<compile_context>
chip_gen: v7x
topology: tpu7x:2x2x1
jax: 0.10.0
libtpu: 0.0.40
codegen_flags: <defaults>
</compile_context>

<pallas_src>
import math

import numpy as np
import jax
import jax.numpy as jnp
from jax import lax
from jax.experimental import pallas as pl
from jax.experimental.pallas import tpu as pltpu


# ----------------------------------------------------------------------------
# Fused forward kernel
# ----------------------------------------------------------------------------
def _convnet_kernel(x_ref, w1_ref, b1_ref, w2_ref, b2_ref,
                    s1e_ref, s1o_ref, r1e_ref, r1o_ref,
                    s2e_ref, s2o_ref, r2e_ref, r2o_ref,
                    wfc1_ref, bfc1_ref, wfc2_ref, bfc2_ref, out_ref):
    f32 = jnp.float32

    def shift_lanes(a, j):
        # Left-rotate lanes by j: out[:, l] = a[:, l + j] (with wrap).  The
        # wrapped/cross-group lanes only land in the unused tail of each
        # (channel, batch) lane group, so they never affect valid outputs.
        if j == 0:
            return a
        return jnp.concatenate([a[:, j:], a[:, :j]], axis=1)

    # ---------------- conv1: 3 -> 3, k=5, valid ----------------
    # x_ref: (32, 192), lane = ci*64 + b*32 + w  (B=2)
    L1 = x_ref.shape[1]            # 192
    G1 = L1 // 3                   # 64  = per-input-channel lane group
    acc1 = [jnp.zeros((28, L1), f32) for _ in range(3)]
    for i in range(5):                                   # kh -> row window
        rows = x_ref[i:i + 28, :]                        # (28, 192)
        for j in range(5):                               # kw -> lane rotate
            patch = shift_lanes(rows, j)                 # (28, 192)
            for co in range(3):
                wrow = w1_ref[co * 25 + i * 5 + j:co * 25 + i * 5 + j + 1, :]
                acc1[co] = acc1[co] + wrow * patch       # lane-replicated weight
    # reduce over the 3 input-channel lane groups, add bias, ReLU
    h1 = []
    for co in range(3):
        a = acc1[co]
        s = a[:, 0:G1] + a[:, G1:2 * G1] + a[:, 2 * G1:3 * G1]   # (28, 64)
        h1.append(jnp.maximum(s + b1_ref[co], 0.0))
    h1cat = jnp.concatenate(h1, axis=1)                  # (28, 192), lane = co*64+b*32+w

    # ---------------- pool1: 2x2 max via 0/1 selection matmuls ----------------
    cmax1 = jnp.maximum(
        jnp.dot(h1cat, s1e_ref[...], preferred_element_type=f32),
        jnp.dot(h1cat, s1o_ref[...], preferred_element_type=f32))   # (28, 84)
    p1 = jnp.maximum(
        jnp.dot(r1e_ref[...], cmax1, preferred_element_type=f32),
        jnp.dot(r1o_ref[...], cmax1, preferred_element_type=f32))   # (14, 84), lane = ci*28+b*14+w

    # ---------------- conv2: 3 -> 5, k=3, valid ----------------
    L2 = p1.shape[1]               # 84
    G2 = L2 // 3                   # 28
    acc2 = [jnp.zeros((12, L2), f32) for _ in range(5)]
    for i in range(3):
        rows2 = p1[i:i + 12, :]                          # (12, 84)
        for j in range(3):
            patch2 = shift_lanes(rows2, j)
            for co in range(5):
                wrow = w2_ref[co * 9 + i * 3 + j:co * 9 + i * 3 + j + 1, :]
                acc2[co] = acc2[co] + wrow * patch2
    h2 = []
    for co in range(5):
        a = acc2[co]
        s = a[:, 0:G2] + a[:, G2:2 * G2] + a[:, 2 * G2:3 * G2]     # (12, 28)
        h2.append(jnp.maximum(s + b2_ref[co], 0.0))
    h2cat = jnp.concatenate(h2, axis=0)                  # (60, 28), row = co*12+oh

    # ---------------- pool2 ----------------
    cmax2 = jnp.maximum(
        jnp.dot(h2cat, s2e_ref[...], preferred_element_type=f32),
        jnp.dot(h2cat, s2o_ref[...], preferred_element_type=f32))   # (60, 12)
    p2 = jnp.maximum(
        jnp.dot(r2e_ref[...], cmax2, preferred_element_type=f32),
        jnp.dot(r2o_ref[...], cmax2, preferred_element_type=f32))   # (32, 12): row=c*6+h (30,31 pad), lane=w*2+b

    # ---------------- fc1 (single K=192 matmul) + ReLU, fc2 ----------------
    # Gather the 6 (32, 2) width-slices into a (192, 2) activation with batch
    # on lanes; wfc1 was host-permuted/padded to match this row order.
    a_fc = jnp.concatenate([p2[:, 2 * w:2 * w + 2] for w in range(6)], axis=0)  # (192, 2)
    z1 = jnp.dot(wfc1_ref[...], a_fc, preferred_element_type=f32) + bfc1_ref[...]
    z1 = jnp.maximum(z1, 0.0)                                                   # (100, 2)
    z2 = jnp.dot(wfc2_ref[...], z1, preferred_element_type=f32) + bfc2_ref[...] # (10, 2)
    out_ref[...] = z2.astype(out_ref.dtype)


# ----------------------------------------------------------------------------
# Host-side wrappers
# ----------------------------------------------------------------------------
def convnet_forward(x_nchw, p):
    """x: (B, 3, 32, 32) float32 NCHW; p: output of prepare_params."""
    B = x_nchw.shape[0]
    assert B == 2, "kernel layout (lane packing / selectors) is built for B=2"
    # Lane-dense input layout: (H, Cin*B*W) with lane = ci*B*32 + b*32 + w.
    xp = jnp.transpose(x_nchw, (2, 1, 0, 3)).reshape(32, 3 * B * 32)
    vmem = pl.BlockSpec(memory_space=pltpu.MemorySpace.VMEM)
    smem = pl.BlockSpec(memory_space=pltpu.MemorySpace.SMEM)
    out_t = pl.pallas_call(
        _convnet_kernel,
        out_shape=jax.ShapeDtypeStruct((10, B), jnp.float32),
        in_specs=[vmem, vmem, smem, vmem, smem,
                  vmem, vmem, vmem, vmem,
                  vmem, vmem, vmem, vmem,
                  vmem, vmem, vmem, vmem],
        out_specs=vmem,
    )(xp, p["w1tab"], p["b1"], p["w2tab"], p["b2"],
      p["s1e"], p["s1o"], p["r1e"], p["r1o"],
      p["s2e"], p["s2o"], p["r2e"], p["r2o"],
      p["wfc1"], p["bfc1"], p["wfc2"], p["bfc2"])
    # Kernel keeps batch on lanes; transpose the tiny (10, B) result back.
    return out_t.T


# ----- 0/1 max-pool selection matrices (host precomputed -> VMEM inputs) -----
def _pool1_col_selectors(B):
    # (3*B*32, 3*B*14): lane co*B*32 + b*32 + (2*w2[+1]) -> co*B*14 + b*14 + w2
    se = np.zeros((3 * B * 32, 3 * B * 14), np.float32)
    so = np.zeros_like(se)
    for co in range(3):
        for b in range(B):
            for w2 in range(14):
                se[co * B * 32 + b * 32 + 2 * w2, co * B * 14 + b * 14 + w2] = 1.0
                so[co * B * 32 + b * 32 + 2 * w2 + 1, co * B * 14 + b * 14 + w2] = 1.0
    return se, so


def _pool1_row_selectors():
    re_ = np.zeros((14, 28), np.float32)
    ro = np.zeros_like(re_)
    for h2 in range(14):
        re_[h2, 2 * h2] = 1.0
        ro[h2, 2 * h2 + 1] = 1.0
    return re_, ro


def _pool2_col_selectors(B):
    # (B*14, 6*B): lane b*14 + (2*w2[+1]) -> w2*B + b   (batch minor, for fc1)
    se = np.zeros((B * 14, 6 * B), np.float32)
    so = np.zeros_like(se)
    for b in range(B):
        for w2 in range(6):
            se[b * 14 + 2 * w2, w2 * B + b] = 1.0
            so[b * 14 + 2 * w2 + 1, w2 * B + b] = 1.0
    return se, so


def _pool2_row_selectors():
    # (32, 60): row c*6+h2 <- row c*12 + (2*h2[+1]); rows 30..31 stay zero (pad
    # to a sublane-aligned 32-row block so the fc1 gather is aligned).
    re_ = np.zeros((32, 60), np.float32)
    ro = np.zeros_like(re_)
    for c in range(5):
        for h2 in range(6):
            re_[c * 6 + h2, c * 12 + 2 * h2] = 1.0
            ro[c * 6 + h2, c * 12 + 2 * h2 + 1] = 1.0
    return re_, ro


def init_params(key):
    """PyTorch-default-style init (uniform +/- 1/sqrt(fan_in)), PyTorch shapes."""
    ks = jax.random.split(key, 8)

    def u(k, shape, fan_in):
        bound = 1.0 / math.sqrt(fan_in)
        return jax.random.uniform(k, shape, jnp.float32, -bound, bound)

    return {
        "w1": u(ks[0], (3, 3, 5, 5), 3 * 5 * 5),
        "b1": u(ks[1], (3,), 3 * 5 * 5),
        "w2": u(ks[2], (5, 3, 3, 3), 3 * 3 * 3),
        "b2": u(ks[3], (5,), 3 * 3 * 3),
        "w_fc1": u(ks[4], (100, 5 * 6 * 6), 5 * 6 * 6),
        "b_fc1": u(ks[5], (100,), 5 * 6 * 6),
        "w_fc2": u(ks[6], (10, 100), 100),
        "b_fc2": u(ks[7], (10,), 100),
    }


def prepare_params(params, batch=2):
    """One-time host-side re-layout (outside jit): lane-replicated conv weight
    rows, fc1 weight permuted/padded to the kernel's activation row order, and
    the pool selection matrices.  The traced forward contains zero parameter
    transposes/reshapes."""
    B = batch
    # Conv weight row tables: one (1, L) lane-replicated row per (co, kh, kw),
    # lane layout ci*(B*W) + b*W + w matching the activation slabs.
    w1 = jnp.transpose(params["w1"], (0, 2, 3, 1))                 # (co, kh, kw, ci)
    w1tab = jnp.repeat(w1, B * 32, axis=-1).reshape(3 * 5 * 5, 3 * B * 32)
    w2 = jnp.transpose(params["w2"], (0, 2, 3, 1))                 # (co, kh, kw, ci)
    w2tab = jnp.repeat(w2, B * 14, axis=-1).reshape(5 * 3 * 3, 3 * B * 14)

    # fc1 weight: columns ordered  kw*32 + (c*6 + h), cols 30/31 of each
    # 32-block are zero (they multiply the zero pad rows of the activation).
    wf = params["w_fc1"].reshape(100, 5, 6, 6)                     # (n, c, h, w)
    wf = jnp.transpose(wf, (0, 3, 1, 2)).reshape(100, 6, 30)       # (n, w, c*6+h)
    wfc1 = jnp.pad(wf, ((0, 0), (0, 0), (0, 2))).reshape(100, 192)

    s1e, s1o = _pool1_col_selectors(B)
    r1e, r1o = _pool1_row_selectors()
    s2e, s2o = _pool2_col_selectors(B)
    r2e, r2o = _pool2_row_selectors()

    return {
        "w1tab": w1tab, "b1": params["b1"],
        "w2tab": w2tab, "b2": params["b2"],
        "s1e": jnp.asarray(s1e), "s1o": jnp.asarray(s1o),
        "r1e": jnp.asarray(r1e), "r1o": jnp.asarray(r1o),
        "s2e": jnp.asarray(s2e), "s2o": jnp.asarray(s2o),
        "r2e": jnp.asarray(r2e), "r2o": jnp.asarray(r2o),
        "wfc1": wfc1, "bfc1": params["b_fc1"].reshape(100, 1),
        "wfc2": params["w_fc2"], "bfc2": params["b_fc2"].reshape(10, 1),
    }


# ----------------------------------------------------------------------------
# Pure-JAX reference (for correctness check only)
# ----------------------------------------------------------------------------
def reference_forward(x, params):
    dn1 = lax.conv_dimension_numbers(x.shape, params["w1"].shape,
                                     ("NCHW", "OIHW", "NCHW"))
    y = lax.conv_general_dilated(x, params["w1"], (1, 1), "VALID",
                                 dimension_numbers=dn1)
    y = jnp.maximum(y + params["b1"][None, :, None, None], 0.0)
    y = lax.reduce_window(y, -jnp.inf, lax.max, (1, 1, 2, 2), (1, 1, 2, 2), "VALID")
    dn2 = lax.conv_dimension_numbers(y.shape, params["w2"].shape,
                                     ("NCHW", "OIHW", "NCHW"))
    y = lax.conv_general_dilated(y, params["w2"], (1, 1), "VALID",
                                 dimension_numbers=dn2)
    y = jnp.maximum(y + params["b2"][None, :, None, None], 0.0)
    y = lax.reduce_window(y, -jnp.inf, lax.max, (1, 1, 2, 2), (1, 1, 2, 2), "VALID")
    y = y.reshape(y.shape[0], -1)
    y = jnp.maximum(y @ params["w_fc1"].T + params["b_fc1"], 0.0)
    return y @ params["w_fc2"].T + params["b_fc2"]


if __name__ == "__main__":
    key = jax.random.PRNGKey(0)
    k_x, k_p = jax.random.split(key)

    # fc1 expects 5*6*6 features -> input must be (B, 3, 32, 32).
    x = jax.random.normal(k_x, (2, 3, 32, 32), dtype=jnp.float32)
    params = init_params(k_p)
    kparams = prepare_params(params, batch=2)

    fwd = jax.jit(convnet_forward)
    out = fwd(x, kparams)
    jax.block_until_ready(out)
    assert out.shape == (2, 10), out.shape

    ref = reference_forward(x, params)
    np.testing.assert_allclose(np.asarray(out), np.asarray(ref),
                               rtol=2e-2, atol=2e-2)
    print("KERNEL_OK")
</pallas_src>

<mosaic_0001>
module attributes {stable_mosaic.version = 11 : i64} {
  func.func @_convnet_kernel(%arg0: memref<32x192xf32, #tpu.memory_space<vmem>>, %arg1: memref<75x192xf32, #tpu.memory_space<vmem>>, %arg2: memref<3xf32, #tpu.memory_space<smem>>, %arg3: memref<45x84xf32, #tpu.memory_space<vmem>>, %arg4: memref<5xf32, #tpu.memory_space<smem>>, %arg5: memref<192x84xf32, #tpu.memory_space<vmem>>, %arg6: memref<192x84xf32, #tpu.memory_space<vmem>>, %arg7: memref<14x28xf32, #tpu.memory_space<vmem>>, %arg8: memref<14x28xf32, #tpu.memory_space<vmem>>, %arg9: memref<28x12xf32, #tpu.memory_space<vmem>>, %arg10: memref<28x12xf32, #tpu.memory_space<vmem>>, %arg11: memref<32x60xf32, #tpu.memory_space<vmem>>, %arg12: memref<32x60xf32, #tpu.memory_space<vmem>>, %arg13: memref<100x192xf32, #tpu.memory_space<vmem>>, %arg14: memref<100x1xf32, #tpu.memory_space<vmem>>, %arg15: memref<10x100xf32, #tpu.memory_space<vmem>>, %arg16: memref<10x1xf32, #tpu.memory_space<vmem>>, %arg17: memref<10x2xf32, #tpu.memory_space<vmem>>) attributes {dimension_semantics = [], scalar_prefetch = 0 : i64, scratch_operands = 0 : i64, tpu.core_type = #tpu.core_type<tc>} {
    %cst = arith.constant 0.000000e+00 : f32
    %0 = vector.broadcast %cst : f32 to vector<28x192xf32>
    %cst_0 = arith.constant 0.000000e+00 : f32
    %1 = vector.broadcast %cst_0 : f32 to vector<28x192xf32>
    %cst_1 = arith.constant 0.000000e+00 : f32
    %2 = vector.broadcast %cst_1 : f32 to vector<28x192xf32>
    %c0 = arith.constant 0 : index
    %c0_2 = arith.constant 0 : index
    %3 = vector.load %arg0[%c0, %c0_2] : memref<32x192xf32, #tpu.memory_space<vmem>>, vector<28x192xf32>
    %c0_3 = arith.constant 0 : index
    %c0_4 = arith.constant 0 : index
    %4 = vector.load %arg1[%c0_3, %c0_4] : memref<75x192xf32, #tpu.memory_space<vmem>>, vector<1x192xf32>
    %5 = vector.broadcast %4 : vector<1x192xf32> to vector<28x192xf32>
    %6 = arith.mulf %5, %3 : vector<28x192xf32>
    %7 = arith.addf %0, %6 : vector<28x192xf32>
    %c25 = arith.constant 25 : index
    %c0_5 = arith.constant 0 : index
    %8 = vector.load %arg1[%c25, %c0_5] : memref<75x192xf32, #tpu.memory_space<vmem>>, vector<1x192xf32>
    %9 = vector.broadcast %8 : vector<1x192xf32> to vector<28x192xf32>
    %10 = arith.mulf %9, %3 : vector<28x192xf32>
    %11 = arith.addf %1, %10 : vector<28x192xf32>
    %c50 = arith.constant 50 : index
    %c0_6 = arith.constant 0 : index
    %12 = vector.load %arg1[%c50, %c0_6] : memref<75x192xf32, #tpu.memory_space<vmem>>, vector<1x192xf32>
    %13 = vector.broadcast %12 : vector<1x192xf32> to vector<28x192xf32>
    %14 = arith.mulf %13, %3 : vector<28x192xf32>
    %15 = arith.addf %2, %14 : vector<28x192xf32>
    %16 = vector.extract_strided_slice %3 {offsets = [0, 1], sizes = [28, 191], strides = [1, 1]} : vector<28x192xf32> to vector<28x191xf32>
    %17 = vector.extract_strided_slice %3 {offsets = [0, 0], sizes = [28, 1], strides = [1, 1]} : vector<28x192xf32> to vector<28x1xf32>
    %18 = tpu.concatenate %16, %17 in 1 : vector<28x191xf32>, vector<28x1xf32> -> vector<28x192xf32>
    %c1 = arith.constant 1 : index
    %c0_7 = arith.constant 0 : index
    %19 = vector.load %arg1[%c1, %c0_7] : memref<75x192xf32, #tpu.memory_space<vmem>>, vector<1x192xf32>
    %20 = vector.broadcast %19 : vector<1x192xf32> to vector<28x192xf32>
    %21 = arith.mulf %20, %18 : vector<28x192xf32>
    %22 = arith.addf %7, %21 : vector<28x192xf32>
    %c26 = arith.constant 26 : index
    %c0_8 = arith.constant 0 : index
    %23 = vector.load %arg1[%c26, %c0_8] : memref<75x192xf32, #tpu.memory_space<vmem>>, vector<1x192xf32>
    %24 = vector.broadcast %23 : vector<1x192xf32> to vector<28x192xf32>
    %25 = arith.mulf %24, %18 : vector<28x192xf32>
    %26 = arith.addf %11, %25 : vector<28x192xf32>
    %c51 = arith.constant 51 : index
    %c0_9 = arith.constant 0 : index
    %27 = vector.load %arg1[%c51, %c0_9] : memref<75x192xf32, #tpu.memory_space<vmem>>, vector<1x192xf32>
    %28 = vector.broadcast %27 : vector<1x192xf32> to vector<28x192xf32>
    %29 = arith.mulf %28, %18 : vector<28x192xf32>
    %30 = arith.addf %15, %29 : vector<28x192xf32>
    %31 = vector.extract_strided_slice %3 {offsets = [0, 2], sizes = [28, 190], strides = [1, 1]} : vector<28x192xf32> to vector<28x190xf32>
    %32 = vector.extract_strided_slice %3 {offsets = [0, 0], sizes = [28, 2], strides = [1, 1]} : vector<28x192xf32> to vector<28x2xf32>
    %33 = tpu.concatenate %31, %32 in 1 : vector<28x190xf32>, vector<28x2xf32> -> vector<28x192xf32>
    %c2 = arith.constant 2 : index
    %c0_10 = arith.constant 0 : index
    %34 = vector.load %arg1[%c2, %c0_10] : memref<75x192xf32, #tpu.memory_space<vmem>>, vector<1x192xf32>
    %35 = vector.broadcast %34 : vector<1x192xf32> to vector<28x192xf32>
    %36 = arith.mulf %35, %33 : vector<28x192xf32>
    %37 = arith.addf %22, %36 : vector<28x192xf32>
    %c27 = arith.constant 27 : index
    %c0_11 = arith.constant 0 : index
    %38 = vector.load %arg1[%c27, %c0_11] : memref<75x192xf32, #tpu.memory_space<vmem>>, vector<1x192xf32>
    %39 = vector.broadcast %38 : vector<1x192xf32> to vector<28x192xf32>
    %40 = arith.mulf %39, %33 : vector<28x192xf32>
    %41 = arith.addf %26, %40 : vector<28x192xf32>
    %c52 = arith.constant 52 : index
    %c0_12 = arith.constant 0 : index
    %42 = vector.load %arg1[%c52, %c0_12] : memref<75x192xf32, #tpu.memory_space<vmem>>, vector<1x192xf32>
    %43 = vector.broadcast %42 : vector<1x192xf32> to vector<28x192xf32>
    %44 = arith.mulf %43, %33 : vector<28x192xf32>
    %45 = arith.addf %30, %44 : vector<28x192xf32>
    %46 = vector.extract_strided_slice %3 {offsets = [0, 3], sizes = [28, 189], strides = [1, 1]} : vector<28x192xf32> to vector<28x189xf32>
    %47 = vector.extract_strided_slice %3 {offsets = [0, 0], sizes = [28, 3], strides = [1, 1]} : vector<28x192xf32> to vector<28x3xf32>
    %48 = tpu.concatenate %46, %47 in 1 : vector<28x189xf32>, vector<28x3xf32> -> vector<28x192xf32>
    %c3 = arith.constant 3 : index
    %c0_13 = arith.constant 0 : index
    %49 = vector.load %arg1[%c3, %c0_13] : memref<75x192xf32, #tpu.memory_space<vmem>>, vector<1x192xf32>
    %50 = vector.broadcast %49 : vector<1x192xf32> to vector<28x192xf32>
    %51 = arith.mulf %50, %48 : vector<28x192xf32>
    %52 = arith.addf %37, %51 : vector<28x192xf32>
    %c28 = arith.constant 28 : index
    %c0_14 = arith.constant 0 : index
    %53 = vector.load %arg1[%c28, %c0_14] : memref<75x192xf32, #tpu.memory_space<vmem>>, vector<1x192xf32>
    %54 = vector.broadcast %53 : vector<1x192xf32> to vector<28x192xf32>
    %55 = arith.mulf %54, %48 : vector<28x192xf32>
    %56 = arith.addf %41, %55 : vector<28x192xf32>
    %c53 = arith.constant 53 : index
    %c0_15 = arith.constant 0 : index
    %57 = vector.load %arg1[%c53, %c0_15] : memref<75x192xf32, #tpu.memory_space<vmem>>, vector<1x192xf32>
    %58 = vector.broadcast %57 : vector<1x192xf32> to vector<28x192xf32>
    %59 = arith.mulf %58, %48 : vector<28x192xf32>
    %60 = arith.addf %45, %59 : vector<28x192xf32>
    %61 = vector.extract_strided_slice %3 {offsets = [0, 4], sizes = [28, 188], strides = [1, 1]} : vector<28x192xf32> to vector<28x188xf32>
    %62 = vector.extract_strided_slice %3 {offsets = [0, 0], sizes = [28, 4], strides = [1, 1]} : vector<28x192xf32> to vector<28x4xf32>
    %63 = tpu.concatenate %61, %62 in 1 : vector<28x188xf32>, vector<28x4xf32> -> vector<28x192xf32>
    %c4 = arith.constant 4 : index
    %c0_16 = arith.constant 0 : index
    %64 = vector.load %arg1[%c4, %c0_16] : memref<75x192xf32, #tpu.memory_space<vmem>>, vector<1x192xf32>
    %65 = vector.broadcast %64 : vector<1x192xf32> to vector<28x192xf32>
    %66 = arith.mulf %65, %63 : vector<28x192xf32>
    %67 = arith.addf %52, %66 : vector<28x192xf32>
    %c29 = arith.constant 29 : index
    %c0_17 = arith.constant 0 : index
    %68 = vector.load %arg1[%c29, %c0_17] : memref<75x192xf32, #tpu.memory_space<vmem>>, vector<1x192xf32>
    %69 = vector.broadcast %68 : vector<1x192xf32> to vector<28x192xf32>
    %70 = arith.mulf %69, %63 : vector<28x192xf32>
    %71 = arith.addf %56, %70 : vector<28x192xf32>
    %c54 = arith.constant 54 : index
    %c0_18 = arith.constant 0 : index
    %72 = vector.load %arg1[%c54, %c0_18] : memref<75x192xf32, #tpu.memory_space<vmem>>, vector<1x192xf32>
    %73 = vector.broadcast %72 : vector<1x192xf32> to vector<28x192xf32>
    %74 = arith.mulf %73, %63 : vector<28x192xf32>
    %75 = arith.addf %60, %74 : vector<28x192xf32>
    %c1_19 = arith.constant 1 : index
    %c0_20 = arith.constant 0 : index
    %76 = vector.load %arg0[%c1_19, %c0_20] : memref<32x192xf32, #tpu.memory_space<vmem>>, vector<28x192xf32>
    %c5 = arith.constant 5 : index
    %c0_21 = arith.constant 0 : index
    %77 = vector.load %arg1[%c5, %c0_21] : memref<75x192xf32, #tpu.memory_space<vmem>>, vector<1x192xf32>
    %78 = vector.broadcast %77 : vector<1x192xf32> to vector<28x192xf32>
    %79 = arith.mulf %78, %76 : vector<28x192xf32>
    %80 = arith.addf %67, %79 : vector<28x192xf32>
    %c30 = arith.constant 30 : index
    %c0_22 = arith.constant 0 : index
    %81 = vector.load %arg1[%c30, %c0_22] : memref<75x192xf32, #tpu.memory_space<vmem>>, vector<1x192xf32>
    %82 = vector.broadcast %81 : vector<1x192xf32> to vector<28x192xf32>
    %83 = arith.mulf %82, %76 : vector<28x192xf32>
    %84 = arith.addf %71, %83 : vector<28x192xf32>
    %c55 = arith.constant 55 : index
    %c0_23 = arith.constant 0 : index
    %85 = vector.load %arg1[%c55, %c0_23] : memref<75x192xf32, #tpu.memory_space<vmem>>, vector<1x192xf32>
    %86 = vector.broadcast %85 : vector<1x192xf32> to vector<28x192xf32>
    %87 = arith.mulf %86, %76 : vector<28x192xf32>
    %88 = arith.addf %75, %87 : vector<28x192xf32>
    %89 = vector.extract_strided_slice %76 {offsets = [0, 1], sizes = [28, 191], strides = [1, 1]} : vector<28x192xf32> to vector<28x191xf32>
    %90 = vector.extract_strided_slice %76 {offsets = [0, 0], sizes = [28, 1], strides = [1, 1]} : vector<28x192xf32> to vector<28x1xf32>
    %91 = tpu.concatenate %89, %90 in 1 : vector<28x191xf32>, vector<28x1xf32> -> vector<28x192xf32>
    %c6 = arith.constant 6 : index
    %c0_24 = arith.constant 0 : index
    %92 = vector.load %arg1[%c6, %c0_24] : memref<75x192xf32, #tpu.memory_space<vmem>>, vector<1x192xf32>
    %93 = vector.broadcast %92 : vector<1x192xf32> to vector<28x192xf32>
    %94 = arith.mulf %93, %91 : vector<28x192xf32>
    %95 = arith.addf %80, %94 : vector<28x192xf32>
    %c31 = arith.constant 31 : index
    %c0_25 = arith.constant 0 : index
    %96 = vector.load %arg1[%c31, %c0_25] : memref<75x192xf32, #tpu.memory_space<vmem>>, vector<1x192xf32>
    %97 = vector.broadcast %96 : vector<1x192xf32> to vector<28x192xf32>
    %98 = arith.mulf %97, %91 : vector<28x192xf32>
    %99 = arith.addf %84, %98 : vector<28x192xf32>
    %c56 = arith.constant 56 : index
    %c0_26 = arith.constant 0 : index
    %100 = vector.load %arg1[%c56, %c0_26] : memref<75x192xf32, #tpu.memory_space<vmem>>, vector<1x192xf32>
    %101 = vector.broadcast %100 : vector<1x192xf32> to vector<28x192xf32>
    %102 = arith.mulf %101, %91 : vector<28x192xf32>
    %103 = arith.addf %88, %102 : vector<28x192xf32>
    %104 = vector.extract_strided_slice %76 {offsets = [0, 2], sizes = [28, 190], strides = [1, 1]} : vector<28x192xf32> to vector<28x190xf32>
    %105 = vector.extract_strided_slice %76 {offsets = [0, 0], sizes = [28, 2], strides = [1, 1]} : vector<28x192xf32> to vector<28x2xf32>
    %106 = tpu.concatenate %104, %105 in 1 : vector<28x190xf32>, vector<28x2xf32> -> vector<28x192xf32>
    %c7 = arith.constant 7 : index
    %c0_27 = arith.constant 0 : index
    %107 = vector.load %arg1[%c7, %c0_27] : memref<75x192xf32, #tpu.memory_space<vmem>>, vector<1x192xf32>
    %108 = vector.broadcast %107 : vector<1x192xf32> to vector<28x192xf32>
    %109 = arith.mulf %108, %106 : vector<28x192xf32>
    %110 = arith.addf %95, %109 : vector<28x192xf32>
    %c32 = arith.constant 32 : index
    %c0_28 = arith.constant 0 : index
    %111 = vector.load %arg1[%c32, %c0_28] : memref<75x192xf32, #tpu.memory_space<vmem>>, vector<1x192xf32>
    %112 = vector.broadcast %111 : vector<1x192xf32> to vector<28x192xf32>
    %113 = arith.mulf %112, %106 : vector<28x192xf32>
    %114 = arith.addf %99, %113 : vector<28x192xf32>
    %c57 = arith.constant 57 : index
    %c0_29 = arith.constant 0 : index
    %115 = vector.load %arg1[%c57, %c0_29] : memref<75x192xf32, #tpu.memory_space<vmem>>, vector<1x192xf32>
    %116 = vector.broadcast %115 : vector<1x192xf32> to vector<28x192xf32>
    %117 = arith.mulf %116, %106 : vector<28x192xf32>
    %118 = arith.addf %103, %117 : vector<28x192xf32>
    %119 = vector.extract_strided_slice %76 {offsets = [0, 3], sizes = [28, 189], strides = [1, 1]} : vector<28x192xf32> to vector<28x189xf32>
    %120 = vector.extract_strided_slice %76 {offsets = [0, 0], sizes = [28, 3], strides = [1, 1]} : vector<28x192xf32> to vector<28x3xf32>
    %121 = tpu.concatenate %119, %120 in 1 : vector<28x189xf32>, vector<28x3xf32> -> vector<28x192xf32>
    %c8 = arith.constant 8 : index
    %c0_30 = arith.constant 0 : index
    %122 = vector.load %arg1[%c8, %c0_30] : memref<75x192xf32, #tpu.memory_space<vmem>>, vector<1x192xf32>
    %123 = vector.broadcast %122 : vector<1x192xf32> to vector<28x192xf32>
    %124 = arith.mulf %123, %121 : vector<28x192xf32>
    %125 = arith.addf %110, %124 : vector<28x192xf32>
    %c33 = arith.constant 33 : index
    %c0_31 = arith.constant 0 : index
    %126 = vector.load %arg1[%c33, %c0_31] : memref<75x192xf32, #tpu.memory_space<vmem>>, vector<1x192xf32>
    %127 = vector.broadcast %126 : vector<1x192xf32> to vector<28x192xf32>
    %128 = arith.mulf %127, %121 : vector<28x192xf32>
    %129 = arith.addf %114, %128 : vector<28x192xf32>
    %c58 = arith.constant 58 : index
    %c0_32 = arith.constant 0 : index
    %130 = vector.load %arg1[%c58, %c0_32] : memref<75x192xf32, #tpu.memory_space<vmem>>, vector<1x192xf32>
    %131 = vector.broadcast %130 : vector<1x192xf32> to vector<28x192xf32>
    %132 = arith.mulf %131, %121 : vector<28x192xf32>
    %133 = arith.addf %118, %132 : vector<28x192xf32>
    %134 = vector.extract_strided_slice %76 {offsets = [0, 4], sizes = [28, 188], strides = [1, 1]} : vector<28x192xf32> to vector<28x188xf32>
    %135 = vector.extract_strided_slice %76 {offsets = [0, 0], sizes = [28, 4], strides = [1, 1]} : vector<28x192xf32> to vector<28x4xf32>
    %136 = tpu.concatenate %134, %135 in 1 : vector<28x188xf32>, vector<28x4xf32> -> vector<28x192xf32>
    %c9 = arith.constant 9 : index
    %c0_33 = arith.constant 0 : index
    %137 = vector.load %arg1[%c9, %c0_33] : memref<75x192xf32, #tpu.memory_space<vmem>>, vector<1x192xf32>
    %138 = vector.broadcast %137 : vector<1x192xf32> to vector<28x192xf32>
    %139 = arith.mulf %138, %136 : vector<28x192xf32>
    %140 = arith.addf %125, %139 : vector<28x192xf32>
    %c34 = arith.constant 34 : index
    %c0_34 = arith.constant 0 : index
    %141 = vector.load %arg1[%c34, %c0_34] : memref<75x192xf32, #tpu.memory_space<vmem>>, vector<1x192xf32>
    %142 = vector.broadcast %141 : vector<1x192xf32> to vector<28x192xf32>
    %143 = arith.mulf %142, %136 : vector<28x192xf32>
    %144 = arith.addf %129, %143 : vector<28x192xf32>
    %c59 = arith.constant 59 : index
    %c0_35 = arith.constant 0 : index
    %145 = vector.load %arg1[%c59, %c0_35] : memref<75x192xf32, #tpu.memory_space<vmem>>, vector<1x192xf32>
    %146 = vector.broadcast %145 : vector<1x192xf32> to vector<28x192xf32>
    %147 = arith.mulf %146, %136 : vector<28x192xf32>
    %148 = arith.addf %133, %147 : vector<28x192xf32>
    %c2_36 = arith.constant 2 : index
    %c0_37 = arith.constant 0 : index
    %149 = vector.load %arg0[%c2_36, %c0_37] : memref<32x192xf32, #tpu.memory_space<vmem>>, vector<28x192xf32>
    %c10 = arith.constant 10 : index
    %c0_38 = arith.constant 0 : index
    %150 = vector.load %arg1[%c10, %c0_38] : memref<75x192xf32, #tpu.memory_space<vmem>>, vector<1x192xf32>
    %151 = vector.broadcast %150 : vector<1x192xf32> to vector<28x192xf32>
    %152 = arith.mulf %151, %149 : vector<28x192xf32>
    %153 = arith.addf %140, %152 : vector<28x192xf32>
    %c35 = arith.constant 35 : index
    %c0_39 = arith.constant 0 : index
    %154 = vector.load %arg1[%c35, %c0_39] : memref<75x192xf32, #tpu.memory_space<vmem>>, vector<1x192xf32>
    %155 = vector.broadcast %154 : vector<1x192xf32> to vector<28x192xf32>
    %156 = arith.mulf %155, %149 : vector<28x192xf32>
    %157 = arith.addf %144, %156 : vector<28x192xf32>
    %c60 = arith.constant 60 : index
    %c0_40 = arith.constant 0 : index
    %158 = vector.load %arg1[%c60, %c0_40] : memref<75x192xf32, #tpu.memory_space<vmem>>, vector<1x192xf32>
    %159 = vector.broadcast %158 : vector<1x192xf32> to vector<28x192xf32>
    %160 = arith.mulf %159, %149 : vector<28x192xf32>
    %161 = arith.addf %148, %160 : vector<28x192xf32>
    %162 = vector.extract_strided_slice %149 {offsets = [0, 1], sizes = [28, 191], strides = [1, 1]} : vector<28x192xf32> to vector<28x191xf32>
    %163 = vector.extract_strided_slice %149 {offsets = [0, 0], sizes = [28, 1], strides = [1, 1]} : vector<28x192xf32> to vector<28x1xf32>
    %164 = tpu.concatenate %162, %163 in 1 : vector<28x191xf32>, vector<28x1xf32> -> vector<28x192xf32>
    %c11 = arith.constant 11 : index
    %c0_41 = arith.constant 0 : index
    %165 = vector.load %arg1[%c11, %c0_41] : memref<75x192xf32, #tpu.memory_space<vmem>>, vector<1x192xf32>
    %166 = vector.broadcast %165 : vector<1x192xf32> to vector<28x192xf32>
    %167 = arith.mulf %166, %164 : vector<28x192xf32>
    %168 = arith.addf %153, %167 : vector<28x192xf32>
    %c36 = arith.constant 36 : index
    %c0_42 = arith.constant 0 : index
    %169 = vector.load %arg1[%c36, %c0_42] : memref<75x192xf32, #tpu.memory_space<vmem>>, vector<1x192xf32>
    %170 = vector.broadcast %169 : vector<1x192xf32> to vector<28x192xf32>
    %171 = arith.mulf %170, %164 : vector<28x192xf32>
    %172 = arith.addf %157, %171 : vector<28x192xf32>
    %c61 = arith.constant 61 : index
    %c0_43 = arith.constant 0 : index
    %173 = vector.load %arg1[%c61, %c0_43] : memref<75x192xf32, #tpu.memory_space<vmem>>, vector<1x192xf32>
    %174 = vector.broadcast %173 : vector<1x192xf32> to vector<28x192xf32>
    %175 = arith.mulf %174, %164 : vector<28x192xf32>
    %176 = arith.addf %161, %175 : vector<28x192xf32>
    %177 = vector.extract_strided_slice %149 {offsets = [0, 2], sizes = [28, 190], strides = [1, 1]} : vector<28x192xf32> to vector<28x190xf32>
    %178 = vector.extract_strided_slice %149 {offsets = [0, 0], sizes = [28, 2], strides = [1, 1]} : vector<28x192xf32> to vector<28x2xf32>
    %179 = tpu.concatenate %177, %178 in 1 : vector<28x190xf32>, vector<28x2xf32> -> vector<28x192xf32>
    %c12 = arith.constant 12 : index
    %c0_44 = arith.constant 0 : index
    %180 = vector.load %arg1[%c12, %c0_44] : memref<75x192xf32, #tpu.memory_space<vmem>>, vector<1x192xf32>
    %181 = vector.broadcast %180 : vector<1x192xf32> to vector<28x192xf32>
    %182 = arith.mulf %181, %179 : vector<28x192xf32>
    %183 = arith.addf %168, %182 : vector<28x192xf32>
    %c37 = arith.constant 37 : index
    %c0_45 = arith.constant 0 : index
    %184 = vector.load %arg1[%c37, %c0_45] : memref<75x192xf32, #tpu.memory_space<vmem>>, vector<1x192xf32>
    %185 = vector.broadcast %184 : vector<1x192xf32> to vector<28x192xf32>
    %186 = arith.mulf %185, %179 : vector<28x192xf32>
    %187 = arith.addf %172, %186 : vector<28x192xf32>
    %c62 = arith.constant 62 : index
    %c0_46 = arith.constant 0 : index
    %188 = vector.load %arg1[%c62, %c0_46] : memref<75x192xf32, #tpu.memory_space<vmem>>, vector<1x192xf32>
    %189 = vector.broadcast %188 : vector<1x192xf32> to vector<28x192xf32>
    %190 = arith.mulf %189, %179 : vector<28x192xf32>
    %191 = arith.addf %176, %190 : vector<28x192xf32>
    %192 = vector.extract_strided_slice %149 {offsets = [0, 3], sizes = [28, 189], strides = [1, 1]} : vector<28x192xf32> to vector<28x189xf32>
    %193 = vector.extract_strided_slice %149 {offsets = [0, 0], sizes = [28, 3], strides = [1, 1]} : vector<28x192xf32> to vector<28x3xf32>
    %194 = tpu.concatenate %192, %193 in 1 : vector<28x189xf32>, vector<28x3xf32> -> vector<28x192xf32>
    %c13 = arith.constant 13 : index
    %c0_47 = arith.constant 0 : index
    %195 = vector.load %arg1[%c13, %c0_47] : memref<75x192xf32, #tpu.memory_space<vmem>>, vector<1x192xf32>
    %196 = vector.broadcast %195 : vector<1x192xf32> to vector<28x192xf32>
    %197 = arith.mulf %196, %194 : vector<28x192xf32>
    %198 = arith.addf %183, %197 : vector<28x192xf32>
    %c38 = arith.constant 38 : index
    %c0_48 = arith.constant 0 : index
    %199 = vector.load %arg1[%c38, %c0_48] : memref<75x192xf32, #tpu.memory_space<vmem>>, vector<1x192xf32>
    %200 = vector.broadcast %199 : vector<1x192xf32> to vector<28x192xf32>
    %201 = arith.mulf %200, %194 : vector<28x192xf32>
    %202 = arith.addf %187, %201 : vector<28x192xf32>
    %c63 = arith.constant 63 : index
    %c0_49 = arith.constant 0 : index
    %203 = vector.load %arg1[%c63, %c0_49] : memref<75x192xf32, #tpu.memory_space<vmem>>, vector<1x192xf32>
    %204 = vector.broadcast %203 : vector<1x192xf32> to vector<28x192xf32>
    %205 = arith.mulf %204, %194 : vector<28x192xf32>
    %206 = arith.addf %191, %205 : vector<28x192xf32>
    %207 = vector.extract_strided_slice %149 {offsets = [0, 4], sizes = [28, 188], strides = [1, 1]} : vector<28x192xf32> to vector<28x188xf32>
    %208 = vector.extract_strided_slice %149 {offsets = [0, 0], sizes = [28, 4], strides = [1, 1]} : vector<28x192xf32> to vector<28x4xf32>
    %209 = tpu.concatenate %207, %208 in 1 : vector<28x188xf32>, vector<28x4xf32> -> vector<28x192xf32>
    %c14 = arith.constant 14 : index
    %c0_50 = arith.constant 0 : index
    %210 = vector.load %arg1[%c14, %c0_50] : memref<75x192xf32, #tpu.memory_space<vmem>>, vector<1x192xf32>
    %211 = vector.broadcast %210 : vector<1x192xf32> to vector<28x192xf32>
    %212 = arith.mulf %211, %209 : vector<28x192xf32>
    %213 = arith.addf %198, %212 : vector<28x192xf32>
    %c39 = arith.constant 39 : index
    %c0_51 = arith.constant 0 : index
    %214 = vector.load %arg1[%c39, %c0_51] : memref<75x192xf32, #tpu.memory_space<vmem>>, vector<1x192xf32>
    %215 = vector.broadcast %214 : vector<1x192xf32> to vector<28x192xf32>
    %216 = arith.mulf %215, %209 : vector<28x192xf32>
    %217 = arith.addf %202, %216 : vector<28x192xf32>
    %c64 = arith.constant 64 : index
    %c0_52 = arith.constant 0 : index
    %218 = vector.load %arg1[%c64, %c0_52] : memref<75x192xf32, #tpu.memory_space<vmem>>, vector<1x192xf32>
    %219 = vector.broadcast %218 : vector<1x192xf32> to vector<28x192xf32>
    %220 = arith.mulf %219, %209 : vector<28x192xf32>
    %221 = arith.addf %206, %220 : vector<28x192xf32>
    %c3_53 = arith.constant 3 : index
    %c0_54 = arith.constant 0 : index
    %222 = vector.load %arg0[%c3_53, %c0_54] : memref<32x192xf32, #tpu.memory_space<vmem>>, vector<28x192xf32>
    %c15 = arith.constant 15 : index
    %c0_55 = arith.constant 0 : index
    %223 = vector.load %arg1[%c15, %c0_55] : memref<75x192xf32, #tpu.memory_space<vmem>>, vector<1x192xf32>
    %224 = vector.broadcast %223 : vector<1x192xf32> to vector<28x192xf32>
    %225 = arith.mulf %224, %222 : vector<28x192xf32>
    %226 = arith.addf %213, %225 : vector<28x192xf32>
    %c40 = arith.constant 40 : index
    %c0_56 = arith.constant 0 : index
    %227 = vector.load %arg1[%c40, %c0_56] : memref<75x192xf32, #tpu.memory_space<vmem>>, vector<1x192xf32>
    %228 = vector.broadcast %227 : vector<1x192xf32> to vector<28x192xf32>
    %229 = arith.mulf %228, %222 : vector<28x192xf32>
    %230 = arith.addf %217, %229 : vector<28x192xf32>
    %c65 = arith.constant 65 : index
    %c0_57 = arith.constant 0 : index
    %231 = vector.load %arg1[%c65, %c0_57] : memref<75x192xf32, #tpu.memory_space<vmem>>, vector<1x192xf32>
    %232 = vector.broadcast %231 : vector<1x192xf32> to vector<28x192xf32>
    %233 = arith.mulf %232, %222 : vector<28x192xf32>
    %234 = arith.addf %221, %233 : vector<28x192xf32>
    %235 = vector.extract_strided_slice %222 {offsets = [0, 1], sizes = [28, 191], strides = [1, 1]} : vector<28x192xf32> to vector<28x191xf32>
    %236 = vector.extract_strided_slice %222 {offsets = [0, 0], sizes = [28, 1], strides = [1, 1]} : vector<28x192xf32> to vector<28x1xf32>
    %237 = tpu.concatenate %235, %236 in 1 : vector<28x191xf32>, vector<28x1xf32> -> vector<28x192xf32>
    %c16 = arith.constant 16 : index
    %c0_58 = arith.constant 0 : index
    %238 = vector.load %arg1[%c16, %c0_58] : memref<75x192xf32, #tpu.memory_space<vmem>>, vector<1x192xf32>
    %239 = vector.broadcast %238 : vector<1x192xf32> to vector<28x192xf32>
    %240 = arith.mulf %239, %237 : vector<28x192xf32>
    %241 = arith.addf %226, %240 : vector<28x192xf32>
    %c41 = arith.constant 41 : index
    %c0_59 = arith.constant 0 : index
    %242 = vector.load %arg1[%c41, %c0_59] : memref<75x192xf32, #tpu.memory_space<vmem>>, vector<1x192xf32>
    %243 = vector.broadcast %242 : vector<1x192xf32> to vector<28x192xf32>
    %244 = arith.mulf %243, %237 : vector<28x192xf32>
    %245 = arith.addf %230, %244 : vector<28x192xf32>
    %c66 = arith.constant 66 : index
    %c0_60 = arith.constant 0 : index
    %246 = vector.load %arg1[%c66, %c0_60] : memref<75x192xf32, #tpu.memory_space<vmem>>, vector<1x192xf32>
    %247 = vector.broadcast %246 : vector<1x192xf32> to vector<28x192xf32>
    %248 = arith.mulf %247, %237 : vector<28x192xf32>
    %249 = arith.addf %234, %248 : vector<28x192xf32>
    %250 = vector.extract_strided_slice %222 {offsets = [0, 2], sizes = [28, 190], strides = [1, 1]} : vector<28x192xf32> to vector<28x190xf32>
    %251 = vector.extract_strided_slice %222 {offsets = [0, 0], sizes = [28, 2], strides = [1, 1]} : vector<28x192xf32> to vector<28x2xf32>
    %252 = tpu.concatenate %250, %251 in 1 : vector<28x190xf32>, vector<28x2xf32> -> vector<28x192xf32>
    %c17 = arith.constant 17 : index
    %c0_61 = arith.constant 0 : index
    %253 = vector.load %arg1[%c17, %c0_61] : memref<75x192xf32, #tpu.memory_space<vmem>>, vector<1x192xf32>
    %254 = vector.broadcast %253 : vector<1x192xf32> to vector<28x192xf32>
    %255 = arith.mulf %254, %252 : vector<28x192xf32>
    %256 = arith.addf %241, %255 : vector<28x192xf32>
    %c42 = arith.constant 42 : index
    %c0_62 = arith.constant 0 : index
    %257 = vector.load %arg1[%c42, %c0_62] : memref<75x192xf32, #tpu.memory_space<vmem>>, vector<1x192xf32>
    %258 = vector.broadcast %257 : vector<1x192xf32> to vector<28x192xf32>
    %259 = arith.mulf %258, %252 : vector<28x192xf32>
    %260 = arith.addf %245, %259 : vector<28x192xf32>
    %c67 = arith.constant 67 : index
    %c0_63 = arith.constant 0 : index
    %261 = vector.load %arg1[%c67, %c0_63] : memref<75x192xf32, #tpu.memory_space<vmem>>, vector<1x192xf32>
    %262 = vector.broadcast %261 : vector<1x192xf32> to vector<28x192xf32>
    %263 = arith.mulf %262, %252 : vector<28x192xf32>
    %264 = arith.addf %249, %263 : vector<28x192xf32>
    %265 = vector.extract_strided_slice %222 {offsets = [0, 3], sizes = [28, 189], strides = [1, 1]} : vector<28x192xf32> to vector<28x189xf32>
    %266 = vector.extract_strided_slice %222 {offsets = [0, 0], sizes = [28, 3], strides = [1, 1]} : vector<28x192xf32> to vector<28x3xf32>
    %267 = tpu.concatenate %265, %266 in 1 : vector<28x189xf32>, vector<28x3xf32> -> vector<28x192xf32>
    %c18 = arith.constant 18 : index
    %c0_64 = arith.constant 0 : index
    %268 = vector.load %arg1[%c18, %c0_64] : memref<75x192xf32, #tpu.memory_space<vmem>>, vector<1x192xf32>
    %269 = vector.broadcast %268 : vector<1x192xf32> to vector<28x192xf32>
    %270 = arith.mulf %269, %267 : vector<28x192xf32>
    %271 = arith.addf %256, %270 : vector<28x192xf32>
    %c43 = arith.constant 43 : index
    %c0_65 = arith.constant 0 : index
    %272 = vector.load %arg1[%c43, %c0_65] : memref<75x192xf32, #tpu.memory_space<vmem>>, vector<1x192xf32>
    %273 = vector.broadcast %272 : vector<1x192xf32> to vector<28x192xf32>
    %274 = arith.mulf %273, %267 : vector<28x192xf32>
    %275 = arith.addf %260, %274 : vector<28x192xf32>
    %c68 = arith.constant 68 : index
    %c0_66 = arith.constant 0 : index
    %276 = vector.load %arg1[%c68, %c0_66] : memref<75x192xf32, #tpu.memory_space<vmem>>, vector<1x192xf32>
    %277 = vector.broadcast %276 : vector<1x192xf32> to vector<28x192xf32>
    %278 = arith.mulf %277, %267 : vector<28x192xf32>
    %279 = arith.addf %264, %278 : vector<28x192xf32>
    %280 = vector.extract_strided_slice %222 {offsets = [0, 4], sizes = [28, 188], strides = [1, 1]} : vector<28x192xf32> to vector<28x188xf32>
    %281 = vector.extract_strided_slice %222 {offsets = [0, 0], sizes = [28, 4], strides = [1, 1]} : vector<28x192xf32> to vector<28x4xf32>
    %282 = tpu.concatenate %280, %281 in 1 : vector<28x188xf32>, vector<28x4xf32> -> vector<28x192xf32>
    %c19 = arith.constant 19 : index
    %c0_67 = arith.constant 0 : index
    %283 = vector.load %arg1[%c19, %c0_67] : memref<75x192xf32, #tpu.memory_space<vmem>>, vector<1x192xf32>
    %284 = vector.broadcast %283 : vector<1x192xf32> to vector<28x192xf32>
    %285 = arith.mulf %284, %282 : vector<28x192xf32>
    %286 = arith.addf %271, %285 : vector<28x192xf32>
    %c44 = arith.constant 44 : index
    %c0_68 = arith.constant 0 : index
    %287 = vector.load %arg1[%c44, %c0_68] : memref<75x192xf32, #tpu.memory_space<vmem>>, vector<1x192xf32>
    %288 = vector.broadcast %287 : vector<1x192xf32> to vector<28x192xf32>
    %289 = arith.mulf %288, %282 : vector<28x192xf32>
    %290 = arith.addf %275, %289 : vector<28x192xf32>
    %c69 = arith.constant 69 : index
    %c0_69 = arith.constant 0 : index
    %291 = vector.load %arg1[%c69, %c0_69] : memref<75x192xf32, #tpu.memory_space<vmem>>, vector<1x192xf32>
    %292 = vector.broadcast %291 : vector<1x192xf32> to vector<28x192xf32>
    %293 = arith.mulf %292, %282 : vector<28x192xf32>
    %294 = arith.addf %279, %293 : vector<28x192xf32>
    %c4_70 = arith.constant 4 : index
    %c0_71 = arith.constant 0 : index
    %295 = vector.load %arg0[%c4_70, %c0_71] : memref<32x192xf32, #tpu.memory_space<vmem>>, vector<28x192xf32>
    %c20 = arith.constant 20 : index
    %c0_72 = arith.constant 0 : index
    %296 = vector.load %arg1[%c20, %c0_72] : memref<75x192xf32, #tpu.memory_space<vmem>>, vector<1x192xf32>
    %297 = vector.broadcast %296 : vector<1x192xf32> to vector<28x192xf32>
    %298 = arith.mulf %297, %295 : vector<28x192xf32>
    %299 = arith.addf %286, %298 : vector<28x192xf32>
    %c45 = arith.constant 45 : index
    %c0_73 = arith.constant 0 : index
    %300 = vector.load %arg1[%c45, %c0_73] : memref<75x192xf32, #tpu.memory_space<vmem>>, vector<1x192xf32>
    %301 = vector.broadcast %300 : vector<1x192xf32> to vector<28x192xf32>
    %302 = arith.mulf %301, %295 : vector<28x192xf32>
    %303 = arith.addf %290, %302 : vector<28x192xf32>
    %c70 = arith.constant 70 : index
    %c0_74 = arith.constant 0 : index
    %304 = vector.load %arg1[%c70, %c0_74] : memref<75x192xf32, #tpu.memory_space<vmem>>, vector<1x192xf32>
    %305 = vector.broadcast %304 : vector<1x192xf32> to vector<28x192xf32>
    %306 = arith.mulf %305, %295 : vector<28x192xf32>
    %307 = arith.addf %294, %306 : vector<28x192xf32>
    %308 = vector.extract_strided_slice %295 {offsets = [0, 1], sizes = [28, 191], strides = [1, 1]} : vector<28x192xf32> to vector<28x191xf32>
    %309 = vector.extract_strided_slice %295 {offsets = [0, 0], sizes = [28, 1], strides = [1, 1]} : vector<28x192xf32> to vector<28x1xf32>
    %310 = tpu.concatenate %308, %309 in 1 : vector<28x191xf32>, vector<28x1xf32> -> vector<28x192xf32>
    %c21 = arith.constant 21 : index
    %c0_75 = arith.constant 0 : index
    %311 = vector.load %arg1[%c21, %c0_75] : memref<75x192xf32, #tpu.memory_space<vmem>>, vector<1x192xf32>
    %312 = vector.broadcast %311 : vector<1x192xf32> to vector<28x192xf32>
    %313 = arith.mulf %312, %310 : vector<28x192xf32>
    %314 = arith.addf %299, %313 : vector<28x192xf32>
    %c46 = arith.constant 46 : index
    %c0_76 = arith.constant 0 : index
    %315 = vector.load %arg1[%c46, %c0_76] : memref<75x192xf32, #tpu.memory_space<vmem>>, vector<1x192xf32>
    %316 = vector.broadcast %315 : vector<1x192xf32> to vector<28x192xf32>
    %317 = arith.mulf %316, %310 : vector<28x192xf32>
    %318 = arith.addf %303, %317 : vector<28x192xf32>
    %c71 = arith.constant 71 : index
    %c0_77 = arith.constant 0 : index
    %319 = vector.load %arg1[%c71, %c0_77] : memref<75x192xf32, #tpu.memory_space<vmem>>, vector<1x192xf32>
    %320 = vector.broadcast %319 : vector<1x192xf32> to vector<28x192xf32>
    %321 = arith.mulf %320, %310 : vector<28x192xf32>
    %322 = arith.addf %307, %321 : vector<28x192xf32>
    %323 = vector.extract_strided_slice %295 {offsets = [0, 2], sizes = [28, 190], strides = [1, 1]} : vector<28x192xf32> to vector<28x190xf32>
    %324 = vector.extract_strided_slice %295 {offsets = [0, 0], sizes = [28, 2], strides = [1, 1]} : vector<28x192xf32> to vector<28x2xf32>
    %325 = tpu.concatenate %323, %324 in 1 : vector<28x190xf32>, vector<28x2xf32> -> vector<28x192xf32>
    %c22 = arith.constant 22 : index
    %c0_78 = arith.constant 0 : index
    %326 = vector.load %arg1[%c22, %c0_78] : memref<75x192xf32, #tpu.memory_space<vmem>>, vector<1x192xf32>
    %327 = vector.broadcast %326 : vector<1x192xf32> to vector<28x192xf32>
    %328 = arith.mulf %327, %325 : vector<28x192xf32>
    %329 = arith.addf %314, %328 : vector<28x192xf32>
    %c47 = arith.constant 47 : index
    %c0_79 = arith.constant 0 : index
    %330 = vector.load %arg1[%c47, %c0_79] : memref<75x192xf32, #tpu.memory_space<vmem>>, vector<1x192xf32>
    %331 = vector.broadcast %330 : vector<1x192xf32> to vector<28x192xf32>
    %332 = arith.mulf %331, %325 : vector<28x192xf32>
    %333 = arith.addf %318, %332 : vector<28x192xf32>
    %c72 = arith.constant 72 : index
    %c0_80 = arith.constant 0 : index
    %334 = vector.load %arg1[%c72, %c0_80] : memref<75x192xf32, #tpu.memory_space<vmem>>, vector<1x192xf32>
    %335 = vector.broadcast %334 : vector<1x192xf32> to vector<28x192xf32>
    %336 = arith.mulf %335, %325 : vector<28x192xf32>
    %337 = arith.addf %322, %336 : vector<28x192xf32>
    %338 = vector.extract_strided_slice %295 {offsets = [0, 3], sizes = [28, 189], strides = [1, 1]} : vector<28x192xf32> to vector<28x189xf32>
    %339 = vector.extract_strided_slice %295 {offsets = [0, 0], sizes = [28, 3], strides = [1, 1]} : vector<28x192xf32> to vector<28x3xf32>
    %340 = tpu.concatenate %338, %339 in 1 : vector<28x189xf32>, vector<28x3xf32> -> vector<28x192xf32>
    %c23 = arith.constant 23 : index
    %c0_81 = arith.constant 0 : index
    %341 = vector.load %arg1[%c23, %c0_81] : memref<75x192xf32, #tpu.memory_space<vmem>>, vector<1x192xf32>
    %342 = vector.broadcast %341 : vector<1x192xf32> to vector<28x192xf32>
    %343 = arith.mulf %342, %340 : vector<28x192xf32>
    %344 = arith.addf %329, %343 : vector<28x192xf32>
    %c48 = arith.constant 48 : index
    %c0_82 = arith.constant 0 : index
    %345 = vector.load %arg1[%c48, %c0_82] : memref<75x192xf32, #tpu.memory_space<vmem>>, vector<1x192xf32>
    %346 = vector.broadcast %345 : vector<1x192xf32> to vector<28x192xf32>
    %347 = arith.mulf %346, %340 : vector<28x192xf32>
    %348 = arith.addf %333, %347 : vector<28x192xf32>
    %c73 = arith.constant 73 : index
    %c0_83 = arith.constant 0 : index
    %349 = vector.load %arg1[%c73, %c0_83] : memref<75x192xf32, #tpu.memory_space<vmem>>, vector<1x192xf32>
    %350 = vector.broadcast %349 : vector<1x192xf32> to vector<28x192xf32>
    %351 = arith.mulf %350, %340 : vector<28x192xf32>
    %352 = arith.addf %337, %351 : vector<28x192xf32>
    %353 = vector.extract_strided_slice %295 {offsets = [0, 4], sizes = [28, 188], strides = [1, 1]} : vector<28x192xf32> to vector<28x188xf32>
    %354 = vector.extract_strided_slice %295 {offsets = [0, 0], sizes = [28, 4], strides = [1, 1]} : vector<28x192xf32> to vector<28x4xf32>
    %355 = tpu.concatenate %353, %354 in 1 : vector<28x188xf32>, vector<28x4xf32> -> vector<28x192xf32>
    %c24 = arith.constant 24 : index
    %c0_84 = arith.constant 0 : index
    %356 = vector.load %arg1[%c24, %c0_84] : memref<75x192xf32, #tpu.memory_space<vmem>>, vector<1x192xf32>
    %357 = vector.broadcast %356 : vector<1x192xf32> to vector<28x192xf32>
    %358 = arith.mulf %357, %355 : vector<28x192xf32>
    %359 = arith.addf %344, %358 : vector<28x192xf32>
    %c49 = arith.constant 49 : index
    %c0_85 = arith.constant 0 : index
    %360 = vector.load %arg1[%c49, %c0_85] : memref<75x192xf32, #tpu.memory_space<vmem>>, vector<1x192xf32>
    %361 = vector.broadcast %360 : vector<1x192xf32> to vector<28x192xf32>
    %362 = arith.mulf %361, %355 : vector<28x192xf32>
    %363 = arith.addf %348, %362 : vector<28x192xf32>
    %c74 = arith.constant 74 : index
    %c0_86 = arith.constant 0 : index
    %364 = vector.load %arg1[%c74, %c0_86] : memref<75x192xf32, #tpu.memory_space<vmem>>, vector<1x192xf32>
    %365 = vector.broadcast %364 : vector<1x192xf32> to vector<28x192xf32>
    %366 = arith.mulf %365, %355 : vector<28x192xf32>
    %367 = arith.addf %352, %366 : vector<28x192xf32>
    %368 = vector.extract_strided_slice %359 {offsets = [0, 0], sizes = [28, 64], strides = [1, 1]} : vector<28x192xf32> to vector<28x64xf32>
    %369 = vector.extract_strided_slice %359 {offsets = [0, 64], sizes = [28, 64], strides = [1, 1]} : vector<28x192xf32> to vector<28x64xf32>
    %370 = arith.addf %368, %369 : vector<28x64xf32>
    %371 = vector.extract_strided_slice %359 {offsets = [0, 128], sizes = [28, 64], strides = [1, 1]} : vector<28x192xf32> to vector<28x64xf32>
    %372 = arith.addf %370, %371 : vector<28x64xf32>
    %c0_87 = arith.constant 0 : index
    %373 = memref.load %arg2[%c0_87] : memref<3xf32, #tpu.memory_space<smem>>
    %374 = vector.broadcast %373 : f32 to vector<28x64xf32>
    %375 = arith.addf %372, %374 : vector<28x64xf32>
    %cst_88 = arith.constant 0.000000e+00 : f32
    %376 = vector.broadcast %cst_88 : f32 to vector<28x64xf32>
    %377 = arith.maximumf %375, %376 : vector<28x64xf32>
    %378 = vector.extract_strided_slice %363 {offsets = [0, 0], sizes = [28, 64], strides = [1, 1]} : vector<28x192xf32> to vector<28x64xf32>
    %379 = vector.extract_strided_slice %363 {offsets = [0, 64], sizes = [28, 64], strides = [1, 1]} : vector<28x192xf32> to vector<28x64xf32>
    %380 = arith.addf %378, %379 : vector<28x64xf32>
    %381 = vector.extract_strided_slice %363 {offsets = [0, 128], sizes = [28, 64], strides = [1, 1]} : vector<28x192xf32> to vector<28x64xf32>
    %382 = arith.addf %380, %381 : vector<28x64xf32>
    %c1_89 = arith.constant 1 : index
    %383 = memref.load %arg2[%c1_89] : memref<3xf32, #tpu.memory_space<smem>>
    %384 = vector.broadcast %383 : f32 to vector<28x64xf32>
    %385 = arith.addf %382, %384 : vector<28x64xf32>
    %cst_90 = arith.constant 0.000000e+00 : f32
    %386 = vector.broadcast %cst_90 : f32 to vector<28x64xf32>
    %387 = arith.maximumf %385, %386 : vector<28x64xf32>
    %388 = vector.extract_strided_slice %367 {offsets = [0, 0], sizes = [28, 64], strides = [1, 1]} : vector<28x192xf32> to vector<28x64xf32>
    %389 = vector.extract_strided_slice %367 {offsets = [0, 64], sizes = [28, 64], strides = [1, 1]} : vector<28x192xf32> to vector<28x64xf32>
    %390 = arith.addf %388, %389 : vector<28x64xf32>
    %391 = vector.extract_strided_slice %367 {offsets = [0, 128], sizes = [28, 64], strides = [1, 1]} : vector<28x192xf32> to vector<28x64xf32>
    %392 = arith.addf %390, %391 : vector<28x64xf32>
    %c2_91 = arith.constant 2 : index
    %393 = memref.load %arg2[%c2_91] : memref<3xf32, #tpu.memory_space<smem>>
    %394 = vector.broadcast %393 : f32 to vector<28x64xf32>
    %395 = arith.addf %392, %394 : vector<28x64xf32>
    %cst_92 = arith.constant 0.000000e+00 : f32
    %396 = vector.broadcast %cst_92 : f32 to vector<28x64xf32>
    %397 = arith.maximumf %395, %396 : vector<28x64xf32>
    %398 = tpu.concatenate %377, %387, %397 in 1 : vector<28x64xf32>, vector<28x64xf32>, vector<28x64xf32> -> vector<28x192xf32>
    %c0_93 = arith.constant 0 : index
    %c0_94 = arith.constant 0 : index
    %399 = vector.load %arg5[%c0_93, %c0_94] : memref<192x84xf32, #tpu.memory_space<vmem>>, vector<192x84xf32>
    %cst_95 = arith.constant dense<0.000000e+00> : vector<28x84xf32>
    %400 = tpu.matmul %398, %399, %cst_95 {dimension_numbers = #tpu.dot_dimension_numbers<[1], [0], [0], [1], [0, 0, 1, 1], [], []>} : vector<28x192xf32>, vector<192x84xf32>, vector<28x84xf32> -> vector<28x84xf32>
    %c0_96 = arith.constant 0 : index
    %c0_97 = arith.constant 0 : index
    %401 = vector.load %arg6[%c0_96, %c0_97] : memref<192x84xf32, #tpu.memory_space<vmem>>, vector<192x84xf32>
    %cst_98 = arith.constant dense<0.000000e+00> : vector<28x84xf32>
    %402 = tpu.matmul %398, %401, %cst_98 {dimension_numbers = #tpu.dot_dimension_numbers<[1], [0], [0], [1], [0, 0, 1, 1], [], []>} : vector<28x192xf32>, vector<192x84xf32>, vector<28x84xf32> -> vector<28x84xf32>
    %403 = arith.maximumf %400, %402 : vector<28x84xf32>
    %c0_99 = arith.constant 0 : index
    %c0_100 = arith.constant 0 : index
    %404 = vector.load %arg7[%c0_99, %c0_100] : memref<14x28xf32, #tpu.memory_space<vmem>>, vector<14x28xf32>
    %cst_101 = arith.constant dense<0.000000e+00> : vector<14x84xf32>
    %405 = tpu.matmul %404, %403, %cst_101 {dimension_numbers = #tpu.dot_dimension_numbers<[1], [0], [0], [1], [0, 0, 1, 1], [], []>} : vector<14x28xf32>, vector<28x84xf32>, vector<14x84xf32> -> vector<14x84xf32>
    %c0_102 = arith.constant 0 : index
    %c0_103 = arith.constant 0 : index
    %406 = vector.load %arg8[%c0_102, %c0_103] : memref<14x28xf32, #tpu.memory_space<vmem>>, vector<14x28xf32>
    %cst_104 = arith.constant dense<0.000000e+00> : vector<14x84xf32>
    %407 = tpu.matmul %406, %403, %cst_104 {dimension_numbers = #tpu.dot_dimension_numbers<[1], [0], [0], [1], [0, 0, 1, 1], [], []>} : vector<14x28xf32>, vector<28x84xf32>, vector<14x84xf32> -> vector<14x84xf32>
    %408 = arith.maximumf %405, %407 : vector<14x84xf32>
    %cst_105 = arith.constant 0.000000e+00 : f32
    %409 = vector.broadcast %cst_105 : f32 to vector<12x84xf32>
    %cst_106 = arith.constant 0.000000e+00 : f32
    %410 = vector.broadcast %cst_106 : f32 to vector<12x84xf32>
    %cst_107 = arith.constant 0.000000e+00 : f32
    %411 = vector.broadcast %cst_107 : f32 to vector<12x84xf32>
    %cst_108 = arith.constant 0.000000e+00 : f32
    %412 = vector.broadcast %cst_108 : f32 to vector<12x84xf32>
    %cst_109 = arith.constant 0.000000e+00 : f32
    %413 = vector.broadcast %cst_109 : f32 to vector<12x84xf32>
    %414 = vector.extract_strided_slice %408 {offsets = [0, 0], sizes = [12, 84], strides = [1, 1]} : vector<14x84xf32> to vector<12x84xf32>
    %c0_110 = arith.constant 0 : index
    %c0_111 = arith.constant 0 : index
    %415 = vector.load %arg3[%c0_110, %c0_111] : memref<45x84xf32, #tpu.memory_space<vmem>>, vector<1x84xf32>
    %416 = vector.broadcast %415 : vector<1x84xf32> to vector<12x84xf32>
    %417 = arith.mulf %416, %414 : vector<12x84xf32>
    %418 = arith.addf %409, %417 : vector<12x84xf32>
    %c9_112 = arith.constant 9 : index
    %c0_113 = arith.constant 0 : index
    %419 = vector.load %arg3[%c9_112, %c0_113] : memref<45x84xf32, #tpu.memory_space<vmem>>, vector<1x84xf32>
    %420 = vector.broadcast %419 : vector<1x84xf32> to vector<12x84xf32>
    %421 = arith.mulf %420, %414 : vector<12x84xf32>
    %422 = arith.addf %410, %421 : vector<12x84xf32>
    %c18_114 = arith.constant 18 : index
    %c0_115 = arith.constant 0 : index
    %423 = vector.load %arg3[%c18_114, %c0_115] : memref<45x84xf32, #tpu.memory_space<vmem>>, vector<1x84xf32>
    %424 = vector.broadcast %423 : vector<1x84xf32> to vector<12x84xf32>
    %425 = arith.mulf %424, %414 : vector<12x84xf32>
    %426 = arith.addf %411, %425 : vector<12x84xf32>
    %c27_116 = arith.constant 27 : index
    %c0_117 = arith.constant 0 : index
    %427 = vector.load %arg3[%c27_116, %c0_117] : memref<45x84xf32, #tpu.memory_space<vmem>>, vector<1x84xf32>
    %428 = vector.broadcast %427 : vector<1x84xf32> to vector<12x84xf32>
    %429 = arith.mulf %428, %414 : vector<12x84xf32>
    %430 = arith.addf %412, %429 : vector<12x84xf32>
    %c36_118 = arith.constant 36 : index
    %c0_119 = arith.constant 0 : index
    %431 = vector.load %arg3[%c36_118, %c0_119] : memref<45x84xf32, #tpu.memory_space<vmem>>, vector<1x84xf32>
    %432 = vector.broadcast %431 : vector<1x84xf32> to vector<12x84xf32>
    %433 = arith.mulf %432, %414 : vector<12x84xf32>
    %434 = arith.addf %413, %433 : vector<12x84xf32>
    %435 = vector.extract_strided_slice %414 {offsets = [0, 1], sizes = [12, 83], strides = [1, 1]} : vector<12x84xf32> to vector<12x83xf32>
    %436 = vector.extract_strided_slice %414 {offsets = [0, 0], sizes = [12, 1], strides = [1, 1]} : vector<12x84xf32> to vector<12x1xf32>
    %437 = tpu.concatenate %435, %436 in 1 : vector<12x83xf32>, vector<12x1xf32> -> vector<12x84xf32>
    %c1_120 = arith.constant 1 : index
    %c0_121 = arith.constant 0 : index
    %438 = vector.load %arg3[%c1_120, %c0_121] : memref<45x84xf32, #tpu.memory_space<vmem>>, vector<1x84xf32>
    %439 = vector.broadcast %438 : vector<1x84xf32> to vector<12x84xf32>
    %440 = arith.mulf %439, %437 : vector<12x84xf32>
    %441 = arith.addf %418, %440 : vector<12x84xf32>
    %c10_122 = arith.constant 10 : index
    %c0_123 = arith.constant 0 : index
    %442 = vector.load %arg3[%c10_122, %c0_123] : memref<45x84xf32, #tpu.memory_space<vmem>>, vector<1x84xf32>
    %443 = vector.broadcast %442 : vector<1x84xf32> to vector<12x84xf32>
    %444 = arith.mulf %443, %437 : vector<12x84xf32>
    %445 = arith.addf %422, %444 : vector<12x84xf32>
    %c19_124 = arith.constant 19 : index
    %c0_125 = arith.constant 0 : index
    %446 = vector.load %arg3[%c19_124, %c0_125] : memref<45x84xf32, #tpu.memory_space<vmem>>, vector<1x84xf32>
    %447 = vector.broadcast %446 : vector<1x84xf32> to vector<12x84xf32>
    %448 = arith.mulf %447, %437 : vector<12x84xf32>
    %449 = arith.addf %426, %448 : vector<12x84xf32>
    %c28_126 = arith.constant 28 : index
    %c0_127 = arith.constant 0 : index
    %450 = vector.load %arg3[%c28_126, %c0_127] : memref<45x84xf32, #tpu.memory_space<vmem>>, vector<1x84xf32>
    %451 = vector.broadcast %450 : vector<1x84xf32> to vector<12x84xf32>
    %452 = arith.mulf %451, %437 : vector<12x84xf32>
    %453 = arith.addf %430, %452 : vector<12x84xf32>
    %c37_128 = arith.constant 37 : index
    %c0_129 = arith.constant 0 : index
    %454 = vector.load %arg3[%c37_128, %c0_129] : memref<45x84xf32, #tpu.memory_space<vmem>>, vector<1x84xf32>
    %455 = vector.broadcast %454 : vector<1x84xf32> to vector<12x84xf32>
    %456 = arith.mulf %455, %437 : vector<12x84xf32>
    %457 = arith.addf %434, %456 : vector<12x84xf32>
    %458 = vector.extract_strided_slice %414 {offsets = [0, 2], sizes = [12, 82], strides = [1, 1]} : vector<12x84xf32> to vector<12x82xf32>
    %459 = vector.extract_strided_slice %414 {offsets = [0, 0], sizes = [12, 2], strides = [1, 1]} : vector<12x84xf32> to vector<12x2xf32>
    %460 = tpu.concatenate %458, %459 in 1 : vector<12x82xf32>, vector<12x2xf32> -> vector<12x84xf32>
    %c2_130 = arith.constant 2 : index
    %c0_131 = arith.constant 0 : index
    %461 = vector.load %arg3[%c2_130, %c0_131] : memref<45x84xf32, #tpu.memory_space<vmem>>, vector<1x84xf32>
    %462 = vector.broadcast %461 : vector<1x84xf32> to vector<12x84xf32>
    %463 = arith.mulf %462, %460 : vector<12x84xf32>
    %464 = arith.addf %441, %463 : vector<12x84xf32>
    %c11_132 = arith.constant 11 : index
    %c0_133 = arith.constant 0 : index
    %465 = vector.load %arg3[%c11_132, %c0_133] : memref<45x84xf32, #tpu.memory_space<vmem>>, vector<1x84xf32>
    %466 = vector.broadcast %465 : vector<1x84xf32> to vector<12x84xf32>
    %467 = arith.mulf %466, %460 : vector<12x84xf32>
    %468 = arith.addf %445, %467 : vector<12x84xf32>
    %c20_134 = arith.constant 20 : index
    %c0_135 = arith.constant 0 : index
    %469 = vector.load %arg3[%c20_134, %c0_135] : memref<45x84xf32, #tpu.memory_space<vmem>>, vector<1x84xf32>
    %470 = vector.broadcast %469 : vector<1x84xf32> to vector<12x84xf32>
    %471 = arith.mulf %470, %460 : vector<12x84xf32>
    %472 = arith.addf %449, %471 : vector<12x84xf32>
    %c29_136 = arith.constant 29 : index
    %c0_137 = arith.constant 0 : index
    %473 = vector.load %arg3[%c29_136, %c0_137] : memref<45x84xf32, #tpu.memory_space<vmem>>, vector<1x84xf32>
    %474 = vector.broadcast %473 : vector<1x84xf32> to vector<12x84xf32>
    %475 = arith.mulf %474, %460 : vector<12x84xf32>
    %476 = arith.addf %453, %475 : vector<12x84xf32>
    %c38_138 = arith.constant 38 : index
    %c0_139 = arith.constant 0 : index
    %477 = vector.load %arg3[%c38_138, %c0_139] : memref<45x84xf32, #tpu.memory_space<vmem>>, vector<1x84xf32>
    %478 = vector.broadcast %477 : vector<1x84xf32> to vector<12x84xf32>
    %479 = arith.mulf %478, %460 : vector<12x84xf32>
    %480 = arith.addf %457, %479 : vector<12x84xf32>
    %481 = vector.extract_strided_slice %408 {offsets = [1, 0], sizes = [12, 84], strides = [1, 1]} : vector<14x84xf32> to vector<12x84xf32>
    %c3_140 = arith.constant 3 : index
    %c0_141 = arith.constant 0 : index
    %482 = vector.load %arg3[%c3_140, %c0_141] : memref<45x84xf32, #tpu.memory_space<vmem>>, vector<1x84xf32>
    %483 = vector.broadcast %482 : vector<1x84xf32> to vector<12x84xf32>
    %484 = arith.mulf %483, %481 : vector<12x84xf32>
    %485 = arith.addf %464, %484 : vector<12x84xf32>
    %c12_142 = arith.constant 12 : index
    %c0_143 = arith.constant 0 : index
    %486 = vector.load %arg3[%c12_142, %c0_143] : memref<45x84xf32, #tpu.memory_space<vmem>>, vector<1x84xf32>
    %487 = vector.broadcast %486 : vector<1x84xf32> to vector<12x84xf32>
    %488 = arith.mulf %487, %481 : vector<12x84xf32>
    %489 = arith.addf %468, %488 : vector<12x84xf32>
    %c21_144 = arith.constant 21 : index
    %c0_145 = arith.constant 0 : index
    %490 = vector.load %arg3[%c21_144, %c0_145] : memref<45x84xf32, #tpu.memory_space<vmem>>, vector<1x84xf32>
    %491 = vector.broadcast %490 : vector<1x84xf32> to vector<12x84xf32>
    %492 = arith.mulf %491, %481 : vector<12x84xf32>
    %493 = arith.addf %472, %492 : vector<12x84xf32>
    %c30_146 = arith.constant 30 : index
    %c0_147 = arith.constant 0 : index
    %494 = vector.load %arg3[%c30_146, %c0_147] : memref<45x84xf32, #tpu.memory_space<vmem>>, vector<1x84xf32>
    %495 = vector.broadcast %494 : vector<1x84xf32> to vector<12x84xf32>
    %496 = arith.mulf %495, %481 : vector<12x84xf32>
    %497 = arith.addf %476, %496 : vector<12x84xf32>
    %c39_148 = arith.constant 39 : index
    %c0_149 = arith.constant 0 : index
    %498 = vector.load %arg3[%c39_148, %c0_149] : memref<45x84xf32, #tpu.memory_space<vmem>>, vector<1x84xf32>
    %499 = vector.broadcast %498 : vector<1x84xf32> to vector<12x84xf32>
    %500 = arith.mulf %499, %481 : vector<12x84xf32>
    %501 = arith.addf %480, %500 : vector<12x84xf32>
    %502 = vector.extract_strided_slice %481 {offsets = [0, 1], sizes = [12, 83], strides = [1, 1]} : vector<12x84xf32> to vector<12x83xf32>
    %503 = vector.extract_strided_slice %481 {offsets = [0, 0], sizes = [12, 1], strides = [1, 1]} : vector<12x84xf32> to vector<12x1xf32>
    %504 = tpu.concatenate %502, %503 in 1 : vector<12x83xf32>, vector<12x1xf32> -> vector<12x84xf32>
    %c4_150 = arith.constant 4 : index
    %c0_151 = arith.constant 0 : index
    %505 = vector.load %arg3[%c4_150, %c0_151] : memref<45x84xf32, #tpu.memory_space<vmem>>, vector<1x84xf32>
    %506 = vector.broadcast %505 : vector<1x84xf32> to vector<12x84xf32>
    %507 = arith.mulf %506, %504 : vector<12x84xf32>
    %508 = arith.addf %485, %507 : vector<12x84xf32>
    %c13_152 = arith.constant 13 : index
    %c0_153 = arith.constant 0 : index
    %509 = vector.load %arg3[%c13_152, %c0_153] : memref<45x84xf32, #tpu.memory_space<vmem>>, vector<1x84xf32>
    %510 = vector.broadcast %509 : vector<1x84xf32> to vector<12x84xf32>
    %511 = arith.mulf %510, %504 : vector<12x84xf32>
    %512 = arith.addf %489, %511 : vector<12x84xf32>
    %c22_154 = arith.constant 22 : index
    %c0_155 = arith.constant 0 : index
    %513 = vector.load %arg3[%c22_154, %c0_155] : memref<45x84xf32, #tpu.memory_space<vmem>>, vector<1x84xf32>
    %514 = vector.broadcast %513 : vector<1x84xf32> to vector<12x84xf32>
    %515 = arith.mulf %514, %504 : vector<12x84xf32>
    %516 = arith.addf %493, %515 : vector<12x84xf32>
    %c31_156 = arith.constant 31 : index
    %c0_157 = arith.constant 0 : index
    %517 = vector.load %arg3[%c31_156, %c0_157] : memref<45x84xf32, #tpu.memory_space<vmem>>, vector<1x84xf32>
    %518 = vector.broadcast %517 : vector<1x84xf32> to vector<12x84xf32>
    %519 = arith.mulf %518, %504 : vector<12x84xf32>
    %520 = arith.addf %497, %519 : vector<12x84xf32>
    %c40_158 = arith.constant 40 : index
    %c0_159 = arith.constant 0 : index
    %521 = vector.load %arg3[%c40_158, %c0_159] : memref<45x84xf32, #tpu.memory_space<vmem>>, vector<1x84xf32>
    %522 = vector.broadcast %521 : vector<1x84xf32> to vector<12x84xf32>
    %523 = arith.mulf %522, %504 : vector<12x84xf32>
    %524 = arith.addf %501, %523 : vector<12x84xf32>
    %525 = vector.extract_strided_slice %481 {offsets = [0, 2], sizes = [12, 82], strides = [1, 1]} : vector<12x84xf32> to vector<12x82xf32>
    %526 = vector.extract_strided_slice %481 {offsets = [0, 0], sizes = [12, 2], strides = [1, 1]} : vector<12x84xf32> to vector<12x2xf32>
    %527 = tpu.concatenate %525, %526 in 1 : vector<12x82xf32>, vector<12x2xf32> -> vector<12x84xf32>
    %c5_160 = arith.constant 5 : index
    %c0_161 = arith.constant 0 : index
    %528 = vector.load %arg3[%c5_160, %c0_161] : memref<45x84xf32, #tpu.memory_space<vmem>>, vector<1x84xf32>
    %529 = vector.broadcast %528 : vector<1x84xf32> to vector<12x84xf32>
    %530 = arith.mulf %529, %527 : vector<12x84xf32>
    %531 = arith.addf %508, %530 : vector<12x84xf32>
    %c14_162 = arith.constant 14 : index
    %c0_163 = arith.constant 0 : index
    %532 = vector.load %arg3[%c14_162, %c0_163] : memref<45x84xf32, #tpu.memory_space<vmem>>, vector<1x84xf32>
    %533 = vector.broadcast %532 : vector<1x84xf32> to vector<12x84xf32>
    %534 = arith.mulf %533, %527 : vector<12x84xf32>
    %535 = arith.addf %512, %534 : vector<12x84xf32>
    %c23_164 = arith.constant 23 : index
    %c0_165 = arith.constant 0 : index
    %536 = vector.load %arg3[%c23_164, %c0_165] : memref<45x84xf32, #tpu.memory_space<vmem>>, vector<1x84xf32>
    %537 = vector.broadcast %536 : vector<1x84xf32> to vector<12x84xf32>
    %538 = arith.mulf %537, %527 : vector<12x84xf32>
    %539 = arith.addf %516, %538 : vector<12x84xf32>
    %c32_166 = arith.constant 32 : index
    %c0_167 = arith.constant 0 : index
    %540 = vector.load %arg3[%c32_166, %c0_167] : memref<45x84xf32, #tpu.memory_space<vmem>>, vector<1x84xf32>
    %541 = vector.broadcast %540 : vector<1x84xf32> to vector<12x84xf32>
    %542 = arith.mulf %541, %527 : vector<12x84xf32>
    %543 = arith.addf %520, %542 : vector<12x84xf32>
    %c41_168 = arith.constant 41 : index
    %c0_169 = arith.constant 0 : index
    %544 = vector.load %arg3[%c41_168, %c0_169] : memref<45x84xf32, #tpu.memory_space<vmem>>, vector<1x84xf32>
    %545 = vector.broadcast %544 : vector<1x84xf32> to vector<12x84xf32>
    %546 = arith.mulf %545, %527 : vector<12x84xf32>
    %547 = arith.addf %524, %546 : vector<12x84xf32>
    %548 = vector.extract_strided_slice %408 {offsets = [2, 0], sizes = [12, 84], strides = [1, 1]} : vector<14x84xf32> to vector<12x84xf32>
    %c6_170 = arith.constant 6 : index
    %c0_171 = arith.constant 0 : index
    %549 = vector.load %arg3[%c6_170, %c0_171] : memref<45x84xf32, #tpu.memory_space<vmem>>, vector<1x84xf32>
    %550 = vector.broadcast %549 : vector<1x84xf32> to vector<12x84xf32>
    %551 = arith.mulf %550, %548 : vector<12x84xf32>
    %552 = arith.addf %531, %551 : vector<12x84xf32>
    %c15_172 = arith.constant 15 : index
    %c0_173 = arith.constant 0 : index
    %553 = vector.load %arg3[%c15_172, %c0_173] : memref<45x84xf32, #tpu.memory_space<vmem>>, vector<1x84xf32>
    %554 = vector.broadcast %553 : vector<1x84xf32> to vector<12x84xf32>
    %555 = arith.mulf %554, %548 : vector<12x84xf32>
    %556 = arith.addf %535, %555 : vector<12x84xf32>
    %c24_174 = arith.constant 24 : index
    %c0_175 = arith.constant 0 : index
    %557 = vector.load %arg3[%c24_174, %c0_175] : memref<45x84xf32, #tpu.memory_space<vmem>>, vector<1x84xf32>
    %558 = vector.broadcast %557 : vector<1x84xf32> to vector<12x84xf32>
    %559 = arith.mulf %558, %548 : vector<12x84xf32>
    %560 = arith.addf %539, %559 : vector<12x84xf32>
    %c33_176 = arith.constant 33 : index
    %c0_177 = arith.constant 0 : index
    %561 = vector.load %arg3[%c33_176, %c0_177] : memref<45x84xf32, #tpu.memory_space<vmem>>, vector<1x84xf32>
    %562 = vector.broadcast %561 : vector<1x84xf32> to vector<12x84xf32>
    %563 = arith.mulf %562, %548 : vector<12x84xf32>
    %564 = arith.addf %543, %563 : vector<12x84xf32>
    %c42_178 = arith.constant 42 : index
    %c0_179 = arith.constant 0 : index
    %565 = vector.load %arg3[%c42_178, %c0_179] : memref<45x84xf32, #tpu.memory_space<vmem>>, vector<1x84xf32>
    %566 = vector.broadcast %565 : vector<1x84xf32> to vector<12x84xf32>
    %567 = arith.mulf %566, %548 : vector<12x84xf32>
    %568 = arith.addf %547, %567 : vector<12x84xf32>
    %569 = vector.extract_strided_slice %548 {offsets = [0, 1], sizes = [12, 83], strides = [1, 1]} : vector<12x84xf32> to vector<12x83xf32>
    %570 = vector.extract_strided_slice %548 {offsets = [0, 0], sizes = [12, 1], strides = [1, 1]} : vector<12x84xf32> to vector<12x1xf32>
    %571 = tpu.concatenate %569, %570 in 1 : vector<12x83xf32>, vector<12x1xf32> -> vector<12x84xf32>
    %c7_180 = arith.constant 7 : index
    %c0_181 = arith.constant 0 : index
    %572 = vector.load %arg3[%c7_180, %c0_181] : memref<45x84xf32, #tpu.memory_space<vmem>>, vector<1x84xf32>
    %573 = vector.broadcast %572 : vector<1x84xf32> to vector<12x84xf32>
    %574 = arith.mulf %573, %571 : vector<12x84xf32>
    %575 = arith.addf %552, %574 : vector<12x84xf32>
    %c16_182 = arith.constant 16 : index
    %c0_183 = arith.constant 0 : index
    %576 = vector.load %arg3[%c16_182, %c0_183] : memref<45x84xf32, #tpu.memory_space<vmem>>, vector<1x84xf32>
    %577 = vector.broadcast %576 : vector<1x84xf32> to vector<12x84xf32>
    %578 = arith.mulf %577, %571 : vector<12x84xf32>
    %579 = arith.addf %556, %578 : vector<12x84xf32>
    %c25_184 = arith.constant 25 : index
    %c0_185 = arith.constant 0 : index
    %580 = vector.load %arg3[%c25_184, %c0_185] : memref<45x84xf32, #tpu.memory_space<vmem>>, vector<1x84xf32>
    %581 = vector.broadcast %580 : vector<1x84xf32> to vector<12x84xf32>
    %582 = arith.mulf %581, %571 : vector<12x84xf32>
    %583 = arith.addf %560, %582 : vector<12x84xf32>
    %c34_186 = arith.constant 34 : index
    %c0_187 = arith.constant 0 : index
    %584 = vector.load %arg3[%c34_186, %c0_187] : memref<45x84xf32, #tpu.memory_space<vmem>>, vector<1x84xf32>
    %585 = vector.broadcast %584 : vector<1x84xf32> to vector<12x84xf32>
    %586 = arith.mulf %585, %571 : vector<12x84xf32>
    %587 = arith.addf %564, %586 : vector<12x84xf32>
    %c43_188 = arith.constant 43 : index
    %c0_189 = arith.constant 0 : index
    %588 = vector.load %arg3[%c43_188, %c0_189] : memref<45x84xf32, #tpu.memory_space<vmem>>, vector<1x84xf32>
    %589 = vector.broadcast %588 : vector<1x84xf32> to vector<12x84xf32>
    %590 = arith.mulf %589, %571 : vector<12x84xf32>
    %591 = arith.addf %568, %590 : vector<12x84xf32>
    %592 = vector.extract_strided_slice %548 {offsets = [0, 2], sizes = [12, 82], strides = [1, 1]} : vector<12x84xf32> to vector<12x82xf32>
    %593 = vector.extract_strided_slice %548 {offsets = [0, 0], sizes = [12, 2], strides = [1, 1]} : vector<12x84xf32> to vector<12x2xf32>
    %594 = tpu.concatenate %592, %593 in 1 : vector<12x82xf32>, vector<12x2xf32> -> vector<12x84xf32>
    %c8_190 = arith.constant 8 : index
    %c0_191 = arith.constant 0 : index
    %595 = vector.load %arg3[%c8_190, %c0_191] : memref<45x84xf32, #tpu.memory_space<vmem>>, vector<1x84xf32>
    %596 = vector.broadcast %595 : vector<1x84xf32> to vector<12x84xf32>
    %597 = arith.mulf %596, %594 : vector<12x84xf32>
    %598 = arith.addf %575, %597 : vector<12x84xf32>
    %c17_192 = arith.constant 17 : index
    %c0_193 = arith.constant 0 : index
    %599 = vector.load %arg3[%c17_192, %c0_193] : memref<45x84xf32, #tpu.memory_space<vmem>>, vector<1x84xf32>
    %600 = vector.broadcast %599 : vector<1x84xf32> to vector<12x84xf32>
    %601 = arith.mulf %600, %594 : vector<12x84xf32>
    %602 = arith.addf %579, %601 : vector<12x84xf32>
    %c26_194 = arith.constant 26 : index
    %c0_195 = arith.constant 0 : index
    %603 = vector.load %arg3[%c26_194, %c0_195] : memref<45x84xf32, #tpu.memory_space<vmem>>, vector<1x84xf32>
    %604 = vector.broadcast %603 : vector<1x84xf32> to vector<12x84xf32>
    %605 = arith.mulf %604, %594 : vector<12x84xf32>
    %606 = arith.addf %583, %605 : vector<12x84xf32>
    %c35_196 = arith.constant 35 : index
    %c0_197 = arith.constant 0 : index
    %607 = vector.load %arg3[%c35_196, %c0_197] : memref<45x84xf32, #tpu.memory_space<vmem>>, vector<1x84xf32>
    %608 = vector.broadcast %607 : vector<1x84xf32> to vector<12x84xf32>
    %609 = arith.mulf %608, %594 : vector<12x84xf32>
    %610 = arith.addf %587, %609 : vector<12x84xf32>
    %c44_198 = arith.constant 44 : index
    %c0_199 = arith.constant 0 : index
    %611 = vector.load %arg3[%c44_198, %c0_199] : memref<45x84xf32, #tpu.memory_space<vmem>>, vector<1x84xf32>
    %612 = vector.broadcast %611 : vector<1x84xf32> to vector<12x84xf32>
    %613 = arith.mulf %612, %594 : vector<12x84xf32>
    %614 = arith.addf %591, %613 : vector<12x84xf32>
    %615 = vector.extract_strided_slice %598 {offsets = [0, 0], sizes = [12, 28], strides = [1, 1]} : vector<12x84xf32> to vector<12x28xf32>
    %616 = vector.extract_strided_slice %598 {offsets = [0, 28], sizes = [12, 28], strides = [1, 1]} : vector<12x84xf32> to vector<12x28xf32>
    %617 = arith.addf %615, %616 : vector<12x28xf32>
    %618 = vector.extract_strided_slice %598 {offsets = [0, 56], sizes = [12, 28], strides = [1, 1]} : vector<12x84xf32> to vector<12x28xf32>
    %619 = arith.addf %617, %618 : vector<12x28xf32>
    %c0_200 = arith.constant 0 : index
    %620 = memref.load %arg4[%c0_200] : memref<5xf32, #tpu.memory_space<smem>>
    %621 = vector.broadcast %620 : f32 to vector<12x28xf32>
    %622 = arith.addf %619, %621 : vector<12x28xf32>
    %cst_201 = arith.constant 0.000000e+00 : f32
    %623 = vector.broadcast %cst_201 : f32 to vector<12x28xf32>
    %624 = arith.maximumf %622, %623 : vector<12x28xf32>
    %625 = vector.extract_strided_slice %602 {offsets = [0, 0], sizes = [12, 28], strides = [1, 1]} : vector<12x84xf32> to vector<12x28xf32>
    %626 = vector.extract_strided_slice %602 {offsets = [0, 28], sizes = [12, 28], strides = [1, 1]} : vector<12x84xf32> to vector<12x28xf32>
    %627 = arith.addf %625, %626 : vector<12x28xf32>
    %628 = vector.extract_strided_slice %602 {offsets = [0, 56], sizes = [12, 28], strides = [1, 1]} : vector<12x84xf32> to vector<12x28xf32>
    %629 = arith.addf %627, %628 : vector<12x28xf32>
    %c1_202 = arith.constant 1 : index
    %630 = memref.load %arg4[%c1_202] : memref<5xf32, #tpu.memory_space<smem>>
    %631 = vector.broadcast %630 : f32 to vector<12x28xf32>
    %632 = arith.addf %629, %631 : vector<12x28xf32>
    %cst_203 = arith.constant 0.000000e+00 : f32
    %633 = vector.broadcast %cst_203 : f32 to vector<12x28xf32>
    %634 = arith.maximumf %632, %633 : vector<12x28xf32>
    %635 = vector.extract_strided_slice %606 {offsets = [0, 0], sizes = [12, 28], strides = [1, 1]} : vector<12x84xf32> to vector<12x28xf32>
    %636 = vector.extract_strided_slice %606 {offsets = [0, 28], sizes = [12, 28], strides = [1, 1]} : vector<12x84xf32> to vector<12x28xf32>
    %637 = arith.addf %635, %636 : vector<12x28xf32>
    %638 = vector.extract_strided_slice %606 {offsets = [0, 56], sizes = [12, 28], strides = [1, 1]} : vector<12x84xf32> to vector<12x28xf32>
    %639 = arith.addf %637, %638 : vector<12x28xf32>
    %c2_204 = arith.constant 2 : index
    %640 = memref.load %arg4[%c2_204] : memref<5xf32, #tpu.memory_space<smem>>
    %641 = vector.broadcast %640 : f32 to vector<12x28xf32>
    %642 = arith.addf %639, %641 : vector<12x28xf32>
    %cst_205 = arith.constant 0.000000e+00 : f32
    %643 = vector.broadcast %cst_205 : f32 to vector<12x28xf32>
    %644 = arith.maximumf %642, %643 : vector<12x28xf32>
    %645 = vector.extract_strided_slice %610 {offsets = [0, 0], sizes = [12, 28], strides = [1, 1]} : vector<12x84xf32> to vector<12x28xf32>
    %646 = vector.extract_strided_slice %610 {offsets = [0, 28], sizes = [12, 28], strides = [1, 1]} : vector<12x84xf32> to vector<12x28xf32>
    %647 = arith.addf %645, %646 : vector<12x28xf32>
    %648 = vector.extract_strided_slice %610 {offsets = [0, 56], sizes = [12, 28], strides = [1, 1]} : vector<12x84xf32> to vector<12x28xf32>
    %649 = arith.addf %647, %648 : vector<12x28xf32>
    %c3_206 = arith.constant 3 : index
    %650 = memref.load %arg4[%c3_206] : memref<5xf32, #tpu.memory_space<smem>>
    %651 = vector.broadcast %650 : f32 to vector<12x28xf32>
    %652 = arith.addf %649, %651 : vector<12x28xf32>
    %cst_207 = arith.constant 0.000000e+00 : f32
    %653 = vector.broadcast %cst_207 : f32 to vector<12x28xf32>
    %654 = arith.maximumf %652, %653 : vector<12x28xf32>
    %655 = vector.extract_strided_slice %614 {offsets = [0, 0], sizes = [12, 28], strides = [1, 1]} : vector<12x84xf32> to vector<12x28xf32>
    %656 = vector.extract_strided_slice %614 {offsets = [0, 28], sizes = [12, 28], strides = [1, 1]} : vector<12x84xf32> to vector<12x28xf32>
    %657 = arith.addf %655, %656 : vector<12x28xf32>
    %658 = vector.extract_strided_slice %614 {offsets = [0, 56], sizes = [12, 28], strides = [1, 1]} : vector<12x84xf32> to vector<12x28xf32>
    %659 = arith.addf %657, %658 : vector<12x28xf32>
    %c4_208 = arith.constant 4 : index
    %660 = memref.load %arg4[%c4_208] : memref<5xf32, #tpu.memory_space<smem>>
    %661 = vector.broadcast %660 : f32 to vector<12x28xf32>
    %662 = arith.addf %659, %661 : vector<12x28xf32>
    %cst_209 = arith.constant 0.000000e+00 : f32
    %663 = vector.broadcast %cst_209 : f32 to vector<12x28xf32>
    %664 = arith.maximumf %662, %663 : vector<12x28xf32>
    %665 = tpu.concatenate %624, %634, %644, %654, %664 in 0 : vector<12x28xf32>, vector<12x28xf32>, vector<12x28xf32>, vector<12x28xf32>, vector<12x28xf32> -> vector<60x28xf32>
    %c0_210 = arith.constant 0 : index
    %c0_211 = arith.constant 0 : index
    %666 = vector.load %arg9[%c0_210, %c0_211] : memref<28x12xf32, #tpu.memory_space<vmem>>, vector<28x12xf32>
    %cst_212 = arith.constant dense<0.000000e+00> : vector<60x12xf32>
    %667 = tpu.matmul %665, %666, %cst_212 {dimension_numbers = #tpu.dot_dimension_numbers<[1], [0], [0], [1], [0, 0, 1, 1], [], []>} : vector<60x28xf32>, vector<28x12xf32>, vector<60x12xf32> -> vector<60x12xf32>
    %c0_213 = arith.constant 0 : index
    %c0_214 = arith.constant 0 : index
    %668 = vector.load %arg10[%c0_213, %c0_214] : memref<28x12xf32, #tpu.memory_space<vmem>>, vector<28x12xf32>
    %cst_215 = arith.constant dense<0.000000e+00> : vector<60x12xf32>
    %669 = tpu.matmul %665, %668, %cst_215 {dimension_numbers = #tpu.dot_dimension_numbers<[1], [0], [0], [1], [0, 0, 1, 1], [], []>} : vector<60x28xf32>, vector<28x12xf32>, vector<60x12xf32> -> vector<60x12xf32>
    %670 = arith.maximumf %667, %669 : vector<60x12xf32>
    %c0_216 = arith.constant 0 : index
    %c0_217 = arith.constant 0 : index
    %671 = vector.load %arg11[%c0_216, %c0_217] : memref<32x60xf32, #tpu.memory_space<vmem>>, vector<32x60xf32>
    %cst_218 = arith.constant dense<0.000000e+00> : vector<32x12xf32>
    %672 = tpu.matmul %671, %670, %cst_218 {dimension_numbers = #tpu.dot_dimension_numbers<[1], [0], [0], [1], [0, 0, 1, 1], [], []>} : vector<32x60xf32>, vector<60x12xf32>, vector<32x12xf32> -> vector<32x12xf32>
    %c0_219 = arith.constant 0 : index
    %c0_220 = arith.constant 0 : index
    %673 = vector.load %arg12[%c0_219, %c0_220] : memref<32x60xf32, #tpu.memory_space<vmem>>, vector<32x60xf32>
    %cst_221 = arith.constant dense<0.000000e+00> : vector<32x12xf32>
    %674 = tpu.matmul %673, %670, %cst_221 {dimension_numbers = #tpu.dot_dimension_numbers<[1], [0], [0], [1], [0, 0, 1, 1], [], []>} : vector<32x60xf32>, vector<60x12xf32>, vector<32x12xf32> -> vector<32x12xf32>
    %675 = arith.maximumf %672, %674 : vector<32x12xf32>
    %676 = vector.extract_strided_slice %675 {offsets = [0, 0], sizes = [32, 2], strides = [1, 1]} : vector<32x12xf32> to vector<32x2xf32>
    %677 = vector.extract_strided_slice %675 {offsets = [0, 2], sizes = [32, 2], strides = [1, 1]} : vector<32x12xf32> to vector<32x2xf32>
    %678 = vector.extract_strided_slice %675 {offsets = [0, 4], sizes = [32, 2], strides = [1, 1]} : vector<32x12xf32> to vector<32x2xf32>
    %679 = vector.extract_strided_slice %675 {offsets = [0, 6], sizes = [32, 2], strides = [1, 1]} : vector<32x12xf32> to vector<32x2xf32>
    %680 = vector.extract_strided_slice %675 {offsets = [0, 8], sizes = [32, 2], strides = [1, 1]} : vector<32x12xf32> to vector<32x2xf32>
    %681 = vector.extract_strided_slice %675 {offsets = [0, 10], sizes = [32, 2], strides = [1, 1]} : vector<32x12xf32> to vector<32x2xf32>
    %682 = tpu.concatenate %676, %677, %678, %679, %680, %681 in 0 : vector<32x2xf32>, vector<32x2xf32>, vector<32x2xf32>, vector<32x2xf32>, vector<32x2xf32>, vector<32x2xf32> -> vector<192x2xf32>
    %c0_222 = arith.constant 0 : index
    %c0_223 = arith.constant 0 : index
    %683 = vector.load %arg13[%c0_222, %c0_223] : memref<100x192xf32, #tpu.memory_space<vmem>>, vector<100x192xf32>
    %cst_224 = arith.constant dense<0.000000e+00> : vector<100x2xf32>
    %684 = tpu.matmul %683, %682, %cst_224 {dimension_numbers = #tpu.dot_dimension_numbers<[1], [0], [0], [1], [0, 0, 1, 1], [], []>} : vector<100x192xf32>, vector<192x2xf32>, vector<100x2xf32> -> vector<100x2xf32>
    %c0_225 = arith.constant 0 : index
    %c0_226 = arith.constant 0 : index
    %685 = vector.load %arg14[%c0_225, %c0_226] : memref<100x1xf32, #tpu.memory_space<vmem>>, vector<100x1xf32>
    %686 = vector.broadcast %685 : vector<100x1xf32> to vector<100x2xf32>
    %687 = arith.addf %684, %686 : vector<100x2xf32>
    %cst_227 = arith.constant 0.000000e+00 : f32
    %688 = vector.broadcast %cst_227 : f32 to vector<100x2xf32>
    %689 = arith.maximumf %687, %688 : vector<100x2xf32>
    %c0_228 = arith.constant 0 : index
    %c0_229 = arith.constant 0 : index
    %690 = vector.load %arg15[%c0_228, %c0_229] : memref<10x100xf32, #tpu.memory_space<vmem>>, vector<10x100xf32>
    %cst_230 = arith.constant dense<0.000000e+00> : vector<10x2xf32>
    %691 = tpu.matmul %690, %689, %cst_230 {dimension_numbers = #tpu.dot_dimension_numbers<[1], [0], [0], [1], [0, 0, 1, 1], [], []>} : vector<10x100xf32>, vector<100x2xf32>, vector<10x2xf32> -> vector<10x2xf32>
    %c0_231 = arith.constant 0 : index
    %c0_232 = arith.constant 0 : index
    %692 = vector.load %arg16[%c0_231, %c0_232] : memref<10x1xf32, #tpu.memory_space<vmem>>, vector<10x1xf32>
    %693 = vector.broadcast %692 : vector<10x1xf32> to vector<10x2xf32>
    %694 = arith.addf %691, %693 : vector<10x2xf32>
    %c0_233 = arith.constant 0 : index
    %c0_234 = arith.constant 0 : index
    %695 = vector.load %arg17[%c0_233, %c0_234] : memref<10x2xf32, #tpu.memory_space<vmem>>, vector<10x2xf32>
    tpu.vector_store %arg17[%c0_233, %c0_234], %694 {strides = array<i32>} : memref<10x2xf32, #tpu.memory_space<vmem>>, vector<10x2xf32>,
    return
  }
}

</mosaic_0001>

<bundles_post_ra>
// kernel: convnet_forward.1
= control target key start
LH: loop header
LB: loop body
LE: loop exit
PB: predicated region body
PF: predicated region fallthrough
CT: control target
= control target key end

     0   :  { %s14371_s0 = inlined_call_operand.vmem [shape: f32[32,192], index: 0, kind: input, shape index: {}]   ;;  %s14372_s1 = inlined_call_operand.vmem [shape: f32[75,192], index: 1, kind: input, shape index: {}]   ;;  %s14373_s2 = inlined_call_operand.vmem [shape: f32[3], index: 2, kind: input, shape index: {}]   ;;  %s14374_s3 = inlined_call_operand.vmem [shape: f32[45,84], index: 3, kind: input, shape index: {}]   ;;  %s14375_s4 = inlined_call_operand.vmem [shape: f32[5], index: 4, kind: input, shape index: {}]   ;;  %s14376_s5 = inlined_call_operand.vmem [shape: f32[192,84], index: 5, kind: input, shape index: {}]   ;;  %s14377_s6 = inlined_call_operand.vmem [shape: f32[192,84], index: 6, kind: input, shape index: {}]   ;;  %s14378_s7 = inlined_call_operand.vmem [shape: f32[14,28], index: 7, kind: input, shape index: {}]   ;;  %s14379_s8 = inlined_call_operand.vmem [shape: f32[14,28], index: 8, kind: input, shape index: {}]   ;;  %s14380_s9 = inlined_call_operand.vmem [shape: f32[28,12], index: 9, kind: input, shape index: {}]   ;;  %s14381_s10 = inlined_call_operand.vmem [shape: f32[28,12], index: 10, kind: input, shape index: {}]   ;;  %s14382_s11 = inlined_call_operand.vmem [shape: f32[32,60], index: 11, kind: input, shape index: {}]   ;;  %s14383_s12 = inlined_call_operand.vmem [shape: f32[32,60], index: 12, kind: input, shape index: {}]   ;;  %s14384_s13 = inlined_call_operand.vmem [shape: f32[100,192], index: 13, kind: input, shape index: {}]   ;;  %s14385_s14 = inlined_call_operand.vmem [shape: f32[100,1], index: 14, kind: input, shape index: {}]   ;;  %s14386_s15 = inlined_call_operand.vmem [shape: f32[10,100], index: 15, kind: input, shape index: {}]   ;;  %s14387_s16 = inlined_call_operand.vmem [shape: f32[10,1], index: 16, kind: input, shape index: {}]   ;;  %s14388_s17 = inlined_call_operand.vmem [shape: f32[10,2], index: 17, kind: output, shape index: {}]  }
   0x1   :  { %15013 = sst [smem:[#allocation177_spill]] %s14371_s0 }
   0x2   :  { %15014 = sst [smem:[#allocation178_spill]] %s14372_s1 }
   0x3   :  { %22 = vsyncpa [#allocation3], 0  ;;  %s34_s26 = sshll.u32 %s14373_s2, 4  ;;  %s35_s26 = int_to_ptr.vmem [resolvable:$true] %s34_s26 }
   0x4   :  { %23 = vsyncpa [#allocation5], 0  ;;  %s46_s29 = sshll.u32 %s14375_s4, 4  ;;  %s7651_s0 = scalar_lea.vmem %s35_s26, 16  ;;  %s47_s29 = int_to_ptr.vmem [resolvable:$true] %s46_s29 }
   0x5   :  { %p7652_p0 = scmp.ne.s32.totalorder %s35_s26, %s7651_s0  ;;  %p7656_p1 = scmp.lt.s32.totalorder %s35_s26, %s35_s26 }
   0x6   :  { %p7657_p2 = scmp.lt.s32.totalorder %s7651_s0, %s7651_s0 }
   0x8   :  { %p7658_p3 = por %p7657_p2, %p7656_p1 }
   0xa   :  { %p7659_p4 = pnand %p7658_p3, %p7652_p0 }
   0xc   :  { %7662 = shalt.err (!%p7659_p4)
}
   0xd   :  { %s7679_s30 = smov [#allocation2]   ;;  %s7663_s18 = scalar_lea.vmem %s47_s29, 16 }
   0xe   :  { %37 = dma.vmem_to_smem %s35_s26, 16, %s7679_s30, [#allocation3]  }
   0xf   :  { %p7664_p5 = scmp.ne.s32.totalorder %s47_s29, %s7663_s18  ;;  %p7668_p6 = scmp.lt.s32.totalorder %s47_s29, %s47_s29 }
  0x10   :  { %p7669_p7 = scmp.lt.s32.totalorder %s7663_s18, %s7663_s18 }
  0x12   :  { %p7670_p8 = por %p7669_p7, %p7668_p6 }
  0x14   :  { %p7671_p9 = pnand %p7670_p8, %p7664_p5 }
  0x16   :  { %7674 = shalt.err (!%p7671_p9)
}
  0x17   :  { %s7680_s2 = smov [#allocation4]  }
  0x18   :  { %49 = dma.vmem_to_smem %s47_s29, 16, %s7680_s2, [#allocation5]  }
  0x19   :  { %7675 = dma.done.wait [#allocation3], 16  }
  0x1a   :  { %7676 = vsyncadd [#allocation3], 4294967280 }
  0x1b   :  { %7677 = dma.done.wait [#allocation5], 16  }
  0x1c   :  { %7678 = vsyncadd [#allocation5], 4294967280 }
  0x1d   :  { %80 = sfence }
  0x1e   :  { %s15015_s1 = sld [smem:[#allocation177_spill]]  ;;  %s7681_s20 = smov 126   ;;  %v91_v10 = vlaneseq  ;;  %vm748_vm0 = vcmask 1046528   ;;  %vm332_vm1 = vcmask 1031168   ;;  %vm199_vm2 = vcmask 1039360  }
  0x1f   :  { %s7682_s21 = smov 127   ;;  %s7683_s24 = smov 125   ;;  %vm1730_vm3 = vcmask 1045504   ;;  %vm465_vm4 = vcmask 1022976   ;;  %vm598_vm5 = vcmask 1014784   ;;  %vm2712_vm6 = vcmask 1044480  }
  0x20   :  { %s7684_s25 = smov 124   ;;  %v7906_v13 = vshrl.u32 %v91_v10, 7  ;;  %s15018_s28 = sld [smem:[#allocation178_spill]]  ;;  %vm3694_vm7 = vcmask 1043456   ;;  %vm224_vm8 = vcmask 515072   ;;  %vm357_vm9 = vcmask 506880  }
  0x21   :  { %s7685_s19 = smov 63   ;;  %s7686_s22 = smov 62   ;;  %vm623_vm10 = vcmask 490496   ;;  %vm490_vm11 = vcmask 498688   ;;  %vm4761_vm12 = vcmask 523264   ;;  %vm5002_vm13 = vcmask 228352  }
  0x22   :  { %15017 = vst [vmem:[#allocation9_spill] sm:$0xff] %v7906_v13  ;;  %v7929_v18 = vsub.s32 0, %v7906_v13  ;;  %s7687_s27 = smov 60   ;;  %s7688_s29 = smov 61   ;;  %vm7691_vm14 = vmmov 1  }
  0x23   :  { %s7689_s23 = smov 64   ;;  %s12298_s0 = sld [smem:[#allocation2 + $0x1]]  ;;  %vm13391_vm15 = vmpackc.low %vm3694_vm7, %vm7691_vm14 }
  0x24   :  { %v7799_v0 = vld [vmem:[%s15015_s1] sm:$0xff]  ;;  %v82_v1 = vld [vmem:[%s15015_s1 + $0x8] sm:$0xff]  ;;  %v84_v2 = vld [vmem:[%s15015_s1 + $0x18] sm:$0xff]  ;;  %s13074_s2 = sld [smem:[#allocation2]]  ;;  %s7694_s18 = smov 72  }
  0x25   :  { %15016 = vst [vmem:[#allocation8_spill] sm:$0xff] %v7799_v0  ;;  %316 = vrot.lane.b32.xlu1 %v7799_v0, %s7681_s20  ;;  %183 = vrot.lane.b32.xlu0 %v7799_v0, %s7682_s21  ;;  %v7822_v3 = vld [vmem:[%s15015_s1 + $0x10] sm:$0xff]  ;;  %v716_v4 = vld [vmem:[%s15015_s1 + $0x8] sm:$0xfe]  ;;  %s7698_s26 = smov 118  }
  0x26   :  { %v7833_v5 = vld [vmem:[%s15015_s1] sm:$0xfe]  ;;  %v1698_v6 = vld [vmem:[%s15015_s1 + $0x8] sm:$0xfc]  ;;  %v8098_v10 = vld [vmem:[%s15015_s1 + $0x30] sm:$0xf] }
  0x27   :  { %v7862_v7 = vld [vmem:[%s15015_s1] sm:$0xfc]  ;;  %v2680_v8 = vld [vmem:[%s15015_s1 + $0x8] sm:$0xf8] }
  0x28   :  { %v7882_v9 = vld [vmem:[%s15015_s1] sm:$0xf8]  ;;  %v7899_v11 = vld [vmem:[%s15015_s1 + $0x8] sm:$0xf0] }
  0x29   :  { %318 = vrot.lane.b32.xlu1 %v82_v1, %s7681_s20  ;;  %185 = vrot.lane.b32.xlu0 %v82_v1, %s7682_s21  ;;  %v7904_v12 = vld [vmem:[%s15015_s1] sm:$0xf0]  ;;  %v7915_v14 = vld [vmem:[%s15015_s1 + $0x28] sm:$0xff] }
  0x2a   :  { %v7920_v15 = vld [vmem:[%s15015_s1 + $0x20] sm:$0xff]  ;;  %v6890_v17 = vld [vmem:[%s15018_s28 + $0x36] ss:$8 sm:$0x3] }
  0x2b   :  { %v6889_v16 = vld [vmem:[%s15018_s28 + $0x5] ss:$8 sm:$0x3]  ;;  %v6891_v19 = vld [vmem:[%s15018_s28 + $0x67] ss:$8 sm:$0x3]  ;;  %v7945_v22 = vrot.slane %v6890_v17, %v7929_v18 }
  0x2c   :  { %v6880_v20 = vld [vmem:[%s15018_s28 + $0x2] ss:$8 sm:$0x3]  ;;  %v7942_v21 = vrot.slane %v6889_v16, %v7929_v18  ;;  %v6881_v23 = vld [vmem:[%s15018_s28 + $0x33] ss:$8 sm:$0x3]  ;;  %v7954_v25 = vrot.slane %v6891_v19, %v7929_v18 }
  0x2d   :  { %451 = vrot.lane.b32.xlu1 %v82_v1, %s7683_s24  ;;  %449 = vrot.lane.b32.xlu0 %v7799_v0, %s7683_s24  ;;  %v89_v24 = vld [vmem:[%s15018_s28] ss:$8 sm:$0x3]  ;;  %v6882_v26 = vld [vmem:[%s15018_s28 + $0x64] ss:$8 sm:$0x3]  ;;  %v7967_v28 = vrot.slane %v6880_v20, %v7929_v18  ;;  %v7991_v35 = vmul.f32 %v7945_v22, %v7833_v5  ;;  %v8004_v39 = vmul.f32 %v7945_v22, %v7822_v3 }
  0x2e   :  { %v6875_v27 = vld [vmem:[%s15018_s28 + $0x31] ss:$8 sm:$0x3]  ;;  %v6876_v29 = vld [vmem:[%s15018_s28 + $0x62] ss:$8 sm:$0x3]  ;;  %v7976_v31 = vrot.slane %v89_v24, %v7929_v18  ;;  %v7983_v33 = vmul.f32 %v7942_v21, %v7833_v5  ;;  %v7987_v34 = vmul.f32 %v7942_v21, %v7822_v3  ;;  %v8008_v40 = vmul.f32 %v7954_v25, %v7833_v5 }
  0x2f   :  { %15019 = vst [vmem:[#allocation10_spill] sm:$0xff] %v7967_v28  ;;  %v6877_v30 = vld [vmem:[%s15018_s28 + $0x1] ss:$8 sm:$0x3]  ;;  %v7994_v36 = vrot.slane %v6875_v27, %v7929_v18  ;;  %v8012_v41 = vmul.f32 %v7954_v25, %v7822_v3  ;;  %v8015_v42 = vrot.slane %v6881_v23, %v7929_v18  ;;  %v8018_v43 = vrot.slane %v6882_v26, %v7929_v18 }
  0x30   :  { %v6878_v32 = vld [vmem:[%s15018_s28 + $0x32] ss:$8 sm:$0x3]  ;;  %v6879_v37 = vld [vmem:[%s15018_s28 + $0x63] ss:$8 sm:$0x3]  ;;  %v8021_v44 = vrot.slane %v6876_v29, %v7929_v18  ;;  %v8024_v45 = vrot.slane %v6877_v30, %v7929_v18  ;;  %v8041_v49 = vmul.f32 %v7976_v31, %v7822_v3  ;;  %v8102_v16 = vmul.f32 %v7976_v31, %v7799_v0 }
  0x31   :  { %584 = vrot.lane.b32.xlu1 %v82_v1, %s7684_s25  ;;  %582 = vrot.lane.b32.xlu0 %v7799_v0, %s7684_s25  ;;  %v6883_v38 = vld [vmem:[%s15018_s28 + $0x3] ss:$8 sm:$0x3]  ;;  %15020 = vst [vmem:[#allocation11_spill] sm:$0xff] %v8015_v42  ;;  %15021 = vst [vmem:[#allocation12_spill] sm:$0xff] %v8018_v43  ;;  %v8045_v50 = vmul.f32 %v7994_v36, %v7822_v3  ;;  %v8048_v51 = vrot.slane %v6878_v32, %v7929_v18  ;;  %v749_v57 = vrot.slane %v7983_v33, 1 }
  0x32   :  { %15022 = vst [vmem:[#allocation13_spill] sm:$0xff] %v8024_v45  ;;  %v6884_v46 = vld [vmem:[%s15018_s28 + $0x34] ss:$8 sm:$0x3]  ;;  %15023 = vst [vmem:[#allocation14_spill] sm:$0xff] %v8041_v49  ;;  %v8063_v56 = vrot.slane %v6879_v37, %v7929_v18  ;;  %v14391_v58 = vrot.slane %v7987_v34, 1  ;;  %v8079_v63 = vmul.f32 %v8021_v44, %v7822_v3  ;;  %v8106_v17 = vmul.f32 %v7994_v36, %v7799_v0 }
  0x33   :  { %v6885_v47 = vld [vmem:[%s15018_s28 + $0x65] ss:$8 sm:$0x3]  ;;  %v6886_v48 = vld [vmem:[%s15018_s28 + $0x4] ss:$8 sm:$0x3]  ;;  %v8110_v19 = vmul.f32 %v8021_v44, %v7799_v0  ;;  %v8113_v20 = vrot.slane %v6883_v38, %v7929_v18  ;;  %v8129_v27 = vrot.slane %v6884_v46, %v7929_v18 }
  0x34   :  { %15024 = vst [vmem:[#allocation15_spill] sm:$0xff] %v8045_v50  ;;  %15025 = vst [vmem:[#allocation16_spill] sm:$0xff] %v8048_v51  ;;  %v6887_v52 = vld [vmem:[%s15018_s28 + $0x35] ss:$8 sm:$0x3]  ;;  %v808_v59 = vrot.slane %v7991_v35, 1  ;;  %v8132_v29 = vrot.slane %v6885_v47, %v7929_v18  ;;  %v8135_v30 = vrot.slane %v6886_v48, %v7929_v18 }
  0x35   :  { %189 = vrot.lane.b32.xlu1 %v84_v2, %s7682_s21  ;;  %187 = vrot.lane.b32.xlu0 %v7822_v3, %s7682_s21  ;;  %v6888_v53 = vld [vmem:[%s15018_s28 + $0x66] ss:$8 sm:$0x3]  ;;  %v6893_v55 = vld [vmem:[%s15018_s28 + $0x37] ss:$8 sm:$0x3]  ;;  %v8147_v37 = vrot.slane %v6887_v52, %v7929_v18  ;;  %v8167_v52 = vsel %vm748_vm0, %v749_v57, %v14391_v58 }
  0x36   :  { %v6892_v54 = vld [vmem:[%s15018_s28 + $0x6] ss:$8 sm:$0x3]  ;;  %15026 = vst [vmem:[#allocation17_spill] sm:$0xff] %v8063_v56  ;;  %15027 = vst [vmem:[#allocation18_spill] sm:$0xff] %v8079_v63  ;;  %v8150_v38 = vrot.slane %v6888_v53, %v7929_v18  ;;  %v8156_v46 = vrot.slane %v6893_v55, %v7929_v18  ;;  %v15041_v13 = vrot.slane %v8012_v41, 1 }
  0x37   :  { %v6894_v60 = vld [vmem:[%s15018_s28 + $0x70] ss:$8 sm:$0x3]  ;;  %v6895_v61 = vld [vmem:[%s15018_s28 + $0x7] ss:$8 sm:$0x3] }
  0x38   :  { %v6896_v62 = vld [vmem:[%s15018_s28 + $0x40] ss:$8 sm:$0x3]  ;;  %15028 = vst [vmem:[#allocation19_spill] sm:$0xff] %v8113_v20  ;;  %15029 = vst [vmem:[#allocation20_spill] sm:$0xff] %v8129_v27  ;;  %v8170_v53 = vrot.slane %v6894_v60, %v7929_v18 }
  0x39   :  { %903 = vrot.lane.b32.xlu1 %v716_v4, %s7682_s21  ;;  %901 = vrot.lane.b32.xlu0 %v7833_v5, %s7682_s21  ;;  %v6899_v23 = vld [vmem:[%s15018_s28 + $0x41] ss:$8 sm:$0x3]  ;;  %v6900_v24 = vld [vmem:[%s15018_s28 + $0x72] ss:$8 sm:$0x3]  ;;  %v8176_v55 = vrot.slane %v6896_v62, %v7929_v18 }
  0x3a   :  { %v6907_v26 = vld [vmem:[%s15018_s28 + $0x13] ss:$8 sm:$0x3]  ;;  %15030 = vst [vmem:[#allocation21_spill] sm:$0xff] %v8132_v29  ;;  %15031 = vst [vmem:[#allocation22_spill] sm:$0xff] %v8135_v30  ;;  %v15039_v62 = vrot.slane %v8004_v39, 1 }
  0x3b   :  { %v6908_v32 = vld [vmem:[%s15018_s28 + $0x44] ss:$8 sm:$0x3]  ;;  %v6909_v33 = vld [vmem:[%s15018_s28 + $0x75] ss:$8 sm:$0x3] }
  0x3c   :  { %v6910_v35 = vld [vmem:[%s15018_s28 + $0x14] ss:$8 sm:$0x3]  ;;  %15032 = vst [vmem:[#allocation23_spill] sm:$0xff] %v8147_v37  ;;  %15033 = vst [vmem:[#allocation24_spill] sm:$0xff] %v8150_v38  ;;  %v8196_v58 = vsel %vm748_vm0, %v808_v59, %v15039_v62  ;;  %v8232_v62 = vrot.slane %v6907_v26, %v7929_v18 }
  0x3d   :  { %322 = vrot.lane.b32.xlu1 %v84_v2, %s7681_s20  ;;  %320 = vrot.lane.b32.xlu0 %v7822_v3, %s7681_s20  ;;  %15035 = vst [vmem:[#allocation26_spill] sm:$0xff] %v8156_v46  ;;  %v6911_v47 = vld [vmem:[%s15018_s28 + $0x45] ss:$8 sm:$0x3]  ;;  %15036 = vst [vmem:[#allocation27_spill] sm:$0xff] %v8170_v53 }
  0x3e   :  { %v6912_v48 = vld [vmem:[%s15018_s28 + $0x76] ss:$8 sm:$0x3]  ;;  %15038 = vst [vmem:[#allocation29_spill] sm:$0xff] %v8176_v55  ;;  %15040 = vst [vmem:[#allocation30_spill] sm:$0xff] %v8196_v58 }
  0x3f   :  { %v6913_v1 = vld [vmem:[%s15018_s28 + $0x15] ss:$8 sm:$0x3]  ;;  %v6914_v57 = vld [vmem:[%s15018_s28 + $0x46] ss:$8 sm:$0x3] }
  0x40   :  { %v6915_v60 = vld [vmem:[%s15018_s28 + $0x77] ss:$8 sm:$0x3]  ;;  %v6905_v0 = vld [vmem:[%s15018_s28 + $0x43] ss:$8 sm:$0x3] }
  0x41   :  { %1102 = vrot.lane.b32.xlu1 %v716_v4, %s7681_s20  ;;  %1100 = vrot.lane.b32.xlu0 %v7833_v5, %s7681_s20  ;;  %v6906_v59 = vld [vmem:[%s15018_s28 + $0x74] ss:$8 sm:$0x3]  ;;  %15046 = vst [vmem:[#allocation35_spill] sm:$0xff] %v8232_v62  ;;  %v8253_v55 = vrot.slane %v6905_v0, %v7929_v18  ;;  %v8271_v0 = vrot.slane %v6913_v1, %v7929_v18 }
  0x42   :  { %v6916_v26 = vld [vmem:[%s15018_s28 + $0x16] ss:$8 sm:$0x3]  ;;  %v8256_v58 = vrot.slane %v6906_v59, %v7929_v18  ;;  %v8274_v59 = vrot.slane %v6914_v57, %v7929_v18 }
  0x43   :  { %15051 = vst [vmem:[#allocation40_spill] sm:$0xff] %v8253_v55  ;;  %15055 = vst [vmem:[#allocation44_spill] sm:$0xff] %v8271_v0  ;;  %v6925_v0 = vld [vmem:[%s15018_s28 + $0x21] ss:$8 sm:$0x3] }
  0x44   :  { %15052 = vst [vmem:[#allocation41_spill] sm:$0xff] %v8256_v58  ;;  %15056 = vst [vmem:[#allocation45_spill] sm:$0xff] %v8274_v59 }
  0x45   :  { %455 = vrot.lane.b32.xlu1 %v84_v2, %s7683_s24  ;;  %453 = vrot.lane.b32.xlu0 %v7822_v3, %s7683_s24 }
  0x49   :  { %1301 = vrot.lane.b32.xlu1 %v716_v4, %s7683_s24  ;;  %1299 = vrot.lane.b32.xlu0 %v7833_v5, %s7683_s24 }
  0x4d   :  { %588 = vrot.lane.b32.xlu1 %v84_v2, %s7684_s25  ;;  %586 = vrot.lane.b32.xlu0 %v7822_v3, %s7684_s25  ;;  %v867_v2 = vrot.slane %v8008_v40, 1  ;;  %v8153_v40 = vrot.slane %v6892_v54, %v7929_v18  ;;  %v8173_v54 = vrot.slane %v6895_v61, %v7929_v18  ;;  %v6922_v61 = vld [vmem:[%s15018_s28 + $0x20] ss:$8 sm:$0x3] }
  0x4f   :  { %15034 = vst [vmem:[#allocation25_spill] sm:$0xff] %v8153_v40  ;;  %15037 = vst [vmem:[#allocation28_spill] sm:$0xff] %v8173_v54  ;;  %v8201_v63 = vsel %vm748_vm0, %v867_v2, %v15041_v13  ;;  %v8220_v13 = vrot.slane %v6899_v23, %v7929_v18  ;;  %v8223_v2 = vrot.slane %v6900_v24, %v7929_v18 }
  0x50   :  { %v8241_v24 = vrot.slane %v6908_v32, %v7929_v18  ;;  %v8262_v32 = vrot.slane %v6912_v48, %v7929_v18  ;;  %v6919_v48 = vld [vmem:[%s15018_s28 + $0x17] ss:$8 sm:$0x3] }
  0x51   :  { %1500 = vrot.lane.b32.xlu1 %v716_v4, %s7684_s25  ;;  %1498 = vrot.lane.b32.xlu0 %v7833_v5, %s7684_s25  ;;  %v6897_v5 = vld [vmem:[%s15018_s28 + $0x71] ss:$8 sm:$0x3]  ;;  %v6904_v4 = vld [vmem:[%s15018_s28 + $0x12] ss:$8 sm:$0x3] }
  0x52   :  { %v8204_v50 = vrot.slane %v6897_v5, %v7929_v18  ;;  %15044 = vst [vmem:[#allocation33_spill] sm:$0xff] %v8220_v13  ;;  %15045 = vst [vmem:[#allocation34_spill] sm:$0xff] %v8223_v2  ;;  %v6901_v5 = vld [vmem:[%s15018_s28 + $0x11] ss:$8 sm:$0x3]  ;;  %v8238_v23 = vrot.slane %v6904_v4, %v7929_v18  ;;  %v8244_v13 = vrot.slane %v6909_v33, %v7929_v18 }
  0x53   :  { %15048 = vst [vmem:[#allocation37_spill] sm:$0xff] %v8241_v24  ;;  %v8247_v2 = vrot.slane %v6910_v35, %v7929_v18  ;;  %v8259_v4 = vrot.slane %v6911_v47, %v7929_v18  ;;  %15054 = vst [vmem:[#allocation43_spill] sm:$0xff] %v8262_v32  ;;  %v6917_v33 = vld [vmem:[%s15018_s28 + $0x47] ss:$8 sm:$0x3]  ;;  %v8277_v47 = vrot.slane %v6915_v60, %v7929_v18 }
  0x54   :  { %15042 = vst [vmem:[#allocation31_spill] sm:$0xff] %v8204_v50  ;;  %15047 = vst [vmem:[#allocation36_spill] sm:$0xff] %v8238_v23  ;;  %v6918_v35 = vld [vmem:[%s15018_s28 + $0x80] ss:$8 sm:$0x3]  ;;  %v8283_v32 = vrot.slane %v6922_v61, %v7929_v18  ;;  %v8293_v1 = vrot.slane %v6901_v5, %v7929_v18  ;;  %v1714_v59 = vmul.f32 %v8238_v23, %v7862_v7 }
  0x55   :  { %1885 = vrot.lane.b32.xlu1 %v1698_v6, %s7682_s21  ;;  %1883 = vrot.lane.b32.xlu0 %v7862_v7, %s7682_s21  ;;  %15049 = vst [vmem:[#allocation38_spill] sm:$0xff] %v8244_v13  ;;  %15050 = vst [vmem:[#allocation39_spill] sm:$0xff] %v8247_v2  ;;  %v6920_v61 = vld [vmem:[%s15018_s28 + $0x50] ss:$8 sm:$0x3]  ;;  %v8311_v5 = vmul.f32 %v8238_v23, %v7822_v3  ;;  %v8329_v23 = vmul.f32 %v8253_v55, %v7822_v3 }
  0x56   :  { %15053 = vst [vmem:[#allocation42_spill] sm:$0xff] %v8259_v4  ;;  %15057 = vst [vmem:[#allocation46_spill] sm:$0xff] %v8277_v47  ;;  %v6923_v4 = vld [vmem:[%s15018_s28 + $0x51] ss:$8 sm:$0x3] }
  0x57   :  { %15058 = vst [vmem:[#allocation47_spill] sm:$0xff] %v8283_v32  ;;  %15059 = vst [vmem:[#allocation48_spill] sm:$0xff] %v8293_v1  ;;  %v6924_v47 = vld [vmem:[%s15018_s28 + $0x82] ss:$8 sm:$0x3]  ;;  %v8344_v1 = vrot.slane %v6918_v35, %v7929_v18  ;;  %v8350_v2 = vrot.slane %v6923_v4, %v7929_v18  ;;  %v8366_v4 = vrot.slane %v6925_v0, %v7929_v18 }
  0x58   :  { %15062 = vst [vmem:[#allocation51_spill] sm:$0xff] %v8311_v5  ;;  %15065 = vst [vmem:[#allocation54_spill] sm:$0xff] %v8329_v23  ;;  %v6930_v0 = vld [vmem:[%s15018_s28 + $0x84] ss:$8 sm:$0x3] }
  0x59   :  { %2084 = vrot.lane.b32.xlu1 %v1698_v6, %s7681_s20  ;;  %2082 = vrot.lane.b32.xlu0 %v7862_v7, %s7681_s20  ;;  %15068 = vst [vmem:[#allocation57_spill] sm:$0xff] %v8344_v1  ;;  %15070 = vst [vmem:[#allocation59_spill] sm:$0xff] %v8350_v2  ;;  %v6937_v32 = vld [vmem:[%s15018_s28 + $0x25] ss:$8 sm:$0x3]  ;;  %v8438_v62 = vrot.slane %v6930_v0, %v7929_v18 }
  0x5a   :  { %15073 = vst [vmem:[#allocation62_spill] sm:$0xff] %v8366_v4  ;;  %v6938_v13 = vld [vmem:[%s15018_s28 + $0x56] ss:$8 sm:$0x3] }
  0x5b   :  { %15083 = vst [vmem:[#allocation71_spill] sm:$0xff] %v8438_v62  ;;  %v6940_v50 = vld [vmem:[%s15018_s28 + $0x26] ss:$8 sm:$0x3] }
  0x5d   :  { %2283 = vrot.lane.b32.xlu1 %v1698_v6, %s7683_s24  ;;  %2281 = vrot.lane.b32.xlu0 %v7862_v7, %s7683_s24 }
  0x61   :  { %2482 = vrot.lane.b32.xlu1 %v1698_v6, %s7684_s25  ;;  %2480 = vrot.lane.b32.xlu0 %v7862_v7, %s7684_s25  ;;  %v6898_v6 = vld [vmem:[%s15018_s28 + $0x10] ss:$8 sm:$0x3] }
  0x62   :  { %v8207_v49 = vrot.slane %v6898_v6, %v7929_v18  ;;  %v6902_v6 = vld [vmem:[%s15018_s28 + $0x42] ss:$8 sm:$0x3] }
  0x63   :  { %v8296_v57 = vrot.slane %v6902_v6, %v7929_v18  ;;  %v8314_v6 = vrot.slane %v6916_v26, %v7929_v18  ;;  %v1833_v26 = vmul.f32 %v8256_v58, %v7862_v7 }
  0x64   :  { %15043 = vst [vmem:[#allocation32_spill] sm:$0xff] %v8207_v49  ;;  %v6903_v49 = vld [vmem:[%s15018_s28 + $0x73] ss:$8 sm:$0x3] }
  0x65   :  { %2867 = vrot.lane.b32.xlu1 %v2680_v8, %s7682_s21  ;;  %2865 = vrot.lane.b32.xlu0 %v7882_v9, %s7682_s21  ;;  %15060 = vst [vmem:[#allocation49_spill] sm:$0xff] %v8296_v57  ;;  %v8299_v60 = vrot.slane %v6903_v49, %v7929_v18  ;;  %15063 = vst [vmem:[#allocation52_spill] sm:$0xff] %v8314_v6  ;;  %v8317_v49 = vrot.slane %v6917_v33, %v7929_v18  ;;  %v6921_v57 = vld [vmem:[%s15018_s28 + $0x81] ss:$8 sm:$0x3] }
  0x66   :  { %v8334_v33 = vrot.slane %v6919_v48, %v7929_v18  ;;  %v8341_v6 = vmul.f32 %v8256_v58, %v7822_v3  ;;  %v8360_v35 = vrot.slane %v6921_v57, %v7929_v18  ;;  %v8363_v48 = vrot.slane %v6924_v47, %v7929_v18 }
  0x67   :  { %15061 = vst [vmem:[#allocation50_spill] sm:$0xff] %v8299_v60  ;;  %15064 = vst [vmem:[#allocation53_spill] sm:$0xff] %v8317_v49  ;;  %v1774_v60 = vmul.f32 %v8253_v55, %v7862_v7  ;;  %v6926_v49 = vld [vmem:[%s15018_s28 + $0x52] ss:$8 sm:$0x3]  ;;  %v8347_v55 = vrot.slane %v6920_v61, %v7929_v18  ;;  %v1731_v58 = vrot.slane %v1714_v59, 2 }
  0x68   :  { %15066 = vst [vmem:[#allocation55_spill] sm:$0xff] %v8334_v33  ;;  %15067 = vst [vmem:[#allocation56_spill] sm:$0xff] %v8341_v6  ;;  %v6927_v7 = vld [vmem:[%s15018_s28 + $0x83] ss:$8 sm:$0x3]  ;;  %v8376_v57 = vrot.slane %v6926_v49, %v7929_v18  ;;  %v2696_v2 = vmul.f32 %v8334_v33, %v7882_v9  ;;  %v8390_v49 = vmul.f32 %v8334_v33, %v7822_v3  ;;  %v15088_v54 = vrot.slane %v8341_v6, 2 }
  0x69   :  { %3066 = vrot.lane.b32.xlu1 %v2680_v8, %s7681_s20  ;;  %3064 = vrot.lane.b32.xlu0 %v7882_v9, %s7681_s20  ;;  %15069 = vst [vmem:[#allocation58_spill] sm:$0xff] %v8347_v55  ;;  %15071 = vst [vmem:[#allocation60_spill] sm:$0xff] %v8360_v35  ;;  %v6928_v61 = vld [vmem:[%s15018_s28 + $0x22] ss:$8 sm:$0x3]  ;;  %v1790_v47 = vrot.slane %v1774_v60, 2  ;;  %v8396_v60 = vmul.f32 %v8347_v55, %v7822_v3  ;;  %v2815_v1 = vmul.f32 %v8360_v35, %v7882_v9 }
  0x6a   :  { %15072 = vst [vmem:[#allocation61_spill] sm:$0xff] %v8363_v48  ;;  %15074 = vst [vmem:[#allocation63_spill] sm:$0xff] %v8376_v57  ;;  %v1849_v48 = vrot.slane %v1833_v26, 2  ;;  %v6931_v59 = vld [vmem:[%s15018_s28 + $0x23] ss:$8 sm:$0x3]  ;;  %v2756_v57 = vmul.f32 %v8347_v55, %v7882_v9  ;;  %v8409_v4 = vmul.f32 %v8360_v35, %v7822_v3  ;;  %v8412_v55 = vrot.slane %v6927_v7, %v7929_v18 }
  0x6b   :  { %15075 = vst [vmem:[#allocation64_spill] sm:$0xff] %v8390_v49  ;;  %15076 = vst [vmem:[#allocation65_spill] sm:$0xff] %v8396_v60  ;;  %v6932_v26 = vld [vmem:[%s15018_s28 + $0x54] ss:$8 sm:$0x3]  ;;  %v15079_v35 = vrot.slane %v8311_v5, 2  ;;  %v8455_v62 = vrot.slane %v6931_v59, %v7929_v18 }
  0x6c   :  { %15077 = vst [vmem:[#allocation66_spill] sm:$0xff] %v8409_v4  ;;  %15078 = vst [vmem:[#allocation67_spill] sm:$0xff] %v8412_v55  ;;  %v6933_v33 = vld [vmem:[%s15018_s28 + $0x85] ss:$8 sm:$0x3]  ;;  %v8432_v55 = vrot.slane %v6928_v61, %v7929_v18  ;;  %v2713_v0 = vrot.slane %v2696_v2, 3  ;;  %v8466_v46 = vsel %vm1730_vm3, %v1849_v48, %v15088_v54  ;;  %v8493_v2 = vrot.slane %v6937_v32, %v7929_v18 }
  0x6d   :  { %3265 = vrot.lane.b32.xlu1 %v2680_v8, %s7683_s24  ;;  %3263 = vrot.lane.b32.xlu0 %v7882_v9, %s7683_s24  ;;  %v8429_v7 = vsel %vm1730_vm3, %v1731_v58, %v15079_v35  ;;  %v6941_v5 = vld [vmem:[%s15018_s28 + $0x57] ss:$8 sm:$0x3]  ;;  %v6942_v58 = vld [vmem:[%s15018_s28 + $0x90] ss:$8 sm:$0x3] }
  0x6e   :  { %15080 = vst [vmem:[#allocation68_spill] sm:$0xff] %v8429_v7  ;;  %15081 = vst [vmem:[#allocation69_spill] sm:$0xff] %v8432_v55  ;;  %v8458_v7 = vrot.slane %v6932_v26, %v7929_v18  ;;  %v6934_v55 = vld [vmem:[%s15018_s28 + $0x24] ss:$8 sm:$0x3]  ;;  %v2831_v48 = vrot.slane %v2815_v1, 3  ;;  %v8484_v26 = vrot.slane %v6933_v33, %v7929_v18 }
  0x6f   :  { %15086 = vst [vmem:[#allocation73_spill] sm:$0xff] %v8455_v62  ;;  %v6935_v59 = vld [vmem:[%s15018_s28 + $0x55] ss:$8 sm:$0x3]  ;;  %v8480_v54 = vld [vmem:[%s15015_s1 + $0x38] sm:$0x1f] }
  0x70   :  { %15087 = vst [vmem:[#allocation74_spill] sm:$0xff] %v8458_v7  ;;  %15089 = vst [vmem:[#allocation75_spill] sm:$0xff] %v8484_v26  ;;  %v6943_v33 = vld [vmem:[%s15018_s28 + $0x27] ss:$8 sm:$0x3]  ;;  %v8514_v32 = vrot.slane %v6935_v59, %v7929_v18  ;;  %v8523_v7 = vrot.slane %v6942_v58, %v7929_v18  ;;  %v15102_v58 = vrot.slane %v8409_v4, 3 }
  0x71   :  { %3464 = vrot.lane.b32.xlu1 %v2680_v8, %s7684_s25  ;;  %3462 = vrot.lane.b32.xlu0 %v7882_v9, %s7684_s25  ;;  %v8093_v8 = vld [vmem:[%s15015_s1 + $0x38] sm:$0xf]  ;;  %v6939_v9 = vld [vmem:[%s15018_s28 + $0x87] ss:$8 sm:$0x3]  ;;  %15091 = vst [vmem:[#allocation77_spill] sm:$0xff] %v8493_v2 }
  0x72   :  { %v8499_v1 = vrot.slane %v6939_v9, %v7929_v18  ;;  %v8511_v6 = vld [vmem:[%s15015_s1 + $0x30] sm:$0x1f]  ;;  %15096 = vst [vmem:[#allocation82_spill] sm:$0xff] %v8514_v32  ;;  %v8520_v9 = vrot.slane %v6941_v5, %v7929_v18  ;;  %15099 = vst [vmem:[#allocation85_spill] sm:$0xff] %v8523_v7 }
  0x74   :  { %15093 = vst [vmem:[#allocation79_spill] sm:$0xff] %v8499_v1  ;;  %15098 = vst [vmem:[#allocation84_spill] sm:$0xff] %v8520_v9 }
  0x75   :  { %3849 = vrot.lane.b32.xlu1 %v7899_v11, %s7682_s21  ;;  %3847 = vrot.lane.b32.xlu0 %v7904_v12, %s7682_s21 }
  0x79   :  { %193 = vrot.lane.b32.xlu1 %v7915_v14, %s7682_s21  ;;  %191 = vrot.lane.b32.xlu0 %v7920_v15, %s7682_s21 }
  0x7d   :  { %4048 = vrot.lane.b32.xlu1 %v7899_v11, %s7681_s20  ;;  %4046 = vrot.lane.b32.xlu0 %v7904_v12, %s7681_s20 }
  0x81   :  { %326 = vrot.lane.b32.xlu1 %v7915_v14, %s7681_s20  ;;  %324 = vrot.lane.b32.xlu0 %v7920_v15, %s7681_s20 }
  0x85   :  { %4247 = vrot.lane.b32.xlu1 %v7899_v11, %s7683_s24  ;;  %4245 = vrot.lane.b32.xlu0 %v7904_v12, %s7683_s24 }
  0x89   :  { %197 = vrot.lane.b32.xlu1 %v8093_v8, %s7682_s21  ;;  %195 = vrot.lane.b32.xlu0 %v8098_v10, %s7682_s21 }
  0x8d   :  { %459 = vrot.lane.b32.xlu1 %v7915_v14, %s7683_s24  ;;  %457 = vrot.lane.b32.xlu0 %v7920_v15, %s7683_s24 }
  0x91   :  { %4446 = vrot.lane.b32.xlu1 %v7899_v11, %s7684_s25  ;;  %4444 = vrot.lane.b32.xlu0 %v7904_v12, %s7684_s25  ;;  %v6929_v11 = vld [vmem:[%s15018_s28 + $0x53] ss:$8 sm:$0x3] }
  0x92   :  { %v8435_v24 = vrot.slane %v6929_v11, %v7929_v18  ;;  %v15084_v11 = vrot.slane %v8329_v23, 2  ;;  %v8496_v23 = vrot.slane %v6938_v13, %v7929_v18  ;;  %v8517_v13 = vrot.slane %v6940_v50, %v7929_v18 }
  0x93   :  { %v15101_v50 = vrot.slane %v8396_v60, 3 }
  0x94   :  { %15082 = vst [vmem:[#allocation70_spill] sm:$0xff] %v8435_v24  ;;  %v8452_v24 = vsel %vm1730_vm3, %v1790_v47, %v15084_v11  ;;  %v2772_v47 = vrot.slane %v2756_v57, 3  ;;  %v8487_v11 = vrot.slane %v6934_v55, %v7929_v18  ;;  %15092 = vst [vmem:[#allocation78_spill] sm:$0xff] %v8496_v23 }
  0x95   :  { %330 = vrot.lane.b32.xlu1 %v8093_v8, %s7681_s20  ;;  %328 = vrot.lane.b32.xlu0 %v8098_v10, %s7681_s20  ;;  %15085 = vst [vmem:[#allocation72_spill] sm:$0xff] %v8452_v24  ;;  %15097 = vst [vmem:[#allocation83_spill] sm:$0xff] %v8517_v13  ;;  %v15100_v24 = vrot.slane %v8390_v49, 3 }
  0x96   :  { %15090 = vst [vmem:[#allocation76_spill] sm:$0xff] %v8487_v11  ;;  %v8537_v13 = vsel %vm2712_vm6, %v2772_v47, %v15101_v50  ;;  %v3678_v50 = vmul.f32 %v8487_v11, %v7904_v12 }
  0x97   :  { %v317_v35 = vpop.permute.xlu1 %316  ;;  %v184_v61 = vpop.permute.xlu0 %183  ;;  %v8532_v59 = vsel %vm2712_vm6, %v2713_v0, %v15100_v24  ;;  %v8551_v24 = vrot.slane %v6943_v33, %v7929_v18 }
  0x99   :  { %592 = vrot.lane.b32.xlu1 %v7915_v14, %s7684_s25  ;;  %590 = vrot.lane.b32.xlu0 %v7920_v15, %s7684_s25  ;;  %v6936_v14 = vld [vmem:[%s15018_s28 + $0x86] ss:$8 sm:$0x3]  ;;  %15104 = vst [vmem:[#allocation87_spill] sm:$0xff] %v8551_v24 }
  0x9b   :  { %v8504_v57 = vpop.permute.xlu1 %318  ;;  %v8506_v55 = vpop.permute.xlu0 %185 }
  0x9c   :  { %15094 = vst [vmem:[#allocation80_spill] sm:$0xff] %v8504_v57  ;;  %15095 = vst [vmem:[#allocation81_spill] sm:$0xff] %v8506_v55  ;;  %v333_v26 = vsel %vm332_vm1, %v317_v35, %v8504_v57  ;;  %v200_v62 = vsel %vm199_vm2, %v184_v61, %v8506_v55  ;;  %v8545_v35 = vsel %vm2712_vm6, %v2831_v48, %v15102_v58 }
  0x9d   :  { %v242_v5 = vmul.f32 %v8024_v45, %v200_v62  ;;  %907 = vrot.lane.b32.xlu1 %v8480_v54, %s7682_s21  ;;  %v8548_v61 = vrot.slane %v6936_v14, %v7929_v18  ;;  %v271_v0 = vmul.f32 %v8048_v51, %v200_v62  ;;  %v300_v47 = vmul.f32 %v8063_v56, %v200_v62  ;;  %v15208_v51 = vld [vmem:[#allocation45_spill] sm:$0xff] }
  0x9e   :  { %905 = vrot.lane.b32.xlu0 %v8511_v6, %s7682_s21  ;;  %v8561_v48 = vmul.f32 %v8487_v11, %v7822_v3  ;;  %v375_v14 = vmul.f32 %v7967_v28, %v333_v26  ;;  %v404_v58 = vmul.f32 %v8015_v42, %v333_v26  ;;  %v3738_v62 = vmul.f32 %v8514_v32, %v7904_v12 }
  0x9f   :  { %15103 = vst [vmem:[#allocation86_spill] sm:$0xff] %v8548_v61  ;;  %v250_v33 = vadd.f32 %v242_v5, %v8102_v16  ;;  %v8566_v4 = vpop.permute.xlu1 %451  ;;  %v450_v60 = vpop.permute.xlu0 %449  ;;  %v433_v49 = vmul.f32 %v8018_v43, %v333_v26  ;;  %v279_v57 = vadd.f32 %v271_v0, %v8106_v17  ;;  %v308_v55 = vadd.f32 %v300_v47, %v8110_v19 }
  0xa0   :  { %15105 = vst [vmem:[#allocation88_spill] sm:$0xff] %v8561_v48  ;;  %15106 = vst [vmem:[#allocation89_spill] sm:$0xff] %v8566_v4  ;;  %v466_v11 = vsel %vm465_vm4, %v450_v60, %v8566_v4  ;;  %v8581_v5 = vmul.f32 %v8514_v32, %v7822_v3  ;;  %v3797_v19 = vmul.f32 %v8548_v61, %v7904_v12  ;;  %v6947_v32 = vld [vmem:[%s15018_s28 + $0x61] ss:$8 sm:$0x3] }
  0xa1   :  { %v383_v24 = vadd.f32 %v375_v14, %v250_v33  ;;  %v508_v9 = vmul.f32 %v8113_v20, %v466_v11  ;;  %v566_v16 = vmul.f32 %v8132_v29, %v466_v11  ;;  %463 = vrot.lane.b32.xlu1 %v8093_v8, %s7683_s24  ;;  %v8583_v26 = vadd.f32 %v404_v58, %v279_v57 }
  0xa2   :  { %15107 = vst [vmem:[#allocation90_spill] sm:$0xff] %v8581_v5  ;;  %v441_v17 = vadd.f32 %v433_v49, %v308_v55  ;;  %461 = vrot.lane.b32.xlu0 %v8098_v10, %s7683_s24  ;;  %v8591_v60 = vmul.f32 %v8548_v61, %v7822_v3  ;;  %v3695_v33 = vrot.slane %v3678_v50, 4  ;;  %v6944_v49 = vld [vmem:[%s15018_s28 + $0x60] ss:$8 sm:$0x3]  ;;  %v8601_v57 = vmul.f32 %v7942_v21, %v7920_v15 }
  0xa3   :  { %v516_v0 = vadd.f32 %v508_v9, %v383_v24  ;;  %v8593_v47 = vpop.permute.xlu1 %584  ;;  %v583_v14 = vpop.permute.xlu0 %582  ;;  %v6945_v55 = vld [vmem:[%s15018_s28 + $0x91] ss:$8 sm:$0x3]  ;;  %v6946_v9 = vld [vmem:[%s15018_s28 + $0x30] ss:$8 sm:$0x3]  ;;  %v8613_v24 = vmul.f32 %v7945_v22, %v7920_v15  ;;  %v8617_v50 = vmul.f32 %v7954_v25, %v7920_v15  ;;  %v8631_v4 = vrot.slane %v6944_v49, %v7929_v18 }
  0xa4   :  { %15108 = vst [vmem:[#allocation91_spill] sm:$0xff] %v8591_v60  ;;  %15109 = vst [vmem:[#allocation92_spill] sm:$0xff] %v8593_v47  ;;  %v574_v12 = vadd.f32 %v566_v16, %v441_v17  ;;  %v599_v3 = vsel %vm598_vm5, %v583_v14, %v8593_v47  ;;  %v3754_v17 = vrot.slane %v3738_v62, 4  ;;  %v3813_v61 = vrot.slane %v3797_v19, 4 }
  0xa5   :  { %15110 = vst [vmem:[#allocation93_spill] sm:$0xff] %v8601_v57  ;;  %15111 = vst [vmem:[#allocation94_spill] sm:$0xff] %v8613_v24  ;;  %v641_v58 = vmul.f32 %v8135_v30, %v599_v3  ;;  %v699_v16 = vmul.f32 %v8150_v38, %v599_v3  ;;  %1106 = vrot.lane.b32.xlu1 %v8480_v54, %s7681_s20  ;;  %v6948_v62 = vld [vmem:[%s15018_s28 + $0x92] ss:$8 sm:$0x3]  ;;  %v8639_v43 = vrot.slane %v6945_v55, %v7929_v18 }
  0xa6   :  { %15112 = vst [vmem:[#allocation95_spill] sm:$0xff] %v8617_v50  ;;  %1104 = vrot.lane.b32.xlu0 %v8511_v6, %s7681_s20  ;;  %15113 = vst [vmem:[#allocation96_spill] sm:$0xff] %v8631_v4  ;;  %v14474_v20 = vrot.slane %v8601_v57, 1  ;;  %v8647_v49 = vrot.slane %v6946_v9, %v7929_v18  ;;  %v8664_v9 = vrot.slane %v6947_v32, %v7929_v18  ;;  %v15194_v4 = vld [vmem:[#allocation33_spill] sm:$0xff] }
  0xa7   :  { %v649_v38 = vadd.f32 %v641_v58, %v516_v0  ;;  %v707_v14 = vadd.f32 %v699_v16, %v574_v12  ;;  %v8636_v30 = vpop.permute.xlu1 %189  ;;  %v188_v29 = vpop.permute.xlu0 %187  ;;  %15115 = vst [vmem:[#allocation98_spill] sm:$0xff] %v8639_v43  ;;  %v15118_v12 = vrot.slane %v8561_v48, 4  ;;  %v15120_v58 = vrot.slane %v8581_v5, 4 }
  0xa8   :  { %15114 = vst [vmem:[#allocation97_spill] sm:$0xff] %v8636_v30  ;;  %v8644_v19 = vsel %vm199_vm2, %v188_v29, %v8636_v30  ;;  %15117 = vst [vmem:[#allocation100_spill] sm:$0xff] %v8647_v49  ;;  %v8667_v16 = vrot.slane %v6948_v62, %v7929_v18  ;;  %v537_v0 = vmul.f32 %v8129_v27, %v466_v11  ;;  %v15135_v48 = vrot.slane %v8613_v24, 1  ;;  %v15189_v24 = vld [vmem:[#allocation8_spill] sm:$0xff] }
  0xa9   :  { %15116 = vst [vmem:[#allocation99_spill] sm:$0xff] %v8644_v19  ;;  %596 = vrot.lane.b32.xlu1 %v8093_v8, %s7684_s25  ;;  %v8656_v55 = vsel %vm3694_vm7, %v3695_v33, %v15118_v12  ;;  %v8661_v29 = vsel %vm3694_vm7, %v3754_v17, %v15120_v58  ;;  %15122 = vst [vmem:[#allocation103_spill] sm:$0xff] %v8664_v9  ;;  %v15124_v8 = vrot.slane %v8591_v60, 4  ;;  %v15132_v58 = vrot.slane %v7987_v34, 1 }
  0xaa   :  { %15119 = vst [vmem:[#allocation101_spill] sm:$0xff] %v8656_v55  ;;  %15121 = vst [vmem:[#allocation102_spill] sm:$0xff] %v8661_v29  ;;  %594 = vrot.lane.b32.xlu0 %v8098_v10, %s7684_s25  ;;  %v8679_v17 = vmul.f32 %v7976_v31, %v8098_v10  ;;  %v8683_v32 = vmul.f32 %v7994_v36, %v8098_v10  ;;  %v8689_v11 = vmul.f32 %v8153_v40, %v8644_v19 }
  0xab   :  { %15123 = vst [vmem:[#allocation104_spill] sm:$0xff] %v8667_v16  ;;  %v8675_v33 = vsel %vm3694_vm7, %v3813_v61, %v15124_v8  ;;  %v8685_v18 = vpop.permute.xlu1 %903  ;;  %v8693_v62 = vmul.f32 %v8170_v53, %v8644_v19  ;;  %v902_v61 = vpop.permute.xlu0 %901  ;;  %v8697_v12 = vmul.f32 %v8021_v44, %v8098_v10  ;;  %v8704_v8 = vsel %vm748_vm0, %v15132_v58, %v14474_v20 }
  0xac   :  { %15125 = vst [vmem:[#allocation105_spill] sm:$0xff] %v8675_v33  ;;  %15126 = vst [vmem:[#allocation106_spill] sm:$0xff] %v8679_v17  ;;  %v909_v47 = vsel %vm199_vm2, %v902_v61, %v8685_v18  ;;  %v8710_v60 = vmul.f32 %v7976_v31, %v7920_v15  ;;  %v15136_v30 = vrot.slane %v8004_v39, 1  ;;  %v15138_v5 = vrot.slane %v8617_v50, 1 }
  0xad   :  { %15127 = vst [vmem:[#allocation107_spill] sm:$0xff] %v8683_v32  ;;  %15128 = vst [vmem:[#allocation108_spill] sm:$0xff] %v8685_v18  ;;  %v15139_v34 = vrot.slane %v8012_v41, 1  ;;  %v670_v61 = vmul.f32 %v8147_v37, %v599_v3  ;;  %v936_v20 = vmul.f32 %v8153_v40, %v909_v47  ;;  %v1054_v31 = vmul.f32 %v8170_v53, %v909_v47 }
  0xae   :  { %15129 = vst [vmem:[#allocation109_spill] sm:$0xff] %v8689_v11  ;;  %15130 = vst [vmem:[#allocation110_spill] sm:$0xff] %v8693_v62  ;;  %v8717_v10 = vsel %vm748_vm0, %v15136_v30, %v15135_v48  ;;  %1305 = vrot.lane.b32.xlu1 %v8480_v54, %s7683_s24  ;;  %v8733_v39 = vmul.f32 %v7942_v21, %v8511_v6  ;;  %v545_v30 = vadd.f32 %v537_v0, %v8583_v26 }
  0xaf   :  { %15131 = vst [vmem:[#allocation111_spill] sm:$0xff] %v8697_v12  ;;  %15133 = vst [vmem:[#allocation112_spill] sm:$0xff] %v8704_v8  ;;  %v8724_v58 = vsel %vm748_vm0, %v15139_v34, %v15138_v5  ;;  %1303 = vrot.lane.b32.xlu0 %v8511_v6, %s7683_s24  ;;  %v8740_v41 = vmul.f32 %v7994_v36, %v7920_v15  ;;  %v8744_v48 = vmul.f32 %v7945_v22, %v8511_v6  ;;  %v8752_v34 = vpop.permute.xlu1 %322  ;;  %v321_v18 = vpop.permute.xlu0 %320  ;;  %v15167_v12 = vld [vmem:[#allocation30_spill] sm:$0xff] }
  0xb0   :  { %15134 = vst [vmem:[#allocation113_spill] sm:$0xff] %v8710_v60  ;;  %15137 = vst [vmem:[#allocation114_spill] sm:$0xff] %v8717_v10  ;;  %v8748_v5 = vmul.f32 %v7954_v25, %v8511_v6  ;;  %v952_v26 = vrot.slane %v936_v20, 1  ;;  %v1070_v0 = vrot.slane %v1054_v31, 1  ;;  %v771_v36 = vadd.f32 %v8167_v52, %v649_v38  ;;  %v15150_v38 = vld [vmem:[#allocation26_spill] sm:$0xff] }
  0xb1   :  { %15140 = vst [vmem:[#allocation115_spill] sm:$0xff] %v8724_v58  ;;  %15141 = vst [vmem:[#allocation116_spill] sm:$0xff] %v8733_v39  ;;  %v889_v16 = vadd.f32 %v8201_v63, %v707_v14  ;;  %v8758_v22 = vsel %vm332_vm1, %v321_v18, %v8752_v34  ;;  %v8762_v25 = vmul.f32 %v8021_v44, %v7920_v15  ;;  %v15148_v3 = vrot.slane %v8689_v11, 1  ;;  %v8783_v18 = vld [vmem:[%s15015_s1 + $0x38] sm:$0x3f] }
  0xb2   :  { %15142 = vst [vmem:[#allocation117_spill] sm:$0xff] %v8740_v41  ;;  %15143 = vst [vmem:[#allocation118_spill] sm:$0xff] %v8744_v48  ;;  %v678_v21 = vadd.f32 %v670_v61, %v545_v30  ;;  %v15149_v31 = vrot.slane %v8693_v62, 1  ;;  %1504 = vrot.lane.b32.xlu1 %v8480_v54, %s7684_s25  ;;  %v8775_v52 = vmul.f32 %v15150_v38, %v8644_v19  ;;  %v15153_v54 = vld [vmem:[#allocation28_spill] sm:$0xff] }
  0xb3   :  { %15144 = vst [vmem:[#allocation119_spill] sm:$0xff] %v8748_v5  ;;  %15145 = vst [vmem:[#allocation120_spill] sm:$0xff] %v8752_v34  ;;  %v954_v20 = vsel %vm748_vm0, %v952_v26, %v15148_v3  ;;  %v995_v44 = vmul.f32 %v15150_v38, %v909_v47  ;;  %1502 = vrot.lane.b32.xlu0 %v8511_v6, %s7684_s25  ;;  %v8785_v61 = vpop.permute.xlu1 %1102  ;;  %v8789_v30 = vmul.f32 %v15153_v54, %v8758_v22  ;;  %v15155_v3 = vld [vmem:[#allocation31_spill] sm:$0xff]  ;;  %v1101_v47 = vpop.permute.xlu0 %1100  ;;  %v8798_v6 = vld [vmem:[%s15015_s1 + $0x30] sm:$0x3f] }
  0xb4   :  { %15146 = vst [vmem:[#allocation121_spill] sm:$0xff] %v8758_v22  ;;  %15147 = vst [vmem:[#allocation122_spill] sm:$0xff] %v8762_v25  ;;  %v1072_v9 = vsel %vm748_vm0, %v1070_v0, %v15149_v31  ;;  %v974_v15 = vadd.f32 %v954_v20, %v771_v36  ;;  %v8793_v26 = vmul.f32 %v15155_v3, %v8758_v22  ;;  %v15157_v36 = vld [vmem:[#allocation35_spill] sm:$0xff]  ;;  %v15159_v31 = vld [vmem:[#allocation37_spill] sm:$0xff] }
  0xb5   :  { %15151 = vst [vmem:[#allocation123_spill] sm:$0xff] %v8775_v52  ;;  %v1092_v14 = vadd.f32 %v1072_v9, %v889_v16  ;;  %15152 = vst [vmem:[#allocation124_spill] sm:$0xff] %v8785_v61  ;;  %v1108_v0 = vsel %vm332_vm1, %v1101_v47, %v8785_v61  ;;  %v8806_v20 = vmul.f32 %v15157_v36, %v8644_v19  ;;  %v15161_v34 = vld [vmem:[#allocation38_spill] sm:$0xff]  ;;  %v15163_v47 = vld [vmem:[#allocation47_spill] sm:$0xff]  ;;  %v1011_v10 = vrot.slane %v995_v44, 1 }
  0xb6   :  { %15154 = vst [vmem:[#allocation125_spill] sm:$0xff] %v8789_v30  ;;  %15156 = vst [vmem:[#allocation126_spill] sm:$0xff] %v8793_v26  ;;  %v8810_v63 = vmul.f32 %v15159_v31, %v8644_v19  ;;  %v8814_v49 = vmul.f32 %v15161_v34, %v8644_v19  ;;  %v1135_v32 = vmul.f32 %v15153_v54, %v1108_v0  ;;  %1889 = vrot.lane.b32.xlu1 %v8783_v18, %s7682_s21  ;;  %v15165_v61 = vld [vmem:[#allocation59_spill] sm:$0xff] }
  0xb7   :  { %15158 = vst [vmem:[#allocation127_spill] sm:$0xff] %v8806_v20  ;;  %v1253_v9 = vmul.f32 %v15155_v3, %v1108_v0  ;;  %v8822_v16 = vmul.f32 %v15163_v47, %v8644_v19  ;;  %v8826_v62 = vmul.f32 %v15165_v61, %v8644_v19  ;;  %v830_v17 = vadd.f32 %v15167_v12, %v678_v21  ;;  %v15168_v3 = vld [vmem:[#allocation61_spill] sm:$0xff]  ;;  %v8838_v11 = vpop.permute.xlu1 %455  ;;  %v454_v60 = vpop.permute.xlu0 %453 }
  0xb8   :  { %15160 = vst [vmem:[#allocation128_spill] sm:$0xff] %v8810_v63  ;;  %15162 = vst [vmem:[#allocation129_spill] sm:$0xff] %v8814_v49  ;;  %1887 = vrot.lane.b32.xlu0 %v8798_v6, %s7682_s21  ;;  %v8834_v53 = vmul.f32 %v15168_v3, %v8644_v19  ;;  %v14492_v38 = vrot.slane %v8789_v30, 1  ;;  %v14491_v25 = vrot.slane %v8793_v26, 1  ;;  %v1151_v41 = vrot.slane %v1135_v32, 1  ;;  %v15183_v26 = vld [vmem:[#allocation42_spill] sm:$0xff] }
  0xb9   :  { %15164 = vst [vmem:[#allocation130_spill] sm:$0xff] %v8822_v16  ;;  %15166 = vst [vmem:[#allocation131_spill] sm:$0xff] %v8826_v62  ;;  %v1269_v54 = vrot.slane %v1253_v9, 1  ;;  %v8842_v12 = vsel %vm465_vm4, %v454_v60, %v8838_v11  ;;  %v15176_v60 = vld [vmem:[#allocation32_spill] sm:$0xff] }
  0xba   :  { %15169 = vst [vmem:[#allocation30_spill] sm:$0xff] %v8834_v53  ;;  %15170 = vst [vmem:[#allocation132_spill] sm:$0xff] %v8838_v11  ;;  %v1153_v8 = vsel %vm748_vm0, %v1151_v41, %v14492_v38  ;;  %2088 = vrot.lane.b32.xlu1 %v8783_v18, %s7681_s20  ;;  %v15172_v11 = vld [vmem:[#allocation29_spill] sm:$0xff]  ;;  %v8862_v41 = vmul.f32 %v8493_v2, %v8644_v19  ;;  %v8871_v9 = vmul.f32 %v15176_v60, %v8842_v12 }
  0xbb   :  { %15171 = vst [vmem:[#allocation133_spill] sm:$0xff] %v8842_v12  ;;  %v1271_v32 = vsel %vm748_vm0, %v1269_v54, %v14491_v25  ;;  %v1173_v21 = vadd.f32 %v1153_v8, %v974_v15  ;;  %v1194_v44 = vmul.f32 %v15172_v11, %v1108_v0  ;;  %v15174_v54 = vrot.slane %v8775_v52, 1  ;;  %v8867_v38 = vpop.permute.xlu1 %1301  ;;  %v15178_v8 = vld [vmem:[#allocation34_spill] sm:$0xff]  ;;  %v15185_v0 = vld [vmem:[#allocation43_spill] sm:$0xff] }
  0xbc   :  { %v1291_v37 = vadd.f32 %v1271_v32, %v1092_v14  ;;  %2086 = vrot.lane.b32.xlu0 %v8798_v6, %s7681_s20  ;;  %15173 = vst [vmem:[#allocation134_spill] sm:$0xff] %v8862_v41  ;;  %15175 = vst [vmem:[#allocation135_spill] sm:$0xff] %v8867_v38  ;;  %v8875_v15 = vmul.f32 %v15178_v8, %v8842_v12  ;;  %v1300_v14 = vpop.permute.xlu0 %1299  ;;  %v8880_v32 = vmul.f32 %v15172_v11, %v8758_v22 }
  0xbd   :  { %v1013_v25 = vsel %vm748_vm0, %v1011_v10, %v15174_v54  ;;  %15177 = vst [vmem:[#allocation136_spill] sm:$0xff] %v8871_v9  ;;  %v1307_v10 = vsel %vm465_vm4, %v1300_v14, %v8867_v38  ;;  %v15181_v54 = vld [vmem:[#allocation39_spill] sm:$0xff]  ;;  %v8890_v52 = vmul.f32 %v15183_v26, %v8758_v22  ;;  %v8898_v11 = vmul.f32 %v15185_v0, %v8758_v22  ;;  %v15187_v14 = vld [vmem:[#allocation62_spill] sm:$0xff] }
  0xbe   :  { %15179 = vst [vmem:[#allocation137_spill] sm:$0xff] %v8875_v15  ;;  %15180 = vst [vmem:[#allocation138_spill] sm:$0xff] %v8880_v32  ;;  %v8886_v58 = vmul.f32 %v15181_v54, %v8758_v22  ;;  %v1334_v30 = vmul.f32 %v15176_v60, %v1307_v10  ;;  %v1452_v40 = vmul.f32 %v15178_v8, %v1307_v10  ;;  %2285 = vrot.lane.b32.xlu1 %v8798_v6, %s7683_s24 }
  0xbf   :  { %15184 = vst [vmem:[#allocation140_spill] sm:$0xff] %v8890_v52  ;;  %15186 = vst [vmem:[#allocation141_spill] sm:$0xff] %v8898_v11  ;;  %v8902_v38 = vmul.f32 %v15187_v14, %v8758_v22  ;;  %v1033_v50 = vadd.f32 %v1013_v25, %v830_v17  ;;  %v1210_v5 = vrot.slane %v1194_v44, 1  ;;  %v8908_v8 = vmul.f32 %v8496_v23, %v8644_v19  ;;  %v8916_v17 = vpop.permute.xlu1 %588  ;;  %v15210_v23 = vld [vmem:[#allocation46_spill] sm:$0xff] }
  0xc0   :  { %15182 = vst [vmem:[#allocation139_spill] sm:$0xff] %v8886_v58  ;;  %212 = vrot.lane.b32.xlu0 %v15189_v24, %s7685_s19  ;;  %v8912_v60 = vmul.f32 %v8499_v1, %v8644_v19  ;;  %v14519_v48 = vrot.slane %v8871_v9, 1  ;;  %v14518_v57 = vrot.slane %v8875_v15, 1  ;;  %v1350_v39 = vrot.slane %v1334_v30, 1  ;;  %15192 = vst [vmem:[#allocation144_spill] sm:$0xff] %v8916_v17  ;;  %v587_v25 = vpop.permute.xlu0 %586 }
  0xc1   :  { %15188 = vst [vmem:[#allocation142_spill] sm:$0xff] %v8902_v38  ;;  %15190 = vst [vmem:[#allocation8_spill] sm:$0xff] %v8908_v8  ;;  %v1468_v43 = vrot.slane %v1452_v40, 1  ;;  %v8921_v29 = vsel %vm598_vm5, %v587_v25, %v8916_v17  ;;  %v8937_v44 = vmul.f32 %v15194_v4, %v8842_v12  ;;  %v15200_v25 = vld [vmem:[#allocation48_spill] sm:$0xff]  ;;  %v1393_v9 = vmul.f32 %v15194_v4, %v1307_v10  ;;  %v15213_v10 = vld [vmem:[#allocation49_spill] sm:$0xff] }
  0xc2   :  { %15191 = vst [vmem:[#allocation143_spill] sm:$0xff] %v8912_v60  ;;  %15193 = vst [vmem:[#allocation145_spill] sm:$0xff] %v8921_v29  ;;  %v1352_v42 = vsel %vm748_vm0, %v1350_v39, %v14519_v48  ;;  %345 = vrot.lane.b32.xlu1 %v15189_v24, %s7686_s22  ;;  %v15196_v39 = vld [vmem:[#allocation63_spill] sm:$0xff]  ;;  %v8952_v30 = vmul.f32 %v15200_v25, %v8921_v29  ;;  %v8976_v33 = vmul.f32 %v15208_v51, %v8842_v12 }
  0xc3   :  { %v1470_v40 = vsel %vm748_vm0, %v1468_v43, %v14518_v57  ;;  %15195 = vst [vmem:[#allocation146_spill] sm:$0xff] %v8937_v44  ;;  %v1372_v27 = vadd.f32 %v1352_v42, %v1173_v21  ;;  %v8943_v43 = vmul.f32 %v15196_v39, %v8758_v22  ;;  %v15198_v57 = vrot.slane %v8880_v32, 1  ;;  %v8948_v48 = vpop.permute.xlu1 %1500  ;;  %v15202_v42 = vld [vmem:[#allocation50_spill] sm:$0xff] }
  0xc4   :  { %v1490_v17 = vadd.f32 %v1470_v40, %v1291_v37  ;;  %2287 = vrot.lane.b32.xlu0 %v8783_v18, %s7683_s24  ;;  %15199 = vst [vmem:[#allocation148_spill] sm:$0xff] %v8948_v48  ;;  %15201 = vst [vmem:[#allocation149_spill] sm:$0xff] %v8952_v30  ;;  %v8956_v37 = vmul.f32 %v15202_v42, %v8921_v29  ;;  %v1499_v21 = vpop.permute.xlu0 %1498  ;;  %v15204_v40 = vld [vmem:[#allocation67_spill] sm:$0xff] }
  0xc5   :  { %15197 = vst [vmem:[#allocation147_spill] sm:$0xff] %v8943_v43  ;;  %v1212_v24 = vsel %vm748_vm0, %v1210_v5, %v15198_v57  ;;  %v8960_v15 = vmul.f32 %v15204_v40, %v8758_v22  ;;  %v1506_v57 = vsel %vm598_vm5, %v1499_v21, %v8948_v48  ;;  %v15206_v5 = vld [vmem:[#allocation44_spill] sm:$0xff]  ;;  %15209 = vst [vmem:[#allocation153_spill] sm:$0xff] %v8976_v33 }
  0xc6   :  { %15203 = vst [vmem:[#allocation150_spill] sm:$0xff] %v8956_v37  ;;  %v8967_v32 = vmul.f32 %v15206_v5, %v8842_v12  ;;  %v1533_v56 = vmul.f32 %v15200_v25, %v1506_v57  ;;  %v1651_v28 = vmul.f32 %v15202_v42, %v1506_v57  ;;  %2486 = vrot.lane.b32.xlu1 %v8783_v18, %s7684_s25  ;;  %v14543_v18 = vrot.slane %v8952_v30, 1 }
  0xc7   :  { %15205 = vst [vmem:[#allocation151_spill] sm:$0xff] %v8960_v15  ;;  %v1232_v21 = vadd.f32 %v1212_v24, %v1033_v50  ;;  %v8984_v25 = vmul.f32 %v15210_v23, %v8842_v12  ;;  %v14544_v4 = vrot.slane %v8956_v37, 1  ;;  %v8989_v19 = vpop.permute.xlu1 %1885  ;;  %v1409_v24 = vrot.slane %v1393_v9, 1  ;;  %v7549_v9 = vld [vmem:[%s15015_s1] sm:$0xff] }
  0xc8   :  { %15207 = vst [vmem:[#allocation152_spill] sm:$0xff] %v8967_v32  ;;  %2484 = vrot.lane.b32.xlu0 %v8798_v6, %s7684_s25  ;;  %v1549_v41 = vrot.slane %v1533_v56, 1  ;;  %v1667_v45 = vrot.slane %v1651_v28, 1  ;;  %15212 = vst [vmem:[#allocation155_spill] sm:$0xff] %v8989_v19  ;;  %v1884_v50 = vpop.permute.xlu0 %1883  ;;  %v1592_v48 = vmul.f32 %v15213_v10, %v1506_v57  ;;  %v15236_v1 = vrot.slane %v8967_v32, 2 }
  0xc9   :  { %15211 = vst [vmem:[#allocation154_spill] sm:$0xff] %v8984_v25  ;;  %v1891_v6 = vsel %vm199_vm2, %v1884_v50, %v8989_v19  ;;  %v9009_v50 = vmul.f32 %v15213_v10, %v8921_v29  ;;  %v15220_v10 = vrot.slane %v8806_v20, 2 }
  0xca   :  { %v1551_v42 = vsel %vm748_vm0, %v1549_v41, %v14543_v18  ;;  %v1669_v56 = vsel %vm748_vm0, %v1667_v45, %v14544_v4  ;;  %v1918_v28 = vmul.f32 %v15157_v36, %v1891_v6  ;;  %611 = vrot.lane.b32.xlu1 %v7549_v9, %s7687_s27  ;;  %v9015_v45 = vld [vmem:[%s15015_s1 + $0x38] sm:$0x7f]  ;;  %v2036_v19 = vmul.f32 %v15161_v34, %v1891_v6  ;;  %v15219_v34 = vld [vmem:[#allocation68_spill] sm:$0xff] }
  0xcb   :  { %15214 = vst [vmem:[#allocation156_spill] sm:$0xff] %v9009_v50  ;;  %v1571_v41 = vadd.f32 %v1551_v42, %v1372_v27  ;;  %v1689_v18 = vadd.f32 %v1669_v56, %v1490_v17  ;;  %v9019_v57 = vpop.permute.xlu1 %2084  ;;  %v9024_v27 = vld [vmem:[%s15015_s1 + $0x30] sm:$0x7f]  ;;  %v15216_v42 = vld [vmem:[#allocation69_spill] sm:$0xff]  ;;  %v1608_v4 = vrot.slane %v1592_v48, 1  ;;  %v14558_v48 = vrot.slane %v9009_v50, 1 }
  0xcc   :  { %478 = vrot.lane.b32.xlu0 %v7549_v9, %s7688_s29  ;;  %v1934_v8 = vrot.slane %v1918_v28, 2  ;;  %15215 = vst [vmem:[#allocation157_spill] sm:$0xff] %v9019_v57  ;;  %v2083_v36 = vpop.permute.xlu0 %2082  ;;  %v9029_v56 = vmul.f32 %v15216_v42, %v8842_v12  ;;  %v15218_v9 = vrot.slane %v8937_v44, 1  ;;  %v2052_v7 = vrot.slane %v2036_v19, 2  ;;  %v15221_v44 = vld [vmem:[#allocation70_spill] sm:$0xff]  ;;  %v15223_v19 = vld [vmem:[#allocation71_spill] sm:$0xff] }
  0xcd   :  { %v1753_v37 = vadd.f32 %v15219_v34, %v1571_v41  ;;  %v1871_v30 = vadd.f32 %v8466_v46, %v1689_v18  ;;  %v2090_v17 = vsel %vm332_vm1, %v2083_v36, %v9019_v57  ;;  %v9045_v43 = vmul.f32 %v15221_v44, %v8842_v12 }
  0xce   :  { %15217 = vst [vmem:[#allocation158_spill] sm:$0xff] %v9029_v56  ;;  %v1411_v28 = vsel %vm748_vm0, %v1409_v24, %v15218_v9  ;;  %v1936_v55 = vsel %vm1730_vm3, %v1934_v8, %v15220_v10  ;;  %2871 = vrot.lane.b32.xlu1 %v9015_v45, %s7682_s21  ;;  %v2117_v46 = vmul.f32 %v15181_v54, %v2090_v17  ;;  %v15225_v10 = vrot.slane %v8814_v49, 2 }
  0xcf   :  { %15222 = vst [vmem:[#allocation68_spill] sm:$0xff] %v9045_v43  ;;  %v1956_v34 = vadd.f32 %v1936_v55, %v1753_v37  ;;  %v9053_v8 = vmul.f32 %v15223_v19, %v8842_v12  ;;  %v1431_v36 = vadd.f32 %v1411_v28, %v1232_v21  ;;  %v2235_v24 = vmul.f32 %v15185_v0, %v2090_v17  ;;  %v9059_v41 = vpop.permute.xlu1 %2283  ;;  %v9073_v55 = vld [vmem:[%s15015_s1] sm:$0xfe] }
  0xd0   :  { %2869 = vrot.lane.b32.xlu0 %v9024_v27, %s7682_s21  ;;  %v2054_v18 = vsel %vm1730_vm3, %v2052_v7, %v15225_v10  ;;  %15226 = vst [vmem:[#allocation160_spill] sm:$0xff] %v9059_v41  ;;  %v2282_v9 = vpop.permute.xlu0 %2281  ;;  %v1610_v37 = vsel %vm748_vm0, %v1608_v4, %v14558_v48  ;;  %v2133_v54 = vrot.slane %v2117_v46, 2  ;;  %v1977_v28 = vmul.f32 %v15159_v31, %v1891_v6  ;;  %v9083_v6 = vld [vmem:[%s15015_s1 + $0x10] sm:$0xff]  ;;  %v15228_v46 = vld [vmem:[#allocation52_spill] sm:$0xff]  ;;  %v15232_v48 = vld [vmem:[#allocation57_spill] sm:$0xff] }
  0xd1   :  { %15224 = vst [vmem:[#allocation159_spill] sm:$0xff] %v9053_v8  ;;  %v2074_v57 = vadd.f32 %v2054_v18, %v1871_v30  ;;  %v2289_v21 = vsel %vm465_vm4, %v2282_v9, %v9059_v41  ;;  %v2251_v49 = vrot.slane %v2235_v24, 2  ;;  %v15227_v4 = vrot.slane %v8886_v58, 2  ;;  %v15230_v24 = vld [vmem:[#allocation53_spill] sm:$0xff] }
  0xd2   :  { %v2316_v7 = vmul.f32 %v15206_v5, %v2289_v21  ;;  %v2434_v10 = vmul.f32 %v15210_v23, %v2289_v21  ;;  %915 = vrot.lane.b32.xlu1 %v9073_v55, %s7685_s19  ;;  %v9089_v18 = vmul.f32 %v15228_v46, %v8921_v29  ;;  %v9093_v9 = vmul.f32 %v15230_v24, %v8921_v29 }
  0xd3   :  { %v2135_v30 = vsel %vm1730_vm3, %v2133_v54, %v15227_v4  ;;  %v9097_v41 = vmul.f32 %v15232_v48, %v8921_v29  ;;  %v2176_v4 = vmul.f32 %v15183_v26, %v2090_v17  ;;  %v15234_v23 = vrot.slane %v8898_v11, 2  ;;  %v9103_v0 = vpop.permute.xlu1 %2482  ;;  %v15341_v11 = vld [vmem:[#allocation122_spill] sm:$0xff]  ;;  %v15371_v26 = vld [vmem:[#allocation136_spill] sm:$0xff] }
  0xd4   :  { %214 = vrot.lane.b32.xlu0 %v9083_v6, %s7685_s19  ;;  %15229 = vst [vmem:[#allocation161_spill] sm:$0xff] %v9089_v18  ;;  %15231 = vst [vmem:[#allocation162_spill] sm:$0xff] %v9093_v9  ;;  %v2155_v54 = vadd.f32 %v2135_v30, %v1956_v34  ;;  %v2332_v58 = vrot.slane %v2316_v7, 2  ;;  %v2481_v31 = vpop.permute.xlu0 %2480  ;;  %v1630_v20 = vadd.f32 %v1610_v37, %v1431_v36  ;;  %v2450_v12 = vrot.slane %v2434_v10, 2 }
  0xd5   :  { %15233 = vst [vmem:[#allocation163_spill] sm:$0xff] %v9097_v41  ;;  %v2253_v5 = vsel %vm1730_vm3, %v2251_v49, %v15234_v23  ;;  %15235 = vst [vmem:[#allocation164_spill] sm:$0xff] %v9103_v0  ;;  %v2488_v60 = vsel %vm598_vm5, %v2481_v31, %v9103_v0  ;;  %v1993_v22 = vrot.slane %v1977_v28, 2  ;;  %v2375_v49 = vmul.f32 %v15208_v51, %v2289_v21  ;;  %v15342_v51 = vld [vmem:[#allocation26_spill] sm:$0xff] }
  0xd6   :  { %v2273_v50 = vadd.f32 %v2253_v5, %v2074_v57  ;;  %v2334_v34 = vsel %vm1730_vm3, %v2332_v58, %v15236_v1  ;;  %v2515_v17 = vmul.f32 %v15228_v46, %v2488_v60  ;;  %v2633_v30 = vmul.f32 %v15232_v48, %v2488_v60  ;;  %3070 = vrot.lane.b32.xlu1 %v9015_v45, %s7681_s20  ;;  %v15337_v46 = vld [vmem:[#allocation28_spill] sm:$0xff] }
  0xd7   :  { %v2354_v23 = vadd.f32 %v2334_v34, %v2155_v54  ;;  %v15237_v5 = vrot.slane %v8984_v25, 2  ;;  %v2192_v1 = vrot.slane %v2176_v4, 2  ;;  %v14575_v36 = vrot.slane %v9089_v18, 2  ;;  %v9122_v28 = vpop.permute.xlu1 %2867  ;;  %v15239_v34 = vld [vmem:[#allocation72_spill] sm:$0xff]  ;;  %v15335_v18 = vld [vmem:[#allocation109_spill] sm:$0xff] }
  0xd8   :  { %3068 = vrot.lane.b32.xlu0 %v9024_v27, %s7681_s20  ;;  %v2531_v37 = vrot.slane %v2515_v17, 2  ;;  %15238 = vst [vmem:[#allocation165_spill] sm:$0xff] %v9122_v28  ;;  %v2866_v7 = vpop.permute.xlu0 %2865  ;;  %v14576_v10 = vrot.slane %v9097_v41, 2  ;;  %v2574_v21 = vmul.f32 %v15230_v24, %v2488_v60  ;;  %v2649_v54 = vrot.slane %v2633_v30, 2 }
  0xd9   :  { %v2452_v57 = vsel %vm1730_vm3, %v2450_v12, %v15237_v5  ;;  %v2873_v12 = vsel %vm199_vm2, %v2866_v7, %v9122_v28  ;;  %v1812_v5 = vadd.f32 %v15239_v34, %v1630_v20  ;;  %v15240_v31 = vrot.slane %v8810_v63, 2 }
  0xda   :  { %v2472_v58 = vadd.f32 %v2452_v57, %v2273_v50  ;;  %v2533_v4 = vsel %vm1730_vm3, %v2531_v37, %v14575_v36  ;;  %v2900_v17 = vmul.f32 %v15163_v47, %v2873_v12  ;;  %1114 = vrot.lane.b32.xlu1 %v9073_v55, %s7686_s22  ;;  %v2391_v60 = vrot.slane %v2375_v49, 2  ;;  %v15325_v47 = vld [vmem:[#allocation25_spill] sm:$0xff] }
  0xdb   :  { %v1995_v50 = vsel %vm1730_vm3, %v1993_v22, %v15240_v31  ;;  %v2553_v30 = vadd.f32 %v2533_v4, %v2354_v23  ;;  %v2651_v57 = vsel %vm1730_vm3, %v2649_v54, %v14576_v10  ;;  %v3018_v20 = vmul.f32 %v15168_v3, %v2873_v12  ;;  %v9148_v36 = vpop.permute.xlu1 %3066 }
  0xdc   :  { %347 = vrot.lane.b32.xlu0 %v9083_v6, %s7686_s22  ;;  %v15241_v22 = vrot.slane %v8890_v52, 2  ;;  %v14580_v37 = vrot.slane %v9093_v9, 2  ;;  %v2671_v7 = vadd.f32 %v2651_v57, %v2472_v58  ;;  %v2916_v34 = vrot.slane %v2900_v17, 3  ;;  %15242 = vst [vmem:[#allocation72_spill] sm:$0xff] %v9148_v36  ;;  %v3065_v23 = vpop.permute.xlu0 %3064 }
  0xdd   :  { %v2590_v49 = vrot.slane %v2574_v21, 2  ;;  %v2735_v4 = vadd.f32 %v8532_v59, %v2553_v30  ;;  %v3034_v54 = vrot.slane %v3018_v20, 3  ;;  %v3072_v10 = vsel %vm332_vm1, %v3065_v23, %v9148_v36 }
  0xde   :  { %v2194_v31 = vsel %vm1730_vm3, %v2192_v1, %v15241_v22  ;;  %v2015_v28 = vadd.f32 %v1995_v50, %v1812_v5  ;;  %v2853_v0 = vadd.f32 %v8545_v35, %v2671_v7  ;;  %v15243_v3 = vrot.slane %v8822_v16, 3  ;;  %3269 = vrot.lane.b32.xlu1 %v9015_v45, %s7683_s24 }
  0xdf   :  { %v3099_v58 = vmul.f32 %v15187_v14, %v3072_v10  ;;  %v15244_v21 = vrot.slane %v8976_v33, 2  ;;  %v15245_v30 = vrot.slane %v8834_v53, 3  ;;  %v3217_v20 = vmul.f32 %v15204_v40, %v3072_v10  ;;  %v9170_v22 = vpop.permute.xlu1 %3265  ;;  %v15291_v53 = vld [vmem:[#allocation20_spill] sm:$0xff] }
  0xe0   :  { %v2918_v1 = vsel %vm2712_vm6, %v2916_v34, %v15243_v3  ;;  %3267 = vrot.lane.b32.xlu0 %v9024_v27, %s7683_s24  ;;  %v2214_v3 = vadd.f32 %v2194_v31, %v2015_v28  ;;  %15246 = vst [vmem:[#allocation166_spill] sm:$0xff] %v9170_v22  ;;  %v3264_v7 = vpop.permute.xlu0 %3263  ;;  %v2959_v34 = vmul.f32 %v15165_v61, %v2873_v12  ;;  %v15248_v12 = vld [vmem:[#allocation73_spill] sm:$0xff]  ;;  %v15336_v25 = vrot.slane %v15335_v18, 1 }
  0xe1   :  { %v2393_v59 = vsel %vm1730_vm3, %v2391_v60, %v15244_v21  ;;  %v2938_v17 = vadd.f32 %v2918_v1, %v2735_v4  ;;  %v3036_v5 = vsel %vm2712_vm6, %v3034_v54, %v15245_v30  ;;  %v3115_v57 = vrot.slane %v3099_v58, 3 }
  0xe2   :  { %v3056_v50 = vadd.f32 %v3036_v5, %v2853_v0  ;;  %v2592_v60 = vsel %vm1730_vm3, %v2590_v49, %v14580_v37  ;;  %v3271_v4 = vsel %vm465_vm4, %v3264_v7, %v9170_v22  ;;  %v2413_v54 = vadd.f32 %v2393_v59, %v2214_v3  ;;  %1313 = vrot.lane.b32.xlu1 %v9073_v55, %s7688_s29  ;;  %v15250_v59 = vld [vmem:[#allocation75_spill] sm:$0xff] }
  0xe3   :  { %v15247_v0 = vrot.slane %v8902_v38, 3  ;;  %v3233_v31 = vrot.slane %v3217_v20, 3  ;;  %v3298_v1 = vmul.f32 %v15216_v42, %v3271_v4  ;;  %v3416_v49 = vmul.f32 %v15223_v19, %v3271_v4  ;;  %v9200_v7 = vpop.permute.xlu1 %3464  ;;  %v15290_v42 = vld [vmem:[#allocation15_spill] sm:$0xff] }
  0xe4   :  { %480 = vrot.lane.b32.xlu0 %v9083_v6, %s7688_s29  ;;  %v9190_v21 = vmul.f32 %v15248_v12, %v8921_v29  ;;  %v9194_v30 = vmul.f32 %v15250_v59, %v8921_v29  ;;  %v2612_v5 = vadd.f32 %v2592_v60, %v2413_v54  ;;  %v3158_v3 = vmul.f32 %v15196_v39, %v3072_v10  ;;  %v15255_v54 = vld [vmem:[#allocation74_spill] sm:$0xff] }
  0xe5   :  { %v3117_v28 = vsel %vm2712_vm6, %v3115_v57, %v15247_v0  ;;  %v15252_v57 = vrot.slane %v8960_v15, 3  ;;  %v3314_v20 = vrot.slane %v3298_v1, 3  ;;  %15253 = vst [vmem:[#allocation169_spill] sm:$0xff] %v9200_v7  ;;  %v3463_v0 = vpop.permute.xlu0 %3462  ;;  %v3432_v35 = vrot.slane %v3416_v49, 3  ;;  %v15276_v15 = vld [vmem:[#allocation134_spill] sm:$0xff] }
  0xe6   :  { %v3137_v58 = vadd.f32 %v3117_v28, %v2938_v17  ;;  %15249 = vst [vmem:[#allocation167_spill] sm:$0xff] %v9190_v21  ;;  %15251 = vst [vmem:[#allocation168_spill] sm:$0xff] %v9194_v30  ;;  %v2975_v28 = vrot.slane %v2959_v34, 3  ;;  %v3470_v23 = vsel %vm598_vm5, %v3463_v0, %v9200_v7  ;;  %v15254_v22 = vrot.slane %v9029_v56, 3  ;;  %3468 = vrot.lane.b32.xlu1 %v9015_v45, %s7684_s25 }
  0xe7   :  { %v3235_v17 = vsel %vm2712_vm6, %v3233_v31, %v15252_v57  ;;  %v3357_v10 = vmul.f32 %v15221_v44, %v3271_v4  ;;  %v9210_v36 = vmul.f32 %v15255_v54, %v8921_v29  ;;  %v3497_v31 = vmul.f32 %v15248_v12, %v3470_v23  ;;  %v9223_v0 = vpop.permute.xlu1 %3849  ;;  %v15272_v12 = vld [vmem:[#allocation99_spill] sm:$0xff] }
  0xe8   :  { %v3255_v37 = vadd.f32 %v3235_v17, %v3056_v50  ;;  %v3316_v60 = vsel %vm2712_vm6, %v3314_v20, %v15254_v22  ;;  %v15257_v34 = vrot.slane %v9053_v8, 3  ;;  %v3615_v22 = vmul.f32 %v15250_v59, %v3470_v23  ;;  %3466 = vrot.lane.b32.xlu0 %v9024_v27, %s7684_s25  ;;  %15258 = vst [vmem:[#allocation171_spill] sm:$0xff] %v9223_v0  ;;  %v15275_v8 = vld [vmem:[#allocation105_spill] sm:$0xff] }
  0xe9   :  { %15256 = vst [vmem:[#allocation170_spill] sm:$0xff] %v9210_v36  ;;  %v3336_v50 = vadd.f32 %v3316_v60, %v3137_v58  ;;  %v3174_v4 = vrot.slane %v3158_v3, 3  ;;  %v14584_v17 = vrot.slane %v9194_v30, 3  ;;  %v3513_v20 = vrot.slane %v3497_v31, 3  ;;  %v3848_v45 = vpop.permute.xlu0 %3847 }
  0xea   :  { %v3434_v1 = vsel %vm2712_vm6, %v3432_v35, %v15257_v34  ;;  %v2794_v58 = vadd.f32 %v8537_v13, %v2612_v5  ;;  %v15259_v60 = vrot.slane %v8826_v62, 3  ;;  %v3631_v34 = vrot.slane %v3615_v22, 3  ;;  %1512 = vrot.lane.b32.xlu1 %v9073_v55, %s7687_s27  ;;  %v15263_v22 = vld [vmem:[#allocation83_spill] sm:$0xff] }
  0xeb   :  { %v3454_v57 = vadd.f32 %v3434_v1, %v3255_v37  ;;  %v3855_v49 = vsel %vm199_vm2, %v3848_v45, %v9223_v0  ;;  %v3373_v7 = vrot.slane %v3357_v10, 3  ;;  %v15260_v27 = vrot.slane %v9190_v21, 3  ;;  %v9247_v10 = vld [vmem:[%s15015_s1 + $0x38] sm:$0xff] }
  0xec   :  { %v2977_v35 = vsel %vm2712_vm6, %v2975_v28, %v15259_v60  ;;  %v3556_v3 = vmul.f32 %v15255_v54, %v3470_v23  ;;  %v3882_v31 = vmul.f32 %v8493_v2, %v3855_v49  ;;  %v3633_v5 = vsel %vm2712_vm6, %v3631_v34, %v14584_v17  ;;  %v15261_v28 = vld [vmem:[#allocation79_spill] sm:$0xff]  ;;  %613 = vrot.lane.b32.xlu0 %v9083_v6, %s7687_s27  ;;  %v15262_v23 = vld [vmem:[#allocation121_spill] sm:$0xff]  ;;  %v9261_v6 = vld [vmem:[%s15015_s1 + $0x30] sm:$0xff] }
  0xed   :  { %v3515_v37 = vsel %vm2712_vm6, %v3513_v20, %v15260_v27  ;;  %v4000_v1 = vmul.f32 %v15261_v28, %v3855_v49  ;;  %v9251_v20 = vmul.f32 %v15263_v22, %v15262_v23  ;;  %v15265_v55 = vld [vmem:[#allocation147_spill] sm:$0xff]  ;;  %v3653_v60 = vadd.f32 %v3633_v5, %v3454_v57  ;;  %v9256_v27 = vpop.permute.xlu1 %193  ;;  %15268 = vst [vmem:[#allocation173_spill] sm:$0xff] %v9261_v6  ;;  %v15269_v17 = vld [vmem:[#allocation85_spill] sm:$0xff] }
  0xee   :  { %v3535_v13 = vadd.f32 %v3515_v37, %v3336_v50  ;;  %v15266_v50 = vrot.slane %v15265_v55, 3  ;;  %v3898_v34 = vrot.slane %v3882_v31, 4  ;;  %15267 = vst [vmem:[#allocation172_spill] sm:$0xff] %v9256_v27  ;;  %v192_v37 = vpop.permute.xlu0 %191  ;;  %v9265_v0 = vmul.f32 %v15269_v17, %v15262_v23  ;;  %v15271_v2 = vld [vmem:[#allocation101_spill] sm:$0xff]  ;;  %3853 = vrot.lane.b32.xlu1 %v9247_v10, %s7682_s21 }
  0xef   :  { %15264 = vst [vmem:[#allocation121_spill] sm:$0xff] %v9251_v20  ;;  %v2997_v30 = vadd.f32 %v2977_v35, %v2794_v58  ;;  %v4016_v28 = vrot.slane %v4000_v1, 4  ;;  %v15274_v31 = vrot.slane %v9045_v43, 3  ;;  %v3835_v59 = vadd.f32 %v15275_v8, %v3653_v60 }
  0xf0   :  { %v3176_v45 = vsel %vm2712_vm6, %v3174_v4, %v15266_v50  ;;  %15270 = vst [vmem:[#allocation174_spill] sm:$0xff] %v9265_v0  ;;  %v3717_v21 = vadd.f32 %v15271_v2, %v3535_v13  ;;  %v15273_v4 = vld [vmem:[#allocation13_spill] sm:$0xff]  ;;  %v3572_v50 = vrot.slane %v3556_v3, 3  ;;  %v15277_v19 = vrot.slane %v15276_v15, 4  ;;  %v15278_v13 = vld [vmem:[#allocation143_spill] sm:$0xff]  ;;  %3851 = vrot.lane.b32.xlu0 %v9261_v6, %s7682_s21 }
  0xf1   :  { %v244_v57 = vmul.f32 %v15273_v4, %v15272_v12  ;;  %v3375_v5 = vsel %vm2712_vm6, %v3373_v7, %v15274_v31  ;;  %v3196_v58 = vadd.f32 %v3176_v45, %v2997_v30  ;;  %v14597_v2 = vrot.slane %v9210_v36, 3  ;;  %v9285_v8 = vpop.permute.xlu1 %4048  ;;  %v15281_v30 = vld [vmem:[#allocation16_spill] sm:$0xff]  ;;  %v15283_v31 = vld [vmem:[#allocation10_spill] sm:$0xff] }
  0xf2   :  { %v3900_v56 = vsel %vm3694_vm7, %v3898_v34, %v15277_v19  ;;  %v15279_v1 = vrot.slane %v15278_v13, 4  ;;  %15280 = vst [vmem:[#allocation101_spill] sm:$0xff] %v9285_v8  ;;  %v4047_v60 = vpop.permute.xlu0 %4046  ;;  %v273_v45 = vmul.f32 %v15281_v30, %v15272_v12  ;;  %4050 = vrot.lane.b32.xlu1 %v9261_v6, %s7681_s20  ;;  %v15287_v13 = vld [vmem:[#allocation133_spill] sm:$0xff]  ;;  %v15292_v36 = vld [vmem:[#allocation84_spill] sm:$0xff]  ;;  %v15297_v54 = vrot.slane %v9251_v20, 4  ;;  %v15318_v20 = vld [vmem:[#allocation94_spill] sm:$0xff] }
  0xf3   :  { %v3920_v35 = vadd.f32 %v3900_v56, %v3717_v21  ;;  %v3395_v34 = vadd.f32 %v3375_v5, %v3196_v58  ;;  %v4054_v56 = vsel %vm332_vm1, %v4047_v60, %v9285_v8  ;;  %v15282_v21 = vld [vmem:[#allocation14_spill] sm:$0xff]  ;;  %v15284_v5 = vld [vmem:[#allocation17_spill] sm:$0xff]  ;;  %v15288_v8 = vld [vmem:[#allocation19_spill] sm:$0xff]  ;;  %v539_v14 = vmul.f32 %v15291_v53, %v15287_v13 }
  0xf4   :  { %v4018_v38 = vsel %vm3694_vm7, %v4016_v28, %v15279_v1  ;;  %v252_v28 = vadd.f32 %v244_v57, %v15282_v21  ;;  %v377_v1 = vmul.f32 %v15283_v31, %v15262_v23  ;;  %v4199_v19 = vmul.f32 %v15269_v17, %v4054_v56  ;;  %v15285_v60 = vld [vmem:[#allocation78_spill] sm:$0xff]  ;;  %v9309_v57 = vld [vmem:[%s15015_s1] sm:$0xfc]  ;;  %v15286_v21 = vld [vmem:[#allocation11_spill] sm:$0xff] }
  0xf5   :  { %v4038_v7 = vadd.f32 %v4018_v38, %v3835_v59  ;;  %v3574_v38 = vsel %vm2712_vm6, %v3572_v50, %v14597_v2  ;;  %v4081_v59 = vmul.f32 %v15263_v22, %v4054_v56  ;;  %v302_v58 = vmul.f32 %v15284_v5, %v15272_v12  ;;  %1897 = vrot.lane.b32.xlu0 %v9309_v57, %s7685_s19  ;;  %v9317_v12 = vpop.permute.xlu1 %326 }
  0xf6   :  { %v3941_v3 = vmul.f32 %v15285_v60, %v3855_v49  ;;  %v385_v50 = vadd.f32 %v377_v1, %v252_v28  ;;  %v406_v2 = vmul.f32 %v15286_v21, %v15262_v23  ;;  %v510_v15 = vmul.f32 %v15288_v8, %v15287_v13  ;;  %15289 = vst [vmem:[#allocation99_spill] sm:$0xff] %v9317_v12  ;;  %v325_v49 = vpop.permute.xlu0 %324  ;;  %v15294_v28 = vld [vmem:[#allocation87_spill] sm:$0xff]  ;;  %v15296_v60 = vld [vmem:[#allocation12_spill] sm:$0xff] }
  0xf7   :  { %v4097_v22 = vrot.slane %v4081_v59, 4  ;;  %v4215_v17 = vrot.slane %v4199_v19, 4  ;;  %v281_v40 = vadd.f32 %v273_v45, %v15290_v42  ;;  %v9324_v43 = vmul.f32 %v15292_v36, %v15262_v23  ;;  %2096 = vrot.lane.b32.xlu1 %v9309_v57, %s7686_s22 }
  0xf8   :  { %v9328_v1 = vmul.f32 %v15294_v28, %v15287_v13  ;;  %v435_v59 = vmul.f32 %v15296_v60, %v15262_v23  ;;  %v518_v19 = vadd.f32 %v510_v15, %v385_v50  ;;  %v3594_v55 = vadd.f32 %v3574_v38, %v3395_v34  ;;  %v15301_v15 = vld [vmem:[#allocation18_spill] sm:$0xff] }
  0xf9   :  { %15293 = vst [vmem:[#allocation13_spill] sm:$0xff] %v9324_v43  ;;  %v4099_v42 = vsel %vm3694_vm7, %v4097_v22, %v15297_v54  ;;  %v15298_v45 = vrot.slane %v9265_v0, 4  ;;  %v414_v62 = vadd.f32 %v406_v2, %v281_v40  ;;  %v3957_v39 = vrot.slane %v3941_v3, 4  ;;  %4052 = vrot.lane.b32.xlu0 %v9247_v10, %s7681_s20  ;;  %v9351_v22 = vpop.permute.xlu1 %4247  ;;  %v15307_v50 = vld [vmem:[#allocation102_spill] sm:$0xff]  ;;  %v15312_v0 = vld [vmem:[#allocation93_spill] sm:$0xff] }
  0xfa   :  { %15295 = vst [vmem:[#allocation105_spill] sm:$0xff] %v9328_v1  ;;  %v9340_v16 = vadd.f32 %v4099_v42, %v3920_v35  ;;  %v310_v23 = vadd.f32 %v302_v58, %v15301_v15  ;;  %v9349_v54 = vsel %vm199_vm2, %v192_v37, %v9256_v27  ;;  %15302 = vst [vmem:[#allocation10_spill] sm:$0xff] %v9351_v22  ;;  %v4246_v40 = vpop.permute.xlu0 %4245  ;;  %v15306_v37 = vld [vmem:[#allocation22_spill] sm:$0xff]  ;;  %v15313_v27 = vrot.slane %v15312_v0, 1 }
  0xfb   :  { %v4217_v44 = vsel %vm3694_vm7, %v4215_v17, %v15298_v45  ;;  %v15303_v17 = vld [vmem:[#allocation96_spill] sm:$0xff]  ;;  %v547_v2 = vadd.f32 %v539_v14, %v414_v62  ;;  %v4253_v3 = vsel %vm465_vm4, %v4246_v40, %v9351_v22  ;;  %v643_v58 = vmul.f32 %v15306_v37, %v8921_v29  ;;  %v15308_v45 = vld [vmem:[#allocation98_spill] sm:$0xff]  ;;  %4251 = vrot.lane.b32.xlu1 %v9247_v10, %s7683_s24 }
  0xfc   :  { %15299 = vst [vmem:[#allocation16_spill] sm:$0xff] %v9340_v16  ;;  %v9342_v61 = vadd.f32 %v4217_v44, %v4038_v7  ;;  %v9355_v34 = vmul.f32 %v15303_v17, %v15287_v13  ;;  %v15305_v44 = vld [vmem:[#allocation21_spill] sm:$0xff]  ;;  %v4140_v7 = vmul.f32 %v15292_v36, %v4054_v56  ;;  %v443_v38 = vadd.f32 %v435_v59, %v310_v23  ;;  %v15310_v14 = vld [vmem:[#allocation116_spill] sm:$0xff]  ;;  %v15322_v36 = vld [vmem:[#allocation95_spill] sm:$0xff] }
  0xfd   :  { %v568_v35 = vmul.f32 %v15305_v44, %v15287_v13  ;;  %v3776_v42 = vadd.f32 %v15307_v50, %v3594_v55  ;;  %v9367_v15 = vmul.f32 %v15308_v45, %v15287_v13  ;;  %v4280_v62 = vmul.f32 %v15294_v28, %v4253_v3  ;;  %v15314_v23 = vld [vmem:[#allocation8_spill] sm:$0xff]  ;;  %4249 = vrot.lane.b32.xlu0 %v9261_v6, %s7683_s24  ;;  %v15316_v50 = vld [vmem:[#allocation118_spill] sm:$0xff]  ;;  %v15320_v28 = vld [vmem:[#allocation119_spill] sm:$0xff]  ;;  %s13017_s24 = sld [smem:[#allocation2 + $0x2]] }
  0xfe   :  { %15300 = vst [vmem:[#allocation14_spill] sm:$0xff] %v9342_v61  ;;  %15304 = vst [vmem:[#allocation17_spill] sm:$0xff] %v9355_v34  ;;  %v15311_v56 = vrot.slane %v15310_v14, 1  ;;  %v15315_v40 = vrot.slane %v15314_v23, 4  ;;  %v15317_v22 = vrot.slane %v15316_v50, 1  ;;  %v15319_v16 = vrot.slane %v15318_v20, 1  ;;  %v9399_v23 = vpop.permute.xlu1 %197 }
  0xff   :  { %15309 = vst [vmem:[#allocation11_spill] sm:$0xff] %v9367_v15  ;;  %v576_v13 = vadd.f32 %v568_v35, %v443_v38  ;;  %v15321_v0 = vrot.slane %v15320_v28, 1  ;;  %15324 = vst [vmem:[#allocation133_spill] sm:$0xff] %v9399_v23  ;;  %v196_v35 = vpop.permute.xlu0 %195  ;;  %v651_v38 = vadd.f32 %v643_v58, %v518_v19  ;;  %v9403_v20 = vmul.f32 %v15325_v47, %v9349_v54 }
 0x100   :  { %v9377_v59 = vsel %vm748_vm0, %v15313_v27, %v15311_v56  ;;  %v3959_v55 = vsel %vm3694_vm7, %v3957_v39, %v15315_v40  ;;  %v9389_v61 = vsel %vm748_vm0, %v15319_v16, %v15317_v22  ;;  %v15323_v27 = vrot.slane %v15322_v36, 1  ;;  %4448 = vrot.lane.b32.xlu1 %v9261_v6, %s7684_s25  ;;  %v15330_v16 = vld [vmem:[#allocation24_spill] sm:$0xff]  ;;  %v15368_v6 = vld [vmem:[#allocation110_spill] sm:$0xff] }
 0x101   :  { %v14621_v39 = vrot.slane %v9328_v1, 4  ;;  %v4296_v40 = vrot.slane %v4280_v62, 4  ;;  %v4156_v22 = vrot.slane %v4140_v7, 4  ;;  %v246_v36 = vmul.f32 %v15273_v4, %v9349_v54  ;;  %2295 = vrot.lane.b32.xlu0 %v9309_v57, %s7688_s29  ;;  %v15331_v1 = vld [vmem:[#allocation112_spill] sm:$0xff] }
 0x102   :  { %v9396_v56 = vsel %vm748_vm0, %v15323_v27, %v15321_v0  ;;  %v3979_v0 = vadd.f32 %v3959_v55, %v3776_v42  ;;  %v9411_v62 = vsel %vm332_vm1, %v325_v49, %v9317_v12  ;;  %v4339_v7 = vmul.f32 %v15303_v17, %v4253_v3  ;;  %v15328_v49 = vld [vmem:[#allocation23_spill] sm:$0xff]  ;;  %v9428_v27 = vpop.permute.xlu1 %459  ;;  %v15333_v17 = vld [vmem:[#allocation113_spill] sm:$0xff] }
 0x103   :  { %15326 = vst [vmem:[#allocation19_spill] sm:$0xff] %v9411_v62  ;;  %v9417_v19 = vsel %vm3694_vm7, %v4296_v40, %v14621_v39  ;;  %v4398_v58 = vmul.f32 %v15308_v45, %v4253_v3  ;;  %v672_v42 = vmul.f32 %v15328_v49, %v8921_v29  ;;  %15329 = vst [vmem:[#allocation20_spill] sm:$0xff] %v9428_v27  ;;  %v458_v41 = vpop.permute.xlu0 %457  ;;  %v15334_v9 = vrot.slane %v9403_v20, 1 }
 0x104   :  { %15327 = vst [vmem:[#allocation15_spill] sm:$0xff] %v9417_v19  ;;  %v275_v40 = vmul.f32 %v15281_v30, %v9349_v54  ;;  %v304_v39 = vmul.f32 %v15284_v5, %v9349_v54  ;;  %v701_v3 = vmul.f32 %v15330_v16, %v8921_v29  ;;  %v773_v12 = vadd.f32 %v15331_v1, %v651_v38 }
 0x105   :  { %v15332_v19 = vrot.slane %v9324_v43, 4  ;;  %v254_v55 = vadd.f32 %v246_v36, %v15333_v17  ;;  %v959_v33 = vsel %vm748_vm0, %v15336_v25, %v15334_v9  ;;  %v9448_v48 = vmul.f32 %v15337_v46, %v9411_v62  ;;  %2494 = vrot.lane.b32.xlu1 %v9309_v57, %s7687_s27  ;;  %4450 = vrot.lane.b32.xlu0 %v9247_v10, %s7684_s25  ;;  %v15340_v43 = vld [vmem:[#allocation117_spill] sm:$0xff]  ;;  %v15345_v10 = vld [vmem:[#allocation27_spill] sm:$0xff] }
 0x106   :  { %v379_v1 = vmul.f32 %v15283_v31, %v9411_v62  ;;  %v408_v38 = vmul.f32 %v15286_v21, %v9411_v62  ;;  %v437_v17 = vmul.f32 %v15296_v60, %v9411_v62  ;;  %v4355_v18 = vrot.slane %v4339_v7, 4  ;;  %v9462_v57 = vpop.permute.xlu1 %4446 }
 0x107   :  { %v4158_v45 = vsel %vm3694_vm7, %v4156_v22, %v15332_v19  ;;  %15338 = vst [vmem:[#allocation12_spill] sm:$0xff] %v9448_v48  ;;  %v976_v22 = vadd.f32 %v959_v33, %v773_v12  ;;  %v4414_v36 = vrot.slane %v4398_v58, 4  ;;  %v203_v25 = vsel %vm199_vm2, %v196_v35, %v9399_v23  ;;  %15339 = vst [vmem:[#allocation18_spill] sm:$0xff] %v9462_v57  ;;  %v4445_v19 = vpop.permute.xlu0 %4444 }
 0x108   :  { %v680_v9 = vadd.f32 %v672_v42, %v547_v2  ;;  %v283_v24 = vadd.f32 %v275_v40, %v15340_v43  ;;  %v312_v52 = vadd.f32 %v304_v39, %v15341_v11  ;;  %v709_v32 = vadd.f32 %v701_v3, %v576_v13  ;;  %v7553_v13 = vld [vmem:[%s15015_s1] sm:$0xf8] }
 0x109   :  { %v9468_v33 = vmul.f32 %v15342_v51, %v9349_v54  ;;  %v9470_v12 = vadd.f32 %v4158_v45, %v3979_v0  ;;  %v9474_v35 = vsel %vm465_vm4, %v458_v41, %v9428_v27  ;;  %v9478_v2 = vmul.f32 %v15345_v10, %v9349_v54  ;;  %3078 = vrot.lane.b32.xlu1 %v7553_v13, %s7686_s22 }
 0x10a   :  { %15344 = vst [vmem:[#allocation22_spill] sm:$0xff] %v9474_v35  ;;  %v248_v43 = vmul.f32 %v15273_v4, %v203_v25  ;;  %v306_v11 = vmul.f32 %v15284_v5, %v203_v25  ;;  %v387_v45 = vadd.f32 %v379_v1, %v254_v55  ;;  %v416_v39 = vadd.f32 %v408_v38, %v283_v24  ;;  %v15350_v5 = vld [vmem:[#allocation114_spill] sm:$0xff]  ;;  %v9500_v7 = vpop.permute.xlu1 %330  ;;  %v15352_v55 = vld [vmem:[#allocation115_spill] sm:$0xff] }
 0x10b   :  { %15343 = vst [vmem:[#allocation21_spill] sm:$0xff] %v9470_v12  ;;  %v15346_v41 = vrot.slane %v9355_v34, 4  ;;  %v15348_v58 = vrot.slane %v9367_v15, 4  ;;  %2879 = vrot.lane.b32.xlu0 %v7553_v13, %s7685_s19  ;;  %v445_v4 = vadd.f32 %v437_v17, %v312_v52  ;;  %v832_v40 = vadd.f32 %v15350_v5, %v680_v9  ;;  %15351 = vst [vmem:[#allocation93_spill] sm:$0xff] %v9500_v7  ;;  %v329_v24 = vpop.permute.xlu0 %328  ;;  %v15356_v9 = vld [vmem:[#allocation125_spill] sm:$0xff]  ;;  %v15359_v5 = vld [vmem:[#allocation106_spill] sm:$0xff] }
 0x10c   :  { %v277_v3 = vmul.f32 %v15281_v30, %v203_v25  ;;  %v891_v1 = vadd.f32 %v15352_v55, %v709_v32  ;;  %v15355_v17 = vrot.slane %v9448_v48, 1  ;;  %v15357_v30 = vrot.slane %v15356_v9, 1  ;;  %v15360_v38 = vld [vmem:[#allocation111_spill] sm:$0xff]  ;;  %v15380_v12 = vld [vmem:[#allocation104_spill] sm:$0xff] }
 0x10d   :  { %v9490_v0 = vsel %vm3694_vm7, %v4355_v18, %v15346_v41  ;;  %v9495_v42 = vsel %vm3694_vm7, %v4414_v36, %v15348_v58  ;;  %v15353_v18 = vld [vmem:[#allocation32_spill] sm:$0xff]  ;;  %v336_v36 = vsel %vm332_vm1, %v329_v24, %v9500_v7  ;;  %v15358_v58 = vld [vmem:[#allocation29_spill] sm:$0xff]  ;;  %v256_v55 = vadd.f32 %v248_v43, %v15359_v5  ;;  %3476 = vrot.lane.b32.xlu1 %v7553_v13, %s7687_s27  ;;  %v15361_v24 = vld [vmem:[#allocation31_spill] sm:$0xff] }
 0x10e   :  { %15347 = vst [vmem:[#allocation102_spill] sm:$0xff] %v9490_v0  ;;  %15349 = vst [vmem:[#allocation116_spill] sm:$0xff] %v9495_v42  ;;  %v9506_v41 = vmul.f32 %v15353_v18, %v9474_v35  ;;  %v1158_v25 = vsel %vm748_vm0, %v15357_v30, %v15355_v17  ;;  %v9518_v32 = vmul.f32 %v15358_v58, %v9411_v62  ;;  %v9540_v30 = vpop.permute.xlu1 %592  ;;  %v15364_v7 = vld [vmem:[#allocation123_spill] sm:$0xff] }
 0x10f   :  { %v314_v15 = vadd.f32 %v306_v11, %v15360_v38  ;;  %v439_v27 = vmul.f32 %v15296_v60, %v336_v36  ;;  %v9526_v52 = vmul.f32 %v15361_v24, %v9411_v62  ;;  %3277 = vrot.lane.b32.xlu0 %v7553_v13, %s7688_s29  ;;  %v512_v17 = vmul.f32 %v15288_v8, %v9474_v35  ;;  %v591_v5 = vpop.permute.xlu0 %590 }
 0x110   :  { %15354 = vst [vmem:[#allocation118_spill] sm:$0xff] %v9506_v41  ;;  %v541_v9 = vmul.f32 %v15291_v53, %v9474_v35  ;;  %v570_v43 = vmul.f32 %v15305_v44, %v9474_v35  ;;  %v4452_v60 = vsel %vm598_vm5, %v4445_v19, %v9462_v57  ;;  %15362 = vst [vmem:[#allocation94_spill] sm:$0xff] %v9540_v30  ;;  %v15363_v13 = vrot.slane %v9468_v33, 1 }
 0x111   :  { %v9538_v38 = vadd.f32 %v439_v27, %v314_v15  ;;  %v15365_v23 = vrot.slane %v15364_v7, 1  ;;  %v1175_v34 = vadd.f32 %v1158_v25, %v976_v22  ;;  %v9549_v63 = vsel %vm598_vm5, %v591_v5, %v9540_v30  ;;  %v7555_v5 = vld [vmem:[%s15015_s1] sm:$0xf0]  ;;  %v15375_v27 = vld [vmem:[#allocation34_spill] sm:$0xff]  ;;  %v15378_v22 = vld [vmem:[#allocation103_spill] sm:$0xff] }
 0x112   :  { %15366 = vst [vmem:[#allocation119_spill] sm:$0xff] %v9549_v63  ;;  %v15367_v11 = vrot.slane %v9478_v2, 1  ;;  %v15369_v19 = vrot.slane %v15368_v6, 1  ;;  %v15370_v57 = vrot.slane %v9506_v41, 1  ;;  %v15372_v62 = vrot.slane %v15371_v26, 1 }
 0x113   :  { %v1018_v42 = vsel %vm748_vm0, %v15365_v23, %v15363_v13  ;;  %v9565_v23 = vld [vmem:[%s15015_s1 + $0x20] sm:$0xff]  ;;  %v674_v6 = vmul.f32 %v15328_v49, %v9549_v63  ;;  %3861 = vrot.lane.b32.xlu0 %v7555_v5, %s7685_s19  ;;  %v520_v13 = vadd.f32 %v512_v17, %v387_v45  ;;  %v9585_v30 = vmul.f32 %v15375_v27, %v9474_v35  ;;  %v906_v17 = vpop.permute.xlu0 %905 }
 0x114   :  { %v1077_v15 = vsel %vm748_vm0, %v15369_v19, %v15367_v11  ;;  %v1357_v7 = vsel %vm748_vm0, %v15372_v62, %v15370_v57  ;;  %216 = vrot.lane.b32.xlu1 %v9565_v23, %s7685_s19  ;;  %v15373_v11 = vld [vmem:[#allocation33_spill] sm:$0xff]  ;;  %v15374_v62 = vld [vmem:[#allocation107_spill] sm:$0xff]  ;;  %v549_v19 = vadd.f32 %v541_v9, %v416_v39  ;;  %v9591_v0 = vmul.f32 %v15378_v22, %v4452_v60 }
 0x115   :  { %v9572_v25 = vadd.f32 %v1357_v7, %v1175_v34  ;;  %v9576_v26 = vmul.f32 %v15373_v11, %v9474_v35  ;;  %v285_v57 = vadd.f32 %v277_v3, %v15374_v62  ;;  %v15376_v34 = vld [vmem:[#allocation100_spill] sm:$0xff]  ;;  %v9594_v3 = vmul.f32 %v15380_v12, %v4452_v60  ;;  %v9596_v62 = vpop.permute.xlu1 %907  ;;  %v15384_v35 = vld [vmem:[#allocation138_spill] sm:$0xff] }
 0x116   :  { %v9588_v7 = vmul.f32 %v15376_v34, %v4452_v60  ;;  %15379 = vst [vmem:[#allocation25_spill] sm:$0xff] %v9591_v0  ;;  %15382 = vst [vmem:[#allocation24_spill] sm:$0xff] %v9596_v62  ;;  %v578_v41 = vadd.f32 %v570_v43, %v445_v4  ;;  %v381_v29 = vmul.f32 %v15283_v31, %v336_v36  ;;  %v15383_v9 = vrot.slane %v9518_v32, 1  ;;  %v15387_v43 = vld [vmem:[#allocation126_spill] sm:$0xff] }
 0x117   :  { %15381 = vst [vmem:[#allocation23_spill] sm:$0xff] %v9594_v3  ;;  %v1035_v45 = vadd.f32 %v1018_v42, %v832_v40  ;;  %v1094_v39 = vadd.f32 %v1077_v15, %v891_v1  ;;  %v15385_v48 = vrot.slane %v15384_v35, 1  ;;  %v910_v22 = vsel %vm199_vm2, %v906_v17, %v9596_v62  ;;  %4060 = vrot.lane.b32.xlu0 %v7555_v5, %s7686_s22  ;;  %v9643_v60 = vld [vmem:[%s15015_s1 + $0x30] sm:$0xf] }
 0x118   :  { %15377 = vst [vmem:[#allocation95_spill] sm:$0xff] %v9588_v7  ;;  %v682_v7 = vadd.f32 %v674_v6, %v549_v19  ;;  %349 = vrot.lane.b32.xlu1 %v9565_v23, %s7686_s22  ;;  %v15386_v4 = vrot.slane %v9526_v52, 1  ;;  %v15388_v31 = vrot.slane %v15387_v43, 1  ;;  %v14660_v40 = vrot.slane %v9576_v26, 1 }
 0x119   :  { %v1217_v34 = vsel %vm748_vm0, %v15385_v48, %v15383_v9  ;;  %v410_v1 = vmul.f32 %v15286_v21, %v336_v36  ;;  %v9616_v35 = vmul.f32 %v15342_v51, %v910_v22  ;;  %v9619_v48 = vmul.f32 %v15345_v10, %v910_v22  ;;  %v9628_v17 = vpop.permute.xlu1 %463  ;;  %v462_v36 = vpop.permute.xlu0 %461 }
 0x11a   :  { %v1276_v42 = vsel %vm748_vm0, %v15388_v31, %v15386_v4  ;;  %v645_v6 = vmul.f32 %v15306_v37, %v9549_v63  ;;  %v703_v19 = vmul.f32 %v15330_v16, %v9549_v63  ;;  %15389 = vst [vmem:[#allocation112_spill] sm:$0xff] %v9628_v17  ;;  %v1234_v21 = vadd.f32 %v1217_v34, %v1035_v45  ;;  %v15390_v4 = vld [vmem:[#allocation48_spill] sm:$0xff]  ;;  %v15393_v45 = vld [vmem:[#allocation49_spill] sm:$0xff] }
 0x11b   :  { %v9630_v51 = vadd.f32 %v381_v29, %v256_v55  ;;  %v14662_v10 = vrot.slane %v9616_v35, 1  ;;  %v1293_v9 = vadd.f32 %v1276_v42, %v1094_v39  ;;  %v9635_v43 = vmul.f32 %v15390_v4, %v9549_v63  ;;  %v15391_v29 = vld [vmem:[#allocation146_spill] sm:$0xff]  ;;  %4259 = vrot.lane.b32.xlu0 %v7555_v5, %s7688_s29 }
 0x11c   :  { %v834_v31 = vadd.f32 %v9389_v61, %v682_v7  ;;  %v469_v15 = vsel %vm465_vm4, %v462_v36, %v9628_v17  ;;  %218 = vrot.lane.b32.xlu1 %v9643_v60, %s7685_s19  ;;  %v15392_v55 = vrot.slane %v15391_v29, 1  ;;  %v9654_v61 = vmul.f32 %v15393_v45, %v9549_v63  ;;  %v15396_v29 = vld [vmem:[#allocation137_spill] sm:$0xff] }
 0x11d   :  { %v418_v7 = vadd.f32 %v410_v1, %v285_v57  ;;  %v15394_v39 = vrot.slane %v9468_v33, 1  ;;  %v15395_v62 = vrot.slane %v9585_v30, 1  ;;  %v15397_v17 = vrot.slane %v15396_v29, 1  ;;  %v9668_v57 = vpop.permute.xlu1 %1106  ;;  %v15399_v1 = vld [vmem:[#allocation36_spill] sm:$0xff]  ;;  %v1105_v36 = vpop.permute.xlu0 %1104 }
 0x11e   :  { %v1416_v34 = vsel %vm748_vm0, %v15392_v55, %v14660_v40  ;;  %v653_v40 = vadd.f32 %v645_v6, %v520_v13  ;;  %v711_v12 = vadd.f32 %v703_v19, %v578_v41  ;;  %15398 = vst [vmem:[#allocation113_spill] sm:$0xff] %v9668_v57  ;;  %v9672_v33 = vmul.f32 %v9565_v23, %v15399_v1  ;;  %v15400_v6 = vld [vmem:[#allocation50_spill] sm:$0xff] }
 0x11f   :  { %v1022_v42 = vsel %vm748_vm0, %v15394_v39, %v14662_v10  ;;  %v1475_v55 = vsel %vm748_vm0, %v15397_v17, %v15395_v62  ;;  %v9675_v39 = vmul.f32 %v15325_v47, %v910_v22  ;;  %v572_v10 = vmul.f32 %v15305_v44, %v469_v15  ;;  %482 = vrot.lane.b32.xlu0 %v9565_v23, %s7688_s29 }
 0x120   :  { %v1037_v3 = vadd.f32 %v1022_v42, %v834_v31  ;;  %v1433_v0 = vadd.f32 %v1416_v34, %v1234_v21  ;;  %v14664_v29 = vrot.slane %v9635_v43, 1  ;;  %v9681_v13 = vsel %vm332_vm1, %v1105_v36, %v9668_v57  ;;  %4458 = vrot.lane.b32.xlu1 %v7555_v5, %s7687_s27 }
 0x121   :  { %v9684_v41 = vadd.f32 %v1475_v55, %v1293_v9  ;;  %v1614_v62 = vrot.slane %v9654_v61, 1  ;;  %v9689_v47 = vmul.f32 %v15400_v6, %v9549_v63  ;;  %v15401_v44 = vrot.slane %v9619_v48, 1  ;;  %v15432_v61 = vld [vmem:[#allocation12_spill] sm:$0xff] }
 0x122   :  { %v15402_v22 = vrot.slane %v9478_v2, 1  ;;  %v580_v17 = vadd.f32 %v572_v10, %v9538_v38  ;;  %v9699_v21 = vmul.f32 %v15358_v58, %v9681_v13  ;;  %v9703_v5 = vmul.f32 %v15361_v24, %v9681_v13  ;;  %v9709_v2 = vpop.permute.xlu1 %596  ;;  %v9714_v38 = vld [vmem:[%s15015_s1 + $0x30] sm:$0x3f] }
 0x123   :  { %v775_v9 = vadd.f32 %v9377_v59, %v653_v40  ;;  %v893_v31 = vadd.f32 %v9396_v56, %v711_v12  ;;  %15403 = vst [vmem:[#allocation109_spill] sm:$0xff] %v9709_v2  ;;  %v9718_v58 = vmul.f32 %v9714_v38, %v15399_v1  ;;  %v1737_v24 = vrot.slane %v9672_v33, 2  ;;  %v595_v56 = vpop.permute.xlu0 %594  ;;  %v15404_v12 = vld [vmem:[#allocation149_spill] sm:$0xff]  ;;  %v15406_v1 = vld [vmem:[#allocation156_spill] sm:$0xff]  ;;  %351 = vrot.lane.b32.xlu0 %v9643_v60, %s7686_s22 }
 0x124   :  { %v1081_v19 = vsel %vm748_vm0, %v15402_v22, %v15401_v44  ;;  %v14665_v34 = vrot.slane %v9699_v21, 1  ;;  %v1279_v59 = vrot.slane %v9703_v5, 1  ;;  %v15405_v40 = vrot.slane %v15404_v12, 1  ;;  %615 = vrot.lane.b32.xlu1 %v9565_v23, %s7687_s27 }
 0x125   :  { %v1096_v36 = vadd.f32 %v1081_v19, %v893_v31  ;;  %v602_v55 = vsel %vm598_vm5, %v595_v56, %v9709_v2  ;;  %v15407_v44 = vrot.slane %v15406_v1, 1  ;;  %v1673_v5 = vrot.slane %v9689_v47, 1 }
 0x126   :  { %v1556_v42 = vsel %vm748_vm0, %v15405_v40, %v14664_v29  ;;  %v514_v10 = vmul.f32 %v15288_v8, %v469_v15  ;;  %v543_v12 = vmul.f32 %v15291_v53, %v469_v15  ;;  %v15408_v19 = vrot.slane %v9518_v32, 1  ;;  %v9751_v29 = vpop.permute.xlu1 %1305  ;;  %v15411_v53 = vld [vmem:[#allocation51_spill] sm:$0xff] }
 0x127   :  { %v1615_v22 = vsel %vm748_vm0, %v15407_v44, %v1614_v62  ;;  %v15409_v56 = vrot.slane %v9526_v52, 1  ;;  %15410 = vst [vmem:[#allocation28_spill] sm:$0xff] %v9751_v29  ;;  %v1573_v8 = vadd.f32 %v1556_v42, %v9572_v25  ;;  %v15412_v15 = vrot.slane %v15411_v53, 2 }
 0x128   :  { %v1221_v31 = vsel %vm748_vm0, %v15408_v19, %v14665_v34  ;;  %v15413_v19 = vrot.slane %v9675_v39, 1  ;;  %v15414_v52 = vrot.slane %v9403_v20, 1  ;;  %v647_v34 = vmul.f32 %v15306_v37, %v602_v55  ;;  %484 = vrot.lane.b32.xlu1 %v9643_v60, %s7688_s29  ;;  %v15415_v20 = vld [vmem:[#allocation150_spill] sm:$0xff]  ;;  %v15417_v37 = vld [vmem:[#allocation35_spill] sm:$0xff] }
 0x129   :  { %v1280_v40 = vsel %vm748_vm0, %v15409_v56, %v1279_v59  ;;  %v1236_v1 = vadd.f32 %v1221_v31, %v1037_v3  ;;  %v1738_v32 = vsel %vm1730_vm3, %v15412_v15, %v1737_v24  ;;  %v676_v3 = vmul.f32 %v15328_v49, %v602_v55  ;;  %v1304_v31 = vpop.permute.xlu0 %1303 }
 0x12a   :  { %v1295_v44 = vadd.f32 %v1280_v40, %v1096_v36  ;;  %v963_v56 = vsel %vm748_vm0, %v15414_v52, %v15413_v19  ;;  %v705_v36 = vmul.f32 %v15330_v16, %v602_v55  ;;  %v1308_v25 = vsel %vm465_vm4, %v1304_v31, %v9751_v29  ;;  %v9796_v31 = vpop.permute.xlu1 %1504 }
 0x12b   :  { %v9771_v42 = vadd.f32 %v1615_v22, %v1433_v0  ;;  %v15416_v40 = vrot.slane %v15415_v20, 1  ;;  %v9780_v49 = vmul.f32 %v15417_v37, %v9349_v54  ;;  %v522_v16 = vadd.f32 %v514_v10, %v9630_v51  ;;  %v9789_v0 = vld [vmem:[%s15015_s1 + $0x30] sm:$0x1f]  ;;  %15418 = vst [vmem:[#allocation117_spill] sm:$0xff] %v9796_v31 }
 0x12c   :  { %v551_v55 = vadd.f32 %v543_v12, %v418_v7  ;;  %v713_v15 = vadd.f32 %v705_v36, %v580_v17  ;;  %v9784_v19 = vmul.f32 %v15373_v11, %v1308_v25  ;;  %917 = vrot.lane.b32.xlu0 %v9789_v0, %s7685_s19  ;;  %v9793_v22 = vadd.f32 %v963_v56, %v775_v9  ;;  %v15420_v9 = vld [vmem:[#allocation40_spill] sm:$0xff] }
 0x12d   :  { %v1674_v53 = vsel %vm748_vm0, %v15416_v40, %v1673_v5  ;;  %v1458_v52 = vmul.f32 %v15375_v27, %v1308_v25  ;;  %v1741_v51 = vrot.slane %v9718_v58, 2  ;;  %v1755_v7 = vadd.f32 %v1738_v32, %v1573_v8  ;;  %v1503_v20 = vpop.permute.xlu0 %1502  ;;  %617 = vrot.lane.b32.xlu1 %v9643_v60, %s7687_s27 }
 0x12e   :  { %v655_v17 = vadd.f32 %v647_v34, %v522_v16  ;;  %v684_v11 = vadd.f32 %v676_v3, %v551_v55  ;;  %v15419_v10 = vrot.slane %v15320_v28, 1  ;;  %v1419_v36 = vrot.slane %v9784_v19, 1  ;;  %v9931_v19 = vld [vmem:[%s15015_s1 + $0x30] sm:$0x7f] }
 0x12f   :  { %v1478_v40 = vrot.slane %v1458_v52, 1  ;;  %v1778_v27 = vmul.f32 %v9565_v23, %v15420_v9  ;;  %v9808_v56 = vmul.f32 %v9714_v38, %v15420_v9  ;;  %v1940_v34 = vrot.slane %v9780_v49, 2 }
 0x130   :  { %v895_v12 = vadd.f32 %v15419_v10, %v713_v15  ;;  %v1141_v28 = vmul.f32 %v15337_v46, %v9681_v13  ;;  %v15421_v8 = vrot.slane %v9619_v48, 1  ;;  %v15422_v3 = vrot.slane %v9576_v26, 1  ;;  %1116 = vrot.lane.b32.xlu0 %v9789_v0, %s7686_s22  ;;  %v15424_v13 = vld [vmem:[#allocation41_spill] sm:$0xff] }
 0x131   :  { %v1507_v16 = vsel %vm598_vm5, %v1503_v20, %v9796_v31  ;;  %v15423_v15 = vrot.slane %v9585_v30, 1  ;;  %v9829_v48 = vmul.f32 %v9565_v23, %v15424_v13  ;;  %v1839_v26 = vmul.f32 %v9714_v38, %v15424_v13  ;;  %1315 = vrot.lane.b32.xlu1 %v9789_v0, %s7688_s29 }
 0x132   :  { %v1098_v32 = vadd.f32 %v15421_v8, %v895_v12  ;;  %v1420_v60 = vsel %vm748_vm0, %v15422_v3, %v1419_v36  ;;  %v15425_v52 = vrot.slane %v15310_v14, 1  ;;  %v15426_v12 = vrot.slane %v15316_v50, 1 }
 0x133   :  { %v1435_v55 = vadd.f32 %v1420_v60, %v1236_v1  ;;  %v1479_v46 = vsel %vm748_vm0, %v15423_v15, %v1478_v40  ;;  %v9838_v1 = vmul.f32 %v15393_v45, %v1507_v16  ;;  %v1657_v30 = vmul.f32 %v15400_v6, %v1507_v16  ;;  %v15427_v60 = vld [vmem:[#allocation127_spill] sm:$0xff] }
 0x134   :  { %v777_v10 = vadd.f32 %v15425_v52, %v655_v17  ;;  %v836_v20 = vadd.f32 %v15426_v12, %v684_v11  ;;  %v1297_v9 = vadd.f32 %v1279_v59, %v1098_v32  ;;  %v1494_v8 = vadd.f32 %v1479_v46, %v1295_v44  ;;  %v9855_v11 = vpop.permute.xlu1 %1889  ;;  %v1888_v46 = vpop.permute.xlu0 %1887 }
 0x135   :  { %v1800_v3 = vrot.slane %v9808_v56, 2  ;;  %v15428_v15 = vrot.slane %v15427_v60, 2  ;;  %v9850_v50 = vadd.f32 %v1674_v53, %v9684_v41  ;;  %v1796_v59 = vrot.slane %v1778_v27, 2  ;;  %15429 = vst [vmem:[#allocation122_spill] sm:$0xff] %v9855_v11  ;;  %1899 = vrot.lane.b32.xlu1 %v9714_v38, %s7685_s19  ;;  %v15460_v56 = vld [vmem:[#allocation173_spill] sm:$0xff] }
 0x136   :  { %v1496_v14 = vadd.f32 %v1478_v40, %v1297_v9  ;;  %v1161_v44 = vrot.slane %v1141_v28, 1  ;;  %v1618_v6 = vrot.slane %v9838_v1, 1  ;;  %v1677_v17 = vrot.slane %v1657_v30, 1 }
 0x137   :  { %v1941_v13 = vsel %vm1730_vm3, %v15428_v15, %v1940_v34  ;;  %v1859_v32 = vrot.slane %v1839_v26, 2  ;;  %v15430_v52 = vrot.slane %v9675_v39, 1  ;;  %v15431_v60 = vrot.slane %v9616_v35, 1  ;;  %v15435_v26 = vld [vmem:[#allocation38_spill] sm:$0xff] }
 0x138   :  { %v9852_v45 = vadd.f32 %v1941_v13, %v1755_v7  ;;  %v1340_v41 = vmul.f32 %v15353_v18, %v1308_v25  ;;  %v1855_v53 = vrot.slane %v9829_v48, 2  ;;  %v1539_v7 = vmul.f32 %v15390_v4, %v1507_v16  ;;  %v15437_v15 = vld [vmem:[#allocation54_spill] sm:$0xff] }
 0x139   :  { %v980_v12 = vadd.f32 %v15430_v52, %v777_v10  ;;  %v1039_v40 = vadd.f32 %v15431_v60, %v836_v20  ;;  %v1619_v27 = vsel %vm748_vm0, %v1614_v62, %v1618_v6  ;;  %v1678_v39 = vsel %vm748_vm0, %v1673_v5, %v1677_v17  ;;  %v15434_v5 = vld [vmem:[#allocation37_spill] sm:$0xff]  ;;  %2297 = vrot.lane.b32.xlu1 %v9714_v38, %s7688_s29 }
 0x13a   :  { %v1801_v35 = vsel %vm1730_vm3, %v1796_v59, %v1800_v3  ;;  %v1634_v18 = vadd.f32 %v1619_v27, %v1435_v55  ;;  %v1693_v25 = vadd.f32 %v1678_v39, %v1494_v8  ;;  %v1695_v4 = vadd.f32 %v1677_v17, %v1496_v14  ;;  %v15439_v60 = vld [vmem:[#allocation145_spill] sm:$0xff] }
 0x13b   :  { %v1892_v28 = vsel %vm199_vm2, %v1888_v46, %v9855_v11  ;;  %v15433_v16 = vrot.slane %v15432_v61, 1  ;;  %v1860_v47 = vsel %vm1730_vm3, %v1855_v53, %v1859_v32  ;;  %v9885_v48 = vmul.f32 %v15434_v5, %v9349_v54  ;;  %v15474_v11 = vld [vmem:[#allocation45_spill] sm:$0xff] }
 0x13c   :  { %v9889_v10 = vmul.f32 %v15435_v26, %v9349_v54  ;;  %v1179_v55 = vadd.f32 %v1161_v44, %v980_v12  ;;  %v15436_v20 = vrot.slane %v9699_v21, 1  ;;  %v1360_v8 = vrot.slane %v1340_v41, 1 }
 0x13d   :  { %v1162_v62 = vsel %vm748_vm0, %v15433_v16, %v1161_v44  ;;  %v1816_v30 = vadd.f32 %v1801_v35, %v1634_v18  ;;  %v15438_v13 = vrot.slane %v15437_v15, 2  ;;  %v1877_v17 = vadd.f32 %v1859_v32, %v1695_v4  ;;  %v9910_v35 = vpop.permute.xlu1 %2088  ;;  %v15442_v18 = vld [vmem:[#allocation118_spill] sm:$0xff]  ;;  %2881 = vrot.lane.b32.xlu1 %v9931_v19, %s7685_s19 }
 0x13e   :  { %v1238_v9 = vadd.f32 %v15436_v20, %v1039_v40  ;;  %v9897_v46 = vmul.f32 %v15434_v5, %v1892_v28  ;;  %v2042_v52 = vmul.f32 %v15435_v26, %v1892_v28  ;;  %v1177_v44 = vadd.f32 %v1162_v62, %v9793_v22  ;;  %v15440_v40 = vld [vmem:[#allocation103_spill] sm:$0xff]  ;;  %15441 = vst [vmem:[#allocation26_spill] sm:$0xff] %v9910_v35  ;;  %v15444_v5 = vld [vmem:[#allocation21_spill] sm:$0xff]  ;;  %v15445_v26 = vld [vmem:[#allocation102_spill] sm:$0xff] }
 0x13f   :  { %v1797_v14 = vsel %vm1730_vm3, %v15438_v13, %v1796_v59  ;;  %v1559_v12 = vrot.slane %v1539_v7, 1  ;;  %v1875_v21 = vadd.f32 %v1860_v47, %v1693_v25  ;;  %v9905_v41 = vmul.f32 %v15440_v40, %v15439_v60  ;;  %v15447_v13 = vld [vmem:[#allocation25_spill] sm:$0xff] }
 0x140   :  { %v1999_v27 = vrot.slane %v9885_v48, 2  ;;  %v14667_v59 = vrot.slane %v9889_v10, 2  ;;  %v14666_v32 = vrot.slane %v9897_v46, 2  ;;  %v2062_v39 = vrot.slane %v2042_v52, 2 }
 0x141   :  { %v15443_v4 = vrot.slane %v15442_v18, 1  ;;  %v1378_v22 = vadd.f32 %v1360_v8, %v1179_v55  ;;  %v1437_v7 = vadd.f32 %v1419_v36, %v1238_v9  ;;  %v14668_v25 = vrot.slane %v9905_v41, 4  ;;  %v2087_v55 = vpop.permute.xlu0 %2086  ;;  %v15449_v18 = vld [vmem:[#allocation56_spill] sm:$0xff]  ;;  %3279 = vrot.lane.b32.xlu1 %v9931_v19, %s7688_s29 }
 0x142   :  { %v2004_v16 = vsel %vm1730_vm3, %v1999_v27, %v14666_v32  ;;  %v2063_v62 = vsel %vm1730_vm3, %v14667_v59, %v2062_v39  ;;  %v2080_v47 = vadd.f32 %v2062_v39, %v1877_v17  ;;  %v4377_v20 = vadd.f32 %v15445_v26, %v15444_v5  ;;  %v15452_v32 = vld [vmem:[#allocation19_spill] sm:$0xff]  ;;  %v15453_v59 = vld [vmem:[#allocation42_spill] sm:$0xff]  ;;  %v7566_v48 = vld [vmem:[%s15018_s28 + $0x64] ss:$8 sm:$0x3] }
 0x143   :  { %v1361_v61 = vsel %vm748_vm0, %v15443_v4, %v1360_v8  ;;  %v15446_v36 = vrot.slane %v9635_v43, 1  ;;  %v2019_v8 = vadd.f32 %v2004_v16, %v1816_v30  ;;  %v2078_v15 = vadd.f32 %v2063_v62, %v1875_v21  ;;  %v15454_v30 = vld [vmem:[#allocation43_spill] sm:$0xff] }
 0x144   :  { %v15448_v17 = vrot.slane %v15447_v13, 4  ;;  %v1376_v39 = vadd.f32 %v1361_v61, %v1177_v44  ;;  %v15450_v4 = vrot.slane %v15449_v18, 2  ;;  %v9950_v43 = vmul.f32 %v15453_v59, %v15452_v32  ;;  %v15455_v44 = vld [vmem:[#allocation9_spill] sm:$0xff] }
 0x145   :  { %v1560_v9 = vsel %vm748_vm0, %v15446_v36, %v1559_v12  ;;  %v1577_v36 = vadd.f32 %v1559_v12, %v1378_v22  ;;  %v9954_v21 = vmul.f32 %v15454_v30, %v15452_v32  ;;  %v9958_v16 = vsel %vm332_vm1, %v2087_v55, %v9910_v35  ;;  %v9972_v22 = vpop.permute.xlu1 %2285  ;;  %3863 = vrot.lane.b32.xlu1 %v15460_v56, %s7685_s19 }
 0x146   :  { %v4556_v52 = vsel %vm3694_vm7, %v15448_v17, %v14668_v25  ;;  %v1856_v5 = vsel %vm1730_vm3, %v15450_v4, %v1855_v53  ;;  %v9961_v61 = vsub.s32 1, %v15455_v44  ;;  %v1636_v13 = vadd.f32 %v1618_v6, %v1437_v7 }
 0x147   :  { %v9946_v26 = vadd.f32 %v4556_v52, %v4377_v20  ;;  %v1575_v20 = vadd.f32 %v1560_v9, %v1376_v39  ;;  %v9970_v12 = vmul.f32 %v15453_v59, %v9958_v16  ;;  %v1742_v1 = vsel %vm1730_vm3, %v1737_v24, %v1741_v51  ;;  %v15457_v9 = vld [vmem:[#allocation39_spill] sm:$0xff]  ;;  %v213_v39 = vpop.permute.xlu0 %212 }
 0x148   :  { %v1814_v6 = vadd.f32 %v1797_v14, %v9771_v42  ;;  %v9983_v7 = vadd.f32 %v1856_v5, %v9850_v50  ;;  %v2241_v59 = vmul.f32 %v15454_v30, %v9958_v16  ;;  %v9988_v55 = vmul.f32 %v15417_v37, %v1892_v28  ;;  %v7560_v50 = vld [vmem:[%s15018_s28] ss:$8 sm:$0x3]  ;;  %v7561_v37 = vld [vmem:[%s15018_s28 + $0x62] ss:$8 sm:$0x3] }
 0x149   :  { %15451 = vst [vmem:[#allocation27_spill] sm:$0xff] %v9946_v26  ;;  %4681 = vrot.lane.b32.xlu0 %v9946_v26, %s7689_s23  ;;  %v9992_v17 = vmul.f32 %v15457_v9, %v15452_v32  ;;  %v14671_v52 = vrot.slane %v9950_v43, 2  ;;  %v14669_v33 = vrot.slane %v9970_v12, 2  ;;  %v14670_v24 = vrot.slane %v9954_v21, 2  ;;  %4261 = vrot.lane.b32.xlu1 %v15460_v56, %s7688_s29 }
 0x14a   :  { %v2261_v42 = vrot.slane %v2241_v59, 2  ;;  %v10001_v14 = vrot.slane %v7560_v50, %v9961_v61  ;;  %v10007_v28 = vrot.slane %v7561_v37, %v9961_v61  ;;  %v1757_v18 = vadd.f32 %v1742_v1, %v1575_v20  ;;  %v7563_v1 = vld [vmem:[%s15018_s28 + $0x1] ss:$8 sm:$0x3] }
 0x14b   :  { %v1759_v4 = vadd.f32 %v1741_v51, %v1577_v36  ;;  %v10013_v5 = vadd.f32 %v1800_v3, %v1636_v13  ;;  %v2203_v30 = vsel %vm1730_vm3, %v14671_v52, %v14669_v33  ;;  %v1944_v3 = vrot.slane %v9988_v55, 2  ;;  %v7564_v59 = vld [vmem:[%s15018_s28 + $0x63] ss:$8 sm:$0x3] }
 0x14c   :  { %15458 = vst [vmem:[#allocation114_spill] sm:$0xff] %v10001_v14  ;;  %15459 = vst [vmem:[#allocation115_spill] sm:$0xff] %v10007_v28  ;;  %v10022_v44 = vadd.f32 %v2203_v30, %v2019_v8  ;;  %v2262_v58 = vsel %vm1730_vm3, %v14670_v24, %v2261_v42  ;;  %v10027_v51 = vadd.f32 %v2261_v42, %v2080_v47  ;;  %v14674_v36 = vrot.slane %v9992_v17, 2  ;;  %v10038_v8 = vld [vmem:[%s15015_s1 + $0x8] sm:$0xff]  ;;  %v15463_v42 = vld [vmem:[#allocation128_spill] sm:$0xff] }
 0x14d   :  { %1514 = vrot.lane.b32.xlu0 %v9789_v0, %s7687_s27  ;;  %v10033_v20 = vadd.f32 %v2262_v58, %v2078_v15  ;;  %v346_v0 = vpop.permute.xlu1 %345  ;;  %v102_v47 = vmul.f32 %v10038_v8, %v10001_v14  ;;  %v160_v13 = vmul.f32 %v10038_v8, %v10007_v28  ;;  %v10048_v15 = vrot.slane %v7563_v1, %v9961_v61  ;;  %v15465_v30 = vld [vmem:[#allocation81_spill] sm:$0xff]  ;;  %v15472_v24 = vld [vmem:[#allocation22_spill] sm:$0xff] }
 0x14e   :  { %v10054_v55 = vrot.slane %v7564_v59, %v9961_v61  ;;  %v15464_v50 = vrot.slane %v15463_v42, 2  ;;  %v10063_v58 = vsel %vm224_vm8, %v15465_v30, %v213_v39  ;;  %v7565_v1 = vld [vmem:[%s15018_s28 + $0x2] ss:$8 sm:$0x3]  ;;  %v1945_v52 = vsel %vm1730_vm3, %v1940_v34, %v1944_v3 }
 0x14f   :  { %15461 = vst [vmem:[#allocation32_spill] sm:$0xff] %v10048_v15  ;;  %v10071_v59 = vrot.slane %v7565_v1, %v9961_v61  ;;  %v243_v39 = vmul.f32 %v10048_v15, %v10063_v58  ;;  %v15468_v30 = vld [vmem:[#allocation80_spill] sm:$0xff]  ;;  %v10087_v1 = vpop.permute.xlu0 %2287  ;;  %v10113_v26 = vmul.f32 %v15474_v11, %v15472_v24  ;;  %v15475_v49 = vrot.slane %v9889_v10, 2  ;;  %v15476_v34 = vld [vmem:[#allocation129_spill] sm:$0xff] }
 0x150   :  { %15462 = vst [vmem:[#allocation125_spill] sm:$0xff] %v10054_v55  ;;  %v2000_v37 = vsel %vm1730_vm3, %v15464_v50, %v1999_v27  ;;  %v10077_v27 = vrot.slane %v7566_v48, %v9961_v61  ;;  %v301_v50 = vmul.f32 %v10054_v55, %v10063_v58  ;;  %v10085_v53 = vsel %vm357_vm9, %v15468_v30, %v346_v0  ;;  %v15470_v48 = vld [vmem:[#allocation139_spill] sm:$0xff]  ;;  %v15473_v0 = vld [vmem:[#allocation44_spill] sm:$0xff] }
 0x151   :  { %2098 = vrot.lane.b32.xlu0 %v9714_v38, %s7686_s22  ;;  %15466 = vst [vmem:[#allocation29_spill] sm:$0xff] %v10071_v59  ;;  %v2017_v42 = vadd.f32 %v2000_v37, %v1814_v6  ;;  %15469 = vst [vmem:[#allocation111_spill] sm:$0xff] %v10087_v1  ;;  %v15471_v25 = vrot.slane %v15470_v48, 2  ;;  %v376_v37 = vmul.f32 %v10071_v59, %v10085_v53 }
 0x152   :  { %15467 = vst [vmem:[#allocation106_spill] sm:$0xff] %v10077_v27  ;;  %v434_v33 = vmul.f32 %v10077_v27, %v10085_v53  ;;  %v10102_v30 = vmul.f32 %v15473_v0, %v15472_v24  ;;  %v251_v31 = vadd.f32 %v243_v39, %v102_v47  ;;  %v309_v48 = vadd.f32 %v301_v50, %v160_v13  ;;  %v15478_v13 = vld [vmem:[#allocation46_spill] sm:$0xff] }
 0x153   :  { %v2140_v6 = vsel %vm1730_vm3, %v15471_v25, %v14674_v36  ;;  %v2123_v25 = vmul.f32 %v15457_v9, %v9958_v16  ;;  %v2290_v29 = vsel %vm465_vm4, %v9972_v22, %v10087_v1  ;;  %v10131_v39 = vmul.f32 %v15478_v13, %v15472_v24 }
 0x154   :  { %v2157_v35 = vadd.f32 %v2140_v6, %v9852_v45  ;;  %v14680_v36 = vrot.slane %v10102_v30, 2  ;;  %v15477_v45 = vrot.slane %v15476_v34, 2  ;;  %v10125_v16 = vadd.f32 %v376_v37, %v251_v31  ;;  %v15483_v6 = vld [vmem:[#allocation140_spill] sm:$0xff] }
 0x155   :  { %2496 = vrot.lane.b32.xlu0 %v9714_v38, %s7687_s27  ;;  %v10127_v9 = vadd.f32 %v434_v33, %v309_v48  ;;  %v15480_v38 = vld [vmem:[#allocation152_spill] sm:$0xff]  ;;  %v1960_v31 = vadd.f32 %v1945_v52, %v1757_v18  ;;  %v1962_v33 = vadd.f32 %v1944_v3, %v1759_v4  ;;  %v2440_v48 = vmul.f32 %v15478_v13, %v2290_v29  ;;  %v15487_v3 = vld [vmem:[#allocation141_spill] sm:$0xff] }
 0x156   :  { %v2059_v47 = vsel %vm1730_vm3, %v15477_v45, %v15475_v49  ;;  %v15481_v10 = vrot.slane %v15480_v38, 2  ;;  %v10141_v49 = vmul.f32 %v15474_v11, %v2290_v29  ;;  %v15482_v45 = vrot.slane %v9950_v43, 2 }
 0x157   :  { %v2076_v22 = vadd.f32 %v2059_v47, %v9983_v7  ;;  %v15484_v1 = vrot.slane %v15483_v6, 2  ;;  %v2143_v47 = vrot.slane %v2123_v25, 2  ;;  %v2397_v38 = vrot.slane %v10113_v26, 2  ;;  %v7567_v26 = vld [vmem:[%s15018_s28 + $0x31] ss:$8 sm:$0x3] }
 0x158   :  { %v2339_v34 = vsel %vm1730_vm3, %v15481_v10, %v14680_v36  ;;  %v14679_v10 = vrot.slane %v10141_v49, 2  ;;  %v15485_v11 = vrot.slane %v9897_v46, 2  ;;  %v2456_v18 = vrot.slane %v10131_v39, 2  ;;  %v7568_v46 = vld [vmem:[%s15018_s28 + $0x32] ss:$8 sm:$0x3]  ;;  %v2485_v39 = vpop.permute.xlu0 %2484 }
 0x159   :  { %v10143_v37 = vadd.f32 %v2339_v34, %v2157_v35  ;;  %v2199_v7 = vsel %vm1730_vm3, %v15484_v1, %v15482_v45  ;;  %3080 = vrot.lane.b32.xlu0 %v9931_v19, %s7686_s22  ;;  %v2460_v43 = vrot.slane %v2440_v48, 2  ;;  %v15486_v4 = vrot.slane %v9954_v21, 2 }
 0x15a   :  { %v2021_v35 = vadd.f32 %v15485_v11, %v10013_v5  ;;  %v2216_v52 = vadd.f32 %v2199_v7, %v2017_v42  ;;  %v15488_v1 = vrot.slane %v15487_v3, 2  ;;  %v10168_v13 = vrot.slane %v7567_v26, %v9961_v61  ;;  %v10179_v42 = vpop.permute.xlu1 %2486 }
 0x15b   :  { %v10174_v5 = vrot.slane %v7568_v46, %v9961_v61  ;;  %v2402_v21 = vsel %vm1730_vm3, %v2397_v38, %v14679_v10  ;;  %15491 = vst [vmem:[#allocation110_spill] sm:$0xff] %v10179_v42  ;;  %v2461_v48 = vsel %vm1730_vm3, %v2456_v18, %v2460_v43  ;;  %v2478_v45 = vadd.f32 %v2460_v43, %v10027_v51 }
 0x15c   :  { %v2258_v25 = vsel %vm1730_vm3, %v15488_v1, %v15486_v4  ;;  %15489 = vst [vmem:[#allocation31_spill] sm:$0xff] %v10168_v13  ;;  %v2417_v34 = vadd.f32 %v2402_v21, %v10022_v44  ;;  %v15492_v7 = vrot.slane %v9992_v17, 2  ;;  %v10190_v4 = vld [vmem:[%s15015_s1 + $0x18] sm:$0xff]  ;;  %v15494_v44 = vld [vmem:[#allocation53_spill] sm:$0xff]  ;;  %v2322_v43 = vmul.f32 %v15473_v0, %v2290_v29 }
 0x15d   :  { %15490 = vst [vmem:[#allocation123_spill] sm:$0xff] %v10174_v5  ;;  %v2275_v6 = vadd.f32 %v2258_v25, %v2076_v22  ;;  %v10194_v3 = vmul.f32 %v10190_v4, %v10001_v14  ;;  %v2476_v22 = vadd.f32 %v2461_v48, %v10033_v20  ;;  %v2578_v1 = vmul.f32 %v15494_v44, %v9549_v63  ;;  %v7570_v17 = vld [vmem:[%s15018_s28 + $0x33] ss:$8 sm:$0x3]  ;;  %v15496_v25 = vld [vmem:[#allocation57_spill] sm:$0xff]  ;;  %v15497_v48 = vld [vmem:[#allocation52_spill] sm:$0xff] }
 0x15e   :  { %v2144_v11 = vsel %vm1730_vm3, %v15492_v7, %v2143_v47  ;;  %3478 = vrot.lane.b32.xlu0 %v9931_v19, %s7687_s27  ;;  %v10205_v51 = vrot.slane %v7570_v17, %v9961_v61  ;;  %v2637_v26 = vmul.f32 %v15496_v25, %v9549_v63  ;;  %v2489_v20 = vsel %vm598_vm5, %v2485_v39, %v10179_v42 }
 0x15f   :  { %15493 = vst [vmem:[#allocation136_spill] sm:$0xff] %v10194_v3  ;;  %v131_v46 = vmul.f32 %v10038_v8, %v10168_v13  ;;  %v272_v21 = vmul.f32 %v10174_v5, %v10063_v58  ;;  %v2519_v7 = vmul.f32 %v15497_v48, %v9549_v63  ;;  %v10219_v17 = vmul.f32 %v15494_v44, %v2489_v20 }
 0x160   :  { %15495 = vst [vmem:[#allocation33_spill] sm:$0xff] %v10205_v51  ;;  %v2159_v10 = vadd.f32 %v2144_v11, %v1960_v31  ;;  %v2161_v29 = vadd.f32 %v2143_v47, %v1962_v33  ;;  %v15498_v0 = vrot.slane %v9970_v12, 2  ;;  %v2639_v57 = vmul.f32 %v15496_v25, %v2489_v20  ;;  %v15501_v11 = vld [vmem:[#allocation153_spill] sm:$0xff] }
 0x161   :  { %v10226_v39 = vmul.f32 %v10190_v4, %v10168_v13  ;;  %v10230_v8 = vmul.f32 %v10190_v4, %v10007_v28  ;;  %v2596_v58 = vrot.slane %v2578_v1, 2  ;;  %v14684_v42 = vrot.slane %v10219_v17, 2 }
 0x162   :  { %v2220_v36 = vadd.f32 %v15498_v0, %v2021_v35  ;;  %4062 = vrot.lane.b32.xlu0 %v15460_v56, %s7686_s22  ;;  %v405_v12 = vmul.f32 %v10205_v51, %v10085_v53  ;;  %v2342_v31 = vrot.slane %v2322_v43, 2  ;;  %v2655_v33 = vrot.slane %v2637_v26, 2  ;;  %v479_v43 = vpop.permute.xlu0 %478  ;;  %v612_v26 = vpop.permute.xlu1 %611  ;;  %v15536_v51 = vld [vmem:[#allocation65_spill] sm:$0xff]  ;;  %s7695_s22 = smov 100  }
 0x163   :  { %15499 = vst [vmem:[#allocation107_spill] sm:$0xff] %v10226_v39  ;;  %15500 = vst [vmem:[#allocation34_spill] sm:$0xff] %v10230_v8  ;;  %v2659_v47 = vrot.slane %v2639_v57, 2  ;;  %v280_v35 = vadd.f32 %v272_v21, %v131_v46  ;;  %v15502_v44 = vrot.slane %v15501_v11, 2  ;;  %v2537_v0 = vrot.slane %v2519_v7, 2 }
 0x164   :  { %v2601_v1 = vsel %vm1730_vm3, %v2596_v58, %v14684_v42  ;;  %v2521_v2 = vmul.f32 %v15497_v48, %v2489_v20  ;;  %v15504_v20 = vld [vmem:[#allocation154_spill] sm:$0xff]  ;;  %v15506_v48 = vrot.slane %v10102_v30, 2  ;;  %v15511_v30 = vld [vmem:[#allocation92_spill] sm:$0xff]  ;;  %v15532_v42 = vld [vmem:[#allocation47_spill] sm:$0xff] }
 0x165   :  { %v2398_v25 = vsel %vm1730_vm3, %v15502_v44, %v2397_v38  ;;  %v10244_v8 = vadd.f32 %v2601_v1, %v2417_v34  ;;  %v2660_v39 = vsel %vm1730_vm3, %v2655_v33, %v2659_v47  ;;  %v10247_v53 = vadd.f32 %v2659_v47, %v2478_v45  ;;  %v7571_v38 = vld [vmem:[%s15018_s28 + $0x3] ss:$8 sm:$0x3] }
 0x166   :  { %v10249_v57 = vadd.f32 %v2660_v39, %v2476_v22  ;;  %v10255_v46 = vrot.slane %v7571_v38, %v9961_v61  ;;  %4460 = vrot.lane.b32.xlu0 %v15460_v56, %s7687_s27  ;;  %v10259_v34 = vadd.f32 %v405_v12, %v280_v35  ;;  %v2415_v45 = vadd.f32 %v2398_v25, %v2216_v52  ;;  %v15507_v47 = vld [vmem:[#allocation161_spill] sm:$0xff]  ;;  %v15513_v38 = vld [vmem:[#allocation55_spill] sm:$0xff] }
 0x167   :  { %v15505_v21 = vrot.slane %v15504_v20, 2  ;;  %v2343_v7 = vsel %vm1730_vm3, %v15506_v48, %v2342_v31  ;;  %v15508_v11 = vrot.slane %v15507_v47, 2  ;;  %v7572_v56 = vld [vmem:[%s15018_s28 + $0x4] ss:$8 sm:$0x3]  ;;  %v624_v25 = vsel %vm623_vm10, %v15511_v30, %v612_v26  ;;  %v15515_v47 = vld [vmem:[#allocation162_spill] sm:$0xff] }
 0x168   :  { %15503 = vst [vmem:[#allocation138_spill] sm:$0xff] %v10255_v46  ;;  %v10274_v12 = vrot.slane %v7572_v56, %v9961_v61  ;;  %v15510_v52 = vld [vmem:[#allocation89_spill] sm:$0xff]  ;;  %v10290_v20 = vmul.f32 %v9565_v23, %v15513_v38 }
 0x169   :  { %v2457_v22 = vsel %vm1730_vm3, %v15505_v21, %v2456_v18  ;;  %v2538_v44 = vsel %vm1730_vm3, %v15508_v11, %v2537_v0  ;;  %v10278_v35 = vsel %vm490_vm11, %v15510_v52, %v479_v43  ;;  %v2541_v18 = vrot.slane %v2521_v2, 2  ;;  %v7574_v52 = vld [vmem:[%s15018_s28 + $0x35] ss:$8 sm:$0x3] }
 0x16a   :  { %v2474_v39 = vadd.f32 %v2457_v22, %v2275_v6  ;;  %15509 = vst [vmem:[#allocation126_spill] sm:$0xff] %v10274_v12  ;;  %v7573_v6 = vld [vmem:[%s15018_s28 + $0x65] ss:$8 sm:$0x3]  ;;  %v2358_v21 = vadd.f32 %v2343_v7, %v2159_v10  ;;  %v2360_v22 = vadd.f32 %v2342_v31, %v2161_v29  ;;  %v15514_v43 = vrot.slane %v10141_v49, 2 }
 0x16b   :  { %v10286_v1 = vrot.slane %v7573_v6, %v9961_v61  ;;  %v509_v2 = vmul.f32 %v10255_v46, %v10278_v35  ;;  %v2555_v26 = vadd.f32 %v2538_v44, %v10143_v37  ;;  %v15516_v11 = vrot.slane %v15515_v47, 2  ;;  %v15519_v37 = vld [vmem:[#allocation163_spill] sm:$0xff]  ;;  %v15521_v47 = vld [vmem:[#allocation58_spill] sm:$0xff] }
 0x16c   :  { %v10294_v48 = vadd.f32 %v15514_v43, %v2220_v36  ;;  %v10306_v10 = vrot.slane %v7574_v52, %v9961_v61  ;;  %v7575_v36 = vld [vmem:[%s15018_s28 + $0x66] ss:$8 sm:$0x3]  ;;  %v15520_v31 = vrot.slane %v15519_v37, 2  ;;  %v2542_v30 = vsel %vm1730_vm3, %v2537_v0, %v2541_v18 }
 0x16d   :  { %15512 = vst [vmem:[#allocation48_spill] sm:$0xff] %v10286_v1  ;;  %v2597_v56 = vsel %vm1730_vm3, %v15516_v11, %v2596_v58  ;;  %v10312_v49 = vrot.slane %v7575_v36, %v9961_v61  ;;  %v642_v58 = vmul.f32 %v10274_v12, %v624_v25  ;;  %v517_v44 = vadd.f32 %v509_v2, %v10125_v16  ;;  %v7577_v16 = vld [vmem:[%s15018_s28 + $0x36] ss:$8 sm:$0x3] }
 0x16e   :  { %15517 = vst [vmem:[#allocation146_spill] sm:$0xff] %v10306_v10  ;;  %v2614_v29 = vadd.f32 %v2597_v56, %v2415_v45  ;;  %v2656_v7 = vsel %vm1730_vm3, %v15520_v31, %v2655_v33  ;;  %v567_v6 = vmul.f32 %v10286_v1, %v10278_v35  ;;  %v14685_v43 = vrot.slane %v10290_v20, 3  ;;  %v7576_v33 = vld [vmem:[%s15018_s28 + $0x5] ss:$8 sm:$0x3] }
 0x16f   :  { %15518 = vst [vmem:[#allocation49_spill] sm:$0xff] %v10312_v49  ;;  %v2760_v11 = vmul.f32 %v9565_v23, %v15521_v47  ;;  %v10325_v52 = vadd.f32 %v2656_v7, %v2474_v39  ;;  %v10331_v45 = vrot.slane %v7576_v33, %v9961_v61  ;;  %v10337_v0 = vrot.slane %v7577_v16, %v9961_v61  ;;  %v2870_v16 = vpop.permute.xlu0 %2869 }
 0x170   :  { %v10339_v2 = vadd.f32 %v642_v58, %v517_v44  ;;  %v10342_v56 = vmul.f32 %v10306_v10, %v624_v25  ;;  %v700_v39 = vmul.f32 %v10312_v49, %v624_v25  ;;  %v575_v36 = vadd.f32 %v567_v6, %v10127_v9  ;;  %v7578_v58 = vld [vmem:[%s15018_s28 + $0x34] ss:$8 sm:$0x3]  ;;  %v7579_v25 = vld [vmem:[%s15018_s28 + $0x67] ss:$8 sm:$0x3] }
 0x171   :  { %15522 = vst [vmem:[#allocation137_spill] sm:$0xff] %v10331_v45  ;;  %15523 = vst [vmem:[#allocation36_spill] sm:$0xff] %v10337_v0  ;;  %v10348_v37 = vmul.f32 %v9931_v19, %v15521_v47  ;;  %v10350_v31 = vadd.f32 %v2542_v30, %v2358_v21  ;;  %v10352_v7 = vadd.f32 %v2541_v18, %v2360_v22  ;;  %v10368_v21 = vpop.permute.xlu1 %2871  ;;  %v15527_v22 = vld [vmem:[#allocation64_spill] sm:$0xff]  ;;  %v2778_v33 = vrot.slane %v2760_v11, 3  ;;  %v15533_v49 = vld [vmem:[#allocation59_spill] sm:$0xff] }
 0x172   :  { %v10358_v44 = vrot.slane %v7578_v58, %v9961_v61  ;;  %v10364_v9 = vrot.slane %v7579_v25, %v9961_v61  ;;  %v10366_v6 = vadd.f32 %v700_v39, %v575_v36  ;;  %15526 = vst [vmem:[#allocation156_spill] sm:$0xff] %v10368_v21  ;;  %v10372_v18 = vmul.f32 %v9931_v19, %v15513_v38  ;;  %v7580_v58 = vld [vmem:[%s15015_s1 + $0x8] sm:$0xfe]  ;;  %v15531_v11 = vld [vmem:[#allocation60_spill] sm:$0xff] }
 0x173   :  { %v15528_v30 = vrot.slane %v15527_v22, 3  ;;  %v733_v39 = vmul.f32 %v7580_v58, %v10331_v45  ;;  %v10385_v36 = vmul.f32 %v10190_v4, %v10331_v45  ;;  %v793_v38 = vmul.f32 %v7580_v58, %v10337_v0 }
 0x174   :  { %15524 = vst [vmem:[#allocation50_spill] sm:$0xff] %v10358_v44  ;;  %15525 = vst [vmem:[#allocation149_spill] sm:$0xff] %v10364_v9  ;;  %v10391_v22 = vmul.f32 %v10190_v4, %v10337_v0  ;;  %v2963_v10 = vmul.f32 %v15533_v49, %v9349_v54  ;;  %v852_v12 = vmul.f32 %v7580_v58, %v10364_v9  ;;  %v15535_v0 = vrot.slane %v10348_v37, 3 }
 0x175   :  { %v2720_v47 = vsel %vm2712_vm6, %v15528_v30, %v14685_v43  ;;  %15529 = vst [vmem:[#allocation51_spill] sm:$0xff] %v10385_v36  ;;  %v2821_v30 = vmul.f32 %v9931_v19, %v15531_v11  ;;  %v10397_v43 = vmul.f32 %v15532_v42, %v9349_v54  ;;  %v10404_v45 = vmul.f32 %v10190_v4, %v10364_v9 }
 0x176   :  { %15530 = vst [vmem:[#allocation150_spill] sm:$0xff] %v10391_v22  ;;  %v2737_v25 = vadd.f32 %v2720_v47, %v2555_v26  ;;  %v2783_v3 = vsel %vm2712_vm6, %v2778_v33, %v15535_v0  ;;  %v15537_v19 = vrot.slane %v15536_v51, 3  ;;  %v2819_v27 = vmul.f32 %v9565_v23, %v15531_v11  ;;  %v15538_v51 = vld [vmem:[#allocation130_spill] sm:$0xff] }
 0x177   :  { %15534 = vst [vmem:[#allocation35_spill] sm:$0xff] %v10404_v45  ;;  %v2798_v46 = vadd.f32 %v2783_v3, %v10244_v8  ;;  %v14712_v58 = vrot.slane %v10397_v43, 3  ;;  %v752_v59 = vrot.slane %v733_v39, 1  ;;  %v811_v5 = vrot.slane %v793_v38, 1  ;;  %v15540_v8 = vld [vmem:[#allocation63_spill] sm:$0xff]  ;;  %v10430_v39 = vpop.permute.xlu0 %214 }
 0x178   :  { %v2779_v1 = vsel %vm2712_vm6, %v15537_v19, %v2778_v33  ;;  %v538_v26 = vmul.f32 %v10358_v44, %v10278_v35  ;;  %v2841_v47 = vrot.slane %v2821_v30, 3  ;;  %v15539_v0 = vrot.slane %v15538_v51, 3  ;;  %v10428_v19 = vpop.permute.xlu1 %915 }
 0x179   :  { %v2981_v3 = vrot.slane %v2963_v10, 3  ;;  %v10426_v11 = vmul.f32 %v15540_v8, %v15452_v32  ;;  %v14720_v38 = vrot.slane %v10391_v22, 1  ;;  %v870_v9 = vrot.slane %v852_v12, 1 }
 0x17a   :  { %v2923_v33 = vsel %vm2712_vm6, %v15539_v0, %v14712_v58  ;;  %v2796_v35 = vadd.f32 %v2779_v1, %v2614_v29  ;;  %v2837_v51 = vrot.slane %v2819_v27, 3  ;;  %v15541_v0 = vld [vmem:[#allocation61_spill] sm:$0xff]  ;;  %v10440_v58 = vsel %vm199_vm2, %v2870_v16, %v10368_v21 }
 0x17b   :  { %v10433_v30 = vadd.f32 %v2923_v33, %v2737_v25  ;;  %v3022_v10 = vmul.f32 %v15541_v0, %v9349_v54  ;;  %v546_v13 = vadd.f32 %v538_v26, %v10259_v34  ;;  %v2723_v55 = vrot.slane %v10372_v18, 3  ;;  %v15543_v33 = vld [vmem:[#allocation131_spill] sm:$0xff]  ;;  %v3069_v22 = vpop.permute.xlu0 %3068 }
 0x17c   :  { %v10446_v12 = vmul.f32 %v15533_v49, %v10440_v58  ;;  %v3024_v1 = vmul.f32 %v15541_v0, %v10440_v58  ;;  %v15542_v27 = vrot.slane %v10385_v36, 1  ;;  %v2842_v25 = vsel %vm2712_vm6, %v2837_v51, %v2841_v47  ;;  %v10471_v34 = vpop.permute.xlu1 %3070 }
 0x17d   :  { %v15544_v16 = vrot.slane %v15543_v33, 3  ;;  %v813_v49 = vsel %vm748_vm0, %v811_v5, %v14720_v38  ;;  %v2859_v21 = vadd.f32 %v2841_v47, %v10247_v53  ;;  %v3040_v36 = vrot.slane %v3022_v10, 3  ;;  %v15546_v33 = vld [vmem:[#allocation74_spill] sm:$0xff]  ;;  %15547 = vst [vmem:[#allocation40_spill] sm:$0xff] %v10471_v34 }
 0x17e   :  { %v754_v29 = vsel %vm748_vm0, %v752_v59, %v15542_v27  ;;  %v14725_v26 = vrot.slane %v10446_v12, 3  ;;  %v3044_v0 = vrot.slane %v3024_v1, 3  ;;  %v15545_v59 = vld [vmem:[#allocation70_spill] sm:$0xff]  ;;  %v679_v5 = vadd.f32 %v10342_v56, %v546_v13  ;;  %v15550_v1 = vld [vmem:[#allocation147_spill] sm:$0xff] }
 0x17f   :  { %v2982_v44 = vsel %vm2712_vm6, %v15544_v16, %v2981_v3  ;;  %v10465_v27 = vmul.f32 %v15545_v59, %v15472_v24  ;;  %v10469_v16 = vmul.f32 %v15546_v33, %v9549_v63  ;;  %v2857_v53 = vadd.f32 %v2842_v25, %v10249_v57 }
 0x180   :  { %v2999_v18 = vadd.f32 %v2982_v44, %v2796_v35  ;;  %v15548_v44 = vrot.slane %v10290_v20, 3  ;;  %v2986_v47 = vsel %vm2712_vm6, %v2981_v3, %v14725_v26  ;;  %v15549_v10 = vrot.slane %v10426_v11, 3 }
 0x181   :  { %v15551_v38 = vrot.slane %v15550_v1, 3  ;;  %v10486_v15 = vadd.f32 %v2986_v47, %v2798_v46  ;;  %v3045_v13 = vsel %vm2712_vm6, %v3040_v36, %v3044_v0  ;;  %v10489_v56 = vadd.f32 %v3044_v0, %v2859_v21  ;;  %v15554_v46 = vld [vmem:[#allocation82_spill] sm:$0xff] }
 0x182   :  { %v2724_v35 = vsel %vm2712_vm6, %v15548_v44, %v2723_v55  ;;  %v15552_v20 = vrot.slane %v10219_v17, 2  ;;  %v15553_v25 = vrot.slane %v10404_v45, 1  ;;  %v3060_v26 = vadd.f32 %v3045_v13, %v2857_v53  ;;  %v15555_v21 = vld [vmem:[#allocation78_spill] sm:$0xff] }
 0x183   :  { %v3181_v28 = vsel %vm2712_vm6, %v15551_v38, %v15549_v10  ;;  %v14726_v1 = vrot.slane %v10465_v27, 3  ;;  %v14731_v38 = vrot.slane %v10469_v16, 3  ;;  %v10501_v47 = vmul.f32 %v9565_v23, %v15554_v46  ;;  %v15559_v10 = vld [vmem:[#allocation68_spill] sm:$0xff] }
 0x184   :  { %v2618_v57 = vadd.f32 %v15552_v20, %v10294_v48  ;;  %v872_v3 = vsel %vm748_vm0, %v870_v9, %v15553_v25  ;;  %v3198_v44 = vadd.f32 %v3181_v28, %v2999_v18  ;;  %v10505_v0 = vmul.f32 %v15555_v21, %v9349_v54  ;;  %v15557_v18 = vld [vmem:[#allocation66_spill] sm:$0xff]  ;;  %v15564_v25 = vld [vmem:[#allocation96_spill] sm:$0xff] }
 0x185   :  { %v10508_v17 = vadd.f32 %v754_v29, %v10339_v2  ;;  %v10510_v48 = vadd.f32 %v813_v49, %v679_v5  ;;  %v10513_v28 = vadd.f32 %v2724_v35, %v10350_v31  ;;  %v10516_v9 = vadd.f32 %v2723_v55, %v10352_v7  ;;  %v15561_v29 = vld [vmem:[#allocation84_spill] sm:$0xff]  ;;  %v10531_v31 = vpop.permute.xlu1 %1114  ;;  %v10533_v55 = vpop.permute.xlu0 %347 }
 0x186   :  { %v15558_v53 = vrot.slane %v15557_v18, 3  ;;  %v15560_v13 = vrot.slane %v15559_v10, 3  ;;  %v14730_v2 = vrot.slane %v10501_v47, 4  ;;  %v10529_v49 = vmul.f32 %v15561_v29, %v15452_v32 }
 0x187   :  { %15556 = vst [vmem:[#allocation41_spill] sm:$0xff] %v10510_v48  ;;  %v10536_v7 = vadd.f32 %v872_v3, %v10366_v6  ;;  %v10544_v18 = vmul.f32 %v15564_v25, %v15472_v24 }
 0x188   :  { %v2838_v23 = vsel %vm2712_vm6, %v15558_v53, %v2837_v51  ;;  %v3380_v20 = vsel %vm2712_vm6, %v15560_v13, %v14726_v1  ;;  %15562 = vst [vmem:[#allocation127_spill] sm:$0xff] %v10529_v49  ;;  %v15563_v51 = vrot.slane %v10348_v37, 3  ;;  %v15566_v53 = vld [vmem:[#allocation170_spill] sm:$0xff]  ;;  %v14733_v37 = vrot.slane %v10505_v0, 4 }
 0x189   :  { %v3397_v35 = vadd.f32 %v3380_v20, %v3198_v44  ;;  %15565 = vst [vmem:[#allocation12_spill] sm:$0xff] %v10544_v18  ;;  %v15567_v10 = vrot.slane %v15566_v53, 3  ;;  %v15568_v1 = vld [vmem:[#allocation90_spill] sm:$0xff]  ;;  %v2855_v20 = vadd.f32 %v2838_v23, %v10325_v52  ;;  %v15575_v52 = vld [vmem:[#allocation67_spill] sm:$0xff]  ;;  %v10601_v62 = vpop.permute.xlu1 %3269 }
 0x18a   :  { %v10540_v5 = vadd.f32 %v15563_v51, %v2618_v57  ;;  %v15569_v6 = vrot.slane %v15568_v1, 4  ;;  %v15570_v57 = vld [vmem:[#allocation62_spill] sm:$0xff]  ;;  %v7581_v1 = vld [vmem:[%s15018_s28 + $0x6] ss:$8 sm:$0x3]  ;;  %v10578_v23 = vmul.f32 %v15575_v52, %v15452_v32  ;;  %15578 = vst [vmem:[#allocation54_spill] sm:$0xff] %v10601_v62 }
 0x18b   :  { %v3579_v13 = vsel %vm2712_vm6, %v15567_v10, %v14731_v38  ;;  %v10559_v44 = vmul.f32 %v15570_v57, %v15452_v32  ;;  %v15571_v51 = vld [vmem:[#allocation30_spill] sm:$0xff]  ;;  %v10567_v10 = vmul.f32 %v15440_v40, %v9549_v63  ;;  %v15576_v38 = vld [vmem:[#allocation8_spill] sm:$0xff]  ;;  %v15583_v40 = vld [vmem:[#allocation69_spill] sm:$0xff] }
 0x18c   :  { %v3761_v3 = vsel %vm3694_vm7, %v15569_v6, %v14730_v2  ;;  %v15572_v45 = vrot.slane %v15571_v51, 3  ;;  %v3596_v14 = vadd.f32 %v3579_v13, %v3397_v35  ;;  %v10573_v6 = vrot.slane %v7581_v1, %v9961_v61  ;;  %v7582_v35 = vld [vmem:[%s15018_s28 + $0x37] ss:$8 sm:$0x3] }
 0x18d   :  { %15573 = vst [vmem:[#allocation37_spill] sm:$0xff] %v10567_v10  ;;  %v10588_v13 = vrot.slane %v7582_v35, %v9961_v61  ;;  %v15577_v2 = vrot.slane %v15576_v38, 4  ;;  %v3268_v35 = vpop.permute.xlu0 %3267  ;;  %v3239_v50 = vrot.slane %v10578_v23, 3  ;;  %v10619_v25 = vmul.f32 %v15583_v40, %v15472_v24 }
 0x18e   :  { %v3041_v53 = vsel %vm2712_vm6, %v15572_v45, %v3040_v36  ;;  %15574 = vst [vmem:[#allocation38_spill] sm:$0xff] %v10573_v6  ;;  %v3073_v45 = vsel %vm332_vm1, %v3069_v22, %v10471_v34  ;;  %v2906_v36 = vmul.f32 %v15532_v42, %v10440_v58  ;;  %v3778_v51 = vadd.f32 %v3761_v3, %v3596_v14  ;;  %v7583_v14 = vld [vmem:[%s15018_s28 + $0x70] ss:$8 sm:$0x3]  ;;  %v15581_v42 = vld [vmem:[#allocation13_spill] sm:$0xff] }
 0x18f   :  { %v10591_v1 = vmul.f32 %v15540_v8, %v3073_v45  ;;  %v3964_v22 = vsel %vm3694_vm7, %v15577_v2, %v14733_v37  ;;  %v3223_v58 = vmul.f32 %v15575_v52, %v3073_v45  ;;  %v10607_v8 = vrot.slane %v7583_v14, %v9961_v61 }
 0x190   :  { %v3981_v3 = vadd.f32 %v3964_v22, %v3778_v51  ;;  %v15580_v37 = vrot.slane %v10529_v49, 4  ;;  %v15582_v34 = vrot.slane %v15581_v42, 4  ;;  %v2926_v14 = vrot.slane %v2906_v36, 3  ;;  %v15584_v51 = vld [vmem:[#allocation108_spill] sm:$0xff]  ;;  %v15590_v36 = vld [vmem:[#allocation142_spill] sm:$0xff] }
 0x191   :  { %15579 = vst [vmem:[#allocation118_spill] sm:$0xff] %v10607_v8  ;;  %v14738_v2 = vrot.slane %v10591_v1, 3  ;;  %v3243_v60 = vrot.slane %v3223_v58, 3  ;;  %v921_v22 = vsel %vm224_vm8, %v15584_v51, %v10428_v19  ;;  %v15585_v49 = vrot.slane %v10426_v11, 3 }
 0x192   :  { %v4163_v52 = vsel %vm3694_vm7, %v15582_v34, %v15580_v37  ;;  %v15586_v34 = vrot.slane %v10544_v18, 4  ;;  %v15587_v37 = vld [vmem:[#allocation17_spill] sm:$0xff]  ;;  %v15589_v29 = vrot.slane %v10559_v44, 3  ;;  %v15591_v32 = vrot.slane %v15590_v36, 3  ;;  %v15596_v36 = vld [vmem:[#allocation158_spill] sm:$0xff] }
 0x193   :  { %v4180_v38 = vadd.f32 %v4163_v52, %v3981_v3  ;;  %v3185_v42 = vsel %vm2712_vm6, %v15585_v49, %v14738_v2  ;;  %v15588_v23 = vrot.slane %v15587_v37, 4  ;;  %v3244_v3 = vsel %vm2712_vm6, %v3239_v50, %v3243_v60 }
 0x194   :  { %v3122_v48 = vsel %vm2712_vm6, %v15591_v32, %v15589_v29  ;;  %v3200_v19 = vadd.f32 %v3185_v42, %v10486_v15  ;;  %v3259_v49 = vadd.f32 %v3244_v3, %v3060_v26  ;;  %v3261_v51 = vadd.f32 %v3243_v60, %v10489_v56  ;;  %v10655_v42 = vpop.permute.xlu0 %480 }
 0x195   :  { %v4362_v58 = vsel %vm3694_vm7, %v15588_v23, %v15586_v34  ;;  %v3139_v11 = vadd.f32 %v3122_v48, %v10433_v30  ;;  %v10644_v37 = vmul.f32 %v10573_v6, %v921_v22  ;;  %v10647_v34 = vmul.f32 %v10588_v13, %v921_v22 }
 0x196   :  { %v4379_v52 = vadd.f32 %v4362_v58, %v4180_v38  ;;  %v15592_v23 = vrot.slane %v10567_v10, 4  ;;  %v15593_v32 = vrot.slane %v9905_v41, 4  ;;  %v14737_v29 = vrot.slane %v10619_v25, 3  ;;  %v1314_v38 = vpop.permute.xlu1 %1313  ;;  %v15638_v10 = vld [vmem:[#allocation144_spill] sm:$0xff] }
 0x197   :  { %v15594_v30 = vrot.slane %v10397_v43, 3  ;;  %v3105_v56 = vmul.f32 %v15570_v57, %v3073_v45  ;;  %v3272_v48 = vsel %vm465_vm4, %v3268_v35, %v10601_v62  ;;  %v3058_v58 = vadd.f32 %v3041_v53, %v2855_v20  ;;  %v15598_v43 = vld [vmem:[#allocation71_spill] sm:$0xff] }
 0x198   :  { %v4561_v15 = vsel %vm3694_vm7, %v15593_v32, %v15592_v23  ;;  %v10666_v41 = vmul.f32 %v10607_v8, %v921_v22  ;;  %v15597_v3 = vrot.slane %v15596_v36, 3  ;;  %v10675_v32 = vmul.f32 %v15598_v43, %v15472_v24  ;;  %v15606_v36 = vld [vmem:[#allocation124_spill] sm:$0xff] }
 0x199   :  { %v2927_v60 = vsel %vm2712_vm6, %v15594_v30, %v2926_v14  ;;  %v10660_v26 = vadd.f32 %v4561_v15, %v4379_v52  ;;  %v15599_v52 = vld [vmem:[#allocation97_spill] sm:$0xff]  ;;  %v10687_v53 = vmul.f32 %v15545_v59, %v3272_v48  ;;  %v3422_v45 = vmul.f32 %v15598_v43, %v3272_v48  ;;  %v15604_v43 = vld [vmem:[#allocation151_spill] sm:$0xff] }
 0x19a   :  { %v3321_v23 = vsel %vm2712_vm6, %v15597_v3, %v14737_v29  ;;  %v10680_v57 = vsel %vm224_vm8, %v15599_v52, %v10430_v39  ;;  %v2942_v35 = vadd.f32 %v2927_v60, %v10513_v28  ;;  %v2944_v22 = vadd.f32 %v2926_v14, %v10516_v9  ;;  %v7584_v28 = vld [vmem:[%s15018_s28 + $0x7] ss:$8 sm:$0x3]  ;;  %v10712_v60 = vpop.permute.xlu1 %3468 }
 0x19b   :  { %15595 = vst [vmem:[#allocation21_spill] sm:$0xff] %v10660_v26  ;;  %4683 = vrot.lane.b32.xlu1 %v10660_v26, %s7689_s23  ;;  %v10684_v20 = vadd.f32 %v3321_v23, %v3139_v11  ;;  %v15601_v15 = vrot.slane %v10446_v12, 3  ;;  %v3125_v3 = vrot.slane %v3105_v56, 3  ;;  %v14740_v11 = vrot.slane %v10687_v53, 3  ;;  %15603 = vst [vmem:[#allocation56_spill] sm:$0xff] %v10712_v60  ;;  %v3467_v56 = vpop.permute.xlu0 %3466  ;;  %v15609_v26 = vld [vmem:[#allocation120_spill] sm:$0xff] }
 0x19c   :  { %v3442_v23 = vrot.slane %v3422_v45, 3  ;;  %v10703_v9 = vrot.slane %v7584_v28, %v9961_v61  ;;  %v7585_v12 = vld [vmem:[%s15018_s28 + $0x40] ss:$8 sm:$0x3]  ;;  %v3438_v14 = vrot.slane %v10675_v32, 3  ;;  %v15605_v52 = vrot.slane %v15604_v43, 3 }
 0x19d   :  { %15600 = vst [vmem:[#allocation102_spill] sm:$0xff] %v10684_v20  ;;  %v3003_v30 = vadd.f32 %v15601_v15, %v10540_v5  ;;  %v10709_v5 = vrot.slane %v7585_v12, %v9961_v61  ;;  %v7586_v15 = vld [vmem:[%s15018_s28 + $0x71] ss:$8 sm:$0x3]  ;;  %v1120_v12 = vsel %vm357_vm9, %v15606_v36, %v10531_v31  ;;  %v15607_v32 = vrot.slane %v10465_v27, 3 }
 0x19e   :  { %15602 = vst [vmem:[#allocation25_spill] sm:$0xff] %v10703_v9  ;;  %v3240_v45 = vsel %vm2712_vm6, %v15605_v52, %v3239_v50  ;;  %v10721_v28 = vrot.slane %v7586_v15, %v9961_v61  ;;  %v3304_v43 = vmul.f32 %v15583_v40, %v3272_v48  ;;  %v3443_v52 = vsel %vm2712_vm6, %v3438_v14, %v3442_v23 }
 0x19f   :  { %v3384_v59 = vsel %vm2712_vm6, %v15607_v32, %v14740_v11  ;;  %v3460_v39 = vadd.f32 %v3442_v23, %v3261_v51  ;;  %v3257_v29 = vadd.f32 %v3240_v45, %v3058_v58  ;;  %v15608_v15 = vrot.slane %v10559_v44, 3  ;;  %v15611_v32 = vld [vmem:[#allocation135_spill] sm:$0xff] }
 0x1a0   :  { %v3399_v50 = vadd.f32 %v3384_v59, %v3200_v19  ;;  %v10739_v31 = vsel %vm357_vm9, %v15609_v26, %v10533_v55  ;;  %v3458_v36 = vadd.f32 %v3443_v52, %v3259_v49  ;;  %v10742_v27 = vmul.f32 %v10703_v9, %v1120_v12  ;;  %v15610_v19 = vld [vmem:[#allocation75_spill] sm:$0xff]  ;;  %v10768_v52 = vpop.permute.xlu0 %613 }
 0x1a1   :  { %v3126_v2 = vsel %vm2712_vm6, %v15608_v15, %v3125_v3  ;;  %v10745_v40 = vmul.f32 %v10709_v5, %v1120_v12  ;;  %v10749_v51 = vmul.f32 %v15610_v19, %v9549_v63  ;;  %v3471_v44 = vsel %vm598_vm5, %v3467_v56, %v10712_v60  ;;  %v7587_v55 = vld [vmem:[%s15018_s28 + $0x10] ss:$8 sm:$0x3]  ;;  %v7588_v15 = vld [vmem:[%s15018_s28 + $0x41] ss:$8 sm:$0x3] }
 0x1a2   :  { %v10754_v48 = vmul.f32 %v10721_v28, %v1120_v12  ;;  %v10760_v49 = vrot.slane %v7587_v55, %v9961_v61  ;;  %v10763_v26 = vmul.f32 %v15546_v33, %v3471_v44  ;;  %v3621_v58 = vmul.f32 %v15610_v19, %v3471_v44  ;;  %v1513_v12 = vpop.permute.xlu1 %1512  ;;  %v7589_v33 = vld [vmem:[%s15018_s28 + $0x72] ss:$8 sm:$0x3] }
 0x1a3   :  { %v3141_v23 = vadd.f32 %v3126_v2, %v2942_v35  ;;  %v3143_v59 = vadd.f32 %v3125_v3, %v2944_v22  ;;  %v3324_v45 = vrot.slane %v3304_v43, 3  ;;  %v1319_v56 = vsel %vm490_vm11, %v15611_v32, %v1314_v38  ;;  %v15614_v11 = vld [vmem:[#allocation159_spill] sm:$0xff] }
 0x1a4   :  { %v10774_v55 = vrot.slane %v7588_v15, %v9961_v61  ;;  %v10780_v2 = vrot.slane %v7589_v33, %v9961_v61  ;;  %v14744_v35 = vrot.slane %v10763_v26, 3  ;;  %v3641_v38 = vrot.slane %v3621_v58, 3 }
 0x1a5   :  { %v15613_v22 = vrot.slane %v10591_v1, 3  ;;  %v14743_v32 = vrot.slane %v10749_v51, 3  ;;  %v15615_v60 = vrot.slane %v15614_v11, 3  ;;  %v10793_v33 = vmul.f32 %v10760_v49, %v1319_v56 }
 0x1a6   :  { %15612 = vst [vmem:[#allocation42_spill] sm:$0xff] %v10774_v55  ;;  %v15616_v1 = vrot.slane %v10469_v16, 3  ;;  %v15617_v58 = vrot.slane %v10619_v25, 3  ;;  %v3659_v15 = vadd.f32 %v3641_v38, %v3460_v39  ;;  %v10812_v43 = vmul.f32 %v10780_v2, %v1319_v56  ;;  %v15619_v25 = vld [vmem:[#allocation132_spill] sm:$0xff]  ;;  %v3852_v39 = vpop.permute.xlu0 %3851 }
 0x1a7   :  { %v3202_v3 = vadd.f32 %v15613_v22, %v3003_v30  ;;  %v3439_v62 = vsel %vm2712_vm6, %v15615_v60, %v3438_v14  ;;  %v3642_v11 = vsel %vm2712_vm6, %v14743_v32, %v3641_v38  ;;  %v10809_v60 = vmul.f32 %v10774_v55, %v1319_v56  ;;  %v10821_v32 = vpop.permute.xlu1 %3853  ;;  %v15623_v56 = vld [vmem:[#allocation86_spill] sm:$0xff] }
 0x1a8   :  { %v3583_v30 = vsel %vm2712_vm6, %v15616_v1, %v14744_v35  ;;  %v3325_v22 = vsel %vm2712_vm6, %v15617_v58, %v3324_v45  ;;  %v10806_v14 = vadd.f32 %v3439_v62, %v3257_v29  ;;  %v3657_v16 = vadd.f32 %v3642_v11, %v3458_v36  ;;  %15621 = vst [vmem:[#allocation9_spill] sm:$0xff] %v10821_v32  ;;  %v10826_v62 = vld [vmem:[%s15015_s1 + $0x30] sm:$0xff] }
 0x1a9   :  { %v3598_v19 = vadd.f32 %v3583_v30, %v3399_v50  ;;  %v3342_v1 = vadd.f32 %v3324_v45, %v3143_v59  ;;  %v10817_v58 = vsel %vm490_vm11, %v15619_v25, %v10655_v42  ;;  %v15620_v50 = vld [vmem:[#allocation73_spill] sm:$0xff]  ;;  %v10830_v29 = vmul.f32 %v10826_v62, %v15554_v46  ;;  %v10837_v45 = vld [vmem:[%s15015_s1 + $0x20] sm:$0xff] }
 0x1aa   :  { %15618 = vst [vmem:[#allocation43_spill] sm:$0xff] %v10806_v14  ;;  %v3501_v30 = vmul.f32 %v15620_v50, %v9549_v63  ;;  %v3340_v36 = vadd.f32 %v3325_v22, %v3141_v23  ;;  %v15622_v59 = vrot.slane %v10687_v53, 3  ;;  %v10841_v38 = vmul.f32 %v10837_v45, %v15623_v56  ;;  %v7592_v53 = vld [vmem:[%s15018_s28 + $0x11] ss:$8 sm:$0x3] }
 0x1ab   :  { %v3803_v11 = vmul.f32 %v10826_v62, %v15623_v56  ;;  %v3503_v25 = vmul.f32 %v15620_v50, %v3471_v44  ;;  %v10851_v23 = vrot.slane %v7592_v53, %v9961_v61  ;;  %v10859_v56 = vsel %vm199_vm2, %v3852_v39, %v10821_v32  ;;  %v15628_v63 = vld [vmem:[#allocation79_spill] sm:$0xff] }
 0x1ac   :  { %v3401_v42 = vadd.f32 %v15622_v59, %v3202_v3  ;;  %15624 = vst [vmem:[#allocation39_spill] sm:$0xff] %v10841_v38  ;;  %v14747_v3 = vrot.slane %v10830_v29, 4  ;;  %v15626_v59 = vld [vmem:[#allocation148_spill] sm:$0xff]  ;;  %v3519_v50 = vrot.slane %v3501_v30, 3  ;;  %v15627_v53 = vrot.slane %v10501_v47, 4 }
 0x1ad   :  { %15625 = vst [vmem:[#allocation173_spill] sm:$0xff] %v10851_v23  ;;  %v1518_v35 = vsel %vm623_vm10, %v15626_v59, %v1513_v12  ;;  %v3823_v14 = vrot.slane %v3803_v11, 4  ;;  %v10869_v22 = vmul.f32 %v15628_v63, %v9349_v54  ;;  %v7593_v12 = vld [vmem:[%s15018_s28 + $0x42] ss:$8 sm:$0x3]  ;;  %v14750_v59 = vrot.slane %v10841_v38, 4 }
 0x1ae   :  { %v3765_v46 = vsel %vm3694_vm7, %v15627_v53, %v14747_v3  ;;  %v10875_v39 = vrot.slane %v7593_v12, %v9961_v61  ;;  %v7594_v30 = vld [vmem:[%s15018_s28 + $0x73] ss:$8 sm:$0x3]  ;;  %v3523_v53 = vrot.slane %v3503_v25, 3  ;;  %v1534_v3 = vmul.f32 %v10851_v23, %v1518_v35 }
 0x1af   :  { %15629 = vst [vmem:[#allocation128_spill] sm:$0xff] %v10869_v22  ;;  %v10881_v11 = vrot.slane %v7594_v30, %v9961_v61  ;;  %v3780_v47 = vadd.f32 %v3765_v46, %v3598_v19  ;;  %v10887_v44 = vmul.f32 %v15555_v21, %v10859_v56  ;;  %v4006_v12 = vmul.f32 %v15628_v63, %v10859_v56  ;;  %v15634_v21 = vld [vmem:[#allocation167_spill] sm:$0xff] }
 0x1b0   :  { %15630 = vst [vmem:[#allocation81_spill] sm:$0xff] %v10875_v39  ;;  %v3824_v32 = vsel %vm3694_vm7, %v14750_v59, %v3823_v14  ;;  %v10896_v30 = vmul.f32 %v10573_v6, %v10680_v57  ;;  %v10900_v19 = vmul.f32 %v10607_v8, %v10680_v57  ;;  %v10904_v46 = vmul.f32 %v10703_v9, %v10739_v31 }
 0x1b1   :  { %15631 = vst [vmem:[#allocation80_spill] sm:$0xff] %v10881_v11  ;;  %v15635_v25 = vrot.slane %v15634_v21, 3  ;;  %v14760_v59 = vrot.slane %v10887_v44, 4  ;;  %v4026_v20 = vrot.slane %v4006_v12, 4  ;;  %v3841_v6 = vadd.f32 %v3823_v14, %v3659_v15 }
 0x1b2   :  { %15632 = vst [vmem:[#allocation139_spill] sm:$0xff] %v10900_v19  ;;  %15633 = vst [vmem:[#allocation44_spill] sm:$0xff] %v10904_v46  ;;  %v10917_v9 = vmul.f32 %v10875_v39, %v1518_v35  ;;  %v1652_v21 = vmul.f32 %v10881_v11, %v1518_v35  ;;  %v3839_v24 = vadd.f32 %v3824_v32, %v3657_v16  ;;  %v15637_v12 = vrot.slane %v10869_v22, 4  ;;  %v15670_v22 = vld [vmem:[#allocation41_spill] sm:$0xff] }
 0x1b3   :  { %v10909_v63 = vsel %vm2712_vm6, %v15635_v25, %v3519_v50  ;;  %v15636_v25 = vrot.slane %v10505_v0, 4  ;;  %v3524_v15 = vsel %vm2712_vm6, %v3519_v50, %v3523_v53  ;;  %v10931_v8 = vadd.f32 %v4026_v20, %v3841_v6 }
 0x1b4   :  { %v4027_v18 = vsel %vm3694_vm7, %v15637_v12, %v4026_v20  ;;  %v10936_v35 = vsel %vm623_vm10, %v15638_v10, %v10768_v52  ;;  %v15640_v0 = vrot.slane %v10896_v30, 1  ;;  %v15641_v16 = vrot.slane %v10644_v37, 1 }
 0x1b5   :  { %v3968_v38 = vsel %vm3694_vm7, %v15636_v25, %v14760_v59  ;;  %v10938_v32 = vadd.f32 %v4027_v18, %v3839_v24  ;;  %v15642_v50 = vrot.slane %v10900_v19, 1  ;;  %v10950_v20 = vadd.f32 %v3523_v53, %v3342_v1 }
 0x1b6   :  { %v10926_v14 = vadd.f32 %v3968_v38, %v3780_v47  ;;  %v957_v38 = vsel %vm748_vm0, %v15641_v16, %v15640_v0  ;;  %v15643_v47 = vrot.slane %v10666_v41, 1  ;;  %v15644_v24 = vrot.slane %v10904_v46, 1 }
 0x1b7   :  { %15639 = vst [vmem:[#allocation45_spill] sm:$0xff] %v10938_v32  ;;  %v975_v25 = vadd.f32 %v957_v38, %v10508_v17  ;;  %v15645_v18 = vrot.slane %v10742_v27, 1  ;;  %v10959_v52 = vadd.f32 %v3524_v15, %v3340_v36  ;;  %v15646_v12 = vrot.slane %v10763_v26, 3  ;;  %v1898_v32 = vpop.permute.xlu0 %1897 }
 0x1b8   :  { %v1075_v6 = vsel %vm748_vm0, %v15643_v47, %v15642_v50  ;;  %v10967_v41 = vmul.f32 %v10721_v28, %v10739_v31  ;;  %v10971_v17 = vmul.f32 %v10760_v49, %v10817_v58  ;;  %v10979_v1 = vmul.f32 %v10780_v2, %v10817_v58 }
 0x1b9   :  { %v1093_v10 = vadd.f32 %v1075_v6, %v10536_v7  ;;  %v1156_v37 = vsel %vm748_vm0, %v15645_v18, %v15644_v24  ;;  %v10963_v0 = vadd.f32 %v15646_v12, %v3401_v42  ;;  %v10975_v7 = vmul.f32 %v10588_v13, %v10680_v57  ;;  %v15653_v6 = vld [vmem:[#allocation76_spill] sm:$0xff] }
 0x1ba   :  { %15647 = vst [vmem:[#allocation129_spill] sm:$0xff] %v10967_v41  ;;  %15648 = vst [vmem:[#allocation46_spill] sm:$0xff] %v10971_v17  ;;  %v1174_v27 = vadd.f32 %v1156_v37, %v975_v25  ;;  %v10983_v26 = vmul.f32 %v10851_v23, %v10936_v35  ;;  %v1552_v36 = vrot.slane %v1534_v3, 1  ;;  %v14761_v53 = vrot.slane %v10967_v41, 1 }
 0x1bb   :  { %15649 = vst [vmem:[#allocation152_spill] sm:$0xff] %v10975_v7  ;;  %15650 = vst [vmem:[#allocation140_spill] sm:$0xff] %v10979_v1  ;;  %v14765_v15 = vrot.slane %v10971_v17, 1  ;;  %v1670_v16 = vrot.slane %v1652_v21, 1  ;;  %v10990_v38 = vmul.f32 %v10709_v5, %v10739_v31  ;;  %v14764_v50 = vrot.slane %v10979_v1, 1 }
 0x1bc   :  { %15651 = vst [vmem:[#allocation141_spill] sm:$0xff] %v10983_v26  ;;  %v14762_v47 = vrot.slane %v10983_v26, 1  ;;  %v10996_v25 = vmul.f32 %v10837_v45, %v15653_v6  ;;  %v15654_v3 = vrot.slane %v10754_v48, 1  ;;  %v15655_v21 = vrot.slane %v10793_v33, 1 }
 0x1bd   :  { %15652 = vst [vmem:[#allocation53_spill] sm:$0xff] %v10990_v38  ;;  %v11010_v37 = vmul.f32 %v10881_v11, %v10936_v35  ;;  %v14766_v12 = vrot.slane %v10975_v7, 1  ;;  %v15657_v48 = vrot.slane %v10812_v43, 1  ;;  %v15659_v43 = vld [vmem:[#allocation77_spill] sm:$0xff]  ;;  %v15686_v23 = vrot.slane %v10809_v60, 1 }
 0x1be   :  { %v1274_v24 = vsel %vm748_vm0, %v15654_v3, %v14761_v53  ;;  %v1355_v18 = vsel %vm748_vm0, %v15655_v21, %v14765_v15  ;;  %v11020_v53 = vmul.f32 %v10826_v62, %v15653_v6  ;;  %v1554_v33 = vsel %vm748_vm0, %v1552_v36, %v14762_v47  ;;  %v7596_v47 = vld [vmem:[%s15015_s1 + $0x8] sm:$0xfc] }
 0x1bf   :  { %15656 = vst [vmem:[#allocation57_spill] sm:$0xff] %v11010_v37  ;;  %v1292_v45 = vadd.f32 %v1274_v24, %v1093_v10  ;;  %v1373_v59 = vadd.f32 %v1355_v18, %v1174_v27  ;;  %v1473_v3 = vsel %vm748_vm0, %v15657_v48, %v14764_v50  ;;  %v14763_v21 = vrot.slane %v11010_v37, 1  ;;  %v7595_v10 = vld [vmem:[%s15018_s28 + $0x12] ss:$8 sm:$0x3]  ;;  %v11037_v48 = vpop.permute.xlu1 %4050  ;;  %v15753_v7 = vld [vmem:[#allocation169_spill] sm:$0xff] }
 0x1c0   :  { %v11030_v27 = vrot.slane %v7595_v10, %v9961_v61  ;;  %v11034_v24 = vmul.f32 %v15659_v43, %v9349_v54  ;;  %v7598_v50 = vld [vmem:[%s15018_s28 + $0x13] ss:$8 sm:$0x3]  ;;  %v11104_v11 = vmul.f32 %v15659_v43, %v10859_v56  ;;  %v11146_v43 = vpop.permute.xlu0 %4052  ;;  %vm5291_vm2 = vcmask 670720  }
 0x1c1   :  { %v1491_v6 = vadd.f32 %v1473_v3, %v1292_v45  ;;  %v1572_v18 = vadd.f32 %v1554_v33, %v1373_v59  ;;  %v1672_v36 = vsel %vm748_vm0, %v1670_v16, %v14763_v21  ;;  %v7597_v59 = vld [vmem:[%s15018_s28 + $0x74] ss:$8 sm:$0x3]  ;;  %v15662_v16 = vrot.slane %v10647_v34, 1  ;;  %15681 = vst [vmem:[#allocation65_spill] sm:$0xff] %v11146_v43 }
 0x1c2   :  { %15658 = vst [vmem:[#allocation52_spill] sm:$0xff] %v11030_v27  ;;  %v1715_v10 = vmul.f32 %v7596_v47, %v11030_v27  ;;  %v11048_v54 = vmul.f32 %v10190_v4, %v11030_v27  ;;  %v11054_v45 = vrot.slane %v7597_v59, %v9961_v61  ;;  %v11063_v33 = vmul.f32 %v10774_v55, %v10817_v58 }
 0x1c3   :  { %v1016_v3 = vsel %vm748_vm0, %v15662_v16, %v14766_v12  ;;  %v1690_v21 = vadd.f32 %v1672_v36, %v1491_v6  ;;  %v11069_v15 = vrot.slane %v7598_v50, %v9961_v61  ;;  %v15666_v6 = vrot.slane %v10990_v38, 1  ;;  %v2097_v56 = vpop.permute.xlu1 %2096 }
 0x1c4   :  { %15660 = vst [vmem:[#allocation153_spill] sm:$0xff] %v11048_v54  ;;  %15661 = vst [vmem:[#allocation154_spill] sm:$0xff] %v11054_v45  ;;  %v1734_v59 = vrot.slane %v1715_v10, 2  ;;  %v1834_v62 = vmul.f32 %v7596_v47, %v11054_v45  ;;  %v11075_v34 = vmul.f32 %v10190_v4, %v11054_v45  ;;  %v15667_v36 = vrot.slane %v10745_v40, 1 }
 0x1c5   :  { %15663 = vst [vmem:[#allocation161_spill] sm:$0xff] %v11063_v33  ;;  %15664 = vst [vmem:[#allocation89_spill] sm:$0xff] %v11069_v15  ;;  %v11085_v50 = vmul.f32 %v10875_v39, %v10936_v35  ;;  %v7599_v10 = vld [vmem:[%s15018_s28 + $0x43] ss:$8 sm:$0x3]  ;;  %v1034_v16 = vadd.f32 %v1016_v3, %v15670_v22 }
 0x1c6   :  { %15665 = vst [vmem:[#allocation92_spill] sm:$0xff] %v11075_v34  ;;  %v1215_v12 = vsel %vm748_vm0, %v15667_v36, %v15666_v6  ;;  %v11091_v42 = vrot.slane %v7599_v10, %v9961_v61  ;;  %v1852_v37 = vrot.slane %v1834_v62, 2  ;;  %v7600_v40 = vld [vmem:[%s15018_s28 + $0x75] ss:$8 sm:$0x3]  ;;  %v15672_v10 = vrot.slane %v11048_v54, 2 }
 0x1c7   :  { %15668 = vst [vmem:[#allocation55_spill] sm:$0xff] %v11085_v50  ;;  %v11099_v6 = vrot.slane %v7600_v40, %v9961_v61  ;;  %v11111_v62 = vmul.f32 %v11069_v15, %v10680_v57  ;;  %v1233_v3 = vadd.f32 %v1215_v12, %v1034_v16  ;;  %v15675_v36 = vld [vmem:[#allocation155_spill] sm:$0xff]  ;;  %v11179_v60 = vpop.permute.xlu1 %4251 }
 0x1c8   :  { %15669 = vst [vmem:[#allocation162_spill] sm:$0xff] %v11091_v42  ;;  %v1736_v22 = vsel %vm1730_vm3, %v1734_v59, %v15672_v10  ;;  %v1903_v39 = vsel %vm224_vm8, %v15675_v36, %v1898_v32  ;;  %v1775_v54 = vmul.f32 %v7596_v47, %v11091_v42  ;;  %v11124_v59 = vmul.f32 %v10190_v4, %v11091_v42  ;;  %v7601_v32 = vld [vmem:[%s15018_s28 + $0x14] ss:$8 sm:$0x3] }
 0x1c9   :  { %15671 = vst [vmem:[#allocation163_spill] sm:$0xff] %v11099_v6  ;;  %15673 = vst [vmem:[#allocation58_spill] sm:$0xff] %v11111_v62  ;;  %v11116_v40 = vmul.f32 %v11099_v6, %v10680_v57  ;;  %v1919_v12 = vmul.f32 %v11069_v15, %v1903_v39  ;;  %v1754_v16 = vadd.f32 %v1736_v22, %v1572_v18  ;;  %v15677_v10 = vrot.slane %v11075_v34, 2  ;;  %v7602_v18 = vld [vmem:[%s15018_s28 + $0x76] ss:$8 sm:$0x3] }
 0x1ca   :  { %15676 = vst [vmem:[#allocation60_spill] sm:$0xff] %v11124_v59  ;;  %v2037_v45 = vmul.f32 %v11099_v6, %v1903_v39  ;;  %v11135_v36 = vrot.slane %v7601_v32, %v9961_v61  ;;  %v11142_v22 = vrot.slane %v7602_v18, %v9961_v61  ;;  %v7603_v18 = vld [vmem:[%s15018_s28 + $0x44] ss:$8 sm:$0x3]  ;;  %v15685_v34 = vrot.slane %v11063_v33, 1  ;;  %15690 = vst [vmem:[#allocation61_spill] sm:$0xff] %v11179_v60 }
 0x1cb   :  { %15674 = vst [vmem:[#allocation64_spill] sm:$0xff] %v11116_v40  ;;  %v1854_v26 = vsel %vm1730_vm3, %v1852_v37, %v15677_v10  ;;  %v1937_v4 = vrot.slane %v1919_v12, 2  ;;  %v15680_v37 = vld [vmem:[#allocation157_spill] sm:$0xff]  ;;  %v11158_v27 = vrot.slane %v7603_v18, %v9961_v61  ;;  %v15688_v18 = vrot.slane %v11085_v50, 1 }
 0x1cc   :  { %15678 = vst [vmem:[#allocation47_spill] sm:$0xff] %v11135_v36  ;;  %15679 = vst [vmem:[#allocation59_spill] sm:$0xff] %v11142_v22  ;;  %v2102_v10 = vsel %vm357_vm9, %v15680_v37, %v2097_v56  ;;  %v2055_v42 = vrot.slane %v2037_v45, 2  ;;  %v11152_v12 = vmul.f32 %v11135_v36, %v10739_v31  ;;  %v1872_v47 = vadd.f32 %v1854_v26, %v1690_v21 }
 0x1cd   :  { %v2118_v32 = vmul.f32 %v11135_v36, %v2102_v10  ;;  %15683 = vst [vmem:[#allocation63_spill] sm:$0xff] %v11158_v27  ;;  %v15684_v56 = vrot.slane %v11111_v62, 2  ;;  %v2236_v45 = vmul.f32 %v11142_v22, %v2102_v10  ;;  %v1414_v36 = vsel %vm748_vm0, %v15686_v23, %v15685_v34 }
 0x1ce   :  { %15682 = vst [vmem:[#allocation130_spill] sm:$0xff] %v11152_v12  ;;  %v15687_v21 = vrot.slane %v11116_v40, 2  ;;  %v15689_v62 = vrot.slane %v10917_v9, 1  ;;  %v14794_v33 = vrot.slane %v11152_v12, 2  ;;  %v1793_v23 = vrot.slane %v1775_v54, 2 }
 0x1cf   :  { %v1939_v37 = vsel %vm1730_vm3, %v1937_v4, %v15684_v56  ;;  %v2136_v6 = vrot.slane %v2118_v32, 2  ;;  %v1978_v56 = vmul.f32 %v11158_v27, %v1903_v39  ;;  %v11188_v9 = vmul.f32 %v11158_v27, %v10680_v57  ;;  %v7604_v39 = vld [vmem:[%s15018_s28 + $0x45] ss:$8 sm:$0x3] }
 0x1d0   :  { %v1957_v26 = vadd.f32 %v1939_v37, %v1754_v16  ;;  %v2057_v1 = vsel %vm1730_vm3, %v2055_v42, %v15687_v21  ;;  %v1613_v4 = vsel %vm748_vm0, %v15689_v62, %v15688_v18  ;;  %v11184_v42 = vmul.f32 %v11142_v22, %v10739_v31 }
 0x1d1   :  { %v2075_v15 = vadd.f32 %v2057_v1, %v1872_v47  ;;  %v2254_v16 = vrot.slane %v2236_v45, 2  ;;  %15692 = vst [vmem:[#allocation70_spill] sm:$0xff] %v11188_v9  ;;  %v11194_v1 = vrot.slane %v7604_v39, %v9961_v61  ;;  %v2138_v54 = vsel %vm1730_vm3, %v2136_v6, %v14794_v33  ;;  %v4250_v47 = vpop.permute.xlu0 %4249  ;;  %v15696_v33 = vld [vmem:[#allocation85_spill] sm:$0xff] }
 0x1d2   :  { %15691 = vst [vmem:[#allocation131_spill] sm:$0xff] %v11184_v42  ;;  %v4055_v62 = vsel %vm332_vm1, %v11037_v48, %v11146_v43  ;;  %v15694_v32 = vrot.slane %v11020_v53, 4  ;;  %v15695_v37 = vrot.slane %v10996_v25, 4  ;;  %v1432_v21 = vadd.f32 %v1414_v36, %v1233_v3 }
 0x1d3   :  { %15693 = vst [vmem:[#allocation74_spill] sm:$0xff] %v11194_v1  ;;  %v11207_v18 = vadd.f32 %v2138_v54, %v1957_v26  ;;  %v14799_v39 = vrot.slane %v11184_v42, 2  ;;  %v3908_v34 = vrot.slane %v11104_v11, 4  ;;  %v1996_v12 = vrot.slane %v1978_v56, 2  ;;  %v11233_v56 = vpop.permute.xlu1 %4448 }
 0x1d4   :  { %v3706_v45 = vsel %vm3694_vm7, %v15695_v37, %v15694_v32  ;;  %v2177_v6 = vmul.f32 %v11194_v1, %v2102_v10  ;;  %v11213_v22 = vmul.f32 %v15696_v33, %v4055_v62  ;;  %v1631_v48 = vadd.f32 %v1613_v4, %v1432_v21  ;;  %v7609_v42 = vld [vmem:[%s15018_s28 + $0x47] ss:$8 sm:$0x3] }
 0x1d5   :  { %v15697_v43 = vrot.slane %v11124_v59, 2  ;;  %v2256_v3 = vsel %vm1730_vm3, %v2254_v16, %v14799_v39  ;;  %v11223_v36 = vsel %vm465_vm4, %v4250_v47, %v11179_v60  ;;  %v14800_v11 = vrot.slane %v11188_v9, 2  ;;  %v15710_v39 = vld [vmem:[#allocation83_spill] sm:$0xff] }
 0x1d6   :  { %v11228_v10 = vmul.f32 %v11194_v1, %v10739_v31  ;;  %v11230_v26 = vadd.f32 %v2256_v3, %v2075_v15  ;;  %v14802_v4 = vrot.slane %v11213_v22, 4  ;;  %v15703_v47 = vmov %v15694_v32  ;;  %v15704_v15 = vld [vmem:[#allocation98_spill] sm:$0xff] }
 0x1d7   :  { %v1795_v50 = vsel %vm1730_vm3, %v1793_v23, %v15697_v43  ;;  %v15699_v43 = vrot.slane %v10749_v51, 3  ;;  %v15700_v23 = vld [vmem:[#allocation168_spill] sm:$0xff]  ;;  %v3723_v32 = vadd.f32 %v15703_v47, %v10950_v20  ;;  %v14801_v37 = vrot.slane %v11034_v24, 4 }
 0x1d8   :  { %15698 = vst [vmem:[#allocation147_spill] sm:$0xff] %v11228_v10  ;;  %v15701_v16 = vrot.slane %v15700_v23, 3  ;;  %v11248_v21 = vmul.f32 %v15704_v15, %v11223_v36  ;;  %v11251_v3 = vadd.f32 %v3706_v45, %v10959_v52  ;;  %v15705_v51 = vrot.slane %v10830_v29, 4 }
 0x1d9   :  { %v11262_v20 = vsel %vm3694_vm7, %v14801_v37, %v3908_v34  ;;  %v11264_v53 = vadd.f32 %v3908_v34, %v3723_v32  ;;  %v1813_v47 = vadd.f32 %v1795_v50, %v1631_v48  ;;  %v4243_v52 = vadd.f32 %v14802_v4, %v10931_v8  ;;  %v7606_v34 = vld [vmem:[%s15018_s28 + $0x77] ss:$8 sm:$0x3] }
 0x1da   :  { %v11240_v54 = vsel %vm2712_vm6, %v15701_v16, %v15699_v43  ;;  %v3782_v23 = vadd.f32 %v15705_v51, %v10963_v0  ;;  %v1998_v43 = vsel %vm1730_vm3, %v1996_v12, %v14800_v11  ;;  %v2195_v16 = vrot.slane %v2177_v6, 2  ;;  %v7605_v12 = vld [vmem:[%s15018_s28 + $0x15] ss:$8 sm:$0x3]  ;;  %v2296_v6 = vpop.permute.xlu0 %2295 }
 0x1db   :  { %15702 = vst [vmem:[#allocation82_spill] sm:$0xff] %v11240_v54  ;;  %v14803_v29 = vrot.slane %v11228_v10, 2  ;;  %v11275_v45 = vrot.slane %v7605_v12, %v9961_v61  ;;  %v11281_v50 = vrot.slane %v7606_v34, %v9961_v61  ;;  %v15708_v8 = vrot.slane %v10887_v44, 4  ;;  %v15709_v51 = vld [vmem:[#allocation19_spill] sm:$0xff]  ;;  %v15712_v34 = vld [vmem:[#allocation22_spill] sm:$0xff] }
 0x1dc   :  { %v2016_v32 = vadd.f32 %v1998_v43, %v1813_v47  ;;  %v11289_v11 = vmul.f32 %v15710_v39, %v15709_v51  ;;  %v11293_v12 = vmul.f32 %v15696_v33, %v15709_v51  ;;  %v15713_v4 = vld [vmem:[#allocation87_spill] sm:$0xff]  ;;  %v15714_v44 = vrot.slane %v11248_v21, 4  ;;  %v2495_v47 = vpop.permute.xlu1 %2494  ;;  %v7607_v33 = vld [vmem:[%s15018_s28 + $0x46] ss:$8 sm:$0x3] }
 0x1dd   :  { %15706 = vst [vmem:[#allocation78_spill] sm:$0xff] %v11275_v45  ;;  %15707 = vst [vmem:[#allocation66_spill] sm:$0xff] %v11281_v50  ;;  %v11285_v48 = vadd.f32 %v15708_v8, %v3782_v23  ;;  %v2197_v37 = vsel %vm1730_vm3, %v2195_v16, %v14803_v29  ;;  %v11300_v0 = vmul.f32 %v15713_v4, %v15712_v34  ;;  %v15719_v51 = vld [vmem:[#allocation160_spill] sm:$0xff]  ;;  %vm5231_vm1 = vcmask 678912  }
 0x1de   :  { %15711 = vst [vmem:[#allocation68_spill] sm:$0xff] %v11293_v12  ;;  %v11304_v23 = vadd.f32 %v15714_v44, %v4243_v52  ;;  %v11308_v43 = vmul.f32 %v11275_v45, %v10817_v58  ;;  %v11314_v8 = vrot.slane %v7607_v33, %v9961_v61  ;;  %v11318_v16 = vmul.f32 %v11281_v50, %v10817_v58  ;;  %v7608_v44 = vld [vmem:[%s15018_s28 + $0x16] ss:$8 sm:$0x3]  ;;  %v11376_v41 = vpop.permute.xlu0 %4450 }
 0x1df   :  { %v2301_v52 = vsel %vm490_vm11, %v15719_v51, %v2296_v6  ;;  %v11326_v29 = vrot.slane %v7608_v44, %v9961_v61  ;;  %v11329_v60 = vmul.f32 %v15710_v39, %v4055_v62  ;;  %v11339_v6 = vrot.slane %v7609_v42, %v9961_v61  ;;  %v7610_v39 = vld [vmem:[%s15018_s28 + $0x80] ss:$8 sm:$0x3]  ;;  %15728 = vst [vmem:[#allocation17_spill] sm:$0xff] %v11376_v41 }
 0x1e0   :  { %15715 = vst [vmem:[#allocation170_spill] sm:$0xff] %v11304_v23  ;;  %15716 = vst [vmem:[#allocation90_spill] sm:$0xff] %v11308_v43  ;;  %v15721_v23 = vld [vmem:[#allocation84_spill] sm:$0xff]  ;;  %v2317_v54 = vmul.f32 %v11275_v45, %v2301_v52  ;;  %v2376_v51 = vmul.f32 %v11314_v8, %v2301_v52  ;;  %v2435_v44 = vmul.f32 %v11281_v50, %v2301_v52  ;;  %v14826_v1 = vrot.slane %v11308_v43, 2 }
 0x1e1   :  { %15717 = vst [vmem:[#allocation62_spill] sm:$0xff] %v11314_v8  ;;  %15718 = vst [vmem:[#allocation30_spill] sm:$0xff] %v11318_v16  ;;  %v11332_v33 = vmul.f32 %v15721_v23, %v4055_v62  ;;  %v11347_v62 = vrot.slane %v7610_v39, %v9961_v61  ;;  %v15724_v23 = vld [vmem:[#allocation164_spill] sm:$0xff]  ;;  %v11355_v59 = vmul.f32 %v11326_v29, %v10936_v35  ;;  %v14824_v50 = vrot.slane %v11318_v16, 2 }
 0x1e2   :  { %15720 = vst [vmem:[#allocation67_spill] sm:$0xff] %v11326_v29  ;;  %15722 = vst [vmem:[#allocation8_spill] sm:$0xff] %v11339_v6  ;;  %v2500_v10 = vsel %vm623_vm10, %v15724_v23, %v2495_v47  ;;  %v2335_v45 = vrot.slane %v2317_v54, 2  ;;  %v11359_v52 = vmul.f32 %v11314_v8, %v10817_v58  ;;  %v2453_v39 = vrot.slane %v2435_v44, 2 }
 0x1e3   :  { %15723 = vst [vmem:[#allocation13_spill] sm:$0xff] %v11347_v62  ;;  %v2516_v42 = vmul.f32 %v11326_v29, %v2500_v10  ;;  %15725 = vst [vmem:[#allocation69_spill] sm:$0xff] %v11355_v59  ;;  %v2634_v40 = vmul.f32 %v11347_v62, %v2500_v10  ;;  %v14825_v23 = vrot.slane %v11355_v59, 2  ;;  %v2575_v9 = vmul.f32 %v11339_v6, %v2500_v10  ;;  %v15727_v29 = vld [vmem:[#allocation96_spill] sm:$0xff] }
 0x1e4   :  { %15726 = vst [vmem:[#allocation108_spill] sm:$0xff] %v11359_v52  ;;  %v2337_v47 = vsel %vm1730_vm3, %v2335_v45, %v14826_v1  ;;  %v11370_v27 = vmul.f32 %v15727_v29, %v11223_v36  ;;  %v2394_v17 = vrot.slane %v2376_v51, 2  ;;  %v2455_v44 = vsel %vm1730_vm3, %v2453_v39, %v14824_v50 }
 0x1e5   :  { %v2534_v54 = vrot.slane %v2516_v42, 2  ;;  %v2355_v8 = vadd.f32 %v2337_v47, %v11207_v18  ;;  %v2473_v45 = vadd.f32 %v2455_v44, %v11230_v26  ;;  %v11384_v10 = vmul.f32 %v11339_v6, %v10936_v35 }
 0x1e6   :  { %v11388_v18 = vmul.f32 %v11347_v62, %v10936_v35  ;;  %v4166_v29 = vrot.slane %v11332_v33, 4  ;;  %v11393_v51 = vmul.f32 %v15704_v15, %v15712_v34  ;;  %v2652_v26 = vrot.slane %v2634_v40, 2 }
 0x1e7   :  { %v2536_v42 = vsel %vm1730_vm3, %v2534_v54, %v14825_v23  ;;  %15729 = vst [vmem:[#allocation142_spill] sm:$0xff] %v11384_v10  ;;  %v14827_v47 = vrot.slane %v11359_v52, 2  ;;  %v2593_v54 = vrot.slane %v2575_v9, 2  ;;  %v11402_v50 = vsel %vm598_vm5, %v11233_v56, %v11376_v41 }
 0x1e8   :  { %15730 = vst [vmem:[#allocation158_spill] sm:$0xff] %v11388_v18  ;;  %15731 = vst [vmem:[#allocation71_spill] sm:$0xff] %v11393_v51  ;;  %v11395_v39 = vadd.f32 %v2536_v42, %v2355_v8  ;;  %v14828_v44 = vrot.slane %v11388_v18, 2  ;;  %v11406_v33 = vadd.f32 %v11262_v20, %v11251_v3  ;;  %v2215_v23 = vadd.f32 %v2197_v37, %v2016_v32  ;;  %v3079_v42 = vpop.permute.xlu1 %3078  ;;  %v15732_v32 = vld [vmem:[#allocation103_spill] sm:$0xff] }
 0x1e9   :  { %v14830_v40 = vrot.slane %v11370_v27, 4  ;;  %v2396_v9 = vsel %vm1730_vm3, %v2394_v17, %v14827_v47  ;;  %v14829_v8 = vrot.slane %v11384_v10, 2  ;;  %v11422_v1 = vmul.f32 %v15732_v32, %v11402_v50  ;;  %v7618_v3 = vld [vmem:[%s15018_s28 + $0x81] ss:$8 sm:$0x3] }
 0x1ea   :  { %v2654_v56 = vsel %vm1730_vm3, %v2652_v26, %v14828_v44  ;;  %v4184_v34 = vadd.f32 %v4166_v29, %v11285_v48  ;;  %v7611_v26 = vld [vmem:[%s15018_s28 + $0x21] ss:$8 sm:$0x3]  ;;  %v7612_v48 = vld [vmem:[%s15018_s28 + $0x17] ss:$8 sm:$0x3] }
 0x1eb   :  { %v2672_v20 = vadd.f32 %v2654_v56, %v2473_v45  ;;  %v2595_v47 = vsel %vm1730_vm3, %v2593_v54, %v14829_v8  ;;  %v11433_v44 = vrot.slane %v7611_v26, %v9961_v61  ;;  %v2414_v45 = vadd.f32 %v2396_v9, %v2215_v23  ;;  %v15734_v56 = vld [vmem:[#allocation72_spill] sm:$0xff]  ;;  %v7613_v54 = vld [vmem:[%s15018_s28 + $0x50] ss:$8 sm:$0x3] }
 0x1ec   :  { %v3084_v32 = vsel %vm357_vm9, %v15734_v56, %v3079_v42  ;;  %v11441_v17 = vrot.slane %v7612_v48, %v9961_v61  ;;  %v11447_v8 = vrot.slane %v7613_v54, %v9961_v61  ;;  %v15737_v26 = vld [vmem:[#allocation127_spill] sm:$0xff]  ;;  %v4383_v9 = vadd.f32 %v14830_v40, %v4184_v34  ;;  %v7615_v48 = vld [vmem:[%s15018_s28 + $0x83] ss:$8 sm:$0x3] }
 0x1ed   :  { %15733 = vst [vmem:[#allocation97_spill] sm:$0xff] %v11433_v44  ;;  %v15738_v37 = vrot.slane %v15737_v26, 4  ;;  %v7614_v42 = vld [vmem:[%s15018_s28 + $0x52] ss:$8 sm:$0x3]  ;;  %v11466_v54 = vrot.slane %v7615_v48, %v9961_v61  ;;  %v11468_v26 = vadd.f32 %v2595_v47, %v2414_v45  ;;  %v3100_v47 = vmul.f32 %v11433_v44, %v3084_v32 }
 0x1ee   :  { %15735 = vst [vmem:[#allocation151_spill] sm:$0xff] %v11441_v17  ;;  %15736 = vst [vmem:[#allocation124_spill] sm:$0xff] %v11447_v8  ;;  %v11460_v56 = vrot.slane %v7614_v42, %v9961_v61  ;;  %v7616_v34 = vld [vmem:[%s15015_s1 + $0x8] sm:$0xf8]  ;;  %v11478_v42 = vld [vmem:[%s15015_s1 + $0x18] sm:$0xff]  ;;  %v11487_v45 = vmul.f32 %v11433_v44, %v10739_v31  ;;  %v11494_v40 = vrot.slane %v7618_v3, %v9961_v61  ;;  %vm6865_vm4 = vcmask 15360  }
 0x1ef   :  { %v11452_v23 = vsel %vm3694_vm7, %v15738_v37, %v4166_v29  ;;  %15740 = vst [vmem:[#allocation75_spill] sm:$0xff] %v11466_v54  ;;  %v2697_v37 = vmul.f32 %v7616_v34, %v11441_v17  ;;  %v11482_v15 = vmul.f32 %v11478_v42, %v11441_v17  ;;  %v3218_v48 = vmul.f32 %v11466_v54, %v3084_v32  ;;  %v2880_v29 = vpop.permute.xlu0 %2879  ;;  %v7619_v44 = vld [vmem:[%s15018_s28 + $0x20] ss:$8 sm:$0x3] }
 0x1f0   :  { %15739 = vst [vmem:[#allocation120_spill] sm:$0xff] %v11460_v56  ;;  %15742 = vst [vmem:[#allocation159_spill] sm:$0xff] %v11487_v45  ;;  %v2757_v41 = vmul.f32 %v7616_v34, %v11447_v8  ;;  %v11502_v10 = vrot.slane %v7619_v44, %v9961_v61  ;;  %v11505_v59 = vmul.f32 %v11460_v56, %v3084_v32  ;;  %v7620_v32 = vld [vmem:[%s15018_s28 + $0x82] ss:$8 sm:$0x3]  ;;  %v3118_v38 = vrot.slane %v3100_v47, 3 }
 0x1f1   :  { %15741 = vst [vmem:[#allocation135_spill] sm:$0xff] %v11482_v15  ;;  %15743 = vst [vmem:[#allocation132_spill] sm:$0xff] %v11494_v40  ;;  %v2716_v18 = vrot.slane %v2697_v37, 3  ;;  %v11509_v3 = vmul.f32 %v11460_v56, %v10739_v31  ;;  %v2816_v37 = vmul.f32 %v7616_v34, %v11494_v40  ;;  %v11514_v16 = vmul.f32 %v11478_v42, %v11494_v40  ;;  %v15749_v34 = vld [vmem:[#allocation165_spill] sm:$0xff] }
 0x1f2   :  { %15744 = vst [vmem:[#allocation73_spill] sm:$0xff] %v11502_v10  ;;  %v11518_v62 = vmul.f32 %v11478_v42, %v11447_v8  ;;  %v11522_v44 = vmul.f32 %v11502_v10, %v10680_v57  ;;  %v11528_v56 = vrot.slane %v7620_v32, %v9961_v61  ;;  %v2885_v6 = vsel %vm224_vm8, %v15749_v34, %v2880_v29  ;;  %v7621_v34 = vld [vmem:[%s15018_s28 + $0x51] ss:$8 sm:$0x3] }
 0x1f3   :  { %15745 = vst [vmem:[#allocation86_spill] sm:$0xff] %v11509_v3  ;;  %15746 = vst [vmem:[#allocation148_spill] sm:$0xff] %v11514_v16  ;;  %v11534_v40 = vmul.f32 %v11466_v54, %v10739_v31  ;;  %v15751_v8 = vrot.slane %v11482_v15, 3  ;;  %v2834_v52 = vrot.slane %v2816_v37, 3  ;;  %v14859_v43 = vrot.slane %v11514_v16, 3 }
 0x1f4   :  { %15747 = vst [vmem:[#allocation79_spill] sm:$0xff] %v11518_v62  ;;  %15748 = vst [vmem:[#allocation167_spill] sm:$0xff] %v11528_v56  ;;  %v3236_v46 = vrot.slane %v3218_v48, 3  ;;  %v2775_v55 = vrot.slane %v2757_v41, 3  ;;  %v11542_v32 = vmul.f32 %v11528_v56, %v10680_v57  ;;  %v3019_v47 = vmul.f32 %v11528_v56, %v2885_v6  ;;  %v3477_v41 = vpop.permute.xlu1 %3476 }
 0x1f5   :  { %15750 = vst [vmem:[#allocation144_spill] sm:$0xff] %v11534_v40  ;;  %v2718_v17 = vsel %vm2712_vm6, %v2716_v18, %v15751_v8  ;;  %v2836_v29 = vsel %vm2712_vm6, %v2834_v52, %v14859_v43  ;;  %v11551_v18 = vrot.slane %v7621_v34, %v9961_v61  ;;  %v2901_v8 = vmul.f32 %v11502_v10, %v2885_v6 }
 0x1f6   :  { %15752 = vst [vmem:[#allocation76_spill] sm:$0xff] %v11542_v32  ;;  %v2736_v48 = vadd.f32 %v2718_v17, %v11395_v39  ;;  %v14868_v37 = vrot.slane %v11518_v62, 3  ;;  %v2854_v54 = vadd.f32 %v2836_v29, %v2672_v20  ;;  %v14869_v16 = vrot.slane %v11522_v44, 3 }
 0x1f7   :  { %v14867_v52 = vrot.slane %v11542_v32, 3  ;;  %v2919_v43 = vrot.slane %v2901_v8, 3  ;;  %v2960_v15 = vmul.f32 %v11551_v18, %v2885_v6  ;;  %v3037_v19 = vrot.slane %v3019_v47, 3  ;;  %v3278_v32 = vpop.permute.xlu0 %3277 }
 0x1f8   :  { %v14871_v34 = vrot.slane %v11487_v45, 3  ;;  %v14872_v10 = vrot.slane %v11534_v40, 3  ;;  %v11564_v56 = vsel %vm623_vm10, %v15753_v7, %v3477_v41  ;;  %v15754_v39 = vrot.slane %v11422_v1, 4  ;;  %v7622_v7 = vld [vmem:[%s15018_s28 + $0x23] ss:$8 sm:$0x3] }
 0x1f9   :  { %v11572_v20 = vmul.f32 %v11551_v18, %v10680_v57  ;;  %v2921_v6 = vsel %vm2712_vm6, %v2919_v43, %v14869_v16  ;;  %v3039_v29 = vsel %vm2712_vm6, %v3037_v19, %v14867_v52  ;;  %v11584_v8 = vrot.slane %v7622_v7, %v9961_v61  ;;  %v7623_v43 = vld [vmem:[%s15018_s28 + $0x85] ss:$8 sm:$0x3] }
 0x1fa   :  { %v11568_v17 = vadd.f32 %v15754_v39, %v4383_v9  ;;  %v2777_v9 = vsel %vm2712_vm6, %v2775_v55, %v14868_v37  ;;  %v2939_v47 = vadd.f32 %v2921_v6, %v2736_v48  ;;  %v3057_v41 = vadd.f32 %v3039_v29, %v2854_v54  ;;  %v15760_v29 = vld [vmem:[#allocation12_spill] sm:$0xff] }
 0x1fb   :  { %15756 = vst [vmem:[#allocation41_spill] sm:$0xff] %v11572_v20  ;;  %15757 = vst [vmem:[#allocation155_spill] sm:$0xff] %v11584_v8  ;;  %v11593_v39 = vrot.slane %v7623_v43, %v9961_v61  ;;  %v3120_v19 = vsel %vm2712_vm6, %v3118_v38, %v14871_v34  ;;  %v3238_v55 = vsel %vm2712_vm6, %v3236_v46, %v14872_v10  ;;  %v2978_v48 = vrot.slane %v2960_v15, 3 }
 0x1fc   :  { %15755 = vst [vmem:[#allocation77_spill] sm:$0xff] %v11568_v17  ;;  %4687 = vrot.lane.b32.xlu1 %v11568_v17, %s7689_s23  ;;  %v3498_v54 = vmul.f32 %v11584_v8, %v11564_v56  ;;  %v15759_v6 = vrot.slane %v11370_v27, 4  ;;  %v15761_v7 = vrot.slane %v15760_v29, 4  ;;  %v3138_v37 = vadd.f32 %v3120_v19, %v2939_v47  ;;  %v7624_v47 = vld [vmem:[%s15018_s28 + $0x22] ss:$8 sm:$0x3] }
 0x1fd   :  { %15758 = vst [vmem:[#allocation157_spill] sm:$0xff] %v11593_v39  ;;  %v3256_v16 = vadd.f32 %v3238_v55, %v3057_v41  ;;  %v2795_v34 = vadd.f32 %v2777_v9, %v11468_v26  ;;  %v14873_v46 = vrot.slane %v11572_v20, 3  ;;  %v3616_v15 = vmul.f32 %v11593_v39, %v11564_v56  ;;  %v7625_v26 = vld [vmem:[%s15018_s28 + $0x84] ss:$8 sm:$0x3]  ;;  %v15766_v29 = vld [vmem:[#allocation166_spill] sm:$0xff] }
 0x1fe   :  { %v4366_v43 = vsel %vm3694_vm7, %v15761_v7, %v15759_v6  ;;  %v11618_v27 = vmul.f32 %v11584_v8, %v10936_v35  ;;  %v11622_v6 = vmul.f32 %v11593_v39, %v10936_v35  ;;  %v11628_v41 = vrot.slane %v7624_v47, %v9961_v61 }
 0x1ff   :  { %v11634_v9 = vrot.slane %v7625_v26, %v9961_v61  ;;  %v2980_v19 = vsel %vm2712_vm6, %v2978_v48, %v14873_v46  ;;  %v3516_v55 = vrot.slane %v3498_v54, 3  ;;  %v3283_v7 = vsel %vm490_vm11, %v15766_v29, %v3278_v32  ;;  %v7626_v26 = vld [vmem:[%s15018_s28 + $0x53] ss:$8 sm:$0x3]  ;;  %v15771_v54 = vld [vmem:[#allocation37_spill] sm:$0xff] }
 0x200   :  { %15762 = vst [vmem:[#allocation85_spill] sm:$0xff] %v11618_v27  ;;  %15763 = vst [vmem:[#allocation168_spill] sm:$0xff] %v11622_v6  ;;  %v4182_v10 = vadd.f32 %v11452_v23, %v10926_v14  ;;  %v11645_v47 = vmul.f32 %v11628_v41, %v10817_v58  ;;  %v11651_v52 = vrot.slane %v7626_v26, %v9961_v61  ;;  %v15770_v32 = vrot.slane %v11422_v1, 4 }
 0x201   :  { %15764 = vst [vmem:[#allocation98_spill] sm:$0xff] %v11628_v41  ;;  %15765 = vst [vmem:[#allocation19_spill] sm:$0xff] %v11634_v9  ;;  %v11655_v48 = vmul.f32 %v11634_v9, %v10817_v58  ;;  %v15772_v29 = vrot.slane %v15771_v54, 4  ;;  %v3634_v23 = vrot.slane %v3616_v15, 3  ;;  %v3299_v46 = vmul.f32 %v11628_v41, %v3283_v7  ;;  %v11671_v15 = vpop.permute.xlu1 %216 }
 0x202   :  { %15767 = vst [vmem:[#allocation83_spill] sm:$0xff] %v11645_v47  ;;  %15768 = vst [vmem:[#allocation22_spill] sm:$0xff] %v11651_v52  ;;  %v3417_v38 = vmul.f32 %v11634_v9, %v3283_v7  ;;  %v4381_v40 = vadd.f32 %v4366_v43, %v4182_v10  ;;  %v14884_v17 = vrot.slane %v11618_v27, 3  ;;  %v14882_v26 = vrot.slane %v11622_v6, 3 }
 0x203   :  { %15769 = vst [vmem:[#allocation87_spill] sm:$0xff] %v11655_v48  ;;  %v4565_v14 = vsel %vm3694_vm7, %v15772_v29, %v15770_v32  ;;  %v14885_v39 = vrot.slane %v11645_v47, 3  ;;  %v3358_v8 = vmul.f32 %v11651_v52, %v3283_v7  ;;  %v14883_v1 = vrot.slane %v11655_v48, 3  ;;  %v7627_v10 = vld [vmem:[%s15018_s28 + $0x54] ss:$8 sm:$0x3] }
 0x204   :  { %v3317_v45 = vrot.slane %v3299_v46, 3  ;;  %v3435_v54 = vrot.slane %v3417_v38, 3  ;;  %v11669_v20 = vadd.f32 %v4565_v14, %v4381_v40  ;;  %v2998_v32 = vadd.f32 %v2980_v19, %v2795_v34  ;;  %v7628_v7 = vld [vmem:[%s15018_s28 + $0x24] ss:$8 sm:$0x3] }
 0x205   :  { %v11677_v43 = vrot.slane %v7627_v10, %v9961_v61  ;;  %v11683_v29 = vrot.slane %v7628_v7, %v9961_v61  ;;  %v7629_v40 = vld [vmem:[%s15018_s28 + $0x86] ss:$8 sm:$0x3]  ;;  %v3518_v38 = vsel %vm2712_vm6, %v3516_v55, %v14884_v17  ;;  %v3636_v46 = vsel %vm2712_vm6, %v3634_v23, %v14882_v26 }
 0x206   :  { %15773 = vst [vmem:[#allocation160_spill] sm:$0xff] %v11669_v20  ;;  %v11689_v34 = vrot.slane %v7629_v40, %v9961_v61  ;;  %v3319_v19 = vsel %vm2712_vm6, %v3317_v45, %v14885_v39  ;;  %v3437_v14 = vsel %vm2712_vm6, %v3435_v54, %v14883_v1  ;;  %4685 = vrot.lane.b32.xlu0 %v11669_v20, %s7689_s23  ;;  %v7630_v23 = vld [vmem:[%s15015_s1 + $0x8] sm:$0xf0]  ;;  %v3376_v45 = vrot.slane %v3358_v8, 3  ;;  %v3862_v39 = vpop.permute.xlu0 %3861 }
 0x207   :  { %15774 = vst [vmem:[#allocation84_spill] sm:$0xff] %v11677_v43  ;;  %15775 = vst [vmem:[#allocation164_spill] sm:$0xff] %v11683_v29  ;;  %v11707_v10 = vmul.f32 %v11651_v52, %v10817_v58  ;;  %v3337_v55 = vadd.f32 %v3319_v19, %v3138_v37  ;;  %v3455_v7 = vadd.f32 %v3437_v14, %v3256_v16  ;;  %v7631_v1 = vld [vmem:[%s15018_s28 + $0x25] ss:$8 sm:$0x3]  ;;  %v15781_v48 = vrot.slane %v11509_v3, 3 }
 0x208   :  { %15776 = vst [vmem:[#allocation96_spill] sm:$0xff] %v11689_v34  ;;  %v3679_v40 = vmul.f32 %v7630_v23, %v11683_v29  ;;  %v11715_v26 = vmul.f32 %v11478_v42, %v11683_v29  ;;  %v3798_v54 = vmul.f32 %v7630_v23, %v11689_v34  ;;  %v11722_v37 = vrot.slane %v7631_v1, %v9961_v61  ;;  %v7632_v8 = vld [vmem:[%s15018_s28 + $0x55] ss:$8 sm:$0x3] }
 0x209   :  { %15777 = vst [vmem:[#allocation103_spill] sm:$0xff] %v11707_v10  ;;  %v3536_v16 = vadd.f32 %v3518_v38, %v3337_v55  ;;  %v3654_v19 = vadd.f32 %v3636_v46, %v3455_v7  ;;  %v11728_v17 = vrot.slane %v7632_v8, %v9961_v61  ;;  %v11732_v6 = vmul.f32 %v15713_v4, %v11223_v36  ;;  %v11744_v7 = vpop.permute.xlu1 %349 }
 0x20a   :  { %15778 = vst [vmem:[#allocation72_spill] sm:$0xff] %v11715_v26  ;;  %15779 = vst [vmem:[#allocation127_spill] sm:$0xff] %v11722_v37  ;;  %v3698_v14 = vrot.slane %v3679_v40, 4  ;;  %v15782_v1 = vrot.slane %v11505_v59, 3  ;;  %v14891_v46 = vrot.slane %v11715_v26, 4  ;;  %v11742_v55 = vmul.f32 %v11478_v42, %v11689_v34  ;;  %v4061_v3 = vpop.permute.xlu0 %4060 }
 0x20b   :  { %15780 = vst [vmem:[#allocation165_spill] sm:$0xff] %v11728_v17  ;;  %v3557_v40 = vmul.f32 %v11677_v43, %v11564_v56  ;;  %v3816_v4 = vrot.slane %v3798_v54, 4  ;;  %v7633_v59 = vld [vmem:[%s15018_s28 + $0x87] ss:$8 sm:$0x3]  ;;  %v11761_v27 = vmul.f32 %v11722_v37, %v10680_v57  ;;  %v15786_v56 = vld [vmem:[#allocation171_spill] sm:$0xff]  ;;  %v11767_v36 = vmul.f32 %v11677_v43, %v10936_v35 }
 0x20c   :  { %v3179_v38 = vsel %vm2712_vm6, %v15782_v1, %v15781_v48  ;;  %15783 = vst [vmem:[#allocation169_spill] sm:$0xff] %v11742_v55  ;;  %v11753_v48 = vrot.slane %v7633_v59, %v9961_v61  ;;  %v3700_v8 = vsel %vm3694_vm7, %v3698_v14, %v14891_v46  ;;  %v14899_v1 = vrot.slane %v11742_v55, 4  ;;  %v15794_v43 = vld [vmem:[#allocation104_spill] sm:$0xff] }
 0x20d   :  { %15785 = vst [vmem:[#allocation166_spill] sm:$0xff] %v11761_v27  ;;  %v3867_v54 = vsel %vm224_vm8, %v15786_v56, %v3862_v39  ;;  %15787 = vst [vmem:[#allocation37_spill] sm:$0xff] %v11767_v36  ;;  %v3197_v47 = vadd.f32 %v3179_v38, %v2998_v32  ;;  %v15788_v59 = vrot.slane %v11707_v10, 3  ;;  %v3739_v14 = vmul.f32 %v7630_v23, %v11728_v17  ;;  %v15793_v10 = vld [vmem:[#allocation145_spill] sm:$0xff]  ;;  %v11795_v52 = vpop.permute.xlu1 %218 }
 0x20e   :  { %15784 = vst [vmem:[#allocation12_spill] sm:$0xff] %v11753_v48  ;;  %v11775_v46 = vmul.f32 %v11478_v42, %v11728_v17  ;;  %v3818_v20 = vsel %vm3694_vm7, %v3816_v4, %v14899_v1  ;;  %v11782_v39 = vmul.f32 %v11753_v48, %v10680_v57  ;;  %v3883_v32 = vmul.f32 %v11722_v37, %v3867_v54  ;;  %v15796_v1 = vld [vmem:[#allocation16_spill] sm:$0xff]  ;;  %v15797_v17 = vld [vmem:[#allocation15_spill] sm:$0xff] }
 0x20f   :  { %v3378_v26 = vsel %vm2712_vm6, %v3376_v45, %v15788_v59  ;;  %v3718_v38 = vadd.f32 %v3700_v8, %v3536_v16  ;;  %v4001_v56 = vmul.f32 %v11753_v48, %v3867_v54  ;;  %v15791_v45 = vld [vmem:[#allocation14_spill] sm:$0xff]  ;;  %v15792_v59 = vld [vmem:[#allocation116_spill] sm:$0xff]  ;;  %v11790_v42 = vmul.f32 %v15794_v43, %v15793_v10 }
 0x210   :  { %15789 = vst [vmem:[#allocation171_spill] sm:$0xff] %v11775_v46  ;;  %15790 = vst [vmem:[#allocation175_spill] sm:$0xff] %v11782_v39  ;;  %v4436_v23 = vadd.f32 %v15792_v59, %v15791_v45  ;;  %v3836_v34 = vadd.f32 %v3818_v20, %v3654_v19  ;;  %v14912_v55 = vrot.slane %v11761_v27, 4  ;;  %v3901_v4 = vrot.slane %v3883_v32, 4  ;;  %v15798_v45 = vld [vmem:[#allocation100_spill] sm:$0xff] }
 0x211   :  { %15795 = vst [vmem:[#allocation14_spill] sm:$0xff] %v11790_v42  ;;  %v4318_v29 = vadd.f32 %v15797_v17, %v15796_v1  ;;  %v4019_v8 = vrot.slane %v4001_v56, 4  ;;  %v11801_v59 = vmul.f32 %v15798_v45, %v15793_v10  ;;  %v15799_v20 = vrot.slane %v11329_v60, 4  ;;  %v7634_v48 = vld [vmem:[%s15018_s28 + $0x56] ss:$8 sm:$0x3] }
 0x212   :  { %v15800_v19 = vrot.slane %v11289_v11, 4  ;;  %v4306_v17 = vrot.slane %v11732_v6, 4  ;;  %v3575_v1 = vrot.slane %v3557_v40, 3  ;;  %v3903_v56 = vsel %vm3694_vm7, %v3901_v4, %v14912_v55  ;;  %v15805_v40 = vld [vmem:[#allocation23_spill] sm:$0xff] }
 0x213   :  { %v11818_v10 = vrot.slane %v7634_v48, %v9961_v61  ;;  %v11820_v16 = vadd.f32 %v3903_v56, %v3718_v38  ;;  %v15803_v37 = vrot.slane %v11782_v39, 4  ;;  %v15804_v6 = vrot.slane %v11790_v42, 4 }
 0x214   :  { %v11808_v32 = vsel %vm3694_vm7, %v15800_v19, %v15799_v20  ;;  %v15806_v19 = vrot.slane %v15805_v40, 4  ;;  %v3396_v4 = vadd.f32 %v3378_v26, %v3197_v47  ;;  %v4496_v48 = vrot.slane %v11801_v59, 4 }
 0x215   :  { %15801 = vst [vmem:[#allocation116_spill] sm:$0xff] %v11818_v10  ;;  %15802 = vst [vmem:[#allocation145_spill] sm:$0xff] %v11820_v16  ;;  %v4021_v20 = vsel %vm3694_vm7, %v4019_v8, %v15803_v37  ;;  %v14916_v38 = vrot.slane %v11767_v36, 3  ;;  %v3757_v56 = vrot.slane %v3739_v14, 4  ;;  %v14917_v39 = vrot.slane %v11775_v46, 4  ;;  %v15809_v16 = vld [vmem:[#allocation102_spill] sm:$0xff] }
 0x216   :  { %v4615_v27 = vsel %vm3694_vm7, %v15806_v19, %v15804_v6  ;;  %v11830_v55 = vadd.f32 %v4021_v20, %v3836_v34  ;;  %v3537_v37 = vadd.f32 %v10909_v63, %v15809_v16  ;;  %v15810_v8 = vrot.slane %v11329_v60, 4  ;;  %v15814_v14 = vld [vmem:[#allocation95_spill] sm:$0xff]  ;;  %v11858_v60 = vpop.permute.xlu0 %4259 }
 0x217   :  { %v11832_v9 = vadd.f32 %v4615_v27, %v4436_v23  ;;  %v15811_v47 = vrot.slane %v11213_v22, 4  ;;  %v15812_v26 = vrot.slane %v11293_v12, 4  ;;  %v11851_v34 = vmul.f32 %v15798_v45, %v11402_v50 }
 0x218   :  { %15807 = vst [vmem:[#allocation104_spill] sm:$0xff] %v11830_v55  ;;  %v4125_v40 = vadd.f32 %v15810_v8, %v11264_v53  ;;  %v15815_v63 = vrot.slane %v15814_v14, 4  ;;  %v11860_v53 = vpop.permute.xlu1 %4458  ;;  %v11864_v22 = vmul.f32 %v15794_v43, %v11402_v50  ;;  %v3577_v16 = vsel %vm2712_vm6, %v3575_v1, %v14916_v38 }
 0x219   :  { %15808 = vst [vmem:[#allocation16_spill] sm:$0xff] %v11832_v9  ;;  %v11847_v27 = vsel %vm3694_vm7, %v15812_v26, %v15811_v47  ;;  %4715 = vrot.lane.b32.xlu1 %v11832_v9, %s7689_s23  ;;  %v3942_v59 = vmul.f32 %v11818_v10, %v3867_v54  ;;  %v15818_v6 = vrot.slane %v11300_v0, 4  ;;  %v3595_v8 = vadd.f32 %v3577_v16, %v3396_v4  ;;  %v15821_v26 = vld [vmem:[#allocation88_spill] sm:$0xff] }
 0x21a   :  { %15813 = vst [vmem:[#allocation15_spill] sm:$0xff] %v11847_v27  ;;  %v4497_v23 = vsel %vm3694_vm7, %v15815_v63, %v4496_v48  ;;  %15816 = vst [vmem:[#allocation100_spill] sm:$0xff] %v11864_v22  ;;  %v11877_v47 = vmul.f32 %v11818_v10, %v10680_v57  ;;  %v15820_v50 = vrot.slane %v10996_v25, 4  ;;  %v15822_v14 = vrot.slane %v15821_v26, 4  ;;  %v15856_v10 = vld [vmem:[#allocation93_spill] sm:$0xff] }
 0x21b   :  { %v11870_v20 = vadd.f32 %v4497_v23, %v4318_v29  ;;  %v4307_v19 = vsel %vm3694_vm7, %v15818_v6, %v4306_v17  ;;  %v3759_v29 = vsel %vm3694_vm7, %v3757_v56, %v14917_v39  ;;  %v7635_v54 = vld [vmem:[%s15018_s28 + $0x26] ss:$8 sm:$0x3]  ;;  %v7636_v25 = vld [vmem:[%s15018_s28 + $0x57] ss:$8 sm:$0x3]  ;;  %v11901_v16 = vadd.f32 %v4306_v17, %v4125_v40 }
 0x21c   :  { %15819 = vst [vmem:[#allocation102_spill] sm:$0xff] %v11877_v47  ;;  %v3702_v63 = vsel %vm3694_vm7, %v15822_v14, %v15820_v50  ;;  %v11893_v1 = vrot.slane %v7635_v54, %v9961_v61  ;;  %v11899_v4 = vrot.slane %v7636_v25, %v9961_v61  ;;  %v15825_v56 = vrot.slane %v11248_v21, 4  ;;  %v15829_v14 = vld [vmem:[#allocation134_spill] sm:$0xff]  ;;  %v15831_v39 = vld [vmem:[#allocation119_spill] sm:$0xff]  ;;  %v15859_v27 = vld [vmem:[#allocation29_spill] sm:$0xff] }
 0x21d   :  { %15817 = vst [vmem:[#allocation23_spill] sm:$0xff] %v11870_v20  ;;  %4647 = vrot.lane.b32.xlu0 %v11870_v20, %s7689_s23  ;;  %v3719_v23 = vadd.f32 %v3702_v63, %v3537_v37  ;;  %v15826_v6 = vrot.slane %v11393_v51, 4  ;;  %v15828_v26 = vrot.slane %v11034_v24, 4  ;;  %v15830_v54 = vrot.slane %v15829_v14, 4  ;;  %v15832_v20 = vld [vmem:[#allocation101_spill] sm:$0xff] }
 0x21e   :  { %15823 = vst [vmem:[#allocation95_spill] sm:$0xff] %v11893_v1  ;;  %15824 = vst [vmem:[#allocation88_spill] sm:$0xff] %v11899_v4  ;;  %v4483_v25 = vmul.f32 %v15798_v45, %v15831_v39  ;;  %v3960_v40 = vrot.slane %v3942_v59, 4  ;;  %v3777_v63 = vadd.f32 %v3759_v29, %v3595_v8  ;;  %v15834_v24 = vld [vmem:[#allocation121_spill] sm:$0xff]  ;;  %v11928_v45 = vpop.permute.xlu1 %615  ;;  %v14920_v37 = vrot.slane %v11877_v47, 4  ;;  %v15838_v59 = vld [vmem:[#allocation172_spill] sm:$0xff] }
 0x21f   :  { %v11908_v50 = vsel %vm3694_vm7, %v15826_v6, %v15825_v56  ;;  %v3905_v38 = vsel %vm3694_vm7, %v15830_v54, %v15828_v26  ;;  %v4066_v56 = vsel %vm357_vm9, %v15832_v20, %v4061_v3  ;;  %v15833_v6 = vrot.slane %v11289_v11, 4  ;;  %v11926_v54 = vpop.permute.xlu0 %482  ;;  %v15839_v20 = vld [vmem:[#allocation99_spill] sm:$0xff]  ;;  %v15871_v51 = vld [vmem:[#allocation33_spill] sm:$0xff] }
 0x220   :  { %15827 = vst [vmem:[#allocation176_spill] sm:$0xff] %v11908_v50  ;;  %v3922_v21 = vadd.f32 %v3905_v38, %v3719_v23  ;;  %v15835_v9 = vrot.slane %v15834_v24, 4  ;;  %v4501_v26 = vrot.slane %v4483_v25, 4  ;;  %v11933_v38 = vmul.f32 %v11893_v1, %v10739_v31  ;;  %v7637_v29 = vld [vmem:[%s15018_s28 + $0x90] ss:$8 sm:$0x3] }
 0x221   :  { %v11937_v3 = vmul.f32 %v11899_v4, %v10739_v31  ;;  %v11947_v8 = vsel %vm357_vm9, %v15839_v20, %v11744_v7  ;;  %v11953_v23 = vrot.slane %v7637_v29, %v9961_v61  ;;  %v15841_v25 = vrot.slane %v11300_v0, 4 }
 0x222   :  { %v4104_v14 = vsel %vm3694_vm7, %v15835_v9, %v15833_v6  ;;  %15836 = vst [vmem:[#allocation134_spill] sm:$0xff] %v11933_v38  ;;  %v11942_v9 = vsel %vm224_vm8, %v15838_v59, %v11671_v15  ;;  %v3962_v15 = vsel %vm3694_vm7, %v3960_v40, %v14920_v37  ;;  %v4082_v7 = vmul.f32 %v11893_v1, %v4066_v56  ;;  %v15844_v59 = vld [vmem:[#allocation133_spill] sm:$0xff]  ;;  %v485_v37 = vpop.permute.xlu1 %484 }
 0x223   :  { %15837 = vst [vmem:[#allocation119_spill] sm:$0xff] %v11937_v3  ;;  %v4121_v11 = vadd.f32 %v4104_v14, %v3922_v21  ;;  %15840 = vst [vmem:[#allocation101_spill] sm:$0xff] %v11953_v23  ;;  %v15842_v21 = vld [vmem:[#allocation105_spill] sm:$0xff]  ;;  %v228_v20 = vsel %vm224_vm8, %v15844_v59, %v11795_v52  ;;  %v11967_v17 = vadd.f32 %v3962_v15, %v3777_v63  ;;  %v7638_v63 = vld [vmem:[%s15015_s1 + $0x38] sm:$0xf]  ;;  %v15849_v59 = vrot.slane %v11851_v34, 4 }
 0x224   :  { %v15843_v6 = vrot.slane %v15842_v21, 4  ;;  %v4141_v29 = vmul.f32 %v11899_v4, %v4066_v56  ;;  %v4200_v0 = vmul.f32 %v11953_v23, %v4066_v56  ;;  %v4502_v21 = vsel %vm3694_vm7, %v4496_v48, %v4501_v26  ;;  %v15847_v56 = vld [vmem:[#allocation114_spill] sm:$0xff]  ;;  %v15848_v48 = vld [vmem:[#allocation32_spill] sm:$0xff] }
 0x225   :  { %v11980_v52 = vmul.f32 %v11953_v23, %v10739_v31  ;;  %v249_v15 = vmul.f32 %v15848_v48, %v228_v20  ;;  %v15852_v23 = vld [vmem:[#allocation31_spill] sm:$0xff]  ;;  %v7639_v1 = vld [vmem:[%s15018_s28 + $0x27] ss:$8 sm:$0x3] }
 0x226   :  { %v4303_v24 = vsel %vm3694_vm7, %v15843_v6, %v15841_v25  ;;  %v4100_v6 = vrot.slane %v4082_v7, 4  ;;  %v15851_v25 = vld [vmem:[#allocation125_spill] sm:$0xff]  ;;  %v4159_v36 = vrot.slane %v4141_v29, 4  ;;  %v4218_v46 = vrot.slane %v4200_v0, 4  ;;  %v15854_v7 = vld [vmem:[#allocation10_spill] sm:$0xff]  ;;  %v15857_v29 = vld [vmem:[#allocation112_spill] sm:$0xff] }
 0x227   :  { %v4320_v14 = vadd.f32 %v4303_v24, %v4121_v11  ;;  %v4123_v11 = vadd.f32 %v11808_v32, %v11406_v33  ;;  %15846 = vst [vmem:[#allocation172_spill] sm:$0xff] %v11980_v52  ;;  %v108_v24 = vmul.f32 %v7638_v63, %v15847_v56  ;;  %v15850_v33 = vld [vmem:[#allocation115_spill] sm:$0xff]  ;;  %v307_v55 = vmul.f32 %v15851_v25, %v228_v20 }
 0x228   :  { %v166_v32 = vmul.f32 %v7638_v63, %v15850_v33  ;;  %v137_v4 = vmul.f32 %v7638_v63, %v15852_v23  ;;  %v494_v0 = vsel %vm490_vm11, %v15857_v29, %v485_v37  ;;  %v15858_v63 = vld [vmem:[#allocation123_spill] sm:$0xff]  ;;  %v15861_v37 = vld [vmem:[#allocation106_spill] sm:$0xff] }
 0x229   :  { %v11974_v40 = vadd.f32 %v4502_v21, %v4320_v14  ;;  %v4506_v14 = vsel %vm3694_vm7, %v4501_v26, %v15849_v59  ;;  %v352_v21 = vpop.permute.xlu0 %351  ;;  %v4322_v47 = vadd.f32 %v4307_v19, %v4123_v11  ;;  %v11999_v26 = vrot.slane %v7639_v1, %v9961_v61  ;;  %v7640_v1 = vld [vmem:[%s15018_s28 + $0x60] ss:$8 sm:$0x3] }
 0x22a   :  { %v4265_v59 = vsel %vm490_vm11, %v15854_v7, %v11858_v60  ;;  %v361_v19 = vsel %vm357_vm9, %v15856_v10, %v352_v21  ;;  %v257_v11 = vadd.f32 %v249_v15, %v108_v24  ;;  %v278_v50 = vmul.f32 %v15858_v63, %v228_v20  ;;  %v7641_v10 = vld [vmem:[%s15018_s28 + $0x91] ss:$8 sm:$0x3] }
 0x22b   :  { %15845 = vst [vmem:[#allocation121_spill] sm:$0xff] %v11974_v40  ;;  %4649 = vrot.lane.b32.xlu1 %v11974_v40, %s7689_s23  ;;  %15853 = vst [vmem:[#allocation99_spill] sm:$0xff] %v11999_v26  ;;  %v12004_v40 = vadd.f32 %v4506_v14, %v4322_v47  ;;  %v12015_v22 = vrot.slane %v7640_v1, %v9961_v61  ;;  %v382_v60 = vmul.f32 %v15859_v27, %v361_v19  ;;  %v15862_v24 = vld [vmem:[#allocation138_spill] sm:$0xff] }
 0x22c   :  { %v315_v47 = vadd.f32 %v307_v55, %v166_v32  ;;  %v12022_v14 = vrot.slane %v7641_v10, %v9961_v61  ;;  %v440_v20 = vmul.f32 %v15861_v37, %v361_v19  ;;  %v515_v15 = vmul.f32 %v15862_v24, %v494_v0  ;;  %v15864_v32 = vld [vmem:[#allocation48_spill] sm:$0xff] }
 0x22d   :  { %15855 = vst [vmem:[#allocation105_spill] sm:$0xff] %v12004_v40  ;;  %v12029_v21 = vmul.f32 %v11999_v26, %v4265_v59  ;;  %v12032_v7 = vmul.f32 %v12015_v22, %v4265_v59  ;;  %v390_v55 = vadd.f32 %v382_v60, %v257_v11  ;;  %v573_v29 = vmul.f32 %v15864_v32, %v494_v0  ;;  %v15870_v11 = vld [vmem:[#allocation18_spill] sm:$0xff] }
 0x22e   :  { %15860 = vst [vmem:[#allocation133_spill] sm:$0xff] %v12022_v14  ;;  %v12037_v10 = vmul.f32 %v12022_v14, %v4265_v59  ;;  %v448_v62 = vadd.f32 %v440_v20, %v315_v47  ;;  %v15868_v26 = vrot.slane %v11933_v38, 4  ;;  %v4464_v60 = vsel %vm623_vm10, %v15870_v11, %v11860_v53  ;;  %v15891_v14 = vld [vmem:[#allocation109_spill] sm:$0xff] }
 0x22f   :  { %4651 = vrot.lane.b32.xlu1 %v12004_v40, %s7689_s23  ;;  %15863 = vst [vmem:[#allocation114_spill] sm:$0xff] %v12029_v21  ;;  %v15866_v40 = vrot.slane %v11851_v34, 4  ;;  %v411_v1 = vmul.f32 %v15871_v51, %v361_v19  ;;  %v12053_v12 = vadd.f32 %v515_v15, %v390_v55  ;;  %v15872_v59 = vrot.slane %v11937_v3, 4  ;;  %v7644_v55 = vld [vmem:[%s15018_s28 + $0x92] ss:$8 sm:$0x3] }
 0x230   :  { %15865 = vst [vmem:[#allocation32_spill] sm:$0xff] %v12037_v10  ;;  %v12047_v42 = vsel %vm3694_vm7, %v4100_v6, %v15868_v26  ;;  %v7642_v6 = vld [vmem:[%s15018_s28 + $0x30] ss:$8 sm:$0x3]  ;;  %v12073_v26 = vadd.f32 %v573_v29, %v448_v62  ;;  %v286_v19 = vadd.f32 %v278_v50, %v137_v4  ;;  %v12088_v62 = vrot.slane %v7644_v55, %v9961_v61  ;;  %v15878_v50 = vld [vmem:[#allocation20_spill] sm:$0xff] }
 0x231   :  { %v12042_v41 = vadd.f32 %v15866_v40, %v11901_v16  ;;  %15869 = vst [vmem:[#allocation125_spill] sm:$0xff] %v12047_v42  ;;  %v12058_v34 = vsel %vm3694_vm7, %v4159_v36, %v15872_v59  ;;  %v15873_v16 = vrot.slane %v11980_v52, 4  ;;  %v12069_v53 = vrot.slane %v7642_v6, %v9961_v61  ;;  %v15880_v15 = vld [vmem:[#allocation94_spill] sm:$0xff] }
 0x232   :  { %15876 = vst [vmem:[#allocation93_spill] sm:$0xff] %v12088_v62  ;;  %v12096_v29 = vsel %vm490_vm11, %v15878_v50, %v11926_v54  ;;  %v419_v59 = vadd.f32 %v411_v1, %v286_v19  ;;  %v245_v50 = vmul.f32 %v15848_v48, %v10680_v57  ;;  %v274_v1 = vmul.f32 %v15858_v63, %v10680_v57 }
 0x233   :  { %15867 = vst [vmem:[#allocation115_spill] sm:$0xff] %v12042_v41  ;;  %v12063_v40 = vsel %vm3694_vm7, %v4218_v46, %v15873_v16  ;;  %15875 = vst [vmem:[#allocation10_spill] sm:$0xff] %v12069_v53  ;;  %4653 = vrot.lane.b32.xlu1 %v12042_v41, %s7689_s23  ;;  %v7643_v46 = vld [vmem:[%s15018_s28 + $0x61] ss:$8 sm:$0x3]  ;;  %v12091_v4 = vmul.f32 %v12069_v53, %v4464_v60  ;;  %v15879_v16 = vld [vmem:[#allocation50_spill] sm:$0xff]  ;;  %v276_v19 = vmul.f32 %v15858_v63, %v11942_v9  ;;  %v618_v53 = vpop.permute.xlu1 %617 }
 0x234   :  { %15874 = vst [vmem:[#allocation31_spill] sm:$0xff] %v12063_v40  ;;  %v12081_v20 = vrot.slane %v7643_v46, %v9961_v61  ;;  %v544_v6 = vmul.f32 %v15879_v16, %v494_v0  ;;  %v12105_v46 = vld [vmem:[%s15015_s1 + $0x28] sm:$0xff]  ;;  %v247_v0 = vmul.f32 %v15848_v48, %v11942_v9  ;;  %v12127_v36 = vmul.f32 %v12088_v62, %v4464_v60  ;;  %v15882_v41 = vld [vmem:[#allocation107_spill] sm:$0xff]  ;;  %s14136_s28 = sld [smem:[#allocation4 + $0x4]] }
 0x235   :  { %15877 = vst [vmem:[#allocation112_spill] sm:$0xff] %v12091_v4  ;;  %v106_v61 = vmul.f32 %v12105_v46, %v15847_v56  ;;  %v135_v55 = vmul.f32 %v12105_v46, %v15852_v23  ;;  %v164_v54 = vmul.f32 %v12105_v46, %v15850_v33  ;;  %v303_v56 = vmul.f32 %v15851_v25, %v10680_v57 }
 0x236   :  { %v12099_v11 = vmul.f32 %v12081_v20, %v4464_v60  ;;  %v305_v23 = vmul.f32 %v15851_v25, %v11942_v9  ;;  %v12132_v48 = vsel %vm623_vm10, %v15880_v15, %v11928_v45  ;;  %v378_v47 = vmul.f32 %v15859_v27, %v10739_v31  ;;  %v15881_v60 = vld [vmem:[#allocation136_spill] sm:$0xff] }
 0x237   :  { %v12137_v52 = vadd.f32 %v544_v6, %v419_v59  ;;  %v380_v57 = vmul.f32 %v15859_v27, %v11947_v8  ;;  %v407_v25 = vmul.f32 %v15871_v51, %v10739_v31  ;;  %v253_v33 = vadd.f32 %v245_v50, %v15881_v60  ;;  %v15883_v59 = vld [vmem:[#allocation34_spill] sm:$0xff] }
 0x238   :  { %v255_v38 = vadd.f32 %v247_v0, %v106_v61  ;;  %v409_v45 = vmul.f32 %v15871_v51, %v11947_v8  ;;  %v436_v15 = vmul.f32 %v15861_v37, %v10739_v31  ;;  %v282_v4 = vadd.f32 %v274_v1, %v15882_v41 }
 0x239   :  { %v284_v63 = vadd.f32 %v276_v19, %v135_v55  ;;  %v311_v6 = vadd.f32 %v303_v56, %v15883_v59  ;;  %v313_v21 = vadd.f32 %v305_v23, %v164_v54  ;;  %v386_v10 = vadd.f32 %v378_v47, %v253_v33  ;;  %v15886_v56 = vld [vmem:[#allocation36_spill] sm:$0xff] }
 0x23a   :  { %v438_v27 = vmul.f32 %v15861_v37, %v11947_v8  ;;  %v511_v50 = vmul.f32 %v15862_v24, %v10817_v58  ;;  %v513_v61 = vmul.f32 %v15862_v24, %v12096_v29  ;;  %v388_v51 = vadd.f32 %v380_v57, %v255_v38  ;;  %v15884_v37 = vld [vmem:[#allocation137_spill] sm:$0xff]  ;;  %v15885_v38 = vld [vmem:[#allocation126_spill] sm:$0xff] }
 0x23b   :  { %v415_v0 = vadd.f32 %v407_v25, %v282_v4  ;;  %v540_v31 = vmul.f32 %v15879_v16, %v10817_v58  ;;  %v542_v41 = vmul.f32 %v15879_v16, %v12096_v29  ;;  %v417_v55 = vadd.f32 %v409_v45, %v284_v63  ;;  %v7646_v4 = vld [vmem:[%s15015_s1 + $0x38] sm:$0x1f] }
 0x23c   :  { %v444_v54 = vadd.f32 %v436_v15, %v311_v6  ;;  %v569_v47 = vmul.f32 %v15864_v32, %v10817_v58  ;;  %v737_v1 = vmul.f32 %v12105_v46, %v15884_v37  ;;  %v571_v19 = vmul.f32 %v15864_v32, %v12096_v29  ;;  %v15887_v15 = vld [vmem:[#allocation146_spill] sm:$0xff]  ;;  %v918_v6 = vpop.permute.xlu0 %917 }
 0x23d   :  { %v644_v24 = vmul.f32 %v15885_v38, %v10936_v35  ;;  %v739_v16 = vmul.f32 %v7646_v4, %v15884_v37  ;;  %v797_v23 = vmul.f32 %v12105_v46, %v15886_v56  ;;  %v446_v33 = vadd.f32 %v438_v27, %v313_v21  ;;  %v15888_v21 = vld [vmem:[#allocation49_spill] sm:$0xff] }
 0x23e   :  { %v519_v63 = vadd.f32 %v511_v50, %v386_v10  ;;  %v521_v57 = vadd.f32 %v513_v61, %v388_v51  ;;  %v12175_v25 = vmul.f32 %v7646_v4, %v15886_v56  ;;  %v548_v60 = vadd.f32 %v540_v31, %v415_v0  ;;  %v15890_v56 = vld [vmem:[#allocation24_spill] sm:$0xff] }
 0x23f   :  { %v550_v32 = vadd.f32 %v542_v41, %v417_v55  ;;  %v646_v45 = vmul.f32 %v15885_v38, %v12132_v48  ;;  %v673_v59 = vmul.f32 %v15887_v15, %v10936_v35  ;;  %v577_v37 = vadd.f32 %v569_v47, %v444_v54  ;;  %v15889_v41 = vld [vmem:[#allocation149_spill] sm:$0xff] }
 0x240   :  { %v675_v42 = vmul.f32 %v15887_v15, %v12132_v48  ;;  %v702_v10 = vmul.f32 %v15888_v21, %v10936_v35  ;;  %v757_v27 = vrot.slane %v737_v1, 1  ;;  %v579_v50 = vadd.f32 %v571_v19, %v446_v33  ;;  %v15894_v33 = vld [vmem:[#allocation38_spill] sm:$0xff] }
 0x241   :  { %v652_v61 = vadd.f32 %v644_v24, %v519_v63  ;;  %v761_v51 = vrot.slane %v739_v16, 1  ;;  %v816_v0 = vrot.slane %v797_v23, 1  ;;  %v820_v31 = vrot.slane %v12175_v25, 1  ;;  %v15892_v16 = vld [vmem:[#allocation51_spill] sm:$0xff]  ;;  %v15904_v25 = vld [vmem:[#allocation152_spill] sm:$0xff] }
 0x242   :  { %v858_v55 = vmul.f32 %v7646_v4, %v15889_v41  ;;  %v922_v62 = vsel %vm224_vm8, %v15890_v56, %v918_v6  ;;  %v627_v54 = vsel %vm623_vm10, %v15891_v14, %v618_v53  ;;  %v654_v47 = vadd.f32 %v646_v45, %v521_v57  ;;  %v15895_v53 = vld [vmem:[#allocation150_spill] sm:$0xff] }
 0x243   :  { %v681_v40 = vadd.f32 %v673_v59, %v548_v60  ;;  %v704_v3 = vmul.f32 %v15888_v21, %v12132_v48  ;;  %v856_v1 = vmul.f32 %v12105_v46, %v15889_v41  ;;  %v683_v19 = vadd.f32 %v675_v42, %v550_v32  ;;  %v15897_v6 = vld [vmem:[#allocation118_spill] sm:$0xff] }
 0x244   :  { %v12195_v24 = vadd.f32 %v702_v10, %v577_v37  ;;  %v15893_v23 = vrot.slane %v15892_v16, 1  ;;  %v12202_v63 = vmul.f32 %v15894_v33, %v11942_v9  ;;  %v762_v14 = vsel %vm748_vm0, %v757_v27, %v761_v51 }
 0x245   :  { %v15896_v57 = vrot.slane %v15895_v53, 1  ;;  %v943_v45 = vmul.f32 %v15894_v33, %v922_v62  ;;  %v648_v42 = vmul.f32 %v15885_v38, %v627_v54  ;;  %v821_v32 = vsel %vm748_vm0, %v816_v0, %v820_v31  ;;  %v1316_v53 = vpop.permute.xlu1 %1315 }
 0x246   :  { %v758_v4 = vsel %vm748_vm0, %v15893_v23, %v757_v27  ;;  %v879_v59 = vrot.slane %v858_v55, 1  ;;  %v1061_v37 = vmul.f32 %v15897_v6, %v922_v62  ;;  %v706_v10 = vmul.f32 %v15888_v21, %v627_v54 }
 0x247   :  { %v817_v60 = vsel %vm748_vm0, %v15896_v57, %v816_v0  ;;  %v712_v41 = vadd.f32 %v704_v3, %v579_v50  ;;  %v875_v56 = vrot.slane %v856_v1, 1  ;;  %v12217_v27 = vmul.f32 %v15897_v6, %v11942_v9  ;;  %v1117_v1 = vpop.permute.xlu0 %1116 }
 0x248   :  { %v656_v16 = vadd.f32 %v648_v42, %v12053_v12  ;;  %v12220_v23 = vadd.f32 %v758_v4, %v652_v61  ;;  %v776_v38 = vadd.f32 %v762_v14, %v654_v47  ;;  %v12224_v33 = vmul.f32 %v10588_v13, %v11942_v9 }
 0x249   :  { %v714_v0 = vadd.f32 %v706_v10, %v12073_v26  ;;  %v12227_v55 = vadd.f32 %v817_v60, %v681_v40  ;;  %v12229_v21 = vadd.f32 %v821_v32, %v683_v19  ;;  %v964_v3 = vrot.slane %v943_v45, 1  ;;  %v15898_v40 = vld [vmem:[#allocation25_spill] sm:$0xff] }
 0x24a   :  { %v778_v50 = vadd.f32 %v761_v51, %v656_v16  ;;  %v880_v57 = vsel %vm748_vm0, %v875_v56, %v879_v59  ;;  %v960_v12 = vrot.slane %v12202_v63, 1  ;;  %v1082_v61 = vrot.slane %v1061_v37, 1  ;;  %v15899_v60 = vld [vmem:[#allocation113_spill] sm:$0xff]  ;;  %v15900_v63 = vld [vmem:[#allocation28_spill] sm:$0xff] }
 0x24b   :  { %v896_v47 = vadd.f32 %v879_v59, %v714_v0  ;;  %v1078_v4 = vrot.slane %v12217_v27, 1  ;;  %v677_v14 = vmul.f32 %v15887_v15, %v627_v54  ;;  %v12237_v26 = vmul.f32 %v15898_v40, %v11947_v8  ;;  %v15901_v59 = vld [vmem:[#allocation35_spill] sm:$0xff] }
 0x24c   :  { %v981_v42 = vadd.f32 %v964_v3, %v778_v50  ;;  %v12241_v51 = vmul.f32 %v10721_v28, %v11947_v8  ;;  %v1121_v45 = vsel %vm357_vm9, %v15899_v60, %v1117_v1  ;;  %v1320_v32 = vsel %vm490_vm11, %v15900_v63, %v1316_v53 }
 0x24d   :  { %v1099_v19 = vadd.f32 %v1082_v61, %v896_v47  ;;  %v15902_v6 = vrot.slane %v15901_v59, 1  ;;  %v894_v54 = vadd.f32 %v880_v57, %v712_v41  ;;  %v965_v37 = vsel %vm748_vm0, %v960_v12, %v964_v3 }
 0x24e   :  { %v1142_v10 = vmul.f32 %v15898_v40, %v1121_v45  ;;  %v1083_v27 = vsel %vm748_vm0, %v1078_v4, %v1082_v61  ;;  %v1260_v16 = vmul.f32 %v10721_v28, %v1121_v45  ;;  %v12256_v0 = vmul.f32 %v10760_v49, %v12096_v29 }
 0x24f   :  { %v876_v15 = vsel %vm748_vm0, %v15902_v6, %v875_v56  ;;  %v1341_v50 = vmul.f32 %v10760_v49, %v1320_v32  ;;  %v1002_v1 = vmul.f32 %v10588_v13, %v922_v62  ;;  %v685_v53 = vadd.f32 %v677_v14, %v12137_v52 }
 0x250   :  { %v1159_v41 = vrot.slane %v12237_v26, 1  ;;  %v1163_v56 = vrot.slane %v1142_v10, 1  ;;  %v979_v3 = vadd.f32 %v965_v37, %v776_v38  ;;  %v1277_v57 = vrot.slane %v12241_v51, 1 }
 0x251   :  { %v1281_v47 = vrot.slane %v1260_v16, 1  ;;  %v1362_v61 = vrot.slane %v1341_v50, 1  ;;  %v1097_v40 = vadd.f32 %v1083_v27, %v894_v54  ;;  %v1358_v63 = vrot.slane %v12256_v0, 1  ;;  %v15906_v27 = vld [vmem:[#allocation139_spill] sm:$0xff]  ;;  %v15908_v50 = vld [vmem:[#allocation42_spill] sm:$0xff] }
 0x252   :  { %v1164_v28 = vsel %vm748_vm0, %v1159_v41, %v1163_v56  ;;  %v1180_v60 = vadd.f32 %v1163_v56, %v981_v42  ;;  %v1019_v49 = vrot.slane %v12224_v33, 1  ;;  %v1023_v62 = vrot.slane %v1002_v1, 1 }
 0x253   :  { %v1178_v59 = vadd.f32 %v1164_v28, %v979_v3  ;;  %v1282_v13 = vsel %vm748_vm0, %v1277_v57, %v1281_v47  ;;  %v1298_v52 = vadd.f32 %v1281_v47, %v1099_v19  ;;  %v1363_v38 = vsel %vm748_vm0, %v1358_v63, %v1362_v61 }
 0x254   :  { %v1296_v14 = vadd.f32 %v1282_v13, %v1097_v40  ;;  %v12268_v26 = vadd.f32 %v1362_v61, %v1180_v60  ;;  %v892_v51 = vadd.f32 %v876_v15, %v12195_v24  ;;  %v837_v6 = vadd.f32 %v820_v31, %v685_v53 }
 0x255   :  { %v1199_v42 = vmul.f32 %v10709_v5, %v11947_v8  ;;  %v12275_v54 = vadd.f32 %v1363_v38, %v1178_v59  ;;  %v15903_v33 = vrot.slane %v10896_v30, 1  ;;  %v1457_v37 = vmul.f32 %v10780_v2, %v12096_v29 }
 0x256   :  { %v1459_v10 = vmul.f32 %v10780_v2, %v1320_v32  ;;  %v12285_v24 = vmul.f32 %v12015_v22, %v10817_v58  ;;  %v15905_v31 = vrot.slane %v15904_v25, 1  ;;  %v15907_v16 = vrot.slane %v15906_v27, 1 }
 0x257   :  { %v961_v19 = vsel %vm748_vm0, %v15903_v33, %v960_v12  ;;  %v1201_v30 = vmul.f32 %v10709_v5, %v1121_v45  ;;  %v12296_v12 = vmul.f32 %v12081_v20, %v10936_v35  ;;  %v1024_v2 = vsel %vm748_vm0, %v1019_v49, %v1023_v62  ;;  %v4682_v5 = vpop.permute.xlu0 %4681 }
 0x258   :  { %v1020_v15 = vsel %vm748_vm0, %v15905_v31, %v1019_v49  ;;  %v1079_v0 = vsel %vm748_vm0, %v15907_v16, %v1078_v4  ;;  %v1398_v1 = vmul.f32 %v15908_v50, %v12096_v29  ;;  %v1476_v53 = vrot.slane %v1457_v37, 1  ;;  %v15914_v31 = vld [vmem:[#allocation53_spill] sm:$0xff] }
 0x259   :  { %v1480_v56 = vrot.slane %v1459_v10, 1  ;;  %v1040_v3 = vadd.f32 %v1023_v62, %v837_v6  ;;  %v1218_v47 = vrot.slane %v1199_v42, 1  ;;  %v14958_v61 = vrot.slane %v12285_v24, 4  ;;  %v15912_v10 = vld [vmem:[#allocation44_spill] sm:$0xff] }
 0x25a   :  { %v14957_v4 = vrot.slane %v12296_v12, 4  ;;  %v1400_v45 = vmul.f32 %v15908_v50, %v1320_v32  ;;  %v4179_v60 = vadd.f32 %v12058_v34, %v11967_v17  ;;  %v1222_v49 = vrot.slane %v1201_v30, 1  ;;  %v15911_v34 = vld [vmem:[#allocation27_spill] sm:$0xff] }
 0x25b   :  { %v1481_v40 = vsel %vm748_vm0, %v1476_v53, %v1480_v56  ;;  %v12307_v28 = vadd.f32 %v1480_v56, %v1298_v52  ;;  %v15909_v13 = vrot.slane %v12032_v7, 4  ;;  %v15910_v32 = vrot.slane %v12099_v11, 4 }
 0x25c   :  { %v12311_v59 = vadd.f32 %v1481_v40, %v1296_v14  ;;  %v1417_v6 = vrot.slane %v1398_v1, 1  ;;  %v4693_v14 = vadd.f32 %v4682_v5, %v15911_v34  ;;  %v977_v42 = vadd.f32 %v961_v19, %v12220_v23  ;;  %v15916_v1 = vld [vmem:[#allocation129_spill] sm:$0xff] }
 0x25d   :  { %v4360_v62 = vsel %vm3694_vm7, %v15909_v13, %v14958_v61  ;;  %v4559_v38 = vsel %vm3694_vm7, %v15910_v32, %v14957_v4  ;;  %v1036_v33 = vadd.f32 %v1020_v15, %v12227_v55  ;;  %v1095_v7 = vadd.f32 %v1079_v0, %v892_v51  ;;  %v1900_v13 = vpop.permute.xlu1 %1899 }
 0x25e   :  { %v4378_v17 = vadd.f32 %v4360_v62, %v4179_v60  ;;  %v1038_v37 = vadd.f32 %v1024_v2, %v12229_v21  ;;  %v15913_v25 = vrot.slane %v15912_v10, 1  ;;  %v15915_v27 = vrot.slane %v15914_v31, 1  ;;  %v15919_v21 = vld [vmem:[#allocation46_spill] sm:$0xff] }
 0x25f   :  { %v1421_v30 = vrot.slane %v1400_v45, 1  ;;  %v15917_v56 = vrot.slane %v15916_v1, 1  ;;  %v1223_v23 = vsel %vm748_vm0, %v1218_v47, %v1222_v49  ;;  %v1239_v55 = vadd.f32 %v1222_v49, %v1040_v3  ;;  %v15923_v45 = vld [vmem:[#allocation89_spill] sm:$0xff]  ;;  %v15924_v3 = vld [vmem:[#allocation63_spill] sm:$0xff] }
 0x260   :  { %v1160_v11 = vsel %vm748_vm0, %v15913_v25, %v1159_v41  ;;  %v1219_v16 = vsel %vm748_vm0, %v15915_v27, %v1218_v47  ;;  %v4577_v50 = vadd.f32 %v4559_v38, %v4378_v17  ;;  %v12339_v51 = vstv %s12298_s0  ;;  %v15921_v41 = vld [vmem:[#allocation161_spill] sm:$0xff]  ;;  %v15925_v49 = vld [vmem:[#allocation163_spill] sm:$0xff]  ;;  %v15926_v25 = vld [vmem:[#allocation140_spill] sm:$0xff]  ;;  %s7692_s0 = smov 83  }
 0x261   :  { %v1278_v5 = vsel %vm748_vm0, %v15917_v56, %v1277_v57  ;;  %15918 = vst [vmem:[#allocation123_spill] sm:$0xff] %v12339_v51  ;;  %v15920_v19 = vrot.slane %v15919_v21, 1  ;;  %v15922_v0 = vrot.slane %v15921_v41, 1  ;;  %v12349_v60 = vmul.f32 %v15923_v45, %v11942_v9 }
 0x262   :  { %v4697_v40 = vadd.f32 %v4693_v14, %v4577_v50  ;;  %v1176_v57 = vadd.f32 %v1160_v11, %v977_v42  ;;  %v1235_v62 = vadd.f32 %v1219_v16, %v1036_v33  ;;  %v12353_v47 = vmul.f32 %v15924_v3, %v11942_v9  ;;  %v15928_v11 = vld [vmem:[#allocation122_spill] sm:$0xff]  ;;  %v1515_v50 = vpop.permute.xlu0 %1514 }
 0x263   :  { %v1359_v15 = vsel %vm748_vm0, %v15920_v19, %v1358_v63  ;;  %v1418_v2 = vsel %vm748_vm0, %v15922_v0, %v1417_v6  ;;  %v12357_v32 = vmul.f32 %v15925_v49, %v11942_v9  ;;  %v1294_v63 = vadd.f32 %v1278_v5, %v1095_v7  ;;  %v15932_v0 = vld [vmem:[#allocation81_spill] sm:$0xff] }
 0x264   :  { %v1237_v38 = vadd.f32 %v1223_v23, %v1038_v37  ;;  %v1422_v17 = vsel %vm748_vm0, %v1417_v6, %v1421_v30  ;;  %v4703_v34 = vadd.f32 %v12339_v51, %v4697_v40  ;;  %v1375_v14 = vadd.f32 %v1359_v15, %v1176_v57  ;;  %v15929_v37 = vld [vmem:[#allocation173_spill] sm:$0xff]  ;;  %v15930_v23 = vld [vmem:[#allocation52_spill] sm:$0xff]  ;;  %v15931_v15 = vld [vmem:[#allocation154_spill] sm:$0xff] }
 0x265   :  { %v12361_v10 = vadd.f32 %v1418_v2, %v1235_v62  ;;  %v15927_v42 = vrot.slane %v15926_v25, 1  ;;  %v1904_v31 = vsel %vm224_vm8, %v15928_v11, %v1900_v13  ;;  %v12368_v27 = vadd.f32 %v1421_v30, %v1239_v55  ;;  %v15933_v40 = vld [vmem:[#allocation80_spill] sm:$0xff]  ;;  %v15934_v57 = vld [vmem:[#allocation117_spill] sm:$0xff] }
 0x266   :  { %v4707_v16 = vmax.f32 %v4703_v34, 0.0  ;;  %v1942_v7 = vrot.slane %v12349_v60, 2  ;;  %v1538_v6 = vmul.f32 %v15929_v37, %v12132_v48  ;;  %v12373_v1 = vadd.f32 %v1422_v17, %v1237_v38  ;;  %v15937_v34 = vld [vmem:[#allocation70_spill] sm:$0xff]  ;;  %v15946_v51 = vld [vmem:[#allocation57_spill] sm:$0xff] }
 0x267   :  { %v1477_v33 = vsel %vm748_vm0, %v15927_v42, %v1476_v53  ;;  %v14959_v56 = vrot.slane %v12353_v47, 2  ;;  %v2060_v5 = vrot.slane %v12357_v32, 2  ;;  %v7647_v53 = vld [vmem:[%s15015_s1 + $0x38] sm:$0x3f]  ;;  %v1925_v21 = vmul.f32 %v15923_v45, %v1904_v31  ;;  %v15935_v45 = vld [vmem:[#allocation58_spill] sm:$0xff] }
 0x268   :  { %v1721_v30 = vmul.f32 %v7647_v53, %v15930_v23  ;;  %v1493_v55 = vadd.f32 %v1477_v33, %v1294_v63  ;;  %v12383_v19 = vmul.f32 %v15925_v49, %v1904_v31  ;;  %v1840_v41 = vmul.f32 %v7647_v53, %v15931_v15  ;;  %4749 = vrot.lane.b32.xlu0 %v4707_v16, %s7689_s23  ;;  %v15939_v33 = vld [vmem:[#allocation64_spill] sm:$0xff] }
 0x269   :  { %v1597_v2 = vmul.f32 %v15932_v0, %v12132_v48  ;;  %v1656_v60 = vmul.f32 %v15933_v40, %v12132_v48  ;;  %v1719_v13 = vmul.f32 %v12105_v46, %v15930_v23  ;;  %v1519_v62 = vsel %vm623_vm10, %v15934_v57, %v1515_v50 }
 0x26a   :  { %v15936_v32 = vrot.slane %v15935_v45, 2  ;;  %v12401_v63 = vmul.f32 %v15924_v3, %v1904_v31  ;;  %v1557_v38 = vrot.slane %v1538_v6, 1  ;;  %v1838_v17 = vmul.f32 %v12105_v46, %v15931_v15 }
 0x26b   :  { %v15938_v25 = vrot.slane %v15937_v34, 2  ;;  %v15940_v11 = vrot.slane %v15939_v33, 2  ;;  %v1743_v50 = vrot.slane %v1721_v30, 2  ;;  %v1540_v3 = vmul.f32 %v15929_v37, %v1519_v62  ;;  %v15942_v30 = vld [vmem:[#allocation141_spill] sm:$0xff] }
 0x26c   :  { %v12398_v49 = vsel %vm1730_vm3, %v15936_v32, %v1942_v7  ;;  %v1946_v31 = vrot.slane %v1925_v21, 2  ;;  %v2064_v6 = vrot.slane %v12383_v19, 2  ;;  %v1861_v23 = vrot.slane %v1840_v41, 2 }
 0x26d   :  { %v12410_v42 = vsel %vm1730_vm3, %v15938_v25, %v14959_v56  ;;  %v12415_v16 = vsel %vm1730_vm3, %v15940_v11, %v2060_v5  ;;  %v1658_v15 = vmul.f32 %v15933_v40, %v1519_v62  ;;  %v1616_v57 = vrot.slane %v1597_v2, 1  ;;  %v15941_v25 = vld [vmem:[#allocation162_spill] sm:$0xff] }
 0x26e   :  { %v1675_v45 = vrot.slane %v1656_v60, 1  ;;  %v1739_v32 = vrot.slane %v1719_v13, 2  ;;  %v1561_v34 = vrot.slane %v1540_v3, 1  ;;  %v1779_v52 = vmul.f32 %v12105_v46, %v15941_v25 }
 0x26f   :  { %v1857_v33 = vrot.slane %v1838_v17, 2  ;;  %v1599_v11 = vmul.f32 %v15932_v0, %v1519_v62  ;;  %v1679_v4 = vrot.slane %v1658_v15, 1  ;;  %v15943_v61 = vrot.slane %v15942_v30, 1  ;;  %v15944_v0 = vld [vmem:[#allocation55_spill] sm:$0xff] }
 0x270   :  { %v1744_v21 = vsel %vm1730_vm3, %v1739_v32, %v1743_v50  ;;  %v1562_v19 = vsel %vm748_vm0, %v1557_v38, %v1561_v34  ;;  %v1578_v41 = vadd.f32 %v1561_v34, %v12268_v26  ;;  %v15945_v62 = vrot.slane %v15944_v0, 1 }
 0x271   :  { %v1558_v37 = vsel %vm748_vm0, %v15943_v61, %v1557_v38  ;;  %v1862_v2 = vsel %vm1730_vm3, %v1857_v33, %v1861_v23  ;;  %v1576_v40 = vadd.f32 %v1562_v19, %v12275_v54  ;;  %v1680_v60 = vsel %vm748_vm0, %v1675_v45, %v1679_v4  ;;  %v2298_v38 = vpop.permute.xlu1 %2297 }
 0x272   :  { %v1696_v13 = vadd.f32 %v1679_v4, %v12307_v28  ;;  %v1617_v17 = vsel %vm748_vm0, %v15945_v62, %v1616_v57  ;;  %v1781_v61 = vmul.f32 %v7647_v53, %v15941_v25  ;;  %v1694_v3 = vadd.f32 %v1680_v60, %v12311_v59  ;;  %v2099_v60 = vpop.permute.xlu0 %2098 }
 0x273   :  { %v1760_v15 = vadd.f32 %v1743_v50, %v1578_v41  ;;  %v2005_v26 = vrot.slane %v12401_v63, 2  ;;  %v1798_v34 = vrot.slane %v1779_v52, 2  ;;  %v1620_v30 = vrot.slane %v1599_v11, 1  ;;  %v15948_v50 = vld [vmem:[#allocation111_spill] sm:$0xff]  ;;  %v15949_v41 = vld [vmem:[#allocation153_spill] sm:$0xff] }
 0x274   :  { %v1758_v56 = vadd.f32 %v1744_v21, %v1576_v40  ;;  %v1947_v54 = vsel %vm1730_vm3, %v1942_v7, %v1946_v31  ;;  %v1574_v19 = vadd.f32 %v1558_v37, %v1375_v14  ;;  %v15947_v4 = vrot.slane %v15946_v51, 1  ;;  %v15951_v51 = vld [vmem:[#allocation60_spill] sm:$0xff] }
 0x275   :  { %v1876_v0 = vadd.f32 %v1862_v2, %v1694_v3  ;;  %v2065_v62 = vsel %vm1730_vm3, %v2060_v5, %v2064_v6  ;;  %v1633_v53 = vadd.f32 %v1617_v17, %v12361_v10  ;;  %v1878_v59 = vadd.f32 %v1861_v23, %v1696_v13  ;;  %v15953_v2 = vld [vmem:[#allocation92_spill] sm:$0xff]  ;;  %v15955_v17 = vld [vmem:[#allocation78_spill] sm:$0xff] }
 0x276   :  { %v1676_v28 = vsel %vm748_vm0, %v15947_v4, %v1675_v45  ;;  %v2302_v25 = vsel %vm490_vm11, %v15948_v50, %v2298_v38  ;;  %v15950_v52 = vrot.slane %v15949_v41, 2  ;;  %v1802_v21 = vrot.slane %v1781_v61, 2  ;;  %v15959_v4 = vld [vmem:[#allocation26_spill] sm:$0xff] }
 0x277   :  { %v1961_v7 = vadd.f32 %v1947_v54, %v1758_v56  ;;  %v1963_v14 = vadd.f32 %v1946_v31, %v1760_v15  ;;  %v1692_v37 = vadd.f32 %v1676_v28, %v1493_v55  ;;  %v15952_v40 = vrot.slane %v15951_v51, 2 }
 0x278   :  { %v1740_v11 = vsel %vm1730_vm3, %v15950_v52, %v1739_v32  ;;  %v15954_v5 = vrot.slane %v15953_v2, 2  ;;  %v1621_v23 = vsel %vm748_vm0, %v1616_v57, %v1620_v30  ;;  %v1637_v13 = vadd.f32 %v1620_v30, %v12368_v27  ;;  %v15958_v30 = vld [vmem:[#allocation59_spill] sm:$0xff] }
 0x279   :  { %v1799_v45 = vsel %vm1730_vm3, %v15952_v40, %v1798_v34  ;;  %v2321_v32 = vmul.f32 %v15955_v17, %v12096_v29  ;;  %v2323_v56 = vmul.f32 %v15955_v17, %v2302_v25  ;;  %v2079_v31 = vadd.f32 %v2065_v62, %v1876_v0  ;;  %v15964_v17 = vld [vmem:[#allocation90_spill] sm:$0xff] }
 0x27a   :  { %v1858_v10 = vsel %vm1730_vm3, %v15954_v5, %v1857_v33  ;;  %v15956_v55 = vrot.slane %v12353_v47, 2  ;;  %v1756_v3 = vadd.f32 %v1740_v11, %v1574_v19  ;;  %v2081_v15 = vadd.f32 %v2064_v6, %v1878_v59  ;;  %v15957_v33 = vld [vmem:[#allocation47_spill] sm:$0xff] }
 0x27b   :  { %v2122_v57 = vmul.f32 %v15957_v33, %v11947_v8  ;;  %v1803_v38 = vsel %vm1730_vm3, %v1798_v34, %v1802_v21  ;;  %v1635_v27 = vadd.f32 %v1621_v23, %v12373_v1  ;;  %v12472_v54 = vmul.f32 %v15958_v30, %v11947_v8  ;;  %v15960_v34 = vld [vmem:[#allocation62_spill] sm:$0xff] }
 0x27c   :  { %v2006_v61 = vsel %vm1730_vm3, %v15956_v55, %v2005_v26  ;;  %v2103_v28 = vsel %vm357_vm9, %v15959_v4, %v2099_v60  ;;  %v1815_v0 = vadd.f32 %v1799_v45, %v1633_v53  ;;  %v1874_v47 = vadd.f32 %v1858_v10, %v1692_v37  ;;  %v15961_v1 = vld [vmem:[#allocation66_spill] sm:$0xff] }
 0x27d   :  { %v2124_v62 = vmul.f32 %v15957_v33, %v2103_v28  ;;  %v2242_v6 = vmul.f32 %v15958_v30, %v2103_v28  ;;  %v1819_v19 = vadd.f32 %v1802_v21, %v1637_v13  ;;  %v2340_v59 = vrot.slane %v2321_v32, 2  ;;  %v15963_v21 = vld [vmem:[#allocation74_spill] sm:$0xff]  ;;  %v2882_v13 = vpop.permute.xlu1 %2881 }
 0x27e   :  { %v2344_v50 = vrot.slane %v2323_v56, 2  ;;  %v2380_v41 = vmul.f32 %v15960_v34, %v12096_v29  ;;  %v2441_v52 = vmul.f32 %v15961_v1, %v2302_v25  ;;  %v2141_v11 = vrot.slane %v2122_v57, 2 }
 0x27f   :  { %v2145_v51 = vrot.slane %v2124_v62, 2  ;;  %v2263_v40 = vrot.slane %v2242_v6, 2  ;;  %v1817_v2 = vadd.f32 %v1803_v38, %v1635_v27  ;;  %v2382_v5 = vmul.f32 %v15960_v34, %v2302_v25  ;;  %v15967_v62 = vld [vmem:[#allocation156_spill] sm:$0xff] }
 0x280   :  { %v12484_v53 = vmul.f32 %v15961_v1, %v12096_v29  ;;  %v2259_v37 = vrot.slane %v12472_v54, 2  ;;  %v2181_v45 = vmul.f32 %v15963_v21, %v11947_v8  ;;  %v2183_v60 = vmul.f32 %v15963_v21, %v2103_v28 }
 0x281   :  { %v2146_v10 = vsel %vm1730_vm3, %v2141_v11, %v2145_v51  ;;  %v2162_v23 = vadd.f32 %v2145_v51, %v1963_v14  ;;  %v15965_v32 = vrot.slane %v15964_v17, 2  ;;  %v2399_v25 = vrot.slane %v2380_v41, 2  ;;  %v15966_v14 = vld [vmem:[#allocation73_spill] sm:$0xff] }
 0x282   :  { %15962 = vst [vmem:[#allocation29_spill] sm:$0xff] %v12484_v53  ;;  %v2160_v55 = vadd.f32 %v2146_v10, %v1961_v7  ;;  %v2264_v33 = vsel %vm1730_vm3, %v2259_v37, %v2263_v40  ;;  %v2345_v57 = vsel %vm1730_vm3, %v2340_v59, %v2344_v50  ;;  %v2462_v38 = vrot.slane %v2441_v52, 2 }
 0x283   :  { %v2341_v56 = vsel %vm1730_vm3, %v15965_v32, %v2340_v59  ;;  %v2278_v27 = vadd.f32 %v2264_v33, %v2079_v31  ;;  %v2280_v30 = vadd.f32 %v2263_v40, %v2081_v15  ;;  %v2403_v54 = vrot.slane %v2382_v5, 2  ;;  %v15971_v5 = vld [vmem:[#allocation147_spill] sm:$0xff]  ;;  %v15974_v32 = vld [vmem:[#allocation108_spill] sm:$0xff] }
 0x284   :  { %v1959_v4 = vadd.f32 %v12398_v49, %v1756_v3  ;;  %v2905_v28 = vmul.f32 %v15966_v14, %v11942_v9  ;;  %v2886_v6 = vsel %vm224_vm8, %v15967_v62, %v2882_v13  ;;  %v14963_v34 = vrot.slane %v12484_v53, 2  ;;  %v15979_v62 = vld [vmem:[#allocation67_spill] sm:$0xff] }
 0x285   :  { %v2018_v7 = vadd.f32 %v12410_v42, %v1815_v0  ;;  %v2200_v41 = vrot.slane %v2181_v45, 2  ;;  %v2204_v1 = vrot.slane %v2183_v60, 2  ;;  %v2020_v51 = vadd.f32 %v2006_v61, %v1817_v2  ;;  %v15968_v42 = vld [vmem:[#allocation167_spill] sm:$0xff] }
 0x286   :  { %v2022_v31 = vadd.f32 %v2005_v26, %v1819_v19  ;;  %v12505_v15 = vadd.f32 %v2345_v57, %v2160_v55  ;;  %v12507_v59 = vadd.f32 %v2344_v50, %v2162_v23  ;;  %v2463_v49 = vsel %vm1730_vm3, %v14963_v34, %v2462_v38  ;;  %v15969_v50 = vld [vmem:[#allocation130_spill] sm:$0xff]  ;;  %v16083_v53 = vld [vmem:[#allocation119_spill] sm:$0xff] }
 0x287   :  { %v12513_v3 = vmul.f32 %v15966_v14, %v2886_v6  ;;  %v12516_v52 = vmul.f32 %v11551_v18, %v2886_v6  ;;  %v12519_v0 = vmul.f32 %v15968_v42, %v2886_v6  ;;  %v2924_v61 = vrot.slane %v2905_v28, 3  ;;  %v15976_v14 = vld [vmem:[#allocation131_spill] sm:$0xff] }
 0x288   :  { %v12523_v63 = vmul.f32 %v11551_v18, %v11942_v9  ;;  %v12525_v26 = vadd.f32 %v2463_v49, %v2278_v27  ;;  %v2479_v19 = vadd.f32 %v2462_v38, %v2280_v30  ;;  %v15970_v40 = vrot.slane %v15969_v50, 2  ;;  %v2497_v50 = vpop.permute.xlu0 %2496 }
 0x289   :  { %v15972_v21 = vrot.slane %v15971_v5, 2  ;;  %v2205_v10 = vsel %vm1730_vm3, %v2200_v41, %v2204_v1  ;;  %v12536_v23 = vmul.f32 %v15968_v42, %v11942_v9  ;;  %v2221_v17 = vadd.f32 %v2204_v1, %v2022_v31 }
 0x28a   :  { %v2142_v2 = vsel %vm1730_vm3, %v15970_v40, %v2141_v11  ;;  %v2219_v13 = vadd.f32 %v2205_v10, %v2020_v51  ;;  %v15975_v55 = vrot.slane %v15974_v32, 2  ;;  %v14967_v11 = vrot.slane %v12513_v3, 3  ;;  %v15985_v10 = vld [vmem:[#allocation132_spill] sm:$0xff]  ;;  %v15987_v32 = vld [vmem:[#allocation43_spill] sm:$0xff] }
 0x28b   :  { %v2201_v45 = vsel %vm1730_vm3, %v15972_v21, %v2200_v41  ;;  %15973 = vst [vmem:[#allocation106_spill] sm:$0xff] %v12536_v23  ;;  %v2158_v60 = vadd.f32 %v2142_v2, %v1959_v4  ;;  %v14965_v57 = vrot.slane %v12516_v52, 3  ;;  %v14966_v38 = vrot.slane %v12519_v0, 3  ;;  %v15983_v21 = vld [vmem:[#allocation13_spill] sm:$0xff] }
 0x28c   :  { %v2217_v18 = vadd.f32 %v2201_v45, %v2018_v7  ;;  %v2400_v33 = vsel %vm1730_vm3, %v15975_v55, %v2399_v25  ;;  %v2404_v27 = vsel %vm1730_vm3, %v2399_v25, %v2403_v54  ;;  %v12546_v30 = vadd.f32 %v12415_v16, %v1874_v47  ;;  %v7648_v16 = vld [vmem:[%s15015_s1 + $0x38] sm:$0x7f]  ;;  %v15988_v55 = vld [vmem:[#allocation82_spill] sm:$0xff] }
 0x28d   :  { %v15977_v4 = vrot.slane %v15976_v14, 2  ;;  %v2520_v6 = vmul.f32 %v15979_v62, %v12132_v48  ;;  %v14964_v7 = vrot.slane %v12523_v63, 3  ;;  %v14962_v41 = vrot.slane %v12536_v23, 3  ;;  %v15981_v47 = vld [vmem:[#allocation151_spill] sm:$0xff] }
 0x28e   :  { %v15980_v1 = vrot.slane %v11522_v44, 3  ;;  %v2703_v25 = vmul.f32 %v7648_v16, %v15981_v47  ;;  %v12568_v31 = vadd.f32 %v2400_v33, %v2217_v18  ;;  %v2418_v49 = vadd.f32 %v2404_v27, %v2219_v13  ;;  %v15986_v13 = vld [vmem:[#allocation110_spill] sm:$0xff]  ;;  %v15989_v27 = vld [vmem:[#allocation39_spill] sm:$0xff] }
 0x28f   :  { %v12551_v28 = vsel %vm1730_vm3, %v15977_v4, %v2259_v37  ;;  %v12566_v37 = vadd.f32 %v2341_v56, %v2158_v60  ;;  %v2420_v42 = vadd.f32 %v2403_v54, %v2221_v17  ;;  %v2929_v44 = vsel %vm2712_vm6, %v2924_v61, %v14967_v11  ;;  %v15991_v4 = vld [vmem:[#allocation91_spill] sm:$0xff] }
 0x290   :  { %15978 = vst [vmem:[#allocation138_spill] sm:$0xff] %v12551_v28  ;;  %v12560_v51 = vsel %vm2712_vm6, %v15980_v1, %v2924_v61  ;;  %v12578_v40 = vsel %vm2712_vm6, %v14964_v7, %v14965_v57  ;;  %v12585_v56 = vsel %vm2712_vm6, %v14962_v41, %v14966_v38  ;;  %v2701_v54 = vmul.f32 %v12105_v46, %v15981_v47  ;;  %v15982_v61 = vld [vmem:[#allocation8_spill] sm:$0xff]  ;;  %v15997_v38 = vld [vmem:[#allocation143_spill] sm:$0xff]  ;;  %v16085_v28 = vld [vmem:[#allocation21_spill] sm:$0xff] }
 0x291   :  { %v2539_v2 = vrot.slane %v2520_v6, 2  ;;  %v2579_v5 = vmul.f32 %v15982_v61, %v12132_v48  ;;  %v12593_v45 = vmul.f32 %v15983_v21, %v12132_v48  ;;  %v2822_v60 = vmul.f32 %v7648_v16, %v15985_v10  ;;  %v15993_v47 = vld [vmem:[#allocation124_spill] sm:$0xff] }
 0x292   :  { %v2725_v18 = vrot.slane %v2703_v25, 3  ;;  %v2501_v17 = vsel %vm623_vm10, %v15986_v13, %v2497_v50  ;;  %v3655_v33 = vadd.f32 %v15988_v55, %v15987_v32  ;;  %v15990_v14 = vrot.slane %v15989_v27, 4  ;;  %v15995_v7 = vld [vmem:[#allocation128_spill] sm:$0xff] }
 0x293   :  { %15984 = vst [vmem:[#allocation48_spill] sm:$0xff] %v12593_v45  ;;  %v15992_v6 = vrot.slane %v15991_v4, 4  ;;  %v2761_v41 = vmul.f32 %v12105_v46, %v15993_v47  ;;  %v12609_v34 = vmul.f32 %v12105_v46, %v15985_v10  ;;  %v2522_v25 = vmul.f32 %v15979_v62, %v2501_v17 }
 0x294   :  { %v2581_v50 = vmul.f32 %v15982_v61, %v2501_v17  ;;  %v2721_v13 = vrot.slane %v2701_v54, 3  ;;  %v2763_v32 = vmul.f32 %v7648_v16, %v15993_v47  ;;  %v2640_v55 = vmul.f32 %v15983_v21, %v2501_v17 }
 0x295   :  { %v3820_v1 = vsel %vm3694_vm7, %v15992_v6, %v15990_v14  ;;  %15994 = vst [vmem:[#allocation18_spill] sm:$0xff] %v12609_v34  ;;  %v14969_v4 = vrot.slane %v12593_v45, 2  ;;  %v2843_v14 = vrot.slane %v2822_v60, 3  ;;  %v2543_v6 = vrot.slane %v2522_v25, 2 }
 0x296   :  { %v3837_v27 = vadd.f32 %v3820_v1, %v3655_v33  ;;  %v15996_v57 = vrot.slane %v15995_v7, 4  ;;  %v15998_v11 = vrot.slane %v15997_v38, 4  ;;  %v2726_v62 = vsel %vm2712_vm6, %v2721_v13, %v2725_v18  ;;  %v15999_v38 = vld [vmem:[#allocation68_spill] sm:$0xff]  ;;  %v16001_v1 = vld [vmem:[#allocation174_spill] sm:$0xff] }
 0x297   :  { %v2661_v23 = vrot.slane %v2640_v55, 2  ;;  %v4601_v16 = vmul.f32 %v15794_v43, %v15831_v39  ;;  %v14970_v54 = vrot.slane %v12609_v34, 3  ;;  %v2544_v21 = vsel %vm1730_vm3, %v2539_v2, %v2543_v6 }
 0x298   :  { %v4023_v10 = vsel %vm3694_vm7, %v15998_v11, %v15996_v57  ;;  %v2560_v60 = vadd.f32 %v2543_v6, %v12507_v59  ;;  %v2602_v17 = vrot.slane %v2581_v50, 2  ;;  %v2558_v7 = vadd.f32 %v2544_v21, %v12505_v15 }
 0x299   :  { %v4040_v61 = vadd.f32 %v4023_v10, %v3837_v27  ;;  %v2662_v11 = vsel %vm1730_vm3, %v14969_v4, %v2661_v23  ;;  %v2678_v57 = vadd.f32 %v2661_v23, %v2479_v19  ;;  %v16000_v33 = vrot.slane %v15999_v38, 4  ;;  %v16003_v27 = vld [vmem:[#allocation71_spill] sm:$0xff]  ;;  %v3280_v38 = vpop.permute.xlu1 %3279 }
 0x29a   :  { %v16002_v47 = vrot.slane %v16001_v1, 4  ;;  %v2598_v39 = vrot.slane %v2579_v5, 2  ;;  %v2844_v25 = vsel %vm2712_vm6, %v14970_v54, %v2843_v14  ;;  %v2676_v59 = vadd.f32 %v2662_v11, %v12525_v26  ;;  %v16005_v10 = vld [vmem:[#allocation11_spill] sm:$0xff]  ;;  %v16007_v1 = vld [vmem:[#allocation69_spill] sm:$0xff] }
 0x29b   :  { %v2784_v15 = vrot.slane %v2763_v32, 3  ;;  %v2740_v55 = vadd.f32 %v2726_v62, %v2558_v7  ;;  %v16004_v6 = vrot.slane %v16003_v27, 4  ;;  %v16006_v19 = vrot.slane %v16005_v10, 4  ;;  %v16009_v62 = vld [vmem:[#allocation14_spill] sm:$0xff] }
 0x29c   :  { %v4222_v43 = vsel %vm3694_vm7, %v16002_v47, %v16000_v33  ;;  %v4619_v21 = vrot.slane %v4601_v16, 4  ;;  %v16008_v33 = vrot.slane %v16007_v1, 2  ;;  %v2780_v47 = vrot.slane %v2761_v41, 3  ;;  %v16012_v16 = vld [vmem:[#allocation54_spill] sm:$0xff] }
 0x29d   :  { %v4239_v50 = vadd.f32 %v4222_v43, %v4040_v61  ;;  %v4421_v23 = vsel %vm3694_vm7, %v16006_v19, %v16004_v6  ;;  %v2742_v4 = vadd.f32 %v2725_v18, %v2560_v60  ;;  %v2603_v26 = vsel %vm1730_vm3, %v2598_v39, %v2602_v17  ;;  %v16013_v41 = vld [vmem:[#allocation142_spill] sm:$0xff] }
 0x29e   :  { %v2540_v5 = vsel %vm1730_vm3, %v16008_v33, %v2539_v2  ;;  %v2858_v61 = vadd.f32 %v2844_v25, %v2676_v59  ;;  %v2860_v32 = vadd.f32 %v2843_v14, %v2678_v57  ;;  %v16010_v7 = vrot.slane %v16009_v62, 4  ;;  %v16015_v59 = vld [vmem:[#allocation135_spill] sm:$0xff] }
 0x29f   :  { %v4438_v54 = vadd.f32 %v4421_v23, %v4239_v50  ;;  %v2617_v43 = vadd.f32 %v2603_v26, %v2418_v49  ;;  %v2619_v27 = vadd.f32 %v2602_v17, %v2420_v42  ;;  %v3284_v10 = vsel %vm490_vm11, %v16012_v16, %v3280_v38  ;;  %v16017_v42 = vld [vmem:[#allocation79_spill] sm:$0xff]  ;;  %v16020_v23 = vld [vmem:[#allocation98_spill] sm:$0xff]  ;;  %v16023_v26 = vld [vmem:[#allocation97_spill] sm:$0xff] }
 0x2a0   :  { %v4620_v11 = vsel %vm3694_vm7, %v16010_v7, %v4619_v21  ;;  %v2556_v2 = vadd.f32 %v2540_v5, %v12566_v37  ;;  %v16014_v18 = vrot.slane %v16013_v41, 2  ;;  %v2785_v25 = vsel %vm2712_vm6, %v2780_v47, %v2784_v15  ;;  %v16022_v5 = vld [vmem:[#allocation19_spill] sm:$0xff]  ;;  %v16027_v16 = vld [vmem:[#allocation40_spill] sm:$0xff] }
 0x2a1   :  { %v12652_v6 = vadd.f32 %v4620_v11, %v4438_v54  ;;  %v2943_v14 = vadd.f32 %v2929_v44, %v2740_v55  ;;  %v16016_v50 = vrot.slane %v16015_v59, 3  ;;  %v16018_v54 = vrot.slane %v16017_v42, 3  ;;  %v16025_v7 = vld [vmem:[#allocation75_spill] sm:$0xff]  ;;  %v16031_v41 = vld [vmem:[#allocation100_spill] sm:$0xff] }
 0x2a2   :  { %v2599_v60 = vsel %vm1730_vm3, %v16014_v18, %v2598_v39  ;;  %v16019_v37 = vrot.slane %v12513_v3, 3  ;;  %v3081_v39 = vpop.permute.xlu0 %3080  ;;  %v12674_v44 = vmul.f32 %v16020_v23, %v12096_v29  ;;  %v3061_v55 = vadd.f32 %v12585_v56, %v2858_v61  ;;  %v16029_v61 = vld [vmem:[#allocation15_spill] sm:$0xff]  ;;  %v16033_v42 = vld [vmem:[#allocation176_spill] sm:$0xff] }
 0x2a3   :  { %16011 = vst [vmem:[#allocation33_spill] sm:$0xff] %v12652_v6  ;;  %v2615_v57 = vadd.f32 %v2599_v60, %v12568_v31  ;;  %v2722_v49 = vsel %vm2712_vm6, %v16016_v50, %v2721_v13  ;;  %v2781_v17 = vsel %vm2712_vm6, %v16018_v54, %v2780_v47  ;;  %4717 = vrot.lane.b32.xlu0 %v12652_v6, %s7689_s23  ;;  %v16021_v13 = vrot.slane %v12519_v0, 3  ;;  %v16028_v0 = vld [vmem:[#allocation45_spill] sm:$0xff] }
 0x2a4   :  { %v2945_v19 = vadd.f32 %v16019_v37, %v2742_v4  ;;  %v3305_v31 = vmul.f32 %v16020_v23, %v3284_v10  ;;  %v2799_v1 = vadd.f32 %v2785_v25, %v2617_v43  ;;  %v2801_v33 = vadd.f32 %v2784_v15, %v2619_v27  ;;  %v16024_v4 = vld [vmem:[#allocation22_spill] sm:$0xff]  ;;  %v16034_v23 = vld [vmem:[#allocation120_spill] sm:$0xff] }
 0x2a5   :  { %v3063_v38 = vadd.f32 %v16021_v13, %v2860_v32  ;;  %v3423_v47 = vmul.f32 %v16022_v5, %v3284_v10  ;;  %v3104_v3 = vmul.f32 %v16023_v26, %v11947_v8  ;;  %v12685_v62 = vmul.f32 %v16024_v4, %v12096_v29 }
 0x2a6   :  { %v12689_v11 = vmul.f32 %v16025_v7, %v11947_v8  ;;  %v3085_v56 = vsel %vm357_vm9, %v16027_v16, %v3081_v39  ;;  %v4241_v32 = vadd.f32 %v16029_v61, %v16028_v0  ;;  %v12696_v15 = vmul.f32 %v16024_v4, %v3284_v10 }
 0x2a7   :  { %v12700_v43 = vmul.f32 %v16022_v5, %v12096_v29  ;;  %v3106_v27 = vmul.f32 %v16023_v26, %v3085_v56  ;;  %v16032_v18 = vrot.slane %v16031_v41, 4  ;;  %v14973_v25 = vrot.slane %v12674_v44, 3 }
 0x2a8   :  { %16026 = vst [vmem:[#allocation20_spill] sm:$0xff] %v12689_v11  ;;  %v3326_v59 = vrot.slane %v3305_v31, 3  ;;  %v3224_v50 = vmul.f32 %v16025_v7, %v3085_v56  ;;  %v4440_v54 = vadd.f32 %v16033_v42, %v4241_v32  ;;  %v3444_v37 = vrot.slane %v3423_v47, 3 }
 0x2a9   :  { %16030 = vst [vmem:[#allocation50_spill] sm:$0xff] %v12700_v43  ;;  %v4624_v60 = vsel %vm3694_vm7, %v4619_v21, %v16032_v18  ;;  %v3123_v10 = vrot.slane %v3104_v3, 3  ;;  %v3127_v39 = vrot.slane %v3106_v27, 3  ;;  %v3165_v13 = vmul.f32 %v16034_v23, %v3085_v56 }
 0x2aa   :  { %v3163_v5 = vmul.f32 %v16034_v23, %v11947_v8  ;;  %v14972_v26 = vrot.slane %v12689_v11, 3  ;;  %v3245_v4 = vrot.slane %v3224_v50, 3  ;;  %v12713_v16 = vadd.f32 %v4624_v60, %v4440_v54  ;;  %v16037_v54 = vld [vmem:[#allocation127_spill] sm:$0xff]  ;;  %v16038_v23 = vld [vmem:[#allocation116_spill] sm:$0xff] }
 0x2ab   :  { %v14974_v21 = vrot.slane %v12685_v62, 3  ;;  %v3385_v31 = vrot.slane %v12696_v15, 3  ;;  %v3128_v7 = vsel %vm2712_vm6, %v3123_v10, %v3127_v39  ;;  %v3144_v0 = vadd.f32 %v3127_v39, %v2945_v19  ;;  %v3864_v19 = vpop.permute.xlu1 %3863 }
 0x2ac   :  { %16035 = vst [vmem:[#allocation94_spill] sm:$0xff] %v12713_v16  ;;  %v3327_v47 = vsel %vm2712_vm6, %v14973_v25, %v3326_v59  ;;  %v14971_v3 = vrot.slane %v12700_v43, 3  ;;  %v3142_v56 = vadd.f32 %v3128_v7, %v2943_v14  ;;  %v3246_v61 = vsel %vm2712_vm6, %v14972_v26, %v3245_v4  ;;  %4719 = vrot.lane.b32.xlu0 %v12713_v16, %s7689_s23 }
 0x2ad   :  { %v3002_v32 = vadd.f32 %v12578_v40, %v2799_v1  ;;  %v3186_v15 = vrot.slane %v3165_v13, 3  ;;  %v3260_v27 = vadd.f32 %v3246_v61, %v3061_v55  ;;  %v3262_v18 = vadd.f32 %v3245_v4, %v3063_v38  ;;  %v16039_v40 = vld [vmem:[#allocation12_spill] sm:$0xff]  ;;  %v16041_v4 = vld [vmem:[#allocation41_spill] sm:$0xff] }
 0x2ae   :  { %v3445_v60 = vsel %vm2712_vm6, %v14971_v3, %v3444_v37  ;;  %v16036_v50 = vrot.slane %v12516_v52, 3  ;;  %v3182_v42 = vrot.slane %v3163_v5, 3  ;;  %v12735_v39 = vmul.f32 %v16037_v54, %v11942_v9  ;;  %v16043_v61 = vld [vmem:[#allocation9_spill] sm:$0xff] }
 0x2af   :  { %v12739_v7 = vmul.f32 %v16038_v23, %v11942_v9  ;;  %v12743_v55 = vmul.f32 %v16039_v40, %v11942_v9  ;;  %v3341_v38 = vadd.f32 %v3327_v47, %v3142_v56  ;;  %v3343_v1 = vadd.f32 %v3326_v59, %v3144_v0  ;;  %v16044_v0 = vld [vmem:[#allocation159_spill] sm:$0xff] }
 0x2b0   :  { %v3004_v14 = vadd.f32 %v16036_v50, %v2801_v33  ;;  %v16040_v13 = vrot.slane %v12523_v63, 3  ;;  %v16042_v52 = vrot.slane %v16041_v4, 3  ;;  %v12752_v5 = vadd.f32 %v2722_v49, %v2556_v2 }
 0x2b1   :  { %v3868_v50 = vsel %vm224_vm8, %v16043_v61, %v3864_v19  ;;  %v3459_v3 = vadd.f32 %v3445_v60, %v3260_v27  ;;  %v12756_v26 = vadd.f32 %v2781_v17, %v2615_v57  ;;  %v3386_v9 = vsel %vm2712_vm6, %v14974_v21, %v3385_v31  ;;  %v3479_v19 = vpop.permute.xlu0 %3478  ;;  %v16046_v27 = vld [vmem:[#allocation86_spill] sm:$0xff]  ;;  %v16057_v60 = vld [vmem:[#allocation96_spill] sm:$0xff] }
 0x2b2   :  { %v12750_v33 = vsel %vm2712_vm6, %v16042_v52, %v16040_v13  ;;  %v3187_v59 = vsel %vm2712_vm6, %v3182_v42, %v3186_v15  ;;  %v3461_v63 = vadd.f32 %v3444_v37, %v3262_v18  ;;  %v16045_v47 = vrot.slane %v16044_v0, 3  ;;  %v16051_v52 = vld [vmem:[#allocation164_spill] sm:$0xff] }
 0x2b3   :  { %v3201_v2 = vadd.f32 %v3187_v59, %v3002_v32  ;;  %v3203_v49 = vadd.f32 %v3186_v15, %v3004_v14  ;;  %v16047_v57 = vrot.slane %v16046_v27, 3  ;;  %v3889_v37 = vmul.f32 %v16037_v54, %v3868_v50  ;;  %v16049_v15 = vld [vmem:[#allocation157_spill] sm:$0xff]  ;;  %v16053_v0 = vld [vmem:[#allocation56_spill] sm:$0xff]  ;;  %v16054_v27 = vld [vmem:[#allocation170_spill] sm:$0xff] }
 0x2b4   :  { %v12765_v56 = vsel %vm2712_vm6, %v16045_v47, %v3123_v10  ;;  %v12777_v18 = vmul.f32 %v16038_v23, %v3868_v50  ;;  %v16048_v10 = vld [vmem:[#allocation155_spill] sm:$0xff]  ;;  %v12785_v14 = vmul.f32 %v16049_v15, %v12132_v48  ;;  %v12792_v59 = vmul.f32 %v16039_v40, %v3868_v50  ;;  %v16052_v54 = vld [vmem:[#allocation165_spill] sm:$0xff]  ;;  %v16058_v40 = vld [vmem:[#allocation84_spill] sm:$0xff] }
 0x2b5   :  { %v12771_v17 = vsel %vm2712_vm6, %v16047_v57, %v3182_v42  ;;  %v12781_v32 = vmul.f32 %v16048_v10, %v12132_v48  ;;  %v7649_v42 = vld [vmem:[%s15015_s1 + $0x38] sm:$0xff]  ;;  %v3483_v47 = vsel %vm623_vm10, %v16053_v0, %v3479_v19  ;;  %v16055_v57 = vrot.slane %v16031_v41, 4  ;;  %v4262_v0 = vpop.permute.xlu1 %4261 }
 0x2b6   :  { %16050 = vst [vmem:[#allocation136_spill] sm:$0xff] %v12785_v14  ;;  %v3685_v61 = vmul.f32 %v7649_v42, %v16051_v52  ;;  %v3745_v23 = vmul.f32 %v7649_v42, %v16052_v54  ;;  %v3400_v25 = vadd.f32 %v3386_v9, %v3201_v2  ;;  %v3402_v21 = vadd.f32 %v3385_v31, %v3203_v49 }
 0x2b7   :  { %v12800_v4 = vadd.f32 %v16055_v57, %v16054_v27  ;;  %v3804_v13 = vmul.f32 %v7649_v42, %v16057_v60  ;;  %v3504_v16 = vmul.f32 %v16048_v10, %v3483_v47  ;;  %v3910_v6 = vrot.slane %v3889_v37, 4 }
 0x2b8   :  { %v12806_v50 = vmul.f32 %v16058_v40, %v12132_v48  ;;  %v3563_v43 = vmul.f32 %v16058_v40, %v3483_v47  ;;  %v3622_v19 = vmul.f32 %v16049_v15, %v3483_v47  ;;  %v14979_v41 = vrot.slane %v12781_v32, 3  ;;  %v7650_v15 = vld [vmem:[%s15015_s1 + $0x28] sm:$0xff] }
 0x2b9   :  { %16056 = vst [vmem:[#allocation107_spill] sm:$0xff] %v12800_v4  ;;  %4721 = vrot.lane.b32.xlu0 %v12800_v4, %s7689_s23  ;;  %v14978_v31 = vrot.slane %v12785_v14, 3  ;;  %v3707_v9 = vrot.slane %v3685_v61, 4  ;;  %v3525_v2 = vrot.slane %v3504_v16, 3  ;;  %v12816_v49 = vmul.f32 %v12105_v46, %v16052_v54 }
 0x2ba   :  { %v3766_v37 = vrot.slane %v3745_v23, 4  ;;  %v3584_v10 = vrot.slane %v3563_v43, 3  ;;  %v3643_v42 = vrot.slane %v3622_v19, 3  ;;  %v12822_v47 = vmul.f32 %v7650_v15, %v16051_v52 }
 0x2bb   :  { %v3825_v27 = vrot.slane %v3804_v13, 4  ;;  %v3526_v16 = vsel %vm2712_vm6, %v14979_v41, %v3525_v2  ;;  %v3542_v61 = vadd.f32 %v3525_v2, %v3343_v1  ;;  %v12828_v46 = vmul.f32 %v7650_v15, %v16057_v60  ;;  %v16060_v60 = vld [vmem:[#allocation61_spill] sm:$0xff]  ;;  %v16063_v41 = vld [vmem:[#allocation95_spill] sm:$0xff] }
 0x2bc   :  { %v12830_v54 = vadd.f32 %v3526_v16, %v3341_v38  ;;  %v3601_v43 = vadd.f32 %v3584_v10, %v3402_v21  ;;  %v3644_v23 = vsel %vm2712_vm6, %v14978_v31, %v3643_v42  ;;  %v3969_v57 = vrot.slane %v12777_v18, 4  ;;  %v4063_v21 = vpop.permute.xlu0 %4062 }
 0x2bd   :  { %16059 = vst [vmem:[#allocation34_spill] sm:$0xff] %v12828_v46  ;;  %v12836_v52 = vadd.f32 %v3644_v23, %v3459_v3  ;;  %v3660_v13 = vadd.f32 %v3643_v42, %v3461_v63  ;;  %v3724_v40 = vadd.f32 %v3707_v9, %v3542_v61  ;;  %v3580_v19 = vrot.slane %v12806_v50, 3 }
 0x2be   :  { %v3762_v1 = vrot.slane %v12816_v49, 4  ;;  %v3783_v2 = vadd.f32 %v3766_v37, %v3601_v43  ;;  %v12842_v38 = vsel %vm490_vm11, %v16060_v60, %v4262_v0  ;;  %v16061_v15 = vrot.slane %v12735_v39, 4  ;;  %v4684_v0 = vpop.permute.xlu1 %4683  ;;  %v16064_v49 = vld [vmem:[#allocation88_spill] sm:$0xff] }
 0x2bf   :  { %v14980_v3 = vrot.slane %v12792_v59, 4  ;;  %v3842_v18 = vadd.f32 %v3825_v27, %v3660_v13  ;;  %v3585_v42 = vsel %vm2712_vm6, %v3580_v19, %v3584_v10  ;;  %v3927_v61 = vadd.f32 %v3910_v6, %v3724_v40  ;;  %v16065_v10 = vld [vmem:[#allocation101_spill] sm:$0xff] }
 0x2c0   :  { %v12847_v16 = vsel %vm3694_vm7, %v16061_v15, %v3910_v6  ;;  %v3767_v50 = vsel %vm3694_vm7, %v3762_v1, %v3766_v37  ;;  %v3599_v43 = vadd.f32 %v3585_v42, %v3400_v25  ;;  %v12856_v23 = vmul.f32 %v12015_v22, %v12842_v38  ;;  %v16062_v15 = vld [vmem:[#allocation65_spill] sm:$0xff] }
 0x2c1   :  { %v4045_v60 = vadd.f32 %v14980_v3, %v3842_v18  ;;  %v4067_v31 = vsel %vm357_vm9, %v16062_v15, %v4063_v21  ;;  %v3986_v13 = vadd.f32 %v3969_v57, %v3783_v2  ;;  %v16067_v25 = vrot.slane %v12739_v7, 4 }
 0x2c2   :  { %v12863_v37 = vmul.f32 %v16063_v41, %v4067_v31  ;;  %v4147_v63 = vmul.f32 %v16064_v49, %v4067_v31  ;;  %v12867_v6 = vmul.f32 %v16065_v10, %v4067_v31  ;;  %v16068_v42 = vrot.slane %v12822_v47, 4  ;;  %v4688_v4 = vpop.permute.xlu1 %4687 }
 0x2c3   :  { %v3970_v40 = vsel %vm3694_vm7, %v16067_v25, %v3969_v57  ;;  %v4145_v21 = vmul.f32 %v16064_v49, %v11947_v8  ;;  %v3000_v2 = vadd.f32 %v12750_v33, %v12756_v26  ;;  %v16069_v15 = vrot.slane %v12828_v46, 4  ;;  %v4461_v33 = vpop.permute.xlu0 %4460 }
 0x2c4   :  { %16066 = vst [vmem:[#allocation137_spill] sm:$0xff] %v12867_v6  ;;  %v3708_v18 = vsel %vm3694_vm7, %v16068_v42, %v3707_v9  ;;  %v12886_v31 = vmul.f32 %v16063_v41, %v11947_v8  ;;  %v14985_v57 = vrot.slane %v12863_v37, 4  ;;  %v4168_v25 = vrot.slane %v4147_v63, 4  ;;  %v16071_v63 = vld [vmem:[#allocation103_spill] sm:$0xff] }
 0x2c5   :  { %v12882_v3 = vsel %vm3694_vm7, %v16069_v15, %v3825_v27  ;;  %v3781_v9 = vadd.f32 %v3767_v50, %v3599_v43  ;;  %v4367_v42 = vrot.slane %v12856_v23, 4  ;;  %v14984_v49 = vrot.slane %v12867_v6, 4 }
 0x2c6   :  { %v3199_v26 = vadd.f32 %v12771_v17, %v3000_v2  ;;  %v12894_v27 = vadd.f32 %v14985_v57, %v3927_v61  ;;  %v4185_v15 = vadd.f32 %v4168_v25, %v3986_v13  ;;  %v4543_v41 = vmul.f32 %v12081_v20, %v12132_v48  ;;  %v4766_v13 = vld [vmem:[%s14376_s5] sm:$0xff]  ;;  %v16074_v2 = vld [vmem:[#allocation171_spill] sm:$0xff] }
 0x2c7   :  { %v16070_v46 = vrot.slane %v12685_v62, 3  ;;  %v16072_v14 = vrot.slane %v16071_v63, 3  ;;  %v4164_v43 = vrot.slane %v4145_v21, 4  ;;  %v12905_v23 = vadd.f32 %v14984_v49, %v4045_v60  ;;  %v4767_v62 = vld [vmem:[%s14376_s5 + $0x8] sm:$0xff] }
 0x2c8   :  { %v4344_v61 = vmul.f32 %v12015_v22, %v12096_v29  ;;  %v16075_v63 = vrot.slane %v16074_v2, 4  ;;  %v16079_v22 = vld [vmem:[#allocation99_spill] sm:$0xff]  ;;  %v14988_v2 = vmov 0.0|0.0  }
 0x2c9   :  { %v3382_v50 = vsel %vm2712_vm6, %v16072_v14, %v16070_v46  ;;  %16073 = vst [vmem:[#allocation126_spill] sm:$0xff] %v12905_v23  ;;  %v16076_v46 = vld [vmem:[#allocation37_spill] sm:$0xff]  ;;  %v12927_v49 = vmul.f32 %v16079_v22, %v12842_v38  ;;  %7268 = vmatprep.subr.bf16.mxu1 %v14988_v2  ;;  %v16084_v23 = vrot.slane %v16083_v53, 4  ;;  %v16086_v53 = vrot.slane %v12285_v24, 4 }
 0x2ca   :  { %v3398_v17 = vadd.f32 %v3382_v50, %v3199_v26  ;;  %v3763_v14 = vsel %vm3694_vm7, %v16075_v63, %v3762_v1  ;;  %v16077_v21 = vrot.slane %v16076_v46, 3  ;;  %v16078_v26 = vld [vmem:[#allocation17_spill] sm:$0xff]  ;;  %v4363_v11 = vrot.slane %v4344_v61, 4  ;;  %v4769_v1 = vld [vmem:[%s14376_s5 + $0x18] sm:$0xff]  ;;  %v4716_v46 = vpop.permute.xlu1 %4715 }
 0x2cb   :  { %v12923_v50 = vsel %vm623_vm10, %v16078_v26, %v4461_v33  ;;  %v12939_v33 = vadd.f32 %v3708_v18, %v12830_v54  ;;  %v4562_v63 = vrot.slane %v4543_v41, 4  ;;  %v4384_v61 = vadd.f32 %v4367_v42, %v4185_v15  ;;  %v16081_v26 = vld [vmem:[#allocation102_spill] sm:$0xff] }
 0x2cc   :  { %v3581_v60 = vsel %vm2712_vm6, %v16077_v21, %v3580_v19  ;;  %v4545_v34 = vmul.f32 %v12081_v20, %v12923_v50  ;;  %v4768_v19 = vld [vmem:[%s14376_s5 + $0x10] sm:$0xff]  ;;  %v4169_v20 = vsel %vm3694_vm7, %v4164_v43, %v4168_v25  ;;  %v16082_v2 = vrot.slane %v16081_v26, 4 }
 0x2cd   :  { %v3597_v57 = vadd.f32 %v3581_v60, %v3398_v17  ;;  %v7269_v17 = vpack.c.bf16 %v4767_v62, %v4766_v13  ;;  %v16080_v60 = vrot.slane %v12739_v7, 4  ;;  %v4165_v6 = vsel %vm3694_vm7, %v16084_v23, %v4164_v43  ;;  %v4686_v13 = vpop.permute.xlu0 %4685  ;;  %v4771_v7 = vld [vmem:[%s14376_s5 + $0x28] sm:$0xff]  ;;  %v16089_v62 = vld [vmem:[#allocation104_spill] sm:$0xff] }
 0x2ce   :  { %v4694_v54 = vadd.f32 %v4684_v0, %v16085_v28  ;;  %v4566_v18 = vrot.slane %v4545_v34, 4  ;;  %v7272_v41 = vpack.c.bf16 %v4769_v1, %v4768_v19  ;;  %v3984_v15 = vadd.f32 %v3970_v40, %v3781_v9  ;;  %v16088_v34 = vld [vmem:[#allocation77_spill] sm:$0xff] }
 0x2cf   :  { %v3779_v21 = vadd.f32 %v3763_v14, %v3597_v57  ;;  %v3966_v45 = vsel %vm3694_vm7, %v16082_v2, %v16080_v60  ;;  %7270 = vmatpush1.bf16.msra.mxu1 %v7269_v17  ;;  %v4770_v57 = vld [vmem:[%s14376_s5 + $0x20] sm:$0xff]  ;;  %v4364_v43 = vsel %vm3694_vm7, %v16086_v53, %v4363_v11  ;;  %v16087_v23 = vmov 0.0|0.0   ;;  %v16090_v14 = vld [vmem:[#allocation31_spill] sm:$0xff]  ;;  %v16091_v19 = vld [vmem:[#allocation133_spill] sm:$0xff]  ;;  %v12981_v53 = vpop.permute.xlu1 %4649 }
 0x2d0   :  { %7271 = vmatprep.subr.bf16.mxu1 %v16087_v23  ;;  %v4696_v28 = vadd.f32 %v4688_v4, %v16088_v34  ;;  %v4368_v0 = vsel %vm3694_vm7, %v4363_v11, %v4367_v42  ;;  %v4583_v40 = vadd.f32 %v4566_v18, %v4384_v61  ;;  %v4183_v9 = vadd.f32 %v4169_v20, %v3984_v15  ;;  %v16092_v17 = vld [vmem:[#allocation160_spill] sm:$0xff]  ;;  %v16093_v60 = vld [vmem:[#allocation93_spill] sm:$0xff] }
 0x2d1   :  { %v3982_v25 = vadd.f32 %v3966_v45, %v3779_v21  ;;  %v4238_v2 = vadd.f32 %v16090_v14, %v16089_v62  ;;  %v12967_v1 = vmul.f32 %v16091_v19, %v10817_v58  ;;  %v4695_v24 = vadd.f32 %v4686_v13, %v16092_v17  ;;  %v16094_v42 = vld [vmem:[#allocation145_spill] sm:$0xff]  ;;  %v4772_v62 = vld [vmem:[%s14376_s5 + $0x30] sm:$0xff] }
 0x2d2   :  { %v7275_v21 = vpack.c.bf16 %v4771_v7, %v4770_v57  ;;  %v12972_v26 = vmul.f32 %v16093_v60, %v10936_v35  ;;  %v4382_v4 = vadd.f32 %v4368_v0, %v4183_v9  ;;  %v16095_v61 = vld [vmem:[#allocation125_spill] sm:$0xff]  ;;  %v12979_v15 = vmul.f32 %v16079_v22, %v10817_v58  ;;  %v16098_v58 = vld [vmem:[#allocation32_spill] sm:$0xff] }
 0x2d3   :  { %v4181_v45 = vadd.f32 %v4165_v6, %v3982_v25  ;;  %7273 = vmatpush1.bf16.msra.mxu1 %v7272_v41  ;;  %v4418_v11 = vrot.slane %v12967_v1, 4  ;;  %v4120_v20 = vadd.f32 %v16095_v61, %v16094_v42  ;;  %v4567_v13 = vsel %vm3694_vm7, %v4562_v63, %v4566_v18  ;;  %v16096_v41 = vld [vmem:[#allocation10_spill] sm:$0xff] }
 0x2d4   :  { %7274 = vmatprep.subr.bf16.mxu1 %v16087_v23  ;;  %v4617_v57 = vrot.slane %v12972_v26, 4  ;;  %v12988_v7 = vmul.f32 %v16096_v41, %v10936_v35  ;;  %v16097_v25 = vrot.slane %v12296_v12, 4  ;;  %v4581_v0 = vadd.f32 %v4567_v13, %v4382_v4  ;;  %v4773_v35 = vld [vmem:[%s14376_s5 + $0x38] sm:$0xff]  ;;  %v16101_v61 = vld [vmem:[#allocation114_spill] sm:$0xff] }
 0x2d5   :  { %v4380_v6 = vadd.f32 %v4364_v43, %v4181_v45  ;;  %v16099_v9 = vrot.slane %v16098_v58, 4  ;;  %v4300_v18 = vrot.slane %v12979_v15, 4  ;;  %v4700_v14 = vadd.f32 %v4696_v28, %v4583_v40  ;;  %v4905_v26 = vld [vmem:[%s14377_s6 + $0x90] sm:$0xff] }
 0x2d6   :  { %v4563_v34 = vsel %vm3694_vm7, %v16097_v25, %v4562_v63  ;;  %v16100_v45 = vrot.slane %v12127_v36, 4  ;;  %v4308_v4 = vrot.slane %v12927_v49, 4  ;;  %v4699_v42 = vadd.f32 %v4695_v24, %v4581_v0  ;;  %v16104_v24 = vld [vmem:[#allocation16_spill] sm:$0xff] }
 0x2d7   :  { %v4419_v43 = vsel %vm3694_vm7, %v16099_v9, %v4418_v11  ;;  %v4579_v12 = vadd.f32 %v4563_v34, %v4380_v6  ;;  %7276 = vmatpush1.bf16.msra.mxu1 %v7275_v21  ;;  %v16102_v13 = vrot.slane %v16101_v61, 4  ;;  %v4499_v6 = vrot.slane %v12988_v7, 4  ;;  %v16103_v34 = vld [vmem:[#allocation123_spill] sm:$0xff]  ;;  %v16105_v0 = vld [vmem:[#allocation112_spill] sm:$0xff]  ;;  %v4652_v61 = vpop.permute.xlu1 %4651 }
 0x2d8   :  { %v4437_v63 = vadd.f32 %v4419_v43, %v4238_v2  ;;  %v4618_v17 = vsel %vm3694_vm7, %v16100_v45, %v4617_v57  ;;  %7277 = vmatprep.subr.bf16.mxu1 %v16087_v23  ;;  %v7278_v36 = vpack.c.bf16 %v4773_v35, %v4772_v62  ;;  %v4705_v58 = vadd.f32 %v16103_v34, %v4699_v42 }
 0x2d9   :  { %v4301_v25 = vsel %vm3694_vm7, %v16102_v13, %v4300_v18  ;;  %v4698_v28 = vadd.f32 %v4694_v54, %v4579_v12  ;;  %v4727_v21 = vadd.f32 %v4716_v46, %v16104_v24  ;;  %v16106_v9 = vrot.slane %v16105_v0, 4  ;;  %v4774_v46 = vld [vmem:[%s14376_s5 + $0x40] sm:$0xff]  ;;  %v4775_v12 = vld [vmem:[%s14376_s5 + $0x48] sm:$0xff] }
 0x2da   :  { %v4636_v40 = vadd.f32 %v4618_v17, %v4437_v63  ;;  %v4319_v2 = vadd.f32 %v4301_v25, %v4120_v20  ;;  %v2941_v45 = vadd.f32 %v12560_v51, %v12752_v5  ;;  %v4105_v54 = vrot.slane %v12886_v31, 4  ;;  %v16109_v25 = vld [vmem:[#allocation83_spill] sm:$0xff] }
 0x2db   :  { %v4500_v43 = vsel %vm3694_vm7, %v16106_v9, %v4499_v6  ;;  %v4704_v20 = vadd.f32 %v16103_v34, %v4698_v28  ;;  %v4706_v62 = vadd.f32 %v16103_v34, %v4700_v14  ;;  %v13042_v51 = vmul.f32 %v16065_v10, %v11947_v8  ;;  %7279 = vmatpush1.bf16.msra.mxu1 %v7278_v36  ;;  %v16115_v9 = vld [vmem:[#allocation72_spill] sm:$0xff] }
 0x2dc   :  { %v13032_v35 = vadd.f32 %v4500_v43, %v4319_v2  ;;  %v4486_v5 = vmul.f32 %v16096_v41, %v12923_v50  ;;  %v4709_v31 = vmax.f32 %v4705_v58, 0.0  ;;  %v3140_v14 = vadd.f32 %v12765_v56, %v2941_v45  ;;  %7280 = vmatprep.subr.bf16.mxu1 %v16087_v23  ;;  %v16112_v58 = vld [vmem:[#allocation85_spill] sm:$0xff] }
 0x2dd   :  { %v16107_v63 = vrot.slane %v12863_v37, 4  ;;  %v4708_v42 = vmax.f32 %v4704_v20, 0.0  ;;  %v16108_v13 = vrot.slane %v12674_v44, 3  ;;  %v16110_v28 = vrot.slane %v16109_v25, 3 }
 0x2de   :  { %v4285_v8 = vmul.f32 %v16079_v22, %v12096_v29  ;;  %v4731_v10 = vadd.f32 %v4727_v21, %v4636_v40  ;;  %v4484_v56 = vmul.f32 %v16096_v41, %v12132_v48  ;;  %4753 = vrot.lane.b32.xlu0 %v4709_v31, %s7689_s23  ;;  %v7281_v37 = vpack.c.bf16 %v4775_v12, %v4774_v46  ;;  %v4654_v46 = vpop.permute.xlu1 %4653 }
 0x2df   :  { %v4110_v17 = vsel %vm3694_vm7, %v4105_v54, %v16107_v63  ;;  %v3323_v2 = vsel %vm2712_vm6, %v16110_v28, %v16108_v13  ;;  %4751 = vrot.lane.b32.xlu1 %v4708_v42, %s7689_s23  ;;  %v4710_v44 = vmax.f32 %v4706_v62, 0.0  ;;  %v16111_v34 = vrot.slane %v12781_v32, 3  ;;  %v4776_v62 = vld [vmem:[%s14376_s5 + $0x50] sm:$0xff]  ;;  %v16120_v63 = vld [vmem:[#allocation105_spill] sm:$0xff] }
 0x2e0   :  { %v3339_v36 = vadd.f32 %v3323_v2, %v3140_v14  ;;  %v16113_v24 = vrot.slane %v16112_v58, 3  ;;  %v16114_v0 = vrot.slane %v12822_v47, 4  ;;  %v16116_v40 = vrot.slane %v16115_v9, 4  ;;  %7282 = vmatpush1.bf16.msra.mxu1 %v7281_v37  ;;  %v4777_v47 = vld [vmem:[%s14376_s5 + $0x58] sm:$0xff] }
 0x2e1   :  { %v3925_v41 = vadd.f32 %v12847_v16, %v12939_v33  ;;  %v4507_v43 = vrot.slane %v4486_v5, 4  ;;  %v4304_v20 = vrot.slane %v4285_v8, 4  ;;  %v13077_v32 = vstv %s13017_s24  ;;  %v16118_v16 = vld [vmem:[#allocation166_spill] sm:$0xff]  ;;  %7283 = vmatprep.subr.bf16.mxu1 %v16087_v23 }
 0x2e2   :  { %v3522_v22 = vsel %vm2712_vm6, %v16113_v24, %v16111_v34  ;;  %v3704_v21 = vsel %vm3694_vm7, %v16116_v40, %v16114_v0  ;;  %v16117_v12 = vrot.slane %v12735_v39, 4  ;;  %v16119_v33 = vrot.slane %v16118_v16, 4  ;;  %v4778_v39 = vld [vmem:[%s14376_s5 + $0x60] sm:$0xff] }
 0x2e3   :  { %v3538_v45 = vadd.f32 %v3522_v22, %v3339_v36  ;;  %v4503_v31 = vrot.slane %v4484_v56, 4  ;;  %v4124_v14 = vadd.f32 %v4110_v17, %v3925_v41  ;;  %v4661_v42 = vadd.f32 %v4652_v61, %v16120_v63  ;;  %v4779_v17 = vld [vmem:[%s14376_s5 + $0x68] sm:$0xff]  ;;  %4755 = vrot.lane.b32.xlu1 %v4710_v44, %s7689_s23  ;;  %v16121_v36 = vld [vmem:[#allocation115_spill] sm:$0xff]  ;;  %v16124_v44 = vld [vmem:[#allocation134_spill] sm:$0xff] }
 0x2e4   :  { %v3907_v5 = vsel %vm3694_vm7, %v16119_v33, %v16117_v12  ;;  %v4309_v25 = vsel %vm3694_vm7, %v4304_v20, %v4308_v4  ;;  %v13096_v28 = vadd.f32 %v13077_v32, %v4731_v10  ;;  %v7284_v2 = vpack.c.bf16 %v4777_v47, %v4776_v62  ;;  %v4781_v41 = vld [vmem:[%s14376_s5 + $0x78] sm:$0xff]  ;;  %v16128_v63 = vld [vmem:[#allocation137_spill] sm:$0xff] }
 0x2e5   :  { %v3720_v13 = vadd.f32 %v3704_v21, %v3538_v45  ;;  %v4323_v61 = vadd.f32 %v4309_v25, %v4124_v14  ;;  %v4325_v8 = vadd.f32 %v4308_v4, %v12894_v27  ;;  %v4662_v10 = vadd.f32 %v4654_v46, %v16121_v36  ;;  %v16126_v46 = vld [vmem:[#allocation121_spill] sm:$0xff] }
 0x2e6   :  { %v16122_v56 = vrot.slane %v12792_v59, 4  ;;  %v16123_v37 = vrot.slane %v12743_v55, 4  ;;  %v4508_v24 = vsel %vm3694_vm7, %v4503_v31, %v4507_v43  ;;  %v4741_v22 = vmax.f32 %v13096_v28, 0.0  ;;  %7285 = vmatpush1.bf16.msra.mxu1 %v7284_v2  ;;  %v5087_v28 = vld [vmem:[%s14379_s8] sm:$0xff] }
 0x2e7   :  { %v3923_v58 = vadd.f32 %v3907_v5, %v3720_v13  ;;  %v16125_v0 = vrot.slane %v16124_v44, 4  ;;  %v4522_v40 = vadd.f32 %v4508_v24, %v4323_v61  ;;  %v4524_v49 = vadd.f32 %v4507_v43, %v4325_v8  ;;  %7286 = vmatprep.subr.bf16.mxu1 %v16087_v23  ;;  %v16131_v8 = vld [vmem:[#allocation29_spill] sm:$0xff] }
 0x2e8   :  { %v4029_v34 = vsel %vm3694_vm7, %v16123_v37, %v16122_v56  ;;  %v7287_v27 = vpack.c.bf16 %v4779_v17, %v4778_v39  ;;  %v3840_v59 = vadd.f32 %v12882_v3, %v12836_v52  ;;  %v4405_v4 = vmul.f32 %v16091_v19, %v12842_v38  ;;  %6951 = vmatprep.mubr.msk.f32.mxu1 %vm4761_vm12, %v4741_v22  ;;  %v4648_v17 = vpop.permute.xlu0 %4647 }
 0x2e9   :  { %v4106_v9 = vsel %vm3694_vm7, %v16125_v0, %v4105_v54  ;;  %v4780_v54 = vld [vmem:[%s14376_s5 + $0x70] sm:$0xff]  ;;  %v4223_v52 = vrot.slane %v13042_v51, 4  ;;  %v4305_v38 = vsel %vm3694_vm7, %v4300_v18, %v4304_v20  ;;  %v4665_v3 = vadd.f32 %v4661_v42, %v4522_v40 }
 0x2ea   :  { %v4122_v21 = vadd.f32 %v4106_v9, %v3923_v58  ;;  %v4666_v43 = vadd.f32 %v4662_v10, %v4524_v49  ;;  %v4604_v45 = vmul.f32 %v16093_v60, %v12923_v50  ;;  %v4668_v62 = vstv %s13074_s2  ;;  %7288 = vmatpush1.bf16.msra.mxu1 %v7287_v27  ;;  %v4782_v50 = vld [vmem:[%s14376_s5 + $0x80] sm:$0xff]  ;;  %v4785_v58 = vld [vmem:[%s14376_s5 + $0x98] sm:$0xff] }
 0x2eb   :  { %v4660_v12 = vadd.f32 %v12981_v53, %v16126_v46  ;;  %v4504_v16 = vsel %vm3694_vm7, %v4499_v6, %v4503_v31  ;;  %v13145_v33 = vadd.f32 %v4668_v62, %v4665_v3  ;;  %v7290_v15 = vpack.c.bf16 %v4781_v41, %v4780_v54  ;;  %7289 = vmatprep.subr.bf16.mxu1 %v16087_v23  ;;  %v4783_v53 = vld [vmem:[%s14376_s5 + $0x88] sm:$0xff]  ;;  %v16127_v31 = vld [vmem:[#allocation138_spill] sm:$0xff]  ;;  %v16135_v9 = vld [vmem:[#allocation23_spill] sm:$0xff] }
 0x2ec   :  { %v4321_v47 = vadd.f32 %v4305_v38, %v4122_v21  ;;  %v13147_v5 = vadd.f32 %v4668_v62, %v4666_v43  ;;  %v4426_v18 = vrot.slane %v4405_v4, 4  ;;  %v13158_v7 = vmul.f32 %v16091_v19, %v12096_v29  ;;  %v16130_v19 = vld [vmem:[#allocation126_spill] sm:$0xff]  ;;  %v16136_v54 = vld [vmem:[#allocation48_spill] sm:$0xff] }
 0x2ed   :  { %v13162_v6 = vmul.f32 %v16093_v60, %v12132_v48  ;;  %v2276_v14 = vadd.f32 %v16127_v31, %v12546_v30  ;;  %v16129_v42 = vrot.slane %v16128_v63, 4  ;;  %v4043_v25 = vadd.f32 %v4029_v34, %v3840_v59  ;;  %v16133_v30 = vld [vmem:[#allocation30_spill] sm:$0xff] }
 0x2ee   :  { %v4520_v20 = vadd.f32 %v4504_v16, %v4321_v47  ;;  %v4625_v39 = vrot.slane %v4604_v45, 4  ;;  %v4422_v29 = vrot.slane %v13158_v7, 4  ;;  %v4443_v2 = vadd.f32 %v4426_v18, %v16130_v19  ;;  %7291 = vmatpush1.bf16.msra.mxu1 %v7290_v15  ;;  %v4784_v34 = vld [vmem:[%s14376_s5 + $0x90] sm:$0xff]  ;;  %v4786_v45 = vld [vmem:[%s14376_s5 + $0xa0] sm:$0xff]  ;;  %v4787_v47 = vld [vmem:[%s14376_s5 + $0xa8] sm:$0xff]  ;;  %v4750_v19 = vpop.permute.xlu0 %4749 }
 0x2ef   :  { %v4228_v13 = vsel %vm3694_vm7, %v4223_v52, %v16129_v42  ;;  %v7293_v48 = vpack.c.bf16 %v4783_v53, %v4782_v50  ;;  %v16132_v36 = vrot.slane %v16131_v8, 2  ;;  %v16134_v10 = vrot.slane %v16133_v30, 2  ;;  %7292 = vmatprep.subr.bf16.mxu1 %v16087_v23  ;;  %v16138_v38 = vld [vmem:[#allocation158_spill] sm:$0xff]  ;;  %v16148_v30 = vld [vmem:[#allocation20_spill] sm:$0xff] }
 0x2f0   :  { %v4664_v61 = vadd.f32 %v4660_v12, %v4520_v20  ;;  %v4242_v60 = vadd.f32 %v4228_v13, %v4043_v25  ;;  %v4621_v24 = vrot.slane %v13162_v6, 4  ;;  %v4427_v44 = vsel %vm3694_vm7, %v4422_v29, %v4426_v18  ;;  %v16140_v16 = vld [vmem:[#allocation18_spill] sm:$0xff]  ;;  %v16142_v18 = vld [vmem:[#allocation148_spill] sm:$0xff] }
 0x2f1   :  { %v2459_v56 = vsel %vm1730_vm3, %v16134_v10, %v16132_v36  ;;  %v4659_v40 = vadd.f32 %v4648_v17, %v16135_v9  ;;  %v13192_v27 = vadd.f32 %v4625_v39, %v4443_v2  ;;  %v7296_v4 = vpack.c.bf16 %v4785_v58, %v4784_v34  ;;  %v4788_v31 = vld [vmem:[%s14376_s5 + $0xb0] sm:$0xff]  ;;  %v4887_v2 = vld [vmem:[%s14377_s6] sm:$0xff] }
 0x2f2   :  { %v13178_v37 = vadd.f32 %v4668_v62, %v4664_v61  ;;  %v2475_v0 = vadd.f32 %v2459_v56, %v2276_v14  ;;  %v4441_v49 = vadd.f32 %v4427_v44, %v4242_v60  ;;  %v4626_v59 = vsel %vm3694_vm7, %v4621_v24, %v4625_v39  ;;  %7294 = vmatpush1.bf16.msra.mxu1 %v7293_v48  ;;  %v4789_v14 = vld [vmem:[%s14376_s5 + $0xb8] sm:$0xff]  ;;  %v16144_v13 = vld [vmem:[#allocation106_spill] sm:$0xff]  ;;  %v16146_v39 = vld [vmem:[#allocation76_spill] sm:$0xff] }
 0x2f3   :  { %v16137_v41 = vrot.slane %v16136_v54, 2  ;;  %v16139_v3 = vrot.slane %v16138_v38, 2  ;;  %7295 = vmatprep.subr.bf16.mxu1 %v16087_v23  ;;  %v4663_v12 = vadd.f32 %v4659_v40, %v13032_v35  ;;  %v16141_v15 = vrot.slane %v16140_v16, 3  ;;  %v4888_v48 = vld [vmem:[%s14377_s6 + $0x8] sm:$0xff]  ;;  %v16150_v56 = vld [vmem:[#allocation144_spill] sm:$0xff]  ;;  %v4889_v44 = vld [vmem:[%s14377_s6 + $0x10] sm:$0xff] }
 0x2f4   :  { %v13197_v21 = vadd.f32 %v4626_v59, %v4441_v49  ;;  %v16143_v20 = vrot.slane %v16142_v18, 3  ;;  %v7299_v53 = vpack.c.bf16 %v4787_v47, %v4786_v45  ;;  %v7302_v42 = vpack.c.bf16 %v4789_v14, %v4788_v31  ;;  %v16152_v49 = vld [vmem:[#allocation50_spill] sm:$0xff]  ;;  %v4891_v38 = vld [vmem:[%s14377_s6 + $0x20] sm:$0xff]  ;;  %v16162_v14 = vld [vmem:[#allocation169_spill] sm:$0xff] }
 0x2f5   :  { %v2658_v43 = vsel %vm1730_vm3, %v16139_v3, %v16137_v41  ;;  %v4669_v35 = vadd.f32 %v4668_v62, %v4663_v12  ;;  %v16145_v25 = vrot.slane %v16144_v13, 3  ;;  %v16147_v17 = vrot.slane %v16146_v39, 3  ;;  %v4892_v3 = vld [vmem:[%s14377_s6 + $0x28] sm:$0xff]  ;;  %v16156_v47 = vld [vmem:[#allocation136_spill] sm:$0xff]  ;;  %v4893_v18 = vld [vmem:[%s14377_s6 + $0x30] sm:$0xff] }
 0x2f6   :  { %v2674_v46 = vadd.f32 %v2658_v43, %v2475_v0  ;;  %v2840_v50 = vsel %vm2712_vm6, %v16143_v20, %v16141_v15  ;;  %7297 = vmatpush1.bf16.msra.mxu1 %v7296_v4  ;;  %v7305_v36 = vpack.c.bf16 %v4888_v48, %v4887_v2  ;;  %v16149_v10 = vrot.slane %v16148_v30, 3  ;;  %v4890_v0 = vld [vmem:[%s14377_s6 + $0x18] sm:$0xff]  ;;  %v16158_v12 = vld [vmem:[#allocation168_spill] sm:$0xff] }
 0x2f7   :  { %7298 = vmatprep.subr.bf16.mxu1 %v16087_v23  ;;  %v3043_v61 = vsel %vm2712_vm6, %v16147_v17, %v16145_v25  ;;  %v4673_v62 = vmax.f32 %v4669_v35, 0.0  ;;  %v16151_v34 = vrot.slane %v16150_v56, 3  ;;  %v7308_v40 = vpack.c.bf16 %v4890_v0, %v4889_v44  ;;  %v16154_v4 = vld [vmem:[#allocation87_spill] sm:$0xff]  ;;  %v4895_v13 = vld [vmem:[%s14377_s6 + $0x40] sm:$0xff]  ;;  %v4896_v25 = vld [vmem:[%s14377_s6 + $0x48] sm:$0xff] }
 0x2f8   :  { %v2856_v63 = vadd.f32 %v2840_v50, %v2674_v46  ;;  %v16153_v59 = vrot.slane %v16152_v49, 3  ;;  %v16155_v54 = vrot.slane %v16154_v4, 3  ;;  %v7311_v45 = vpack.c.bf16 %v4892_v3, %v4891_v38  ;;  %v4894_v20 = vld [vmem:[%s14377_s6 + $0x38] sm:$0xff]  ;;  %v4903_v7 = vld [vmem:[%s14377_s6 + $0x80] sm:$0xff]  ;;  %v16169_v4 = vld [vmem:[#allocation33_spill] sm:$0xff] }
 0x2f9   :  { %v13237_v8 = vsel %vm4761_vm12, %v4673_v62, %v4750_v19  ;;  %v3242_v58 = vsel %vm2712_vm6, %v16151_v34, %v16149_v10  ;;  %v16157_v46 = vrot.slane %v16156_v47, 3  ;;  %v16159_v16 = vrot.slane %v16158_v12, 3  ;;  %v16165_v19 = vld [vmem:[#allocation175_spill] sm:$0xff]  ;;  %v4897_v62 = vld [vmem:[%s14377_s6 + $0x50] sm:$0xff]  ;;  %v4899_v34 = vld [vmem:[%s14377_s6 + $0x60] sm:$0xff] }
 0x2fa   :  { %7300 = vmatpush1.bf16.msra.mxu1 %v7299_v53  ;;  %v3059_v60 = vadd.f32 %v3043_v61, %v2856_v63  ;;  %v3441_v41 = vsel %vm2712_vm6, %v16155_v54, %v16153_v59  ;;  %v16160_v53 = vld [vmem:[#allocation34_spill] sm:$0xff]  ;;  %v16163_v63 = vrot.slane %v16162_v14, 4  ;;  %v7317_v17 = vpack.c.bf16 %v4896_v25, %v4895_v13  ;;  %v4910_v12 = vld [vmem:[%s14377_s6 + $0xb8] sm:$0xff] }
 0x2fb   :  { %7301 = vmatprep.subr.bf16.mxu1 %v16087_v23  ;;  %v3640_v15 = vsel %vm2712_vm6, %v16159_v16, %v16157_v46  ;;  %v16161_v31 = vrot.slane %v16160_v53, 4  ;;  %v16164_v61 = vrot.slane %v12743_v55, 4  ;;  %v16166_v2 = vrot.slane %v16165_v19, 4  ;;  %v16167_v55 = vld [vmem:[#allocation172_spill] sm:$0xff]  ;;  %v4909_v46 = vld [vmem:[%s14377_s6 + $0xb0] sm:$0xff] }
 0x2fc   :  { %v3258_v9 = vadd.f32 %v3242_v58, %v3059_v60  ;;  %v4898_v60 = vld [vmem:[%s14377_s6 + $0x58] sm:$0xff]  ;;  %v16168_v10 = vrot.slane %v16167_v55, 4  ;;  %v4900_v58 = vld [vmem:[%s14377_s6 + $0x68] sm:$0xff]  ;;  %v4423_v51 = vsel %vm3694_vm7, %v4418_v11, %v4422_v29  ;;  %v4622_v1 = vsel %vm3694_vm7, %v4617_v57, %v4621_v24 }
 0x2fd   :  { %v3822_v35 = vsel %vm3694_vm7, %v16163_v63, %v16161_v31  ;;  %v4025_v48 = vsel %vm3694_vm7, %v16166_v2, %v16164_v61  ;;  %v7320_v30 = vpack.c.bf16 %v4898_v60, %v4897_v62  ;;  %v7323_v0 = vpack.c.bf16 %v4900_v58, %v4899_v34  ;;  %v4904_v29 = vld [vmem:[%s14377_s6 + $0x88] sm:$0xff]  ;;  %v4906_v57 = vld [vmem:[%s14377_s6 + $0x98] sm:$0xff] }
 0x2fe   :  { %7303 = vmatpush1.bf16.msra.mxu1 %v7302_v42  ;;  %v3457_v43 = vadd.f32 %v3441_v41, %v3258_v9  ;;  %v7314_v42 = vpack.c.bf16 %v4894_v20, %v4893_v18  ;;  %v4224_v56 = vsel %vm3694_vm7, %v16168_v10, %v4223_v52  ;;  %v4901_v52 = vld [vmem:[%s14377_s6 + $0x70] sm:$0xff]  ;;  %v4902_v9 = vld [vmem:[%s14377_s6 + $0x78] sm:$0xff]  ;;  %v7329_v6 = vpack.c.bf16 %v4904_v29, %v4903_v7  ;;  %v5001_v29 = vld [vmem:[%s14378_s7 + $0x8] sm:$0x3f] }
 0x2ff   :  { %7304 = vmatprep.subr.bf16.mxu1 %v16087_v23  ;;  %v7326_v49 = vpack.c.bf16 %v4902_v9, %v4901_v52  ;;  %v7332_v3 = vpack.c.bf16 %v4906_v57, %v4905_v26  ;;  %v7338_v16 = vpack.c.bf16 %v4910_v12, %v4909_v46  ;;  %v16170_v18 = vld [vmem:[#allocation94_spill] sm:$0xff]  ;;  %v16171_v31 = vld [vmem:[#allocation107_spill] sm:$0xff] }
 0x300   :  { %v3656_v50 = vadd.f32 %v3640_v15, %v3457_v43  ;;  %v4907_v43 = vld [vmem:[%s14377_s6 + $0xa0] sm:$0xff] }
 0x301   :  { %4867 = vmatmul.mubr.f32.vlgmr.msra.gmra.mrb[0].mxu1 %v13237_v8 }
 0x302   :  { %7306 = vmatpush1.bf16.msra.mxu1 %v7305_v36  ;;  %v3838_v39 = vadd.f32 %v3822_v35, %v3656_v50 }
 0x303   :  { %7307 = vmatprep.subr.bf16.mxu1 %v16087_v23 }
 0x304   :  { %v4041_v36 = vadd.f32 %v4025_v48, %v3838_v39  ;;  %v4675_v39 = vmax.f32 %v13145_v33, 0.0 }
 0x306   :  { %7309 = vmatpush1.bf16.msra.mxu1 %v7308_v40  ;;  %v4240_v44 = vadd.f32 %v4224_v56, %v4041_v36 }
 0x307   :  { %7310 = vmatprep.subr.bf16.mxu1 %v16087_v23 }
 0x308   :  { %v4439_v40 = vadd.f32 %v4423_v51, %v4240_v44 }
 0x30a   :  { %7312 = vmatpush1.bf16.msra.mxu1 %v7311_v45  ;;  %v4638_v59 = vadd.f32 %v4622_v1, %v4439_v40  ;;  %v4908_v45 = vld [vmem:[%s14377_s6 + $0xa8] sm:$0xff] }
 0x30b   :  { %7313 = vmatprep.subr.bf16.mxu1 %v16087_v23  ;;  %v7335_v47 = vpack.c.bf16 %v4908_v45, %v4907_v43  ;;  %v6996_v43 = vld [vmem:[%s14374_s3 + $0xf] ss:$0 sm:$0xff] }
 0x30e   :  { %7315 = vmatpush1.bf16.msra.mxu1 %v7314_v42  ;;  %v4674_v42 = vmax.f32 %v13178_v37, 0.0 }
 0x30f   :  { %7316 = vmatprep.subr.bf16.mxu1 %v16087_v23 }
 0x312   :  { %7318 = vmatpush1.bf16.msra.mxu1 %v7317_v17 }
 0x313   :  { %7319 = vmatprep.subr.bf16.mxu1 %v16087_v23 }
 0x315   :  { %v4718_v11 = vpop.permute.xlu0 %4717 }
 0x316   :  { %7321 = vmatpush1.bf16.msra.mxu1 %v7320_v30  ;;  %v4728_v54 = vadd.f32 %v4718_v11, %v16169_v4  ;;  %v16172_v11 = vmov 0 }
 0x317   :  { %7322 = vmatprep.subr.bf16.mxu1 %v16087_v23  ;;  %v16173_v11 = vsel %vm13391_vm15, 4294967295, %v16172_v11 }
 0x318   :  { %v4732_v41 = vadd.f32 %v4728_v54, %v4638_v59  ;;  %16174 = vst [vmem:[#allocation36_spill] sm:$0xff] %v16173_v11  ;;  %v5088_v59 = vld [vmem:[%s14379_s8 + $0x8] sm:$0x3f] }
 0x31a   :  { %7324 = vmatpush1.bf16.msra.mxu1 %v7323_v0  ;;  %v4738_v24 = vadd.f32 %v13077_v32, %v4732_v41 }
 0x31b   :  { %7325 = vmatprep.subr.bf16.mxu1 %v16087_v23 }
 0x31c   :  { %v4742_v38 = vmax.f32 %v4738_v24, 0.0  ;;  %v6980_v24 = vld [vmem:[%s14374_s3 + $0x3] ss:$0 sm:$0xff] }
 0x31e   :  { %7327 = vmatpush1.bf16.msra.mxu1 %v7326_v49  ;;  %6952 = vmatprep.mubr.msk.f32.mxu1 %vm4761_vm12, %v4742_v38  ;;  %v4720_v15 = vpop.permute.xlu0 %4719 }
 0x31f   :  { %7328 = vmatprep.subr.bf16.mxu1 %v16087_v23  ;;  %v4729_v20 = vadd.f32 %v4720_v15, %v16170_v18 }
 0x321   :  { %v4733_v53 = vadd.f32 %v4729_v20, %v13197_v21 }
 0x322   :  { %7330 = vmatpush1.bf16.msra.mxu1 %v7329_v6 }
 0x323   :  { %7331 = vmatprep.subr.bf16.mxu1 %v16087_v23  ;;  %v4739_v63 = vadd.f32 %v13077_v32, %v4733_v53 }
 0x325   :  { %v4743_v17 = vmax.f32 %v4739_v63, 0.0 }
 0x326   :  { %7333 = vmatpush1.bf16.msra.mxu1 %v7332_v3  ;;  %v6981_v3 = vld [vmem:[%s14374_s3 + $0xc] ss:$0 sm:$0xff] }
 0x327   :  { %7334 = vmatprep.subr.bf16.mxu1 %v16087_v23 }
 0x32a   :  { %7336 = vmatpush1.bf16.msra.mxu1 %v7335_v47 }
 0x32b   :  { %7337 = vmatprep.subr.bf16.mxu1 %v16087_v23  ;;  %v4722_v50 = vpop.permute.xlu0 %4721 }
 0x32c   :  { %v4730_v14 = vadd.f32 %v4722_v50, %v16171_v31 }
 0x32e   :  { %7339 = vmatpush1.bf16.msra.mxu1 %v7338_v16  ;;  %v4734_v35 = vadd.f32 %v4730_v14, %v13192_v27  ;;  %v4676_v27 = vmax.f32 %v13147_v5, 0.0 }
 0x330   :  { %v4740_v61 = vadd.f32 %v13077_v32, %v4734_v35  ;;  %v5000_v32 = vld [vmem:[%s14378_s7] sm:$0xff]  ;;  %s7693_s7 = smov 82  }
 0x331   :  { %7141 = vmatprep.mubr.msk.f32.mxu0 %vm5002_vm13, %v5000_v32 }
 0x332   :  { %v4744_v2 = vmax.f32 %v4740_v61, 0.0  ;;  %v6998_v61 = vld [vmem:[%s14374_s3 + $0x21] ss:$0 sm:$0xff] }
 0x350   :  { %v4754_v25 = vpop.permute.xlu0 %4753 }
 0x351   :  { %v4752_v13 = vpop.permute.xlu1 %4751  ;;  %v4764_v21 = vsel %vm4761_vm12, %v4675_v39, %v4754_v25 }
 0x352   :  { %v4763_v19 = vsel %vm4761_vm12, %v4674_v42, %v4752_v13  ;;  %v6982_v42 = vld [vmem:[%s14374_s3 + $0x15] ss:$0 sm:$0xff]  ;;  %v6997_v13 = vld [vmem:[%s14374_s3 + $0x18] ss:$0 sm:$0xff] }
 0x353   :  { %4872 = vmatmul.mubr.f32.gmra.mrb[2].mxu1 %v4763_v19 }
 0x354   :  { %6953 = vmatprep.mubr.msk.f32.mxu1 %vm4761_vm12, %v4743_v17 }
 0x355   :  { %v4756_v48 = vpop.permute.xlu1 %4755 }
 0x356   :  { %v4765_v37 = vsel %vm4761_vm12, %v4676_v27, %v4756_v48 }
 0x357   :  { %4877 = vmatmul.mubr.f32.gmra.mrb[4].mxu1 %v4764_v21 }
 0x358   :  { %6954 = vmatprep.mubr.msk.f32.mxu1 %vm4761_vm12, %v4744_v2 }
 0x35b   :  { %4882 = vmatmul.mubr.f32.gmra.mrb[6].mxu1 %v4765_v37 }
 0x35c   :  { %6955 = vmatprep.mubr.msk.f32.mxu1 %vm4761_vm12, %v4741_v22 }
 0x35f   :  { %4976 = vmatmul.mubr.f32.vlgmr.msra.gmra.mrb[8].mxu1 %v13237_v8 }
 0x360   :  { %6956 = vmatprep.mubr.msk.f32.mxu1 %vm4761_vm12, %v4742_v38  ;;  %v6995_v38 = vld [vmem:[%s14374_s3 + $0x6] ss:$0 sm:$0xff] }
 0x363   :  { %4981 = vmatmul.mubr.f32.gmra.mrb[10].mxu1 %v4763_v19 }
 0x364   :  { %6957 = vmatprep.mubr.msk.f32.mxu1 %vm4761_vm12, %v4743_v17  ;;  %v6983_v17 = vld [vmem:[%s14374_s3 + $0x1e] ss:$0 sm:$0xff] }
 0x367   :  { %4986 = vmatmul.mubr.f32.gmra.mrb[12].mxu1 %v4764_v21 }
 0x368   :  { %6958 = vmatprep.mubr.msk.f32.mxu1 %vm4761_vm12, %v4744_v2 }
 0x36b   :  { %4991 = vmatmul.mubr.f32.gmra.mrb[14].mxu1 %v4765_v37 }
 0x36c   :  { %7152 = vmatprep.mubr.msk.f32.mxu1 %vm5002_vm13, %v5087_v28 }
 0x3d4   :  { %v4868_v22 = vpop.f32.mrb[0].mxu1 }
 0x3d5   :  { %v4870_v33 = vpop.f32.mrb[1].mxu1 }
 0x426   :  { %v4873_v5 = vpop.f32.mrb[2].mxu1 }
 0x427   :  { %v4875_v8 = vpop.f32.mrb[3].mxu1 }
 0x42a   :  { %v4878_v62 = vpop.f32.mrb[4].mxu1 }
 0x42b   :  { %v4880_v60 = vpop.f32.mrb[5].mxu1 }
 0x42e   :  { %v4883_v36 = vpop.f32.mrb[6].mxu1 }
 0x42f   :  { %v4885_v30 = vpop.f32.mrb[7].mxu1 }
 0x432   :  { %v4977_v55 = vpop.f32.mrb[8].mxu1 }
 0x433   :  { %v4996_v10 = vmax.f32 %v4868_v22, %v4977_v55  ;;  %v4979_v56 = vpop.f32.mrb[9].mxu1 }
 0x436   :  { %v4982_v34 = vpop.f32.mrb[10].mxu1 }
 0x437   :  { %v4997_v58 = vmax.f32 %v4873_v5, %v4982_v34  ;;  %v4984_v44 = vpop.f32.mrb[11].mxu1 }
 0x439   :  { %v7340_v0 = vpack.c.bf16 %v4997_v58, %v4996_v10 }
 0x43a   :  { %v4987_v51 = vpop.f32.mrb[12].mxu1 }
 0x43b   :  { %v4998_v52 = vmax.f32 %v4878_v62, %v4987_v51  ;;  %v4989_v9 = vpop.f32.mrb[13].mxu1  ;;  %7341 = vmatprep.subr.bf16.mxu0 %v7340_v0  ;;  %7351 = vmatprep.subr.bf16.mxu1 %v7340_v0 }
 0x43c   :  { %7343 = vmatpush3.bf16.msra.mxu0 %v7340_v0  ;;  %7353 = vmatpush3.bf16.msra.mxu1 %v7340_v0 }
 0x43e   :  { %v4992_v40 = vpop.f32.mrb[14].mxu1 }
 0x43f   :  { %v4999_v49 = vmax.f32 %v4883_v36, %v4992_v40  ;;  %v4994_v1 = vpop.f32.mrb[15].mxu1 }
 0x441   :  { %v7344_v7 = vpack.c.bf16 %v4999_v49, %v4998_v52  ;;  %v6984_v52 = vld [vmem:[%s14374_s3 + $0x27] ss:$0 sm:$0xff]  ;;  %v6999_v49 = vld [vmem:[%s14374_s3 + $0x2a] ss:$0 sm:$0xff] }
 0x443   :  { %7346 = vmatprep.subr.msk.bf16.mxu0 %vm13391_vm15, %v7344_v7  ;;  %7356 = vmatprep.subr.msk.bf16.mxu1 %vm13391_vm15, %v7344_v7 }
 0x444   :  { %7349 = vmatpush3.bf16.msk.msra.mxu0 %vm13391_vm15, %v7344_v7  ;;  %7359 = vmatpush3.bf16.msk.msra.mxu1 %vm13391_vm15, %v7344_v7 }
 0x447   :  { %7142 = vmatmul.mubr.msk.f32.vlgmr.msra.gmra.mrb[0].mxu0 %vm5002_vm13, %v5001_v29  ;;  %7153 = vmatmul.mubr.msk.f32.vlgmr.msra.gmra.mrb[16].mxu1 %vm5002_vm13, %v5088_v59 }
 0x51a   :  { %v7143_v4 = vpop.f32.mrb[0].mxu0  ;;  %v7154_v54 = vpop.f32.mrb[16].mxu1 }
 0x51b   :  { %v13411_v41 = vmax.f32 %v7143_v4, %v7154_v54  ;;  %v5078_v6 = vpop.f32.mrb[1].mxu0  ;;  %v5161_v26 = vpop.f32.mrb[17].mxu1 }
 0x51c   :  { %v13413_v57 = vmax.f32 %v5078_v6, %v5161_v26 }
 0x51d   :  { %16175 = vst [vmem:[#allocation146_spill] sm:$0xff] %v13411_v41  ;;  %5227 = vrot.lane.b32.xlu1 %v13411_v41, %s7692_s0  ;;  %5221 = vrot.lane.b32.xlu0 %v13411_v41, %s7682_s21  ;;  %v13440_v45 = vmul.f32 %v6980_v24, %v13411_v41  ;;  %v13443_v47 = vmul.f32 %v6995_v38, %v13411_v41 }
 0x51e   :  { %v5344_v46 = vmul.f32 %v6980_v24, %v13413_v57  ;;  %v5584_v12 = vmul.f32 %v6995_v38, %v13413_v57  ;;  %v13448_v16 = vmul.f32 %v6981_v3, %v13411_v41  ;;  %v13451_v15 = vmul.f32 %v6996_v43, %v13411_v41  ;;  %v6966_v24 = vld [vmem:[%s14374_s3 + $0x9] ss:$0 sm:$0xff]  ;;  %v6965_v38 = vld [vmem:[%s14374_s3] ss:$0 sm:$0xff] }
 0x51f   :  { %v5360_v18 = vmul.f32 %v6981_v3, %v13413_v57  ;;  %v5600_v20 = vmul.f32 %v6996_v43, %v13413_v57  ;;  %v15001_v50 = vrot.slane %v13440_v45, 1  ;;  %v14997_v53 = vrot.slane %v13443_v47, 2 }
 0x520   :  { %v5348_v31 = vrot.slane %v5344_v46, 1  ;;  %v5588_v14 = vrot.slane %v5584_v12, 2  ;;  %v15002_v63 = vrot.slane %v13448_v16, 1  ;;  %v14998_v35 = vrot.slane %v13451_v15, 2  ;;  %v6967_v46 = vld [vmem:[%s14374_s3 + $0x12] ss:$0 sm:$0xff] }
 0x521   :  { %5225 = vrot.lane.b32.xlu1 %v13413_v57, %s7692_s0  ;;  %5219 = vrot.lane.b32.xlu0 %v13413_v57, %s7682_s21  ;;  %v5364_v25 = vrot.slane %v5360_v18, 1  ;;  %v5604_v39 = vrot.slane %v5600_v20, 2  ;;  %v13482_v2 = vmul.f32 %v6982_v42, %v13411_v41  ;;  %v13485_v48 = vmul.f32 %v6997_v13, %v13411_v41  ;;  %v6968_v12 = vld [vmem:[%s14374_s3 + $0x1b] ss:$0 sm:$0xff]  ;;  %v13575_v20 = vld [vmem:[%s14374_s3 + $0xa] ss:$0 sm:$0xff] }
 0x522   :  { %v13474_v19 = vsel %vm748_vm0, %v5348_v31, %v15001_v50  ;;  %v13479_v21 = vsel %vm1730_vm3, %v5588_v14, %v14997_v53  ;;  %v5376_v27 = vmul.f32 %v6982_v42, %v13413_v57  ;;  %v5616_v37 = vmul.f32 %v6997_v13, %v13413_v57  ;;  %v6986_v31 = vld [vmem:[%s14374_s3 + $0xd] ss:$0 sm:$0xff]  ;;  %v13583_v14 = vld [vmem:[%s14374_s3 + $0x24] ss:$0 sm:$0xff]  ;;  %v7001_v13 = vld [vmem:[%s14374_s3 + $0x10] ss:$0 sm:$0xff] }
 0x523   :  { %16176 = vst [vmem:[#allocation49_spill] sm:$0xff] %v13479_v21  ;;  %v13490_v32 = vmul.f32 %v6983_v17, %v13411_v41  ;;  %v13493_v28 = vmul.f32 %v6998_v61, %v13411_v41  ;;  %v5392_v22 = vmul.f32 %v6983_v17, %v13413_v57  ;;  %v5632_v33 = vmul.f32 %v6998_v61, %v13413_v57  ;;  %v6985_v17 = vld [vmem:[%s14374_s3 + $0x4] ss:$0 sm:$0xff]  ;;  %v7000_v61 = vld [vmem:[%s14374_s3 + $0x7] ss:$0 sm:$0xff] }
 0x524   :  { %v13500_v5 = vsel %vm748_vm0, %v5364_v25, %v15002_v63  ;;  %v13505_v8 = vsel %vm1730_vm3, %v5604_v39, %v14998_v35  ;;  %v15000_v62 = vrot.slane %v13482_v2, 1  ;;  %v14996_v60 = vrot.slane %v13485_v48, 2  ;;  %16186 = vst [vmem:[#allocation28_spill] sm:$0xff] %v13583_v14  ;;  %v13593_v39 = vld [vmem:[%s14374_s3 + $0x1] ss:$0 sm:$0xff] }
 0x525   :  { %5285 = vrot.lane.b32.xlu1 %v13413_v57, %s7693_s7  ;;  %5279 = vrot.lane.b32.xlu0 %v13413_v57, %s7681_s20  ;;  %16177 = vst [vmem:[#allocation149_spill] sm:$0xff] %v13505_v8  ;;  %v5380_v36 = vrot.slane %v5376_v27, 1  ;;  %v5620_v30 = vrot.slane %v5616_v37, 2  ;;  %v14999_v55 = vrot.slane %v13490_v32, 1  ;;  %v14995_v10 = vrot.slane %v13493_v28, 2 }
 0x526   :  { %v5396_v56 = vrot.slane %v5392_v22, 1  ;;  %v5636_v34 = vrot.slane %v5632_v33, 2  ;;  %v5408_v9 = vmul.f32 %v6984_v52, %v13413_v57  ;;  %v13536_v40 = vmul.f32 %v6984_v52, %v13411_v41  ;;  %v13605_v37 = vld [vmem:[%s14374_s3 + $0x13] ss:$0 sm:$0xff]  ;;  %v6987_v22 = vld [vmem:[%s14374_s3 + $0x16] ss:$0 sm:$0xff] }
 0x527   :  { %v13514_v58 = vsel %vm748_vm0, %v5380_v36, %v15000_v62  ;;  %v13519_v44 = vsel %vm1730_vm3, %v5620_v30, %v14996_v60  ;;  %v5648_v1 = vmul.f32 %v6999_v49, %v13413_v57  ;;  %v13543_v7 = vmul.f32 %v6999_v49, %v13411_v41  ;;  %v6991_v35 = vld [vmem:[%s14374_s3 + $0xe] ss:$0 sm:$0xff]  ;;  %v6990_v50 = vld [vmem:[%s14374_s3 + $0x5] ss:$0 sm:$0xff] }
 0x528   :  { %16178 = vst [vmem:[#allocation24_spill] sm:$0xff] %v13514_v58  ;;  %16179 = vst [vmem:[#allocation109_spill] sm:$0xff] %v13519_v44  ;;  %v13524_v0 = vsel %vm748_vm0, %v5396_v56, %v14999_v55  ;;  %v13529_v51 = vsel %vm1730_vm3, %v5636_v34, %v14995_v10  ;;  %v5412_v29 = vrot.slane %v5408_v9, 1  ;;  %v14994_v59 = vrot.slane %v13536_v40, 1 }
 0x529   :  { %5287 = vrot.lane.b32.xlu1 %v13411_v41, %s7693_s7  ;;  %5281 = vrot.lane.b32.xlu0 %v13411_v41, %s7681_s20  ;;  %16180 = vst [vmem:[#allocation51_spill] sm:$0xff] %v13524_v0  ;;  %16181 = vst [vmem:[#allocation38_spill] sm:$0xff] %v13529_v51  ;;  %v5652_v4 = vrot.slane %v5648_v1, 2  ;;  %v14993_v54 = vrot.slane %v13543_v7, 2  ;;  %v5187_v42 = vmul.f32 %v6966_v24, %v13411_v41 }
 0x52a   :  { %16182 = vst [vmem:[#allocation150_spill] sm:$0xff] %v13536_v40  ;;  %16183 = vst [vmem:[#allocation118_spill] sm:$0xff] %v13543_v7  ;;  %v13550_v6 = vsel %vm748_vm0, %v5412_v29, %v14994_v59  ;;  %v5178_v25 = vmul.f32 %v6965_v38, %v13411_v41  ;;  %v5196_v27 = vmul.f32 %v6967_v46, %v13411_v41  ;;  %v13732_v7 = vld [vmem:[%s14374_s3 + $0x2] ss:$0 sm:$0xff] }
 0x52b   :  { %16184 = vst [vmem:[#allocation25_spill] sm:$0xff] %v13550_v6  ;;  %v13555_v26 = vsel %vm1730_vm3, %v5652_v4, %v14993_v54  ;;  %v13611_v33 = vmul.f32 %v6968_v12, %v13411_v41  ;;  %v13614_v36 = vmul.f32 %v6965_v38, %v13413_v57  ;;  %v13617_v30 = vmul.f32 %v6966_v24, %v13413_v57 }
 0x52c   :  { %16185 = vst [vmem:[#allocation113_spill] sm:$0xff] %v13555_v26  ;;  %v13622_v9 = vmul.f32 %v6967_v46, %v13413_v57  ;;  %v13625_v49 = vmul.f32 %v6968_v12, %v13413_v57  ;;  %v13629_v1 = vmul.f32 %v13583_v14, %v13413_v57  ;;  %v13749_v26 = vld [vmem:[%s14374_s3 + $0x14] ss:$0 sm:$0xff] }
 0x52e   :  { %16187 = vst [vmem:[#allocation35_spill] sm:$0xff] %v13625_v49  ;;  %16188 = vst [vmem:[#allocation152_spill] sm:$0xff] %v13629_v1 }
 0x58f   :  { %v5228_v3 = vpop.permute.xlu1 %5227  ;;  %v5222_v43 = vpop.permute.xlu0 %5221 }
 0x590   :  { %v13570_v18 = vsel %vm5231_vm1, %v5222_v43, %v5228_v3  ;;  %v7002_v3 = vld [vmem:[%s14374_s3 + $0x19] ss:$0 sm:$0xff] }
 0x591   :  { %v5249_v52 = vmul.f32 %v13575_v20, %v13570_v18  ;;  %v13635_v4 = vmul.f32 %v6986_v31, %v13570_v18  ;;  %v13638_v24 = vmul.f32 %v7001_v13, %v13570_v18  ;;  %v5240_v38 = vmul.f32 %v13593_v39, %v13570_v18 }
 0x592   :  { %v13646_v43 = vmul.f32 %v6985_v17, %v13570_v18  ;;  %v13649_v57 = vmul.f32 %v7000_v61, %v13570_v18  ;;  %v5258_v46 = vmul.f32 %v13605_v37, %v13570_v18  ;;  %v13654_v12 = vmul.f32 %v6987_v22, %v13570_v18 }
 0x593   :  { %v5226_v56 = vpop.permute.xlu1 %5225  ;;  %v5220_v34 = vpop.permute.xlu0 %5219  ;;  %v5251_v53 = vadd.f32 %v5249_v52, %v5187_v42  ;;  %v5242_v62 = vadd.f32 %v5240_v38, %v5178_v25  ;;  %v7007_v38 = vld [vmem:[%s14374_s3 + $0x1a] ss:$0 sm:$0xff]  ;;  %v13724_v52 = vld [vmem:[%s14374_s3 + $0xb] ss:$0 sm:$0xff] }
 0x594   :  { %v13632_v29 = vsel %vm5231_vm1, %v5220_v34, %v5226_v56  ;;  %v5260_v23 = vadd.f32 %v5258_v46, %v5196_v27 }
 0x595   :  { %v13657_v56 = vmul.f32 %v6986_v31, %v13632_v29  ;;  %v13660_v34 = vmul.f32 %v7001_v13, %v13632_v29  ;;  %v13663_v54 = vmul.f32 %v6985_v17, %v13632_v29  ;;  %v13666_v59 = vmul.f32 %v7000_v61, %v13632_v29  ;;  %v7006_v31 = vld [vmem:[%s14374_s3 + $0x11] ss:$0 sm:$0xff] }
 0x596   :  { %v13675_v13 = vmul.f32 %v6987_v22, %v13632_v29  ;;  %v13678_v17 = vmul.f32 %v7002_v3, %v13632_v29  ;;  %v13681_v61 = vmul.f32 %v7002_v3, %v13570_v18  ;;  %v7005_v22 = vld [vmem:[%s14374_s3 + $0x8] ss:$0 sm:$0xff]  ;;  %v6992_v3 = vld [vmem:[%s14374_s3 + $0x17] ss:$0 sm:$0xff] }
 0x597   :  { %v5286_v10 = vpop.permute.xlu1 %5285  ;;  %v5280_v60 = vpop.permute.xlu0 %5279 }
 0x598   :  { %16189 = vst [vmem:[#allocation139_spill] sm:$0xff] %v13675_v13  ;;  %16190 = vst [vmem:[#allocation42_spill] sm:$0xff] %v13678_v17  ;;  %v13684_v55 = vsel %vm5291_vm2, %v5280_v60, %v5286_v10  ;;  %v13700_v10 = vld [vmem:[%s14374_s3 + $0x1c] ss:$0 sm:$0xff]  ;;  %v6988_v17 = vld [vmem:[%s14374_s3 + $0x1f] ss:$0 sm:$0xff] }
 0x599   :  { %v13710_v60 = vmul.f32 %v6991_v35, %v13684_v55  ;;  %v13727_v11 = vmul.f32 %v7006_v31, %v13684_v55  ;;  %v13735_v63 = vmul.f32 %v6990_v50, %v13684_v55  ;;  %v13744_v40 = vmul.f32 %v7005_v22, %v13684_v55 }
 0x59a   :  { %v13752_v51 = vmul.f32 %v6992_v3, %v13684_v55  ;;  %v13763_v44 = vmul.f32 %v7007_v38, %v13684_v55  ;;  %v13766_v6 = vmul.f32 %v6988_v17, %v13632_v29 }
 0x59b   :  { %v5288_v27 = vpop.permute.xlu1 %5287  ;;  %v5282_v46 = vpop.permute.xlu0 %5281  ;;  %v5508_v21 = vrot.slane %v13735_v63, 1  ;;  %v7003_v63 = vld [vmem:[%s14374_s3 + $0x22] ss:$0 sm:$0xff] }
 0x59c   :  { %v13719_v42 = vsel %vm5291_vm2, %v5282_v46, %v5288_v27  ;;  %v5267_v27 = vmul.f32 %v13700_v10, %v13570_v18  ;;  %16191 = vst [vmem:[#allocation27_spill] sm:$0xff] %v13763_v44  ;;  %v13780_v44 = vld [vmem:[%s14374_s3 + $0x1d] ss:$0 sm:$0xff] }
 0x59d   :  { %v5309_v46 = vmul.f32 %v13724_v52, %v13719_v42  ;;  %v5300_v25 = vmul.f32 %v13732_v7, %v13719_v42  ;;  %v13758_v14 = vmul.f32 %v6991_v35, %v13719_v42  ;;  %v5318_v41 = vmul.f32 %v13749_v26, %v13719_v42 }
 0x59e   :  { %v13770_v58 = vmul.f32 %v6990_v50, %v13719_v42  ;;  %v13774_v49 = vmul.f32 %v6992_v3, %v13719_v42  ;;  %v5269_v13 = vadd.f32 %v5267_v27, %v13611_v33  ;;  %v16193_v50 = vrot.slane %v13440_v45, 1 }
 0x59f   :  { %v5311_v8 = vadd.f32 %v5309_v46, %v5251_v53  ;;  %v5302_v1 = vadd.f32 %v5300_v25, %v5242_v62  ;;  %v5320_v35 = vadd.f32 %v5318_v41, %v5260_v23  ;;  %v16192_v53 = vrot.slane %v13448_v16, 1 }
 0x5a0   :  { %v13785_v62 = vmul.f32 %v7006_v31, %v13719_v42  ;;  %v5327_v23 = vmul.f32 %v13780_v44, %v13719_v42  ;;  %v15012_v41 = vrot.slane %v13758_v14, 1  ;;  %v13793_v33 = vmul.f32 %v7005_v22, %v13719_v42  ;;  %v6993_v22 = vld [vmem:[%s14374_s3 + $0x20] ss:$0 sm:$0xff] }
 0x5a1   :  { %v5370_v46 = vadd.f32 %v16192_v53, %v5311_v8  ;;  %v5354_v25 = vadd.f32 %v16193_v50, %v5302_v1  ;;  %v16194_v3 = vrot.slane %v13482_v2, 1  ;;  %v13798_v16 = vmul.f32 %v6988_v17, %v13570_v18 }
 0x5a2   :  { %v16195_v8 = vrot.slane %v13635_v4, 1  ;;  %v16196_v45 = vrot.slane %v13646_v43, 1  ;;  %v5509_v53 = vrot.slane %v13770_v58, 1  ;;  %v5329_v50 = vadd.f32 %v5327_v23, %v5269_v13 }
 0x5a3   :  { %v5386_v27 = vadd.f32 %v16194_v3, %v5320_v35  ;;  %v16197_v2 = vrot.slane %v13654_v12, 1  ;;  %v5541_v17 = vrot.slane %v13774_v49, 1  ;;  %v13813_v3 = vmul.f32 %v6993_v22, %v13719_v42 }
 0x5a4   :  { %v5450_v31 = vadd.f32 %v16195_v8, %v5370_v46  ;;  %v5434_v1 = vadd.f32 %v16196_v45, %v5354_v25  ;;  %v16198_v58 = vrot.slane %v13490_v32, 1  ;;  %v5477_v23 = vrot.slane %v13798_v16, 1 }
 0x5a5   :  { %v5466_v35 = vadd.f32 %v16197_v2, %v5386_v27  ;;  %v5748_v8 = vrot.slane %v13744_v40, 2  ;;  %v5749_v45 = vrot.slane %v13793_v33, 2  ;;  %v16200_v32 = vrot.slane %v13443_v47, 2 }
 0x5a6   :  { %v5530_v46 = vadd.f32 %v15012_v41, %v5450_v31  ;;  %v5514_v25 = vadd.f32 %v5509_v53, %v5434_v1  ;;  %v5402_v13 = vadd.f32 %v16198_v58, %v5329_v50  ;;  %v16199_v31 = vrot.slane %v13451_v15, 2 }
 0x5a7   :  { %v5546_v2 = vadd.f32 %v5541_v17, %v5466_v35  ;;  %v5557_v0 = vrot.slane %v13813_v3, 1  ;;  %v16201_v41 = vrot.slane %v13485_v48, 2  ;;  %v13838_v40 = vmul.f32 %v7007_v38, %v13719_v42  ;;  %v7008_v48 = vld [vmem:[%s14374_s3 + $0x23] ss:$0 sm:$0xff] }
 0x5a8   :  { %v5610_v1 = vadd.f32 %v16199_v31, %v5530_v46  ;;  %v5594_v50 = vadd.f32 %v16200_v32, %v5514_v25  ;;  %v5482_v58 = vadd.f32 %v5477_v23, %v5402_v13  ;;  %v13841_v33 = vmul.f32 %v6993_v22, %v13684_v55 }
 0x5a9   :  { %v5626_v27 = vadd.f32 %v16201_v41, %v5546_v2  ;;  %v13844_v15 = vmul.f32 %v7003_v63, %v13570_v18  ;;  %v16202_v47 = vrot.slane %v13638_v24, 2  ;;  %v16203_v46 = vrot.slane %v13649_v57, 2 }
 0x5aa   :  { %v5562_v13 = vadd.f32 %v5557_v0, %v5482_v58  ;;  %v5239_v38 = vmul.f32 %v13593_v39, %v13632_v29  ;;  %v5540_v41 = vrot.slane %v13752_v51, 1  ;;  %v16204_v22 = vrot.slane %v13681_v61, 2 }
 0x5ab   :  { %v5690_v35 = vadd.f32 %v16202_v47, %v5610_v1  ;;  %v5674_v25 = vadd.f32 %v16203_v46, %v5594_v50  ;;  %v5476_v31 = vrot.slane %v13766_v6, 1  ;;  %v5299_v1 = vmul.f32 %v13732_v7, %v13684_v55 }
 0x5ac   :  { %v5706_v2 = vadd.f32 %v16204_v22, %v5626_v27  ;;  %v16205_v32 = vrot.slane %v13785_v62, 2  ;;  %v16206_v47 = vrot.slane %v13493_v28, 2  ;;  %v5241_v39 = vadd.f32 %v5239_v38, %v13614_v36 }
 0x5ad   :  { %v13867_v58 = vadd.f32 %v5749_v45, %v5674_v25  ;;  %v5781_v51 = vrot.slane %v13838_v40, 2  ;;  %v5556_v27 = vrot.slane %v13841_v33, 1  ;;  %v13875_v6 = vmul.f32 %v7003_v63, %v13632_v29 }
 0x5ae   :  { %v13865_v50 = vadd.f32 %v16205_v32, %v5690_v35  ;;  %v5642_v46 = vadd.f32 %v16206_v47, %v5562_v13  ;;  %v13878_v7 = vmul.f32 %v7008_v48, %v13684_v55  ;;  %v5717_v28 = vrot.slane %v13844_v15, 2 }
 0x5af   :  { %5823 = vrot.lane.b32.xlu0 %v13867_v58, %s7695_s22  ;;  %v13886_v36 = vmul.f32 %v7008_v48, %v13719_v42  ;;  %v5301_v35 = vadd.f32 %v5299_v1, %v5241_v39  ;;  %v5248_v63 = vmul.f32 %v13575_v20, %v13632_v29  ;;  %v13892_v25 = vadd.f32 %v5781_v51, %v5706_v2 }
 0x5b0   :  { %5855 = vrot.lane.b32.xlu1 %v13865_v50, %s7694_s18  ;;  %v16207_v13 = vrot.slane %v13646_v43, 1  ;;  %v16208_v38 = vrot.slane %v13663_v54, 1  ;;  %v5510_v32 = vsel %vm748_vm0, %v5508_v21, %v5509_v53  ;;  %v5308_v48 = vmul.f32 %v13724_v52, %v13684_v55 }
 0x5b1   :  { %v5722_v1 = vadd.f32 %v5717_v28, %v5642_v46  ;;  %v5353_v20 = vadd.f32 %v13474_v19, %v5301_v35  ;;  %v16209_v47 = vrot.slane %v13649_v57, 2  ;;  %v16210_v2 = vrot.slane %v13666_v59, 2 }
 0x5b2   :  { %v5430_v22 = vsel %vm748_vm0, %v16208_v38, %v16207_v13  ;;  %v5250_v54 = vadd.f32 %v5248_v63, %v13617_v30  ;;  %v5750_v39 = vsel %vm1730_vm3, %v5748_v8, %v5749_v45  ;;  %v16211_v21 = vrot.slane %v13635_v4, 1 }
 0x5b3   :  { %v5670_v43 = vsel %vm1730_vm3, %v16210_v2, %v16209_v47  ;;  %v16212_v53 = vrot.slane %v13657_v56, 1  ;;  %v5257_v46 = vmul.f32 %v13605_v37, %v13632_v29  ;;  %v5317_v19 = vmul.f32 %v13749_v26, %v13684_v55  ;;  %5847 = vrot.lane.b32.xlu0 %v13865_v50, %s7695_s22  ;;  %v16222_v47 = vld [vmem:[#allocation24_spill] sm:$0xff] }
 0x5b4   :  { %5871 = vrot.lane.b32.xlu1 %v13892_v25, %s7695_s22  ;;  %v5797_v59 = vrot.slane %v13886_v36, 2  ;;  %v5433_v30 = vadd.f32 %v5430_v22, %v5353_v20  ;;  %v5310_v4 = vadd.f32 %v5308_v48, %v5250_v54  ;;  %v16213_v57 = vrot.slane %v13758_v14, 1  ;;  %v6989_v20 = vld [vmem:[%s14374_s3 + $0x28] ss:$0 sm:$0xff] }
 0x5b5   :  { %v5446_v52 = vsel %vm748_vm0, %v16212_v53, %v16211_v21  ;;  %v16214_v56 = vrot.slane %v13710_v60, 1  ;;  %v16215_v37 = vrot.slane %v13638_v24, 2  ;;  %v16216_v26 = vrot.slane %v13660_v34, 2  ;;  %v16218_v34 = vld [vmem:[#allocation139_spill] sm:$0xff] }
 0x5b6   :  { %v5259_v35 = vadd.f32 %v5257_v46, %v13622_v9  ;;  %v5266_v63 = vmul.f32 %v13700_v10, %v13632_v29  ;;  %v5326_v13 = vmul.f32 %v13780_v44, %v13684_v55  ;;  %v13943_v14 = vadd.f32 %v5797_v59, %v5722_v1  ;;  %v13954_v9 = vld [vmem:[%s14374_s3 + $0x26] ss:$0 sm:$0xff]  ;;  %v16220_v1 = vld [vmem:[#allocation35_spill] sm:$0xff] }
 0x5b7   :  { %v5526_v8 = vsel %vm748_vm0, %v16214_v56, %v16213_v57  ;;  %v5686_v45 = vsel %vm1730_vm3, %v16216_v26, %v16215_v37  ;;  %v5513_v60 = vadd.f32 %v5510_v32, %v5433_v30  ;;  %v5369_v38 = vadd.f32 %v13500_v5, %v5310_v4  ;;  %5831 = vrot.lane.b32.xlu0 %v13867_v58, %s7694_s18  ;;  %v16224_v57 = vld [vmem:[#allocation51_spill] sm:$0xff] }
 0x5b8   :  { %v16217_v24 = vrot.slane %v13654_v12, 1  ;;  %v16219_v22 = vrot.slane %v16218_v34, 1  ;;  %v5319_v10 = vadd.f32 %v5317_v19, %v5259_v35  ;;  %v5542_v44 = vsel %vm748_vm0, %v5540_v41, %v5541_v17  ;;  %v6974_v12 = vld [vmem:[%s14374_s3 + $0x25] ss:$0 sm:$0xff]  ;;  %5879 = vrot.lane.b32.xlu1 %v13892_v25, %s7694_s18  ;;  %v16221_v17 = vld [vmem:[#allocation49_spill] sm:$0xff] }
 0x5b9   :  { %v5268_v32 = vadd.f32 %v5266_v63, %v16220_v1  ;;  %v5478_v5 = vsel %vm748_vm0, %v5476_v31, %v5477_v23  ;;  %v5716_v49 = vrot.slane %v13875_v6, 2  ;;  %v5593_v16 = vadd.f32 %v16221_v17, %v5513_v60  ;;  %v6994_v31 = vld [vmem:[%s14374_s3 + $0x29] ss:$0 sm:$0xff]  ;;  %v16223_v6 = vld [vmem:[#allocation152_spill] sm:$0xff] }
 0x5ba   :  { %v5462_v48 = vsel %vm748_vm0, %v16219_v22, %v16217_v24  ;;  %v5449_v41 = vadd.f32 %v5446_v52, %v5369_v38  ;;  %v5275_v23 = vmul.f32 %v6974_v12, %v13632_v29  ;;  %v5385_v2 = vadd.f32 %v16222_v47, %v5319_v10  ;;  %v16225_v63 = vld [vmem:[#allocation149_spill] sm:$0xff]  ;;  %v16231_v17 = vld [vmem:[#allocation28_spill] sm:$0xff] }
 0x5bb   :  { %v5328_v54 = vadd.f32 %v5326_v13, %v5268_v32  ;;  %v5335_v21 = vmul.f32 %v13954_v9, %v13684_v55  ;;  %v5488_v53 = vmul.f32 %v6989_v20, %v13632_v29  ;;  %v5673_v46 = vadd.f32 %v5670_v43, %v5593_v16  ;;  %5895 = vrot.lane.b32.xlu0 %v13943_v14, %s7695_s22  ;;  %v16229_v10 = vld [vmem:[#allocation109_spill] sm:$0xff] }
 0x5bc   :  { %v5529_v19 = vadd.f32 %v5526_v8, %v5449_v41  ;;  %v5277_v30 = vadd.f32 %v5275_v23, %v16223_v6  ;;  %v13985_v52 = vmul.f32 %v6989_v20, %v13570_v18  ;;  %v5465_v4 = vadd.f32 %v5462_v48, %v5385_v2  ;;  %v16228_v48 = vld [vmem:[#allocation25_spill] sm:$0xff]  ;;  %v16230_v20 = vld [vmem:[#allocation146_spill] sm:$0xff] }
 0x5bd   :  { %v5401_v56 = vadd.f32 %v16224_v57, %v5328_v54  ;;  %v5492_v37 = vrot.slane %v5488_v53, 1  ;;  %v5568_v26 = vmul.f32 %v6994_v31, %v13684_v55  ;;  %v13991_v35 = vadd.f32 %v5750_v39, %v5673_v46  ;;  %v16233_v23 = vld [vmem:[#allocation42_spill] sm:$0xff]  ;;  %v5953_v46 = vld [vmem:[%s14380_s9] sm:$0xff]  ;;  %v5954_v57 = vld [vmem:[%s14380_s9 + $0x8] sm:$0xff] }
 0x5be   :  { %v5609_v13 = vadd.f32 %v16225_v63, %v5529_v19  ;;  %v5558_v43 = vsel %vm748_vm0, %v5556_v27, %v5557_v0  ;;  %v5337_v8 = vadd.f32 %v5335_v21, %v5277_v30  ;;  %v5545_v60 = vadd.f32 %v5542_v44, %v5465_v4  ;;  %v16235_v2 = vld [vmem:[#allocation38_spill] sm:$0xff]  ;;  %v16236_v19 = vld [vmem:[#allocation27_spill] sm:$0xff] }
 0x5bf   :  { %v5481_v38 = vadd.f32 %v5478_v5, %v5401_v56  ;;  %v5493_v24 = vrot.slane %v13985_v52, 1  ;;  %v14001_v34 = vmul.f32 %v6994_v31, %v13719_v42  ;;  %5821 = vrot.lane.b32.xlu1 %v13991_v35, %s7695_s22  ;;  %v16226_v22 = vrot.slane %v13785_v62, 2  ;;  %5903 = vrot.lane.b32.xlu0 %v13943_v14, %s7694_s18  ;;  %v6088_v56 = vld [vmem:[%s14381_s10 + $0x8] sm:$0xff] }
 0x5c0   :  { %v5689_v39 = vadd.f32 %v5686_v45, %v5609_v13  ;;  %v16227_v3 = vrot.slane %v13727_v11, 2  ;;  %v5417_v0 = vadd.f32 %v16228_v48, %v5337_v8  ;;  %v5572_v27 = vrot.slane %v5568_v26, 1  ;;  %v7004_v45 = vld [vmem:[%s14374_s3 + $0x2b] ss:$0 sm:$0xff]  ;;  %v5955_v13 = vld [vmem:[%s14380_s9 + $0x10] sm:$0xff] }
 0x5c1   :  { %v5625_v44 = vadd.f32 %v16229_v10, %v5545_v60  ;;  %v5561_v1 = vadd.f32 %v5558_v43, %v5481_v38  ;;  %v5494_v32 = vsel %vm748_vm0, %v5492_v37, %v5493_v24  ;;  %v5573_v5 = vrot.slane %v14001_v34, 1  ;;  %v5956_v43 = vld [vmem:[%s14380_s9 + $0x18] sm:$0xf]  ;;  %v6089_v8 = vld [vmem:[%s14381_s10 + $0x10] sm:$0xff] }
 0x5c2   :  { %v5766_v33 = vsel %vm1730_vm3, %v16227_v3, %v16226_v22  ;;  %v5497_v11 = vadd.f32 %v5494_v32, %v5417_v0  ;;  %v5214_v16 = vmul.f32 %v16231_v17, %v16230_v20  ;;  %v16232_v41 = vrot.slane %v13681_v61, 2  ;;  %v6090_v60 = vld [vmem:[%s14381_s10 + $0x18] sm:$0xf]  ;;  %v16238_v10 = vld [vmem:[#allocation150_spill] sm:$0xff] }
 0x5c3   :  { %v14018_v62 = vadd.f32 %v5766_v33, %v5689_v39  ;;  %v16234_v31 = vrot.slane %v16233_v23, 2  ;;  %v5641_v54 = vadd.f32 %v16235_v2, %v5561_v1  ;;  %v5574_v21 = vsel %vm748_vm0, %v5572_v27, %v5573_v5 }
 0x5c4   :  { %v5728_v53 = vmul.f32 %v7004_v45, %v13632_v29  ;;  %v5780_v6 = vrot.slane %v16236_v19, 2  ;;  %v5577_v30 = vadd.f32 %v5574_v21, %v5497_v11  ;;  %v5276_v4 = vmul.f32 %v6974_v12, %v13570_v18  ;;  %v6087_v29 = vld [vmem:[%s14381_s10] sm:$0xff]  ;;  %s5837_s10 = sld [smem:[#allocation4]] }
 0x5c5   :  { %v5702_v47 = vsel %vm1730_vm3, %v16234_v31, %v16232_v41  ;;  %5853 = vrot.lane.b32.xlu1 %v14018_v62, %s7694_s18  ;;  %v5796_v37 = vrot.slane %v13878_v7, 2  ;;  %v5718_v26 = vsel %vm1730_vm3, %v5716_v49, %v5717_v28  ;;  %v5729_v12 = vmul.f32 %v7004_v45, %v13570_v18  ;;  %5845 = vrot.lane.b32.xlu0 %v14018_v62, %s7695_s22  ;;  %v16237_v18 = vld [vmem:[#allocation113_spill] sm:$0xff] }
 0x5c6   :  { %v5705_v61 = vadd.f32 %v5702_v47, %v5625_v44  ;;  %v5336_v63 = vmul.f32 %v13954_v9, %v13719_v42  ;;  %v5782_v15 = vsel %vm1730_vm3, %v5780_v6, %v5781_v51  ;;  %v5721_v7 = vadd.f32 %v5718_v26, %v5641_v54  ;;  %v7009_v9 = vld [vmem:[%s14374_s3 + $0x2c] ss:$0 sm:$0xff]  ;;  %s7010_s3 = sld [smem:[#allocation4 + $0x1]] }
 0x5c7   :  { %v5657_v28 = vadd.f32 %v16237_v18, %v5577_v30  ;;  %v5278_v49 = vadd.f32 %v5276_v4, %v5214_v16  ;;  %v5732_v38 = vrot.slane %v5728_v53, 2  ;;  %v5809_v40 = vmul.f32 %v7009_v9, %v13719_v42 }
 0x5c8   :  { %v7360_v51 = vpack.c.bf16 %v5954_v57, %v5953_v46  ;;  %v7370_v34 = vpack.c.bf16 %v6088_v56, %v6087_v29  ;;  %v14080_v39 = vadd.f32 %v5782_v15, %v5705_v61  ;;  %v7364_v3 = vpack.c.bf16 %v5956_v43, %v5955_v13 }
 0x5c9   :  { %5829 = vrot.lane.b32.xlu1 %v13991_v35, %s7694_s18  ;;  %v5338_v22 = vadd.f32 %v5336_v63, %v5278_v49  ;;  %v5798_v33 = vsel %vm1730_vm3, %v5796_v37, %v5797_v59  ;;  %v5733_v48 = vrot.slane %v5729_v12, 2  ;;  %v5808_v0 = vmul.f32 %v7009_v9, %v13684_v55  ;;  %v6210_v59 = vld [vmem:[%s14382_s11 + $0x18] sm:$0xff] }
 0x5ca   :  { %7361 = vmatprep.subr.bf16.mxu0 %v7360_v51  ;;  %7371 = vmatprep.subr.bf16.mxu1 %v7370_v34  ;;  %v7374_v27 = vpack.c.bf16 %v6090_v60, %v6089_v8  ;;  %v14088_v42 = vadd.f32 %v5798_v33, %v5721_v7  ;;  %v16239_v44 = vrot.slane %v16238_v10, 1  ;;  %v5813_v36 = vrot.slane %v5809_v40, 2 }
 0x5cb   :  { %5869 = vrot.lane.b32.xlu0 %v14080_v39, %s7695_s22  ;;  %7363 = vmatpush3.bf16.msra.mxu0 %v7360_v51  ;;  %v5734_v32 = vsel %vm1730_vm3, %v5732_v38, %v5733_v48  ;;  %v5812_v45 = vrot.slane %v5808_v0, 2  ;;  %vm6780_vm0 = vcmask 818176  }
 0x5cc   :  { %v5418_v1 = vadd.f32 %v16239_v44, %v5338_v22  ;;  %7373 = vmatpush3.bf16.msra.mxu1 %v7370_v34  ;;  %7366 = vmatprep.subr.msk.bf16.mxu0 %vm13391_vm15, %v7364_v3  ;;  %v5737_v55 = vadd.f32 %v5734_v32, %v5657_v28  ;;  %v5862_v4 = vstv %s7010_s3 }
 0x5cd   :  { %5893 = vrot.lane.b32.xlu1 %v14088_v42, %s7695_s22  ;;  %7376 = vmatprep.subr.msk.bf16.mxu1 %vm13391_vm15, %v7374_v27  ;;  %v5814_v17 = vsel %vm1730_vm3, %v5812_v45, %v5813_v36  ;;  %vm6867_vm3 = vcmask 9216  }
 0x5ce   :  { %v5498_v11 = vadd.f32 %v5493_v24, %v5418_v1  ;;  %v14110_v52 = vadd.f32 %v5814_v17, %v5737_v55  ;;  %v16241_v24 = vld [vmem:[#allocation118_spill] sm:$0xff] }
 0x5cf   :  { %5877 = vrot.lane.b32.xlu0 %v14080_v39, %s7694_s18  ;;  %7369 = vmatpush3.bf16.msk.msra.mxu0 %vm13391_vm15, %v7364_v3  ;;  %v16242_v16 = vrot.slane %v16241_v24, 2 }
 0x5d0   :  { %v5578_v20 = vadd.f32 %v5573_v5, %v5498_v11  ;;  %7379 = vmatpush3.bf16.msk.msra.mxu1 %vm13391_vm15, %v7374_v27 }
 0x5d1   :  { %5901 = vrot.lane.b32.xlu1 %v14088_v42, %s7694_s18 }
 0x5d2   :  { %v5658_v41 = vadd.f32 %v16242_v16, %v5578_v20  ;;  %v5934_v16 = vstv %s14136_s28 }
 0x5d3   :  { %5917 = vrot.lane.b32.xlu0 %v14110_v52, %s7695_s22 }
 0x5d4   :  { %v5738_v5 = vadd.f32 %v5733_v48, %v5658_v41 }
 0x5d6   :  { %v14116_v23 = vadd.f32 %v5813_v36, %v5738_v5 }
 0x5d7   :  { %5925 = vrot.lane.b32.xlu0 %v14110_v52, %s7694_s18 }
 0x5d8   :  { %5919 = vrot.lane.b32.xlu1 %v14116_v23, %s7695_s22  ;;  %s14126_s22 = sld [smem:[#allocation4 + $0x3]] }
 0x5dc   :  { %5927 = vrot.lane.b32.xlu1 %v14116_v23, %s7694_s18  ;;  %s14130_s18 = sld [smem:[#allocation4 + $0x2]] }
 0x5de   :  { %v5910_v38 = vstv %s14126_s22 }
 0x5e2   :  { %v5886_v0 = vstv %s14130_s18 }
 0x621   :  { %v5824_v47 = vpop.permute.xlu0 %5823 }
 0x622   :  { %v5856_v31 = vpop.permute.xlu1 %5855  ;;  %v5828_v29 = vadd.f32 %v5824_v47, %v13867_v58 }
 0x625   :  { %v5848_v54 = vpop.permute.xlu0 %5847 }
 0x626   :  { %v5872_v2 = vpop.permute.xlu1 %5871  ;;  %v5852_v46 = vadd.f32 %v5848_v54, %v13865_v50  ;;  %v5838_v50 = vstv %s5837_s10 }
 0x627   :  { %v5876_v8 = vadd.f32 %v5872_v2, %v13892_v25 }
 0x628   :  { %v5860_v61 = vadd.f32 %v5856_v31, %v5852_v46 }
 0x629   :  { %v5832_v53 = vpop.permute.xlu0 %5831 }
 0x62a   :  { %v5880_v21 = vpop.permute.xlu1 %5879  ;;  %v5864_v56 = vadd.f32 %v5862_v4, %v5860_v61  ;;  %v5836_v26 = vadd.f32 %v5832_v53, %v5828_v29 }
 0x62b   :  { %v5884_v22 = vadd.f32 %v5880_v21, %v5876_v8 }
 0x62c   :  { %v5866_v7 = vmax.f32 %v5864_v56, 0.0  ;;  %v5840_v28 = vadd.f32 %v5838_v50, %v5836_v26 }
 0x62d   :  { %v5896_v19 = vpop.permute.xlu0 %5895 }
 0x62e   :  { %v5900_v18 = vadd.f32 %v5896_v19, %v13943_v14  ;;  %v5942_v34 = vrot.slane %v5866_v7, 4  ;;  %v5842_v14 = vmax.f32 %v5840_v28, 0.0 }
 0x631   :  { %v5822_v6 = vpop.permute.xlu1 %5821  ;;  %v5904_v30 = vpop.permute.xlu0 %5903 }
 0x632   :  { %v5827_v12 = vadd.f32 %v5822_v6, %v13991_v35  ;;  %v5908_v60 = vadd.f32 %v5904_v30, %v5900_v18  ;;  %v6207_v30 = vld [vmem:[%s14382_s11] sm:$0xff] }
 0x634   :  { %v5912_v27 = vadd.f32 %v5910_v38, %v5908_v60 }
 0x636   :  { %v5914_v45 = vmax.f32 %v5912_v27, 0.0  ;;  %v16243_v27 = vmov 0.0|0.0  }
 0x637   :  { %v5854_v57 = vpop.permute.xlu1 %5853  ;;  %v5846_v37 = vpop.permute.xlu0 %5845 }
 0x638   :  { %v5851_v63 = vadd.f32 %v5846_v37, %v14018_v62  ;;  %v5948_v2 = vrot.slane %v5914_v45, 4 }
 0x63a   :  { %v5859_v43 = vadd.f32 %v5854_v57, %v5851_v63 }
 0x63b   :  { %v5830_v13 = vpop.permute.xlu1 %5829 }
 0x63c   :  { %v5835_v15 = vadd.f32 %v5830_v13, %v5827_v12  ;;  %v5863_v9 = vadd.f32 %v5862_v4, %v5859_v43  ;;  %v6311_v4 = vld [vmem:[%s14383_s12] sm:$0xff] }
 0x63d   :  { %v5870_v58 = vpop.permute.xlu0 %5869 }
 0x63e   :  { %v5839_v49 = vadd.f32 %v5838_v50, %v5835_v15  ;;  %v5865_v62 = vmax.f32 %v5863_v9, 0.0  ;;  %v5875_v51 = vadd.f32 %v5870_v58, %v14080_v39 }
 0x63f   :  { %v5894_v35 = vpop.permute.xlu1 %5893 }
 0x640   :  { %v5841_v40 = vmax.f32 %v5839_v49, 0.0  ;;  %v5941_v33 = vrot.slane %v5865_v62, 4  ;;  %v5899_v48 = vadd.f32 %v5894_v35, %v14088_v42  ;;  %v5888_v42 = vadd.f32 %v5886_v0, %v5884_v22 }
 0x641   :  { %v5878_v3 = vpop.permute.xlu0 %5877 }
 0x642   :  { %7163 = vmatprep.mubr.msk.f32.mxu0 %vm5002_vm13, %v5841_v40  ;;  %7183 = vmatprep.mubr.msk.f32.mxu1 %vm5002_vm13, %v5841_v40  ;;  %v5883_v25 = vadd.f32 %v5878_v3, %v5875_v51  ;;  %v5951_v1 = vsel %vm3694_vm7, %v5842_v14, %v5941_v33  ;;  %v5943_v32 = vsel %vm3694_vm7, %v5941_v33, %v5942_v34  ;;  %v5890_v5 = vmax.f32 %v5888_v42, 0.0  ;;  %v6208_v33 = vld [vmem:[%s14382_s11 + $0x8] sm:$0xff] }
 0x643   :  { %v5902_v10 = vpop.permute.xlu1 %5901  ;;  %7164 = vmatmul.mubr.msk.f32.vlgmr.msra.gmra.mrb[2].mxu0 %vm5002_vm13, %v5951_v1  ;;  %7184 = vmatmul.mubr.msk.f32.vlgmr.msra.gmra.mrb[18].mxu1 %vm5002_vm13, %v5951_v1 }
 0x644   :  { %v5887_v44 = vadd.f32 %v5886_v0, %v5883_v25  ;;  %v5907_v39 = vadd.f32 %v5902_v10, %v5899_v48  ;;  %7166 = vmatprep.mubr.msk.f32.mxu0 %vm5002_vm13, %v5943_v32  ;;  %7186 = vmatprep.mubr.msk.f32.mxu1 %vm5002_vm13, %v5943_v32  ;;  %v6312_v48 = vld [vmem:[%s14383_s12 + $0x8] sm:$0xff]  ;;  %v6209_v25 = vld [vmem:[%s14382_s11 + $0x10] sm:$0xff]  ;;  %v6314_v10 = vld [vmem:[%s14383_s12 + $0x18] sm:$0xff]  ;;  %s7696_s11 = smov 122  }
 0x645   :  { %v5918_v36 = vpop.permute.xlu0 %5917  ;;  %v6313_v0 = vld [vmem:[%s14383_s12 + $0x10] sm:$0xff]  ;;  %s7697_s12 = smov 120  }
 0x646   :  { %v5889_v55 = vmax.f32 %v5887_v44, 0.0  ;;  %v5911_v11 = vadd.f32 %v5910_v38, %v5907_v39  ;;  %v5923_v17 = vadd.f32 %v5918_v36, %v14110_v52 }
 0x648   :  { %v5913_v20 = vmax.f32 %v5911_v11, 0.0  ;;  %7167 = vmatmul.mubr.msk.f32.gmra.mrb[4].mxu0 %vm5002_vm13, %v5889_v55  ;;  %7187 = vmatmul.mubr.msk.f32.gmra.mrb[20].mxu1 %vm5002_vm13, %v5889_v55 }
 0x649   :  { %v5926_v41 = vpop.permute.xlu0 %5925 }
 0x64a   :  { %v5920_v24 = vpop.permute.xlu1 %5919  ;;  %v5947_v31 = vrot.slane %v5913_v20, 4  ;;  %v5931_v47 = vadd.f32 %v5926_v41, %v5923_v17 }
 0x64b   :  { %v5924_v54 = vadd.f32 %v5920_v24, %v14116_v23 }
 0x64c   :  { %v5935_v21 = vadd.f32 %v5934_v16, %v5931_v47  ;;  %v5952_v53 = vsel %vm3694_vm7, %v5890_v5, %v5947_v31  ;;  %v5949_v52 = vsel %vm3694_vm7, %v5947_v31, %v5948_v2  ;;  %v6481_v47 = vld [vmem:[%s14384_s13 + $0x8] sm:$0xff] }
 0x64d   :  { %7169 = vmatprep.mubr.msk.f32.mxu0 %vm5002_vm13, %v5952_v53  ;;  %7189 = vmatprep.mubr.msk.f32.mxu1 %vm5002_vm13, %v5952_v53  ;;  %v6507_v2 = vld [vmem:[%s14385_s14 + $0x8] sm:$0xff]  ;;  %v6508_v53 = vld [vmem:[%s14385_s14 + $0x10] sm:$0xff] }
 0x64e   :  { %v5928_v46 = vpop.permute.xlu1 %5927  ;;  %v5937_v19 = vmax.f32 %v5935_v21, 0.0  ;;  %7170 = vmatmul.mubr.msk.f32.gmra.mrb[6].mxu0 %vm5002_vm13, %v5949_v52  ;;  %7190 = vmatmul.mubr.msk.f32.gmra.mrb[22].mxu1 %vm5002_vm13, %v5949_v52  ;;  %v7699_v21 = vmov 0   ;;  %v6510_v52 = vld [vmem:[%s14385_s14 + $0x20] sm:$0xff] }
 0x64f   :  { %v5932_v6 = vadd.f32 %v5928_v46, %v5924_v54  ;;  %v6506_v54 = vld [vmem:[%s14385_s14] sm:$0xff]  ;;  %7548 = vset.pattern.permute.xlu1 %v7699_v21  ;;  %7547 = vset.pattern.permute.xlu0 %v7699_v21  ;;  %v6509_v46 = vld [vmem:[%s14385_s14 + $0x18] sm:$0xff]  ;;  %v6490_v21 = vld [vmem:[%s14384_s13 + $0x50] sm:$0xff] }
 0x650   :  { %7172 = vmatprep.mubr.msk.f32.mxu0 %vm5002_vm13, %v5937_v19  ;;  %7192 = vmatprep.mubr.msk.f32.mxu1 %vm5002_vm13, %v5937_v19  ;;  %v6511_v19 = vld [vmem:[%s14385_s14 + $0x28] sm:$0xff] }
 0x651   :  { %v5936_v61 = vadd.f32 %v5934_v16, %v5932_v6  ;;  %v6512_v6 = vld [vmem:[%s14385_s14 + $0x30] sm:$0xff] }
 0x653   :  { %v5938_v23 = vmax.f32 %v5936_v61, 0.0  ;;  %v6513_v61 = vld [vmem:[%s14385_s14 + $0x38] sm:$0xff] }
 0x655   :  { %7173 = vmatmul.mubr.msk.f32.gmra.mrb[8].mxu0 %vm5002_vm13, %v5938_v23  ;;  %7193 = vmatmul.mubr.msk.f32.gmra.mrb[24].mxu1 %vm5002_vm13, %v5938_v23  ;;  %v6514_v23 = vld [vmem:[%s14385_s14 + $0x40] sm:$0xff] }
 0x656   :  { %7211 = vmatprep.mubr.msk.f32.mxu0 %vm623_vm10, %v6207_v30  ;;  %7233 = vmatprep.mubr.msk.f32.mxu1 %vm623_vm10, %v6311_v4  ;;  %v6515_v30 = vld [vmem:[%s14385_s14 + $0x48] sm:$0xff]  ;;  %v6516_v4 = vld [vmem:[%s14385_s14 + $0x50] sm:$0xff] }
 0x716   :  { %v7165_v57 = vpop.f32.mrb[2].mxu0  ;;  %v7185_v29 = vpop.f32.mrb[18].mxu1 }
 0x717   :  { %v6200_v56 = vmax.f32 %v7165_v57, %v7185_v29  ;;  %v6048_v37 = vpop.f32.mrb[3].mxu0  ;;  %v6160_v26 = vpop.f32.mrb[19].mxu1  ;;  %v6517_v57 = vld [vmem:[%s14385_s14 + $0x58] sm:$0xff]  ;;  %v6518_v29 = vld [vmem:[%s14385_s14 + $0x60] sm:$0xf] }
 0x718   :  { %v6199_v12 = vmax.f32 %v6048_v37, %v6160_v26  ;;  %v6769_v37 = vld [vmem:[%s14387_s16 + $0x8] sm:$0x3] }
 0x71a   :  { %v7380_v63 = vpack.c.bf16 %v6200_v56, %v6199_v12  ;;  %v6768_v56 = vld [vmem:[%s14387_s16] sm:$0xff] }
 0x71b   :  { %v7168_v50 = vpop.f32.mrb[4].mxu0  ;;  %v7188_v13 = vpop.f32.mrb[20].mxu1 }
 0x71c   :  { %v6202_v43 = vmax.f32 %v7168_v50, %v7188_v13  ;;  %v6058_v15 = vpop.f32.mrb[5].mxu0  ;;  %v6170_v7 = vpop.f32.mrb[21].mxu1  ;;  %7381 = vmatprep.subr.bf16.mxu0 %v7380_v63  ;;  %7399 = vmatprep.subr.bf16.mxu1 %v7380_v63 }
 0x71d   :  { %v6201_v18 = vmax.f32 %v6058_v15, %v6170_v7  ;;  %7383 = vmatpush3.bf16.msra.mxu0 %v7380_v63  ;;  %7401 = vmatpush3.bf16.msra.mxu1 %v7380_v63 }
 0x71f   :  { %v7384_v58 = vpack.c.bf16 %v6202_v43, %v6201_v18 }
 0x721   :  { %v7171_v28 = vpop.f32.mrb[6].mxu0  ;;  %v7191_v9 = vpop.f32.mrb[22].mxu1  ;;  %7385 = vmatprep.subr.bf16.mxu0 %v7384_v58  ;;  %7403 = vmatprep.subr.bf16.mxu1 %v7384_v58 }
 0x722   :  { %v6204_v49 = vmax.f32 %v7171_v28, %v7191_v9  ;;  %v6068_v8 = vpop.f32.mrb[7].mxu0  ;;  %v6180_v60 = vpop.f32.mrb[23].mxu1  ;;  %7387 = vmatpush3.bf16.msra.mxu0 %v7384_v58  ;;  %7405 = vmatpush3.bf16.msra.mxu1 %v7384_v58 }
 0x723   :  { %v6203_v35 = vmax.f32 %v6068_v8, %v6180_v60 }
 0x725   :  { %v7388_v38 = vpack.c.bf16 %v6204_v49, %v6203_v35 }
 0x727   :  { %7389 = vmatprep.subr.bf16.mxu0 %v7388_v38  ;;  %7407 = vmatprep.subr.bf16.mxu1 %v7388_v38 }
 0x728   :  { %v7174_v62 = vpop.f32.mrb[8].mxu0  ;;  %v7194_v40 = vpop.f32.mrb[24].mxu1  ;;  %7391 = vmatpush3.bf16.msra.mxu0 %v7388_v38  ;;  %7409 = vmatpush3.bf16.msra.mxu1 %v7388_v38 }
 0x729   :  { %v6206_v51 = vmax.f32 %v7174_v62, %v7194_v40  ;;  %v6078_v34 = vpop.f32.mrb[9].mxu0  ;;  %v6190_v22 = vpop.f32.mrb[25].mxu1 }
 0x72a   :  { %v6205_v3 = vmax.f32 %v6078_v34, %v6190_v22 }
 0x72c   :  { %v7392_v14 = vpack.c.bf16 %v6206_v51, %v6205_v3 }
 0x72e   :  { %7394 = vmatprep.subr.msk.bf16.mxu0 %vm13391_vm15, %v7392_v14  ;;  %7412 = vmatprep.subr.msk.bf16.mxu1 %vm13391_vm15, %v7392_v14 }
 0x72f   :  { %7397 = vmatpush3.bf16.msk.msra.mxu0 %vm13391_vm15, %v7392_v14  ;;  %7415 = vmatpush3.bf16.msk.msra.mxu1 %vm13391_vm15, %v7392_v14 }
 0x730   :  { %7416 = vmatprep.subr.bf16.mxu0 %v16243_v27 }
 0x732   :  { %7212 = vmatmul.mubr.msk.f32.vlgmr.msra.gmra.mrb[10].mxu0 %vm623_vm10, %v6208_v33  ;;  %7234 = vmatmul.mubr.msk.f32.vlgmr.msra.gmra.mrb[26].mxu1 %vm623_vm10, %v6312_v48 }
 0x733   :  { %7214 = vmatprep.mubr.msk.f32.mxu0 %vm623_vm10, %v6209_v25  ;;  %7236 = vmatprep.mubr.msk.f32.mxu1 %vm623_vm10, %v6313_v0 }
 0x736   :  { %7215 = vmatmul.mubr.msk.f32.gmra.mrb[12].mxu0 %vm623_vm10, %v6210_v59  ;;  %7237 = vmatmul.mubr.msk.f32.gmra.mrb[28].mxu1 %vm623_vm10, %v6314_v10 }
 0x737   :  { %7042 = vmatprep.mubr.msk.f32.mxu0 %vm4761_vm12, %v6481_v47  ;;  %v6489_v47 = vld [vmem:[%s14384_s13 + $0x48] sm:$0xff] }
 0x805   :  { %v7213_v44 = vpop.f32.mrb[10].mxu0  ;;  %v7235_v39 = vpop.f32.mrb[26].mxu1 }
 0x806   :  { %v6413_v1 = vmax.f32 %v7213_v44, %v7235_v39  ;;  %v6292_v32 = vpop.f32.mrb[11].mxu0  ;;  %v6393_v36 = vpop.f32.mrb[27].mxu1 }
 0x807   :  { %v6412_v42 = vmax.f32 %v6292_v32, %v6393_v36 }
 0x809   :  { %v7216_v55 = vpop.f32.mrb[12].mxu0  ;;  %v7238_v11 = vpop.f32.mrb[28].mxu1  ;;  %v7497_v45 = vpack.i.bf16 %v6413_v1, %v6412_v42  ;;  %v7417_v20 = vpack.c.bf16 %v6413_v1, %v6412_v42 }
 0x80a   :  { %v6415_v17 = vmax.f32 %v7216_v55, %v7238_v11  ;;  %v6302_v24 = vpop.f32.mrb[13].mxu0  ;;  %v6403_v16 = vpop.f32.mrb[29].mxu1 }
 0x80b   :  { %v6414_v41 = vmax.f32 %v6302_v24, %v6403_v16  ;;  %7498 = vrot.lane.b32.xlu0 %v7497_v45, %s7681_s20  ;;  %7418 = vmatpush1.bf16.msra.mxu0 %v7417_v20  ;;  %v6483_v24 = vld [vmem:[%s14384_s13 + $0x18] sm:$0xff]  ;;  %v6482_v16 = vld [vmem:[%s14384_s13 + $0x10] sm:$0xff] }
 0x80c   :  { %7419 = vmatprep.subr.bf16.mxu0 %v16243_v27 }
 0x80d   :  { %v7502_v5 = vpack.i.bf16 %v6415_v17, %v6414_v41  ;;  %v7420_v31 = vpack.c.bf16 %v6415_v17, %v6414_v41  ;;  %v6480_v17 = vld [vmem:[%s14384_s13] sm:$0xff] }
 0x80e   :  { %v6484_v41 = vld [vmem:[%s14384_s13 + $0x20] sm:$0xff] }
 0x80f   :  { %7508 = vrot.lane.b32.xlu0 %v7497_v45, %s7684_s25  ;;  %7503 = vrot.lane.b32.xlu1 %v7502_v5, %s7681_s20 }
 0x810   :  { %7421 = vmatpush1.bf16.msra.mxu0 %v7420_v31  ;;  %v6486_v31 = vld [vmem:[%s14384_s13 + $0x30] sm:$0xff] }
 0x811   :  { %7422 = vmatprep.subr.bf16.mxu0 %v16243_v27 }
 0x813   :  { %7518 = vrot.lane.b32.xlu0 %v7497_v45, %s7696_s11  ;;  %7513 = vrot.lane.b32.xlu1 %v7502_v5, %s7684_s25 }
 0x817   :  { %7528 = vrot.lane.b32.xlu0 %v7497_v45, %s7697_s12  ;;  %7523 = vrot.lane.b32.xlu1 %v7502_v5, %s7696_s11 }
 0x81b   :  { %7538 = vrot.lane.b32.xlu0 %v7497_v45, %s7698_s26  ;;  %7533 = vrot.lane.b32.xlu1 %v7502_v5, %s7697_s12 }
 0x81f   :  { %7543 = vrot.lane.b32.xlu1 %v7502_v5, %s7698_s26  ;;  %6521 = vperm.xlu0 %7547, %v6506_v54   ;;  %v6487_v5 = vld [vmem:[%s14384_s13 + $0x38] sm:$0xff] }
 0x820   :  { %v6491_v54 = vld [vmem:[%s14384_s13 + $0x58] sm:$0xff] }
 0x823   :  { %6526 = vperm.xlu1 %7548, %v6507_v2   ;;  %6536 = vperm.xlu0 %7547, %v6509_v46   ;;  %v6488_v2 = vld [vmem:[%s14384_s13 + $0x40] sm:$0xff] }
 0x824   :  { %v6492_v46 = vld [vmem:[%s14384_s13 + $0x60] sm:$0xff] }
 0x827   :  { %6531 = vperm.xlu1 %7548, %v6508_v53   ;;  %6546 = vperm.xlu0 %7547, %v6511_v19   ;;  %v6493_v53 = vld [vmem:[%s14384_s13 + $0x68] sm:$0xff]  ;;  %v6494_v19 = vld [vmem:[%s14384_s13 + $0x70] sm:$0xff] }
 0x82b   :  { %6541 = vperm.xlu1 %7548, %v6510_v52   ;;  %6556 = vperm.xlu0 %7547, %v6513_v61   ;;  %v6495_v52 = vld [vmem:[%s14384_s13 + $0x78] sm:$0xff]  ;;  %v6496_v61 = vld [vmem:[%s14384_s13 + $0x80] sm:$0xff] }
 0x82f   :  { %6551 = vperm.xlu1 %7548, %v6512_v6   ;;  %6566 = vperm.xlu0 %7547, %v6515_v30   ;;  %v6497_v6 = vld [vmem:[%s14384_s13 + $0x88] sm:$0xff]  ;;  %v6498_v30 = vld [vmem:[%s14384_s13 + $0x90] sm:$0xff] }
 0x833   :  { %6561 = vperm.xlu1 %7548, %v6514_v23   ;;  %6576 = vperm.xlu0 %7547, %v6517_v57   ;;  %v6499_v23 = vld [vmem:[%s14384_s13 + $0x98] sm:$0xff]  ;;  %v6500_v57 = vld [vmem:[%s14384_s13 + $0xa0] sm:$0xff] }
 0x837   :  { %6571 = vperm.xlu1 %7548, %v6516_v4   ;;  %6772 = vperm.xlu0 %7547, %v6768_v56   ;;  %v6501_v4 = vld [vmem:[%s14384_s13 + $0xa8] sm:$0xff]  ;;  %v6502_v56 = vld [vmem:[%s14384_s13 + $0xb0] sm:$0xff] }
 0x83b   :  { %6581 = vperm.xlu1 %7548, %v6518_v29   ;;  %v6503_v29 = vld [vmem:[%s14384_s13 + $0xb8] sm:$0xff] }
 0x83f   :  { %6777 = vperm.xlu1 %7548, %v6769_v37   ;;  %v6505_v37 = vld [vmem:[%s14384_s13 + $0xc8] sm:$0xf] }
 0x87d   :  { %v7499_v26 = vpop.permute.xlu0 %7498 }
 0x87e   :  { %v7501_v12 = vunpack.i.h.bf16 %v7499_v26  ;;  %v7500_v63 = vunpack.i.l.bf16 %v7499_v26  ;;  %v6504_v26 = vld [vmem:[%s14384_s13 + $0xc0] sm:$0xf] }
 0x880   :  { %v7423_v50 = vpack.c.bf16 %v7501_v12, %v7500_v63  ;;  %v6766_v12 = vld [vmem:[%s14386_s15] sm:$0xff] }
 0x881   :  { %v7509_v13 = vpop.permute.xlu0 %7508  ;;  %v7504_v43 = vpop.permute.xlu1 %7503 }
 0x882   :  { %v7506_v15 = vunpack.i.h.bf16 %v7504_v43  ;;  %v7505_v7 = vunpack.i.l.bf16 %v7504_v43  ;;  %7424 = vmatpush1.bf16.msra.mxu0 %v7423_v50  ;;  %v7511_v18 = vunpack.i.h.bf16 %v7509_v13  ;;  %v7510_v58 = vunpack.i.l.bf16 %v7509_v13 }
 0x883   :  { %7425 = vmatprep.subr.bf16.mxu0 %v16243_v27 }
 0x884   :  { %v7426_v28 = vpack.c.bf16 %v7506_v15, %v7505_v7  ;;  %v7429_v49 = vpack.c.bf16 %v7511_v18, %v7510_v58 }
 0x885   :  { %v7514_v9 = vpop.permute.xlu1 %7513  ;;  %v7519_v35 = vpop.permute.xlu0 %7518 }
 0x886   :  { %7427 = vmatpush1.bf16.msra.mxu0 %v7426_v28  ;;  %v7516_v8 = vunpack.i.h.bf16 %v7514_v9  ;;  %v7515_v60 = vunpack.i.l.bf16 %v7514_v9  ;;  %v7521_v38 = vunpack.i.h.bf16 %v7519_v35  ;;  %v7520_v62 = vunpack.i.l.bf16 %v7519_v35 }
 0x887   :  { %7428 = vmatprep.subr.bf16.mxu0 %v16243_v27 }
 0x888   :  { %v7432_v40 = vpack.c.bf16 %v7516_v8, %v7515_v60  ;;  %v7435_v34 = vpack.c.bf16 %v7521_v38, %v7520_v62 }
 0x889   :  { %v7524_v51 = vpop.permute.xlu1 %7523  ;;  %v7529_v14 = vpop.permute.xlu0 %7528 }
 0x88a   :  { %7430 = vmatpush1.bf16.msra.mxu0 %v7429_v49  ;;  %v7526_v22 = vunpack.i.h.bf16 %v7524_v51  ;;  %v7525_v3 = vunpack.i.l.bf16 %v7524_v51  ;;  %v7531_v33 = vunpack.i.h.bf16 %v7529_v14  ;;  %v7530_v48 = vunpack.i.l.bf16 %v7529_v14 }
 0x88b   :  { %7431 = vmatprep.subr.bf16.mxu0 %v16243_v27 }
 0x88c   :  { %v7438_v25 = vpack.c.bf16 %v7526_v22, %v7525_v3  ;;  %v7441_v59 = vpack.c.bf16 %v7531_v33, %v7530_v48 }
 0x88d   :  { %v7534_v0 = vpop.permute.xlu1 %7533  ;;  %v7539_v39 = vpop.permute.xlu0 %7538 }
 0x88e   :  { %7433 = vmatpush1.bf16.msra.mxu0 %v7432_v40  ;;  %v7536_v10 = vunpack.i.h.bf16 %v7534_v0  ;;  %v7535_v44 = vunpack.i.l.bf16 %v7534_v0  ;;  %v7541_v1 = vunpack.i.h.bf16 %v7539_v39  ;;  %v7540_v32 = vunpack.i.l.bf16 %v7539_v39 }
 0x88f   :  { %7434 = vmatprep.subr.bf16.mxu0 %v16243_v27 }
 0x890   :  { %v7444_v36 = vpack.c.bf16 %v7536_v10, %v7535_v44  ;;  %v7447_v55 = vpack.c.bf16 %v7541_v1, %v7540_v32 }
 0x891   :  { %v7544_v42 = vpop.permute.xlu1 %7543 }
 0x892   :  { %7436 = vmatpush1.bf16.msra.mxu0 %v7435_v34  ;;  %v7546_v11 = vunpack.i.h.bf16 %v7544_v42  ;;  %v7545_v45 = vunpack.i.l.bf16 %v7544_v42 }
 0x893   :  { %7437 = vmatprep.subr.bf16.mxu0 %v16243_v27 }
 0x894   :  { %v7450_v20 = vpack.c.bf16 %v7546_v11, %v7545_v45 }
 0x896   :  { %7439 = vmatpush1.bf16.msra.mxu0 %v7438_v25 }
 0x897   :  { %7440 = vmatprep.subr.bf16.mxu0 %v16243_v27 }
 0x89a   :  { %7442 = vmatpush1.bf16.msra.mxu0 %v7441_v59 }
 0x89b   :  { %7443 = vmatprep.subr.bf16.mxu0 %v16243_v27 }
 0x89e   :  { %7445 = vmatpush1.bf16.msra.mxu0 %v7444_v36  ;;  %v6522_v63 = vpop.permute.xlu0 %6521 }
 0x89f   :  { %7446 = vmatprep.subr.bf16.mxu0 %v16243_v27 }
 0x8a2   :  { %7448 = vmatpush1.bf16.msra.mxu0 %v7447_v55  ;;  %v6527_v15 = vpop.permute.xlu1 %6526  ;;  %v6537_v62 = vpop.permute.xlu0 %6536 }
 0x8a3   :  { %7449 = vmatprep.subr.bf16.mxu0 %v16243_v27  ;;  %v6485_v27 = vld [vmem:[%s14384_s13 + $0x28] sm:$0xff] }
 0x8a6   :  { %7451 = vmatpush1.bf16.msra.mxu0 %v7450_v20  ;;  %v6532_v35 = vpop.permute.xlu1 %6531  ;;  %v6547_v59 = vpop.permute.xlu0 %6546 }
 0x8a9   :  { %6688 = vmatmul.mubr.f32.vlgmr.msra.gmra.mrb[14].mxu0 %v6480_v17 }
 0x8aa   :  { %7043 = vmatprep.mubr.msk.f32.mxu0 %vm4761_vm12, %v6483_v24  ;;  %v6542_v25 = vpop.permute.xlu1 %6541  ;;  %v6557_v20 = vpop.permute.xlu0 %6556 }
 0x8ad   :  { %6693 = vmatmul.mubr.f32.gmra.mrb[16].mxu0 %v6482_v16 }
 0x8ae   :  { %7044 = vmatprep.mubr.msk.f32.mxu0 %vm4761_vm12, %v6485_v27  ;;  %v6552_v11 = vpop.permute.xlu1 %6551 }
 0x8b1   :  { %6698 = vmatmul.mubr.f32.gmra.mrb[18].mxu0 %v6484_v41 }
 0x8b2   :  { %7045 = vmatprep.mubr.msk.f32.mxu0 %vm4761_vm12, %v6487_v5 }
 0x8b5   :  { %6703 = vmatmul.mubr.f32.gmra.mrb[20].mxu0 %v6486_v31 }
 0x8b6   :  { %7046 = vmatprep.mubr.msk.f32.mxu0 %vm4761_vm12, %v6489_v47 }
 0x8b9   :  { %6708 = vmatmul.mubr.f32.gmra.mrb[22].mxu0 %v6488_v2  ;;  %v6562_v2 = vpop.permute.xlu1 %6561 }
 0x8ba   :  { %7047 = vmatprep.mubr.msk.f32.mxu0 %vm4761_vm12, %v6491_v54 }
 0x8bd   :  { %6713 = vmatmul.mubr.f32.gmra.mrb[24].mxu0 %v6490_v21  ;;  %v6567_v21 = vpop.permute.xlu0 %6566 }
 0x8be   :  { %7048 = vmatprep.mubr.msk.f32.mxu0 %vm4761_vm12, %v6493_v53 }
 0x8c1   :  { %6718 = vmatmul.mubr.f32.gmra.mrb[26].mxu0 %v6492_v46 }
 0x8c2   :  { %7049 = vmatprep.mubr.msk.f32.mxu0 %vm4761_vm12, %v6495_v52 }
 0x8c5   :  { %6723 = vmatmul.mubr.f32.gmra.mrb[28].mxu0 %v6494_v19 }
 0x8c6   :  { %7050 = vmatprep.mubr.msk.f32.mxu0 %vm4761_vm12, %v6497_v6 }
 0x8c9   :  { %6728 = vmatmul.mubr.f32.gmra.mrb[30].mxu0 %v6496_v61 }
 0x8ca   :  { %7051 = vmatprep.mubr.msk.f32.mxu0 %vm4761_vm12, %v6499_v23 }
 0x8cd   :  { %6733 = vmatmul.mubr.f32.gmra.mrb[32].mxu0 %v6498_v30 }
 0x8ce   :  { %7052 = vmatprep.mubr.msk.f32.mxu0 %vm4761_vm12, %v6501_v4  ;;  %v6572_v4 = vpop.permute.xlu1 %6571 }
 0x8d1   :  { %6738 = vmatmul.mubr.f32.gmra.mrb[34].mxu0 %v6500_v57 }
 0x8d2   :  { %7053 = vmatprep.mubr.msk.f32.mxu0 %vm4761_vm12, %v6503_v29  ;;  %v6577_v29 = vpop.permute.xlu0 %6576 }
 0x8d5   :  { %6743 = vmatmul.mubr.f32.gmra.mrb[36].mxu0 %v6502_v56 }
 0x8d6   :  { %7054 = vmatprep.mubr.msk.f32.mxu0 %vm4761_vm12, %v6505_v37 }
 0x8d9   :  { %6748 = vmatmul.mubr.f32.gmra.mrb[38].mxu0 %v6504_v26 }
 0x8da   :  { %7265 = vmatprep.mubr.msk.f32.mxu0 %vm6780_vm0, %v6766_v12 }
 0x97c   :  { %v6689_v50 = vpop.f32.mrb[14].mxu0 }
 0x97d   :  { %v6691_v13 = vpop.f32.mrb[15].mxu0  ;;  %v6690_v43 = vadd.f32 %v6689_v50, %v6522_v63  ;;  %v6582_v50 = vpop.permute.xlu1 %6581 }
 0x97f   :  { %v6753_v28 = vmax.f32 %v6690_v43, 0.0 }
 0x980   :  { %v6694_v7 = vpop.f32.mrb[16].mxu0 }
 0x981   :  { %v6695_v18 = vadd.f32 %v6694_v7, %v6527_v15  ;;  %v6696_v58 = vpop.f32.mrb[17].mxu0 }
 0x982   :  { %v6767_v58 = vld [vmem:[%s14386_s15 + $0x8] sm:$0x3] }
 0x983   :  { %v6754_v9 = vmax.f32 %v6695_v18, 0.0 }
 0x984   :  { %v6699_v49 = vpop.f32.mrb[18].mxu0 }
 0x985   :  { %v7452_v8 = vpack.c.bf16 %v6754_v9, %v6753_v28  ;;  %v6701_v60 = vpop.f32.mrb[19].mxu0  ;;  %v6700_v38 = vadd.f32 %v6699_v49, %v6532_v35  ;;  %v6778_v28 = vpop.permute.xlu1 %6777 }
 0x986   :  { %v6773_v49 = vpop.permute.xlu0 %6772 }
 0x987   :  { %7453 = vmatprep.subr.bf16.mxu0 %v7452_v8  ;;  %v6755_v22 = vmax.f32 %v6700_v38, 0.0 }
 0x988   :  { %v6704_v40 = vpop.f32.mrb[20].mxu0  ;;  %7455 = vmatpush3.bf16.msra.mxu0 %v7452_v8 }
 0x989   :  { %v6705_v51 = vadd.f32 %v6704_v40, %v6537_v62  ;;  %v6706_v34 = vpop.f32.mrb[21].mxu0 }
 0x98b   :  { %v6756_v3 = vmax.f32 %v6705_v51, 0.0 }
 0x98c   :  { %v6709_v14 = vpop.f32.mrb[22].mxu0 }
 0x98d   :  { %v7456_v33 = vpack.c.bf16 %v6756_v3, %v6755_v22  ;;  %v6711_v48 = vpop.f32.mrb[23].mxu0  ;;  %v6710_v0 = vadd.f32 %v6709_v14, %v6542_v25 }
 0x98f   :  { %7457 = vmatprep.subr.bf16.mxu0 %v7456_v33  ;;  %v6757_v1 = vmax.f32 %v6710_v0, 0.0 }
 0x990   :  { %v6714_v10 = vpop.f32.mrb[24].mxu0  ;;  %7459 = vmatpush3.bf16.msra.mxu0 %v7456_v33 }
 0x991   :  { %v6715_v44 = vadd.f32 %v6714_v10, %v6547_v59  ;;  %v6716_v39 = vpop.f32.mrb[25].mxu0 }
 0x993   :  { %v6758_v32 = vmax.f32 %v6715_v44, 0.0 }
 0x994   :  { %v6719_v36 = vpop.f32.mrb[26].mxu0 }
 0x995   :  { %v7460_v42 = vpack.c.bf16 %v6758_v32, %v6757_v1  ;;  %v6721_v55 = vpop.f32.mrb[27].mxu0  ;;  %v6720_v45 = vadd.f32 %v6719_v36, %v6552_v11 }
 0x997   :  { %7461 = vmatprep.subr.bf16.mxu0 %v7460_v42  ;;  %v6759_v27 = vmax.f32 %v6720_v45, 0.0 }
 0x998   :  { %v6724_v17 = vpop.f32.mrb[28].mxu0  ;;  %7463 = vmatpush3.bf16.msra.mxu0 %v7460_v42 }
 0x999   :  { %v6725_v24 = vadd.f32 %v6724_v17, %v6557_v20  ;;  %v6726_v16 = vpop.f32.mrb[29].mxu0 }
 0x99b   :  { %v6760_v41 = vmax.f32 %v6725_v24, 0.0 }
 0x99c   :  { %v6729_v5 = vpop.f32.mrb[30].mxu0 }
 0x99d   :  { %v7464_v31 = vpack.c.bf16 %v6760_v41, %v6759_v27  ;;  %v6731_v47 = vpop.f32.mrb[31].mxu0  ;;  %v6730_v54 = vadd.f32 %v6729_v5, %v6562_v2 }
 0x99f   :  { %7465 = vmatprep.subr.bf16.mxu0 %v7464_v31  ;;  %v6761_v19 = vmax.f32 %v6730_v54, 0.0 }
 0x9a0   :  { %v6734_v53 = vpop.f32.mrb[32].mxu0  ;;  %7467 = vmatpush3.bf16.msra.mxu0 %v7464_v31 }
 0x9a1   :  { %v6735_v46 = vadd.f32 %v6734_v53, %v6567_v21  ;;  %v6736_v52 = vpop.f32.mrb[33].mxu0 }
 0x9a3   :  { %v6762_v6 = vmax.f32 %v6735_v46, 0.0 }
 0x9a4   :  { %v6739_v61 = vpop.f32.mrb[34].mxu0 }
 0x9a5   :  { %v7468_v23 = vpack.c.bf16 %v6762_v6, %v6761_v19  ;;  %v6741_v30 = vpop.f32.mrb[35].mxu0  ;;  %v6740_v57 = vadd.f32 %v6739_v61, %v6572_v4 }
 0x9a7   :  { %7469 = vmatprep.subr.bf16.mxu0 %v7468_v23  ;;  %v6763_v12 = vmax.f32 %v6740_v57, 0.0 }
 0x9a8   :  { %v6744_v56 = vpop.f32.mrb[36].mxu0  ;;  %7471 = vmatpush3.bf16.msra.mxu0 %v7468_v23 }
 0x9a9   :  { %v6745_v37 = vadd.f32 %v6744_v56, %v6577_v29  ;;  %v6746_v26 = vpop.f32.mrb[37].mxu0 }
 0x9ab   :  { %v6764_v63 = vmax.f32 %v6745_v37, 0.0 }
 0x9ac   :  { %v6749_v13 = vpop.f32.mrb[38].mxu0 }
 0x9ad   :  { %v7472_v43 = vpack.c.bf16 %v6764_v63, %v6763_v12  ;;  %v6750_v15 = vadd.f32 %v6749_v13, %v6582_v50  ;;  %v6751_v7 = vpop.f32.mrb[39].mxu0 }
 0x9af   :  { %v6765_v18 = vmax.f32 %v6750_v15, 0.0  ;;  %7473 = vmatprep.subr.bf16.mxu0 %v7472_v43 }
 0x9b0   :  { %7475 = vmatpush3.bf16.msra.mxu0 %v7472_v43 }
 0x9b1   :  { %7263 = vmatprep.subr.msk.mxu0 %vm3694_vm7, %v6765_v18 }
 0x9b4   :  { %7264 = vmatpush3.msk.msra.mxu0 %vm3694_vm7, %v6765_v18 }
 0x9b5   :  { %7266 = vmatmul.mubr.msk.f32.vlgmr.msra.gmra.mrb[40].mxu0 %vm6780_vm0, %v6767_v58 }
 0xa88   :  { %v7267_v9 = vpop.f32.mrb[40].mxu0 }
 0xa89   :  { %v6862_v8 = vadd.f32 %v7267_v9, %v6778_v28  ;;  %v6856_v60 = vpop.f32.mrb[41].mxu0 }
 0xa8a   :  { %v6857_v35 = vadd.f32 %v6856_v60, %v6773_v49 }
 0xa8b   :  { %6868 = vst.msk [vmem:[%s14388_s17 + $0x8] sm:$0x3] %vm6867_vm3, %v6862_v8 }
 0xa8c   :  { %6866 = vst.msk [vmem:[%s14388_s17] sm:$0xff] %vm6865_vm4, %v6857_v35 }
 0xa8d   :  { %6873 = vsyncpa [#allocation3], 1 }
 0xa8e   :  { %6874 = vsyncpa [#allocation5], 1 }

</bundles_post_ra>
